<compile_context>
chip_gen: v7x
topology: tpu7x:2x2x1
jax: 0.10.0
libtpu: 0.0.40
codegen_flags: <defaults>
</compile_context>

<pallas_src>
import numpy as np
import jax
import jax.numpy as jnp
from jax.experimental import pallas as pl
from jax.experimental.pallas import tpu as pltpu

B = 8
C_IN = 64
L_IN = 105
C1 = 128            # conv1 out channels
C2 = 256            # conv2 out channels
NT = 13             # octet groups along width (8*13 = 104 positions + x[104] tail)
P2 = 12             # pooled length after conv2/pool2
FLAT = C2 * P2      # 3072
F1 = 1536           # layer_line1 out features (256*6)
NUM_CLASSES = 10
NCLS_PAD = 128      # lane-padded logits
DROPOUT_P = 0.6     # F.dropout(x, p=0.6), functional default training=True
KEEP = 1.0 - DROPOUT_P
TN = 384            # linear1 output-column tile
NJ = F1 // TN       # 1-D grid size (4)


def _msscaeaa_kernel(x_oct_ref, x_nxt_ref, a_ref, w1t_ref, b1_ref,
                     v_ref, b2_ref, m1e_ref, m1o_ref, m2_ref,
                     wl1_ref, bl1_ref, wl2_ref, bl2_ref,
                     out_ref, x8_ref, h2_s):
    j = pl.program_id(0)

    # ----- conv/pool/dropout stack: runs once, result cached in VMEM scratch.
    @pl.when(j == 0)
    def _conv_stack():
        # conv1 (stride 2, k=3) fused with pool1.  Rows of x_oct are
        # (t*B+b) -> [x[b,8t+0] .. x[b,8t+7]]; one (104,512)@(512,512) matmul
        # yields c1[4t+r], r=0..3, in four 128-lane column blocks.
        c1 = jnp.dot(x_oct_ref[...], a_ref[...],
                     preferred_element_type=jnp.float32)            # (104, 512)
        c1_tail = jnp.dot(x_nxt_ref[...], w1t_ref[...],
                          preferred_element_type=jnp.float32)       # (104, 128)
        b1 = b1_ref[...]
        # pool pairs: h1[2t] = max(c1[4t], c1[4t+1]); h1[2t+1] = max(c1[4t+2], c1[4t+3])
        h1e = jnp.maximum(c1[:, 0:128], c1[:, 128:256]) + b1
        h1o = jnp.maximum(c1[:, 256:384], c1[:, 384:512] + c1_tail) + b1
        h1e = m1e_ref[...] * jnp.maximum(h1e, 0.0)                  # fc1 ReLU + dropout
        h1o = m1o_ref[...] * jnp.maximum(h1o, 0.0)

        # conv2 (stride 1, k=3) fused with pool2: h1 position p lives at row
        # t*8+b of h1e (p=2t) / h1o (p=2t+1); window slices are contiguous.
        v0, v1, v2 = v_ref[0], v_ref[1], v_ref[2]                   # (128, 256)
        e0, e1 = h1e[0:96], h1e[8:104]
        o0, o1 = h1o[0:96], h1o[8:104]
        c2e = (jnp.dot(e0, v0, preferred_element_type=jnp.float32)
               + jnp.dot(o0, v1, preferred_element_type=jnp.float32)
               + jnp.dot(e1, v2, preferred_element_type=jnp.float32))
        c2o = (jnp.dot(o0, v0, preferred_element_type=jnp.float32)
               + jnp.dot(e1, v1, preferred_element_type=jnp.float32)
               + jnp.dot(o1, v2, preferred_element_type=jnp.float32))
        h2 = m2_ref[...] * jnp.maximum(
            jnp.maximum(c2e, c2o) + b2_ref[...], 0.0)               # (96, 256), rows t*8+b

        # Flatten to (B, 3072) with column index t*256 + c; the channel-major
        # PyTorch flatten x6.view(8, 256*12) is folded into wl1 by the wrapper.
        h2b = h2.astype(jnp.bfloat16)
        for t in range(P2):
            h2_s[:, C2 * t:C2 * (t + 1)] = h2b[8 * t:8 * (t + 1), :]
        out_ref[...] = jnp.zeros_like(out_ref)

    # ----- layer_line1 tile (bf16 weight stream) + fc3 ReLU.
    x8_t = jnp.dot(h2_s[...], wl1_ref[...],
                   preferred_element_type=jnp.float32) + bl1_ref[...]
    x8_t = jnp.maximum(x8_t, 0.0)
    x8_ref[...] = x8_t

    # ----- layer_line2 partial product, accumulated over the wl1 column tiles.
    out_ref[...] += jnp.dot(x8_t, wl2_ref[...],
                            preferred_element_type=jnp.float32)

    @pl.when(j == NJ - 1)
    def _finalize():
        out_ref[...] += bl2_ref[...]


def _init_params(key, num_classes=NUM_CLASSES):
    ks = jax.random.split(key, 8)

    def u(k, shape, fan_in):
        bound = float(1.0 / np.sqrt(fan_in))
        return jax.random.uniform(k, shape, jnp.float32, -bound, bound)

    return {
        'conv1_w': u(ks[0], (C1, C_IN, 3), C_IN * 3),
        'conv1_b': u(ks[1], (C1,), C_IN * 3),
        'conv2_w': u(ks[2], (C2, C1, 3), C1 * 3),
        'conv2_b': u(ks[3], (C2,), C1 * 3),
        'lin1_w':  u(ks[4], (F1, FLAT), FLAT),
        'lin1_b':  u(ks[5], (F1,), FLAT),
        'lin2_w':  u(ks[6], (num_classes, F1), F1),
        'lin2_b':  u(ks[7], (num_classes,), F1),
    }


def _pack_params(p):
    num_classes = p['lin2_w'].shape[0]
    # conv1 taps as (64, 128) matrices: Wk[i, o] = conv1_w[o, i, k]
    w = [jnp.transpose(p['conv1_w'][:, :, k]) for k in range(3)]
    z = jnp.zeros((C_IN, C1), jnp.float32)
    a0 = jnp.concatenate([w[0], w[1], w[2], z, z, z, z, z], axis=0)   # c1[4t+0]
    a1 = jnp.concatenate([z, z, w[0], w[1], w[2], z, z, z], axis=0)   # c1[4t+1]
    a2 = jnp.concatenate([z, z, z, z, w[0], w[1], w[2], z], axis=0)   # c1[4t+2]
    a3 = jnp.concatenate([z, z, z, z, z, z, w[0], w[1]], axis=0)      # c1[4t+3] (x[8t+8]*W2 via tail)
    a_cat = jnp.concatenate([a0, a1, a2, a3], axis=1)                 # (512, 512)
    w1_tail = w[2]                                                    # (64, 128)
    b1 = p['conv1_b'].reshape(1, C1)
    # conv2 taps: Vk[i, o] = conv2_w[o, i, k]
    v_pack = jnp.stack([jnp.transpose(p['conv2_w'][:, :, k]) for k in range(3)])  # (3,128,256)
    b2 = p['conv2_b'].reshape(1, C2)
    # layer_line1: y = x7 @ W.T with x7[j], j = c*12 + l (torch flatten of (256,12)).
    # Re-order rows to j' = l*256 + c (the kernel's flatten order), stream in bf16.
    wl1 = jnp.transpose(p['lin1_w'])                                  # (3072, 1536)
    wl1 = jnp.transpose(wl1.reshape(C2, P2, F1), (1, 0, 2)).reshape(FLAT, F1)
    wl1 = wl1.astype(jnp.bfloat16)
    bl1 = p['lin1_b'].reshape(1, F1)
    # layer_line2, zero-padded to a full 128-lane output (sliced in the wrapper).
    wl2 = jnp.zeros((F1, NCLS_PAD), jnp.float32).at[:, :num_classes].set(
        jnp.transpose(p['lin2_w']))
    bl2 = jnp.zeros((1, NCLS_PAD), jnp.float32).at[0, :num_classes].set(p['lin2_b'])
    return a_cat, w1_tail, b1, v_pack, b2, wl1, bl1, wl2, bl2


def _pack_input(x_nwc):
    # octet rows: x_oct[t*B + b, s*64 + c] = x[b, 8t+s, c]
    x_oct = x_nwc[:, :8 * NT, :].reshape(B, NT, 8, C_IN)
    x_oct = jnp.transpose(x_oct, (1, 0, 2, 3)).reshape(NT * B, 8 * C_IN)   # (104, 512)
    # next-octet first element: x_nxt[t*B + b, c] = x[b, 8t+8, c]
    x_nxt = jnp.transpose(x_nwc[:, 8::8, :], (1, 0, 2)).reshape(NT * B, C_IN)  # (104, 64)
    return x_oct, x_nxt


def _dropout_masks(key):
    # Pre-scaled F.dropout masks (training-mode semantics, p = 0.6).
    k1, k2, k3 = jax.random.split(key, 3)
    scale = 1.0 / KEEP
    m1e = jax.random.bernoulli(k1, KEEP, (NT * B, C1)).astype(jnp.float32) * scale
    m1o = jax.random.bernoulli(k2, KEEP, (NT * B, C1)).astype(jnp.float32) * scale
    m2 = jax.random.bernoulli(k3, KEEP, (P2 * B, C2)).astype(jnp.float32) * scale
    return m1e, m1o, m2


def msscaeaa_forward(aaf_out1, aaf_out2, aaf_out3, aaf_out4, weight, params, dropout_key):
    """Pallas implementation of MSSCAEAA.forward.

    As in the reference forward, only AAF_out3 feeds the conv/linear stack
    (x01 / x02 / x04 are dead values) and `weight` is returned unchanged.
    """
    # TODO(synk): SC_AE_AA_model is an external submodule that was not provided;
    # its five outputs are accepted here as inputs instead of being computed.
    del aaf_out1, aaf_out2, aaf_out4
    num_classes = params['lin2_w'].shape[0]
    b, c, _, w = aaf_out3.shape
    assert (b, c, w) == (B, C_IN, L_IN)
    x03 = aaf_out3.reshape(b, c, w)                 # .view(B, C, W)  (NCW)
    x_nwc = jnp.transpose(x03, (0, 2, 1))           # NCW -> NWC (channels on lanes)
    x_oct, x_nxt = _pack_input(x_nwc)
    a_cat, w1_tail, b1, v_pack, b2, wl1, bl1, wl2, bl2 = _pack_params(params)
    m1e, m1o, m2 = _dropout_masks(dropout_key)

    def const(shape):
        return pl.BlockSpec(shape, lambda j, _s=shape: tuple(0 for _ in _s))

    grid_spec = pltpu.PrefetchScalarGridSpec(
        num_scalar_prefetch=0,
        grid=(NJ,),
        in_specs=[
            const((NT * B, 8 * C_IN)),               # x_oct
            const((NT * B, C_IN)),                   # x_nxt
            const((8 * C_IN, 4 * C1)),               # a_cat
            const((C_IN, C1)),                       # w1_tail
            const((1, C1)),                          # b1
            const((3, C1, C2)),                      # v_pack
            const((1, C2)),                          # b2
            const((NT * B, C1)),                     # m1e
            const((NT * B, C1)),                     # m1o
            const((P2 * B, C2)),                     # m2
            pl.BlockSpec((FLAT, TN), lambda j: (0, j)),       # wl1 (bf16, streamed)
            pl.BlockSpec((1, TN), lambda j: (0, j)),          # bl1
            pl.BlockSpec((TN, NCLS_PAD), lambda j: (j, 0)),   # wl2
            const((1, NCLS_PAD)),                    # bl2
        ],
        out_specs=(
            pl.BlockSpec((B, NCLS_PAD), lambda j: (0, 0)),    # logits accumulator (resident)
            pl.BlockSpec((B, TN), lambda j: (0, j)),          # x8 tiles
        ),
        scratch_shapes=[pltpu.VMEM((B, FLAT), jnp.bfloat16)],
    )

    out_pad, x8 = pl.pallas_call(
        _msscaeaa_kernel,
        out_shape=(jax.ShapeDtypeStruct((B, NCLS_PAD), jnp.float32),
                   jax.ShapeDtypeStruct((B, F1), jnp.float32)),
        grid_spec=grid_spec,
        compiler_params=pltpu.CompilerParams(
            # Logits accumulate across the wl1 column tiles -> reduction axis.
            dimension_semantics=("arbitrary",),
            vmem_limit_bytes=32 * 1024 * 1024),
    )(x_oct, x_nxt, a_cat, w1_tail, b1, v_pack, b2, m1e, m1o, m2,
      wl1, bl1, wl2, bl2)
    return out_pad[:, :num_classes], x8, weight


if __name__ == "__main__":
    key = jax.random.PRNGKey(0)
    k_x, k_w, k_p, k_d = jax.random.split(key, 4)

    # Stand-in SC_AE_AA outputs (see TODO above): four (B, 64, 1, 105) maps + weight.
    aaf3 = jax.random.normal(k_x, (B, C_IN, 1, L_IN), jnp.float32)
    aaf1 = aaf2 = aaf4 = aaf3
    attn_weight = jax.nn.softmax(jax.random.normal(k_w, (B, 4), jnp.float32), axis=-1)
    params = _init_params(k_p)

    out, x8, w_out = msscaeaa_forward(aaf1, aaf2, aaf3, aaf4, attn_weight, params, k_d)
    jax.block_until_ready((out, x8, w_out))

    assert out.shape == (B, NUM_CLASSES), out.shape
    assert x8.shape == (B, F1), x8.shape
    assert bool(jnp.all(jnp.isfinite(out))) and bool(jnp.all(jnp.isfinite(x8)))
    print("KERNEL_OK")
</pallas_src>

<mosaic_0001>
module attributes {stable_mosaic.version = 11 : i64} {
  func.func @_msscaeaa_kernel(%arg0: i32, %arg1: memref<104x512xf32, #tpu.memory_space<vmem>>, %arg2: memref<104x64xf32, #tpu.memory_space<vmem>>, %arg3: memref<512x512xf32, #tpu.memory_space<vmem>>, %arg4: memref<64x128xf32, #tpu.memory_space<vmem>>, %arg5: memref<1x128xf32, #tpu.memory_space<vmem>>, %arg6: memref<3x128x256xf32, #tpu.memory_space<vmem>>, %arg7: memref<1x256xf32, #tpu.memory_space<vmem>>, %arg8: memref<104x128xf32, #tpu.memory_space<vmem>>, %arg9: memref<104x128xf32, #tpu.memory_space<vmem>>, %arg10: memref<96x256xf32, #tpu.memory_space<vmem>>, %arg11: memref<3072x384xbf16, #tpu.memory_space<vmem>>, %arg12: memref<1x384xf32, #tpu.memory_space<vmem>>, %arg13: memref<384x128xf32, #tpu.memory_space<vmem>>, %arg14: memref<1x128xf32, #tpu.memory_space<vmem>>, %arg15: memref<8x128xf32, #tpu.memory_space<vmem>>, %arg16: memref<8x384xf32, #tpu.memory_space<vmem>>, %arg17: memref<8x3072xbf16, #tpu.memory_space<vmem>>) attributes {dimension_semantics = [#tpu.dimension_semantics<arbitrary>], iteration_bounds = array<i64: 4>, scalar_prefetch = 0 : i64, scratch_operands = 1 : i64, tpu.core_type = #tpu.core_type<tc>, window_params = [{pipeline_mode = #tpu.pipeline_mode<synchronous>, transform_indices = @transform_0, window_bounds = array<i64: 104, 512>}, {pipeline_mode = #tpu.pipeline_mode<synchronous>, transform_indices = @transform_1, window_bounds = array<i64: 104, 64>}, {pipeline_mode = #tpu.pipeline_mode<synchronous>, transform_indices = @transform_2, window_bounds = array<i64: 512, 512>}, {pipeline_mode = #tpu.pipeline_mode<synchronous>, transform_indices = @transform_3, window_bounds = array<i64: 64, 128>}, {pipeline_mode = #tpu.pipeline_mode<synchronous>, transform_indices = @transform_4, window_bounds = array<i64: 1, 128>}, {pipeline_mode = #tpu.pipeline_mode<synchronous>, transform_indices = @transform_5, window_bounds = array<i64: 3, 128, 256>}, {pipeline_mode = #tpu.pipeline_mode<synchronous>, transform_indices = @transform_6, window_bounds = array<i64: 1, 256>}, {pipeline_mode = #tpu.pipeline_mode<synchronous>, transform_indices = @transform_7, window_bounds = array<i64: 104, 128>}, {pipeline_mode = #tpu.pipeline_mode<synchronous>, transform_indices = @transform_8, window_bounds = array<i64: 104, 128>}, {pipeline_mode = #tpu.pipeline_mode<synchronous>, transform_indices = @transform_9, window_bounds = array<i64: 96, 256>}, {transform_indices = @transform_10, window_bounds = array<i64: 3072, 384>}, {transform_indices = @transform_11, window_bounds = array<i64: 1, 384>}, {transform_indices = @transform_12, window_bounds = array<i64: 384, 128>}, {pipeline_mode = #tpu.pipeline_mode<synchronous>, transform_indices = @transform_13, window_bounds = array<i64: 1, 128>}, {pipeline_mode = #tpu.pipeline_mode<synchronous>, transform_indices = @transform_14, window_bounds = array<i64: 8, 128>}, {transform_indices = @transform_15, window_bounds = array<i64: 8, 384>}]} {
    %c0_i32 = arith.constant 0 : i32
    %0 = arith.cmpi eq, %arg0, %c0_i32 : i32
    %1 = arith.extui %0 : i1 to i32
    %c0_i32_0 = arith.constant 0 : i32
    %2 = arith.cmpi ne, %1, %c0_i32_0 : i32
    scf.if %2 {
      %c0_17 = arith.constant 0 : index
      %c0_18 = arith.constant 0 : index
      %20 = vector.load %arg1[%c0_17, %c0_18] : memref<104x512xf32, #tpu.memory_space<vmem>>, vector<104x512xf32>
      %c0_19 = arith.constant 0 : index
      %c0_20 = arith.constant 0 : index
      %21 = vector.load %arg3[%c0_19, %c0_20] : memref<512x512xf32, #tpu.memory_space<vmem>>, vector<512x512xf32>
      %cst_21 = arith.constant dense<0.000000e+00> : vector<104x512xf32>
      %22 = tpu.matmul %20, %21, %cst_21 {dimension_numbers = #tpu.dot_dimension_numbers<[1], [0], [0], [1], [0, 0, 1, 1], [], []>} : vector<104x512xf32>, vector<512x512xf32>, vector<104x512xf32> -> vector<104x512xf32>
      %c0_22 = arith.constant 0 : index
      %c0_23 = arith.constant 0 : index
      %23 = vector.load %arg2[%c0_22, %c0_23] : memref<104x64xf32, #tpu.memory_space<vmem>>, vector<104x64xf32>
      %c0_24 = arith.constant 0 : index
      %c0_25 = arith.constant 0 : index
      %24 = vector.load %arg4[%c0_24, %c0_25] : memref<64x128xf32, #tpu.memory_space<vmem>>, vector<64x128xf32>
      %cst_26 = arith.constant dense<0.000000e+00> : vector<104x128xf32>
      %25 = tpu.matmul %23, %24, %cst_26 {dimension_numbers = #tpu.dot_dimension_numbers<[1], [0], [0], [1], [0, 0, 1, 1], [], []>} : vector<104x64xf32>, vector<64x128xf32>, vector<104x128xf32> -> vector<104x128xf32>
      %c0_27 = arith.constant 0 : index
      %c0_28 = arith.constant 0 : index
      %26 = vector.load %arg5[%c0_27, %c0_28] : memref<1x128xf32, #tpu.memory_space<vmem>>, vector<1x128xf32>
      %27 = vector.extract_strided_slice %22 {offsets = [0, 0], sizes = [104, 128], strides = [1, 1]} : vector<104x512xf32> to vector<104x128xf32>
      %28 = vector.extract_strided_slice %22 {offsets = [0, 128], sizes = [104, 128], strides = [1, 1]} : vector<104x512xf32> to vector<104x128xf32>
      %29 = arith.maximumf %27, %28 : vector<104x128xf32>
      %30 = vector.broadcast %26 : vector<1x128xf32> to vector<104x128xf32>
      %31 = arith.addf %29, %30 : vector<104x128xf32>
      %32 = vector.extract_strided_slice %22 {offsets = [0, 256], sizes = [104, 128], strides = [1, 1]} : vector<104x512xf32> to vector<104x128xf32>
      %33 = vector.extract_strided_slice %22 {offsets = [0, 384], sizes = [104, 128], strides = [1, 1]} : vector<104x512xf32> to vector<104x128xf32>
      %34 = arith.addf %33, %25 : vector<104x128xf32>
      %35 = arith.maximumf %32, %34 : vector<104x128xf32>
      %36 = vector.broadcast %26 : vector<1x128xf32> to vector<104x128xf32>
      %37 = arith.addf %35, %36 : vector<104x128xf32>
      %c0_29 = arith.constant 0 : index
      %c0_30 = arith.constant 0 : index
      %38 = vector.load %arg8[%c0_29, %c0_30] : memref<104x128xf32, #tpu.memory_space<vmem>>, vector<104x128xf32>
      %cst_31 = arith.constant 0.000000e+00 : f32
      %39 = vector.broadcast %cst_31 : f32 to vector<104x128xf32>
      %40 = arith.maximumf %31, %39 : vector<104x128xf32>
      %41 = arith.mulf %38, %40 : vector<104x128xf32>
      %c0_32 = arith.constant 0 : index
      %c0_33 = arith.constant 0 : index
      %42 = vector.load %arg9[%c0_32, %c0_33] : memref<104x128xf32, #tpu.memory_space<vmem>>, vector<104x128xf32>
      %cst_34 = arith.constant 0.000000e+00 : f32
      %43 = vector.broadcast %cst_34 : f32 to vector<104x128xf32>
      %44 = arith.maximumf %37, %43 : vector<104x128xf32>
      %45 = arith.mulf %42, %44 : vector<104x128xf32>
      %c0_35 = arith.constant 0 : index
      %c0_36 = arith.constant 0 : index
      %c0_37 = arith.constant 0 : index
      %46 = vector.load %arg6[%c0_35, %c0_36, %c0_37] : memref<3x128x256xf32, #tpu.memory_space<vmem>>, vector<1x128x256xf32>
      %47 = vector.shape_cast %46 : vector<1x128x256xf32> to vector<128x256xf32>
      %c1 = arith.constant 1 : index
      %c0_38 = arith.constant 0 : index
      %c0_39 = arith.constant 0 : index
      %48 = vector.load %arg6[%c1, %c0_38, %c0_39] : memref<3x128x256xf32, #tpu.memory_space<vmem>>, vector<1x128x256xf32>
      %49 = vector.shape_cast %48 : vector<1x128x256xf32> to vector<128x256xf32>
      %c2 = arith.constant 2 : index
      %c0_40 = arith.constant 0 : index
      %c0_41 = arith.constant 0 : index
      %50 = vector.load %arg6[%c2, %c0_40, %c0_41] : memref<3x128x256xf32, #tpu.memory_space<vmem>>, vector<1x128x256xf32>
      %51 = vector.shape_cast %50 : vector<1x128x256xf32> to vector<128x256xf32>
      %52 = vector.extract_strided_slice %41 {offsets = [0, 0], sizes = [96, 128], strides = [1, 1]} : vector<104x128xf32> to vector<96x128xf32>
      %53 = vector.extract_strided_slice %41 {offsets = [8, 0], sizes = [96, 128], strides = [1, 1]} : vector<104x128xf32> to vector<96x128xf32>
      %54 = vector.extract_strided_slice %45 {offsets = [0, 0], sizes = [96, 128], strides = [1, 1]} : vector<104x128xf32> to vector<96x128xf32>
      %55 = vector.extract_strided_slice %45 {offsets = [8, 0], sizes = [96, 128], strides = [1, 1]} : vector<104x128xf32> to vector<96x128xf32>
      %cst_42 = arith.constant dense<0.000000e+00> : vector<96x256xf32>
      %56 = tpu.matmul %52, %47, %cst_42 {dimension_numbers = #tpu.dot_dimension_numbers<[1], [0], [0], [1], [0, 0, 1, 1], [], []>} : vector<96x128xf32>, vector<128x256xf32>, vector<96x256xf32> -> vector<96x256xf32>
      %cst_43 = arith.constant dense<0.000000e+00> : vector<96x256xf32>
      %57 = tpu.matmul %54, %49, %cst_43 {dimension_numbers = #tpu.dot_dimension_numbers<[1], [0], [0], [1], [0, 0, 1, 1], [], []>} : vector<96x128xf32>, vector<128x256xf32>, vector<96x256xf32> -> vector<96x256xf32>
      %58 = arith.addf %56, %57 : vector<96x256xf32>
      %cst_44 = arith.constant dense<0.000000e+00> : vector<96x256xf32>
      %59 = tpu.matmul %53, %51, %cst_44 {dimension_numbers = #tpu.dot_dimension_numbers<[1], [0], [0], [1], [0, 0, 1, 1], [], []>} : vector<96x128xf32>, vector<128x256xf32>, vector<96x256xf32> -> vector<96x256xf32>
      %60 = arith.addf %58, %59 : vector<96x256xf32>
      %cst_45 = arith.constant dense<0.000000e+00> : vector<96x256xf32>
      %61 = tpu.matmul %54, %47, %cst_45 {dimension_numbers = #tpu.dot_dimension_numbers<[1], [0], [0], [1], [0, 0, 1, 1], [], []>} : vector<96x128xf32>, vector<128x256xf32>, vector<96x256xf32> -> vector<96x256xf32>
      %cst_46 = arith.constant dense<0.000000e+00> : vector<96x256xf32>
      %62 = tpu.matmul %53, %49, %cst_46 {dimension_numbers = #tpu.dot_dimension_numbers<[1], [0], [0], [1], [0, 0, 1, 1], [], []>} : vector<96x128xf32>, vector<128x256xf32>, vector<96x256xf32> -> vector<96x256xf32>
      %63 = arith.addf %61, %62 : vector<96x256xf32>
      %cst_47 = arith.constant dense<0.000000e+00> : vector<96x256xf32>
      %64 = tpu.matmul %55, %51, %cst_47 {dimension_numbers = #tpu.dot_dimension_numbers<[1], [0], [0], [1], [0, 0, 1, 1], [], []>} : vector<96x128xf32>, vector<128x256xf32>, vector<96x256xf32> -> vector<96x256xf32>
      %65 = arith.addf %63, %64 : vector<96x256xf32>
      %c0_48 = arith.constant 0 : index
      %c0_49 = arith.constant 0 : index
      %66 = vector.load %arg10[%c0_48, %c0_49] : memref<96x256xf32, #tpu.memory_space<vmem>>, vector<96x256xf32>
      %67 = arith.maximumf %60, %65 : vector<96x256xf32>
      %c0_50 = arith.constant 0 : index
      %c0_51 = arith.constant 0 : index
      %68 = vector.load %arg7[%c0_50, %c0_51] : memref<1x256xf32, #tpu.memory_space<vmem>>, vector<1x256xf32>
      %69 = vector.broadcast %68 : vector<1x256xf32> to vector<96x256xf32>
      %70 = arith.addf %67, %69 : vector<96x256xf32>
      %cst_52 = arith.constant 0.000000e+00 : f32
      %71 = vector.broadcast %cst_52 : f32 to vector<96x256xf32>
      %72 = arith.maximumf %70, %71 : vector<96x256xf32>
      %73 = arith.mulf %66, %72 : vector<96x256xf32>
      %74 = arith.truncf %73 : vector<96x256xf32> to vector<96x256xbf16>
      %75 = vector.extract_strided_slice %74 {offsets = [0, 0], sizes = [8, 256], strides = [1, 1]} : vector<96x256xbf16> to vector<8x256xbf16>
      %c0_53 = arith.constant 0 : index
      %c0_54 = arith.constant 0 : index
      %76 = vector.load %arg17[%c0_53, %c0_54] : memref<8x3072xbf16, #tpu.memory_space<vmem>>, vector<8x256xbf16>
      tpu.vector_store %arg17[%c0_53, %c0_54], %75 {strides = array<i32>} : memref<8x3072xbf16, #tpu.memory_space<vmem>>, vector<8x256xbf16>,
      %77 = vector.extract_strided_slice %74 {offsets = [8, 0], sizes = [8, 256], strides = [1, 1]} : vector<96x256xbf16> to vector<8x256xbf16>
      %c0_55 = arith.constant 0 : index
      %c256 = arith.constant 256 : index
      %78 = vector.load %arg17[%c0_55, %c256] : memref<8x3072xbf16, #tpu.memory_space<vmem>>, vector<8x256xbf16>
      tpu.vector_store %arg17[%c0_55, %c256], %77 {strides = array<i32>} : memref<8x3072xbf16, #tpu.memory_space<vmem>>, vector<8x256xbf16>,
      %79 = vector.extract_strided_slice %74 {offsets = [16, 0], sizes = [8, 256], strides = [1, 1]} : vector<96x256xbf16> to vector<8x256xbf16>
      %c0_56 = arith.constant 0 : index
      %c512 = arith.constant 512 : index
      %80 = vector.load %arg17[%c0_56, %c512] : memref<8x3072xbf16, #tpu.memory_space<vmem>>, vector<8x256xbf16>
      tpu.vector_store %arg17[%c0_56, %c512], %79 {strides = array<i32>} : memref<8x3072xbf16, #tpu.memory_space<vmem>>, vector<8x256xbf16>,
      %81 = vector.extract_strided_slice %74 {offsets = [24, 0], sizes = [8, 256], strides = [1, 1]} : vector<96x256xbf16> to vector<8x256xbf16>
      %c0_57 = arith.constant 0 : index
      %c768 = arith.constant 768 : index
      %82 = vector.load %arg17[%c0_57, %c768] : memref<8x3072xbf16, #tpu.memory_space<vmem>>, vector<8x256xbf16>
      tpu.vector_store %arg17[%c0_57, %c768], %81 {strides = array<i32>} : memref<8x3072xbf16, #tpu.memory_space<vmem>>, vector<8x256xbf16>,
      %83 = vector.extract_strided_slice %74 {offsets = [32, 0], sizes = [8, 256], strides = [1, 1]} : vector<96x256xbf16> to vector<8x256xbf16>
      %c0_58 = arith.constant 0 : index
      %c1024 = arith.constant 1024 : index
      %84 = vector.load %arg17[%c0_58, %c1024] : memref<8x3072xbf16, #tpu.memory_space<vmem>>, vector<8x256xbf16>
      tpu.vector_store %arg17[%c0_58, %c1024], %83 {strides = array<i32>} : memref<8x3072xbf16, #tpu.memory_space<vmem>>, vector<8x256xbf16>,
      %85 = vector.extract_strided_slice %74 {offsets = [40, 0], sizes = [8, 256], strides = [1, 1]} : vector<96x256xbf16> to vector<8x256xbf16>
      %c0_59 = arith.constant 0 : index
      %c1280 = arith.constant 1280 : index
      %86 = vector.load %arg17[%c0_59, %c1280] : memref<8x3072xbf16, #tpu.memory_space<vmem>>, vector<8x256xbf16>
      tpu.vector_store %arg17[%c0_59, %c1280], %85 {strides = array<i32>} : memref<8x3072xbf16, #tpu.memory_space<vmem>>, vector<8x256xbf16>,
      %87 = vector.extract_strided_slice %74 {offsets = [48, 0], sizes = [8, 256], strides = [1, 1]} : vector<96x256xbf16> to vector<8x256xbf16>
      %c0_60 = arith.constant 0 : index
      %c1536 = arith.constant 1536 : index
      %88 = vector.load %arg17[%c0_60, %c1536] : memref<8x3072xbf16, #tpu.memory_space<vmem>>, vector<8x256xbf16>
      tpu.vector_store %arg17[%c0_60, %c1536], %87 {strides = array<i32>} : memref<8x3072xbf16, #tpu.memory_space<vmem>>, vector<8x256xbf16>,
      %89 = vector.extract_strided_slice %74 {offsets = [56, 0], sizes = [8, 256], strides = [1, 1]} : vector<96x256xbf16> to vector<8x256xbf16>
      %c0_61 = arith.constant 0 : index
      %c1792 = arith.constant 1792 : index
      %90 = vector.load %arg17[%c0_61, %c1792] : memref<8x3072xbf16, #tpu.memory_space<vmem>>, vector<8x256xbf16>
      tpu.vector_store %arg17[%c0_61, %c1792], %89 {strides = array<i32>} : memref<8x3072xbf16, #tpu.memory_space<vmem>>, vector<8x256xbf16>,
      %91 = vector.extract_strided_slice %74 {offsets = [64, 0], sizes = [8, 256], strides = [1, 1]} : vector<96x256xbf16> to vector<8x256xbf16>
      %c0_62 = arith.constant 0 : index
      %c2048 = arith.constant 2048 : index
      %92 = vector.load %arg17[%c0_62, %c2048] : memref<8x3072xbf16, #tpu.memory_space<vmem>>, vector<8x256xbf16>
      tpu.vector_store %arg17[%c0_62, %c2048], %91 {strides = array<i32>} : memref<8x3072xbf16, #tpu.memory_space<vmem>>, vector<8x256xbf16>,
      %93 = vector.extract_strided_slice %74 {offsets = [72, 0], sizes = [8, 256], strides = [1, 1]} : vector<96x256xbf16> to vector<8x256xbf16>
      %c0_63 = arith.constant 0 : index
      %c2304 = arith.constant 2304 : index
      %94 = vector.load %arg17[%c0_63, %c2304] : memref<8x3072xbf16, #tpu.memory_space<vmem>>, vector<8x256xbf16>
      tpu.vector_store %arg17[%c0_63, %c2304], %93 {strides = array<i32>} : memref<8x3072xbf16, #tpu.memory_space<vmem>>, vector<8x256xbf16>,
      %95 = vector.extract_strided_slice %74 {offsets = [80, 0], sizes = [8, 256], strides = [1, 1]} : vector<96x256xbf16> to vector<8x256xbf16>
      %c0_64 = arith.constant 0 : index
      %c2560 = arith.constant 2560 : index
      %96 = vector.load %arg17[%c0_64, %c2560] : memref<8x3072xbf16, #tpu.memory_space<vmem>>, vector<8x256xbf16>
      tpu.vector_store %arg17[%c0_64, %c2560], %95 {strides = array<i32>} : memref<8x3072xbf16, #tpu.memory_space<vmem>>, vector<8x256xbf16>,
      %97 = vector.extract_strided_slice %74 {offsets = [88, 0], sizes = [8, 256], strides = [1, 1]} : vector<96x256xbf16> to vector<8x256xbf16>
      %c0_65 = arith.constant 0 : index
      %c2816 = arith.constant 2816 : index
      %98 = vector.load %arg17[%c0_65, %c2816] : memref<8x3072xbf16, #tpu.memory_space<vmem>>, vector<8x256xbf16>
      tpu.vector_store %arg17[%c0_65, %c2816], %97 {strides = array<i32>} : memref<8x3072xbf16, #tpu.memory_space<vmem>>, vector<8x256xbf16>,
      %cst_66 = arith.constant 0.000000e+00 : f32
      %99 = vector.broadcast %cst_66 : f32 to vector<8x128xf32>
      %c0_67 = arith.constant 0 : index
      %c0_68 = arith.constant 0 : index
      %100 = vector.load %arg15[%c0_67, %c0_68] : memref<8x128xf32, #tpu.memory_space<vmem>>, vector<8x128xf32>
      tpu.vector_store %arg15[%c0_67, %c0_68], %99 {strides = array<i32>} : memref<8x128xf32, #tpu.memory_space<vmem>>, vector<8x128xf32>,
    } else {
    }
    %c0 = arith.constant 0 : index
    %c0_1 = arith.constant 0 : index
    %3 = vector.load %arg17[%c0, %c0_1] : memref<8x3072xbf16, #tpu.memory_space<vmem>>, vector<8x3072xbf16>
    %c0_2 = arith.constant 0 : index
    %c0_3 = arith.constant 0 : index
    %4 = vector.load %arg11[%c0_2, %c0_3] : memref<3072x384xbf16, #tpu.memory_space<vmem>>, vector<3072x384xbf16>
    %cst = arith.constant dense<0.000000e+00> : vector<8x384xf32>
    %5 = tpu.matmul %3, %4, %cst {dimension_numbers = #tpu.dot_dimension_numbers<[1], [0], [0], [1], [0, 0, 1, 1], [], []>} : vector<8x3072xbf16>, vector<3072x384xbf16>, vector<8x384xf32> -> vector<8x384xf32>
    %c0_4 = arith.constant 0 : index
    %c0_5 = arith.constant 0 : index
    %6 = vector.load %arg12[%c0_4, %c0_5] : memref<1x384xf32, #tpu.memory_space<vmem>>, vector<1x384xf32>
    %7 = vector.broadcast %6 : vector<1x384xf32> to vector<8x384xf32>
    %8 = arith.addf %5, %7 : vector<8x384xf32>
    %cst_6 = arith.constant 0.000000e+00 : f32
    %9 = vector.broadcast %cst_6 : f32 to vector<8x384xf32>
    %10 = arith.maximumf %8, %9 : vector<8x384xf32>
    %c0_7 = arith.constant 0 : index
    %c0_8 = arith.constant 0 : index
    %11 = vector.load %arg16[%c0_7, %c0_8] : memref<8x384xf32, #tpu.memory_space<vmem>>, vector<8x384xf32>
    tpu.vector_store %arg16[%c0_7, %c0_8], %10 {strides = array<i32>} : memref<8x384xf32, #tpu.memory_space<vmem>>, vector<8x384xf32>,
    %c0_9 = arith.constant 0 : index
    %c0_10 = arith.constant 0 : index
    %12 = vector.load %arg15[%c0_9, %c0_10] : memref<8x128xf32, #tpu.memory_space<vmem>>, vector<8x128xf32>
    %c0_11 = arith.constant 0 : index
    %c0_12 = arith.constant 0 : index
    %13 = vector.load %arg13[%c0_11, %c0_12] : memref<384x128xf32, #tpu.memory_space<vmem>>, vector<384x128xf32>
    %cst_13 = arith.constant dense<0.000000e+00> : vector<8x128xf32>
    %14 = tpu.matmul %10, %13, %cst_13 {dimension_numbers = #tpu.dot_dimension_numbers<[1], [0], [0], [1], [0, 0, 1, 1], [], []>} : vector<8x384xf32>, vector<384x128xf32>, vector<8x128xf32> -> vector<8x128xf32>
    %15 = arith.addf %12, %14 : vector<8x128xf32>
    %c0_14 = arith.constant 0 : index
    %c0_15 = arith.constant 0 : index
    %16 = vector.load %arg15[%c0_14, %c0_15] : memref<8x128xf32, #tpu.memory_space<vmem>>, vector<8x128xf32>
    tpu.vector_store %arg15[%c0_14, %c0_15], %15 {strides = array<i32>} : memref<8x128xf32, #tpu.memory_space<vmem>>, vector<8x128xf32>,
    %c3_i32 = arith.constant 3 : i32
    %17 = arith.cmpi eq, %arg0, %c3_i32 : i32
    %18 = arith.extui %17 : i1 to i32
    %c0_i32_16 = arith.constant 0 : i32
    %19 = arith.cmpi ne, %18, %c0_i32_16 : i32
    scf.if %19 {
      %c0_17 = arith.constant 0 : index
      %c0_18 = arith.constant 0 : index
      %20 = vector.load %arg15[%c0_17, %c0_18] : memref<8x128xf32, #tpu.memory_space<vmem>>, vector<8x128xf32>
      %c0_19 = arith.constant 0 : index
      %c0_20 = arith.constant 0 : index
      %21 = vector.load %arg14[%c0_19, %c0_20] : memref<1x128xf32, #tpu.memory_space<vmem>>, vector<1x128xf32>
      %22 = vector.broadcast %21 : vector<1x128xf32> to vector<8x128xf32>
      %23 = arith.addf %20, %22 : vector<8x128xf32>
      %c0_21 = arith.constant 0 : index
      %c0_22 = arith.constant 0 : index
      %24 = vector.load %arg15[%c0_21, %c0_22] : memref<8x128xf32, #tpu.memory_space<vmem>>, vector<8x128xf32>
      tpu.vector_store %arg15[%c0_21, %c0_22], %23 {strides = array<i32>} : memref<8x128xf32, #tpu.memory_space<vmem>>, vector<8x128xf32>,
    } else {
    }
    return
  }
  func.func @transform_0(%arg0: i32) -> (i32, i32) {
    %c0_i32 = arith.constant 0 : i32
    %c0_i32_0 = arith.constant 0 : i32
    %c0_i32_1 = arith.constant 0 : i32
    return %c0_i32, %c0_i32_0 : i32, i32
  }
  func.func @transform_1(%arg0: i32) -> (i32, i32) {
    %c0_i32 = arith.constant 0 : i32
    %c0_i32_0 = arith.constant 0 : i32
    %c0_i32_1 = arith.constant 0 : i32
    return %c0_i32, %c0_i32_0 : i32, i32
  }
  func.func @transform_2(%arg0: i32) -> (i32, i32) {
    %c0_i32 = arith.constant 0 : i32
    %c0_i32_0 = arith.constant 0 : i32
    %c0_i32_1 = arith.constant 0 : i32
    return %c0_i32, %c0_i32_0 : i32, i32
  }
  func.func @transform_3(%arg0: i32) -> (i32, i32) {
    %c0_i32 = arith.constant 0 : i32
    %c0_i32_0 = arith.constant 0 : i32
    %c0_i32_1 = arith.constant 0 : i32
    return %c0_i32, %c0_i32_0 : i32, i32
  }
  func.func @transform_4(%arg0: i32) -> (i32, i32) {
    %c0_i32 = arith.constant 0 : i32
    %c0_i32_0 = arith.constant 0 : i32
    %c0_i32_1 = arith.constant 0 : i32
    return %c0_i32, %c0_i32_0 : i32, i32
  }
  func.func @transform_5(%arg0: i32) -> (i32, i32, i32) {
    %c0_i32 = arith.constant 0 : i32
    %c0_i32_0 = arith.constant 0 : i32
    %c0_i32_1 = arith.constant 0 : i32
    %c0_i32_2 = arith.constant 0 : i32
    return %c0_i32, %c0_i32_0, %c0_i32_1 : i32, i32, i32
  }
  func.func @transform_6(%arg0: i32) -> (i32, i32) {
    %c0_i32 = arith.constant 0 : i32
    %c0_i32_0 = arith.constant 0 : i32
    %c0_i32_1 = arith.constant 0 : i32
    return %c0_i32, %c0_i32_0 : i32, i32
  }
  func.func @transform_7(%arg0: i32) -> (i32, i32) {
    %c0_i32 = arith.constant 0 : i32
    %c0_i32_0 = arith.constant 0 : i32
    %c0_i32_1 = arith.constant 0 : i32
    return %c0_i32, %c0_i32_0 : i32, i32
  }
  func.func @transform_8(%arg0: i32) -> (i32, i32) {
    %c0_i32 = arith.constant 0 : i32
    %c0_i32_0 = arith.constant 0 : i32
    %c0_i32_1 = arith.constant 0 : i32
    return %c0_i32, %c0_i32_0 : i32, i32
  }
  func.func @transform_9(%arg0: i32) -> (i32, i32) {
    %c0_i32 = arith.constant 0 : i32
    %c0_i32_0 = arith.constant 0 : i32
    %c0_i32_1 = arith.constant 0 : i32
    return %c0_i32, %c0_i32_0 : i32, i32
  }
  func.func @transform_10(%arg0: i32) -> (i32, i32) {
    %c0_i32 = arith.constant 0 : i32
    %c0_i32_0 = arith.constant 0 : i32
    return %c0_i32, %arg0 : i32, i32
  }
  func.func @transform_11(%arg0: i32) -> (i32, i32) {
    %c0_i32 = arith.constant 0 : i32
    %c0_i32_0 = arith.constant 0 : i32
    return %c0_i32, %arg0 : i32, i32
  }
  func.func @transform_12(%arg0: i32) -> (i32, i32) {
    %c0_i32 = arith.constant 0 : i32
    %c0_i32_0 = arith.constant 0 : i32
    return %arg0, %c0_i32 : i32, i32
  }
  func.func @transform_13(%arg0: i32) -> (i32, i32) {
    %c0_i32 = arith.constant 0 : i32
    %c0_i32_0 = arith.constant 0 : i32
    %c0_i32_1 = arith.constant 0 : i32
    return %c0_i32, %c0_i32_0 : i32, i32
  }
  func.func @transform_14(%arg0: i32) -> (i32, i32) {
    %c0_i32 = arith.constant 0 : i32
    %c0_i32_0 = arith.constant 0 : i32
    %c0_i32_1 = arith.constant 0 : i32
    return %c0_i32, %c0_i32_0 : i32, i32
  }
  func.func @transform_15(%arg0: i32) -> (i32, i32) {
    %c0_i32 = arith.constant 0 : i32
    %c0_i32_0 = arith.constant 0 : i32
    return %c0_i32, %arg0 : i32, i32
  }
}

</mosaic_0001>

<bundles_post_ra>
// kernel: tpu_custom_call.1
= control target key start
LH: loop header
LB: loop body
LE: loop exit
PB: predicated region body
PF: predicated region fallthrough
CT: control target
= control target key end

     0   :  { %s13950_s0 = inlined_call_operand.hbm [shape: f32[104,512], index: 0, kind: input, shape index: {}]   ;;  %s13951_s1 = inlined_call_operand.vmem [shape: f32[104,64], index: 1, kind: input, shape index: {}]   ;;  %s13952_s2 = inlined_call_operand.hbm [shape: f32[512,512], index: 2, kind: input, shape index: {}]   ;;  %s13953_s3 = inlined_call_operand.hbm [shape: f32[64,128], index: 3, kind: input, shape index: {}]   ;;  %s13954_s4 = inlined_call_operand.hbm [shape: f32[1,128], index: 4, kind: input, shape index: {}]   ;;  %s13955_s5 = inlined_call_operand.hbm [shape: f32[3,128,256], index: 5, kind: input, shape index: {}]   ;;  %s13956_s6 = inlined_call_operand.hbm [shape: f32[1,256], index: 6, kind: input, shape index: {}]   ;;  %s13957_s7 = inlined_call_operand.hbm [shape: f32[104,128], index: 7, kind: input, shape index: {}]   ;;  %s13958_s8 = inlined_call_operand.hbm [shape: f32[104,128], index: 8, kind: input, shape index: {}]   ;;  %s13959_s9 = inlined_call_operand.hbm [shape: f32[96,256], index: 9, kind: input, shape index: {}]   ;;  %s13960_s10 = inlined_call_operand.hbm [shape: bf16[3072,1536], index: 10, kind: input, shape index: {}]   ;;  %s13961_s11 = inlined_call_operand.hbm [shape: f32[1,1536], index: 11, kind: input, shape index: {}]   ;;  %s13962_s12 = inlined_call_operand.hbm [shape: f32[1536,128], index: 12, kind: input, shape index: {}]   ;;  %s13963_s13 = inlined_call_operand.hbm [shape: f32[1,128], index: 13, kind: input, shape index: {}]   ;;  %s13964_s14 = inlined_call_operand.hbm [shape: f32[8,128], index: 14, kind: output, shape index: {0}]   ;;  %s13965_s15 = inlined_call_operand.hbm [shape: f32[8,1536], index: 15, kind: output, shape index: {1}]  }
   0x1   :  { %14011 = sst [smem:[#allocation50_spill]] %s13950_s0 }
   0x2   :  { %14012 = sst [smem:[#allocation51_spill]] %s13951_s1 }
   0x3   :  { %14013 = sst [smem:[#allocation52_spill]] %s13952_s2 }
   0x4   :  { %14014 = sst [smem:[#allocation53_spill]] %s13953_s3 }
   0x5   :  { %14015 = sst [smem:[#allocation54_spill]] %s13954_s4 }
   0x6   :  { %14016 = sst [smem:[#allocation55_spill]] %s13956_s6 }
   0x7   :  { %14017 = sst [smem:[#allocation56_spill]] %s13958_s8 }
   0x8   :  { %14018 = sst [smem:[#allocation57_spill]] %s13959_s9 }
   0x9   :  { %14019 = sst [smem:[#allocation58_spill]] %s13960_s10 }
   0xa   :  { %14020 = sst [smem:[#allocation59_spill]] %s13961_s11 }
   0xb   :  { %14021 = sst [smem:[#allocation60_spill]] %s13962_s12 }
   0xc   :  { %14022 = sst [smem:[#allocation61_spill]] %s13963_s13 }
   0xd   :  { %14023 = sst [smem:[#allocation62_spill]] %s13964_s14 }
   0xe   :  { %14024 = sst [smem:[#allocation63_spill]] %s13965_s15 }
   0xf   :  { %21 = vsyncpa [#allocation4], 0 }
  0x10   :  { %22 = vsyncpa [#allocation7], 0 }
  0x11   :  { %23 = vsyncpa [#allocation10], 0 }
  0x12   :  { %24 = vsyncpa [#allocation13], 0 }
  0x13   :  { %25 = vsyncpa [#allocation16], 0 }
  0x14   :  { %26 = vsyncpa [#allocation19], 0 }
  0x15   :  { %28 = vsyncpa [#allocation19 + $0x1], 0 }
  0x16   :  { %29 = vsyncpa [#allocation22], 0 }
  0x17   :  { %31 = vsyncpa [#allocation22 + $0x1], 0 }
  0x18   :  { %32 = vsyncpa [#allocation5], 0 }
  0x19   :  { %33 = vsyncpa [#allocation26], 0 }
  0x1a   :  { %35 = vsyncpa [#allocation26 + $0x1], 0  ;;  %s11941_s18 = smov 0   ;;  %s11943_s19 = smov 0  }
  0x1b   :  { %s11945_s20 = smov 0   ;;  %s11947_s21 = smov 0  }
  0x1c LB: > { %14025 = sst [smem:[#allocation37_spill]] %s11817_s18  ;;  %s11962_s22 = sadd.s32 4294967295, %s11829_s21   ;;  %s11829_s21 = sphi %s11947_s21, %s14104_s21   ;;  %s11825_s20 = sphi %s11945_s20, %s14106_s20   ;;  %s11821_s19 = sphi %s11943_s19, %s14108_s19   ;;  %s11817_s18 = sphi %s11941_s18, %s14107_s18  }
  0x1d   : > { %14026 = sst [smem:[#allocation38_spill]] %s11825_s20  ;;  %p8527_p0 = scmp.ge.s32.totalorder %s11829_s21, 1 }
  0x1e   : > { %p13974_p1 = scmp.eq.s32.totalorder %s11962_s22, 0  ;;  %p402_p2 = scmp.lt.s32.totalorder %s11829_s21, 5 }
  0x1f   : > { %s11831_s24 = smov [#allocation6]   ;;  %s11832_s26 = smov [#allocation9]  }
  0x20   : > { %p11968_p4 = pnand %p8527_p0, %p402_p2  ;;  %s430_s25 = sshll.u32 %s11831_s24, 4  ;;  %s11972_s25 = int_to_ptr.vmem [resolvable:$true] %s430_s25 }
  0x21   : > { %s457_s27 = sshll.u32 %s11832_s26, 4  ;;  %s11833_s29 = smov [#allocation12]   ;;  %s11982_s27 = int_to_ptr.vmem [resolvable:$true] %s457_s27 }
  0x22   : > { %s14027_s23 = scalar_select %p11968_p4, 1, 0 }
  0x23   : > { %p10413_p5 = pneg %p11968_p4  ;;  %s481_s30 = sshll.u32 %s11833_s29, 4  ;;  %s11984_s30 = int_to_ptr.vmem [resolvable:$true] %s481_s30 }
  0x24   : > { %14028 = sst [smem:[#allocation39_spill]] %s14027_s23 }
  0x25   : > { %p11978_p6 = pnand %p10413_p5, %p13974_p1  ;;  %s14030_s2 = sld [smem:[#allocation52_spill]] }
  0x27   : > { %s14029_s28 = scalar_select %p11978_p6, 1, 0 }
  0x28   : > { %p11994_p8 = pneg %p11978_p6 }
  0x2a   : > { %s14031_s26 = scalar_select %p11994_p8, 1, 0 }
  0x2b   : > { %s11335_s24 = scalar_lea.hbm %s14030_s2, 32768 }
  0x2c   : > { %p11336_p7 = scmp.ne.s32.totalorder %s14030_s2, %s11335_s24  ;;  %p11342_p11 = scmp.lt.u32.totalorder %s11335_s24, %s14030_s2 }
  0x2e   : > { %p11338_p9 = pnand %p11994_p8, %p11336_p7 }
  0x30   : > { %p11339_p10 = pneg %p11338_p9 }
  0x32   : > { %p11344_p12 = pnand %p11342_p11, %p11339_p10 }
  0x34   : > { %11347 = shalt.err (!%p11344_p12)
}
  0x35   : > { %s11348_s14 = scalar_lea.vmem %s11972_s25, 32768  ;;  %p11356_p5 = scmp.lt.s32.totalorder %s11972_s25, %s11972_s25 }
  0x36   : > { %p11349_p13 = scmp.ne.s32.totalorder %s11972_s25, %s11348_s14  ;;  %p11357_p3 = scmp.lt.s32.totalorder %s11348_s14, %s11348_s14 }
  0x38   : > { %p11351_p0 = pnand %p11349_p13, %p11994_p8  ;;  %p11358_p7 = por %p11357_p3, %p11356_p5 }
  0x3a   : > { %p11352_p2 = pneg %p11351_p0 }
  0x3c   : > { %p11359_p9 = pnand %p11358_p7, %p11352_p2 }
  0x3e   : > { %11362 = shalt.err (!%p11359_p9)
}
  0x3f   : > { %s13973_s15 = smov 512   ;;  %s13980_s1 = smov 32  }
  0x40   : > { %10419 = dma.hbm_to_vmem [thread:$0]  (!%p11978_p6), %s14030_s2, 32768, %s11972_s25, [#allocation7], %s13973_s15, %s13973_s15, %s13980_s1  }
  0x41   : > { %s14032_s4 = sld [smem:[#allocation54_spill]] }
  0x47   : > { %s11363_s14 = scalar_lea.hbm %s14032_s4, 16 }
  0x48   : > { %p11364_p3 = scmp.ne.s32.totalorder %s14032_s4, %s11363_s14  ;;  %p11370_p12 = scmp.lt.u32.totalorder %s11363_s14, %s14032_s4 }
  0x4a   : > { %p11366_p10 = pnand %p11364_p3, %p11994_p8 }
  0x4c   : > { %p11367_p11 = pneg %p11366_p10 }
  0x4e   : > { %p11372_p13 = pnand %p11370_p12, %p11367_p11 }
  0x50   : > { %11375 = shalt.err (!%p11372_p13)
}
  0x51   : > { %s11376_s25 = scalar_lea.vmem %s11982_s27, 16  ;;  %s11383_s12 = scalar_lea.vmem %s11982_s27, 32 }
  0x52   : > { %p11377_p0 = scmp.ne.s32.totalorder %s11982_s27, %s11376_s25  ;;  %p11384_p7 = scmp.lt.s32.totalorder %s11982_s27, %s11982_s27 }
  0x53   : > { %p11385_p9 = scmp.lt.s32.totalorder %s11383_s12, %s11376_s25 }
  0x54   : > { %p11379_p2 = pnand %p11377_p0, %p11994_p8 }
  0x55   : > { %p11386_p3 = por %p11385_p9, %p11384_p7 }
  0x56   : > { %p11380_p5 = pneg %p11379_p2 }
  0x58   : > { %p11387_p10 = pnand %p11386_p3, %p11380_p5 }
  0x5a   : > { %11390 = shalt.err (!%p11387_p10)
}
  0x5b   : > { %10425 = dma.hbm_to_vmem [thread:$0]  (!%p11978_p6), %s14032_s4, 16, %s11982_s27, [#allocation10]  }
  0x5c   : > { %s14033_s6 = sld [smem:[#allocation55_spill]] }
  0x62   : > { %s11391_s17 = scalar_lea.hbm %s14033_s6, 32 }
  0x63   : > { %p11392_p11 = scmp.ne.s32.totalorder %s14033_s6, %s11391_s17  ;;  %p11398_p0 = scmp.lt.u32.totalorder %s11391_s17, %s14033_s6 }
  0x65   : > { %p11394_p12 = pnand %p11392_p11, %p11994_p8 }
  0x67   : > { %p11395_p13 = pneg %p11394_p12 }
  0x69   : > { %p11400_p2 = pnand %p11398_p0, %p11395_p13 }
  0x6b   : > { %11403 = shalt.err (!%p11400_p2)
}
  0x6c   : > { %s11404_s27 = scalar_lea.vmem %s11984_s30, 32  ;;  %p11412_p3 = scmp.lt.s32.totalorder %s11984_s30, %s11984_s30 }
  0x6d   : > { %p11405_p5 = scmp.ne.s32.totalorder %s11984_s30, %s11404_s27  ;;  %p11413_p10 = scmp.lt.s32.totalorder %s11404_s27, %s11404_s27 }
  0x6f   : > { %p11407_p7 = pnand %p11405_p5, %p11994_p8  ;;  %p11414_p11 = por %p11413_p10, %p11412_p3 }
  0x71   : > { %p11408_p9 = pneg %p11407_p7 }
  0x73   : > { %p11415_p12 = pnand %p11414_p11, %p11408_p9 }
  0x75   : > { %11418 = shalt.err (!%p11415_p12)
}
  0x76   : > { %10431 = dma.hbm_to_vmem [thread:$0]  (!%p11978_p6), %s14033_s6, 32, %s11984_s30, [#allocation13]  }
  0x77   : > { %s11836_s11 = smov [#allocation15]   ;;  %s11837_s16 = smov [#allocation23]  }
  0x78   : > { %s504_s23 = sshll.u32 %s11836_s11, 4  ;;  %s531_s17 = sshll.u32 %s11837_s16, 4  ;;  %s505_s23 = int_to_ptr.vmem [resolvable:$true] %s504_s23  ;;  %s532_s17 = int_to_ptr.vmem [resolvable:$true] %s531_s17 }
  0x79   : > { %s14034_s8 = sld [smem:[#allocation56_spill]] }
  0x7f   : > { %s11419_s14 = scalar_lea.hbm %s14034_s8, 1664 }
  0x80   : > { %p11420_p13 = scmp.ne.s32.totalorder %s14034_s8, %s11419_s14  ;;  %p11426_p5 = scmp.lt.u32.totalorder %s11419_s14, %s14034_s8 }
  0x82   : > { %p11422_p0 = pnand %p11420_p13, %p11994_p8 }
  0x84   : > { %p11423_p2 = pneg %p11422_p0 }
  0x86   : > { %p11428_p7 = pnand %p11426_p5, %p11423_p2 }
  0x88   : > { %11431 = shalt.err (!%p11428_p7)
}
  0x89   : > { %s11432_s30 = scalar_lea.vmem %s505_s23, 1664  ;;  %p11440_p11 = scmp.lt.s32.totalorder %s505_s23, %s505_s23 }
  0x8a   : > { %p11433_p9 = scmp.ne.s32.totalorder %s505_s23, %s11432_s30  ;;  %p11441_p12 = scmp.lt.s32.totalorder %s11432_s30, %s11432_s30 }
  0x8c   : > { %p11435_p3 = pnand %p11433_p9, %p11994_p8  ;;  %p11442_p1 = por %p11441_p12, %p11440_p11 }
  0x8e   : > { %p11436_p10 = pneg %p11435_p3 }
  0x90   : > { %p11443_p4 = pnand %p11442_p1, %p11436_p10 }
  0x92   : > { %11446 = shalt.err (!%p11443_p4)
}
  0x93   : > { %s13976_s9 = smov 128   ;;  %s13978_s11 = smov 8  }
  0x94   : > { %10437 = dma.hbm_to_vmem [thread:$0]  (!%p11978_p6), %s14034_s8, 1664, %s505_s23, [#allocation16], %s13976_s9, %s13976_s9, %s13978_s11  }
  0x95   : > { %s14035_s13 = sld [smem:[#allocation61_spill]] }
  0x9b   : > { %s11447_s14 = scalar_lea.hbm %s14035_s13, 16 }
  0x9c   : > { %p11448_p1 = scmp.ne.s32.totalorder %s14035_s13, %s11447_s14  ;;  %p11454_p0 = scmp.lt.u32.totalorder %s11447_s14, %s14035_s13 }
  0x9e   : > { %p11450_p4 = pnand %p11448_p1, %p11994_p8 }
  0xa0   : > { %p11451_p13 = pneg %p11450_p4 }
  0xa2   : > { %p11456_p2 = pnand %p11454_p0, %p11451_p13 }
  0xa4   : > { %11459 = shalt.err (!%p11456_p2)
}
  0xa5   : > { %s11460_s15 = scalar_lea.vmem %s532_s17, 16  ;;  %s11467_s23 = scalar_lea.vmem %s532_s17, 32 }
  0xa6   : > { %p11461_p5 = scmp.ne.s32.totalorder %s532_s17, %s11460_s15  ;;  %p11468_p3 = scmp.lt.s32.totalorder %s532_s17, %s532_s17 }
  0xa7   : > { %p11469_p10 = scmp.lt.s32.totalorder %s11467_s23, %s11460_s15 }
  0xa8   : > { %p11463_p7 = pnand %p11461_p5, %p11994_p8 }
  0xa9   : > { %p11470_p11 = por %p11469_p10, %p11468_p3 }
  0xaa   : > { %p11464_p9 = pneg %p11463_p7 }
  0xac   : > { %p11471_p12 = pnand %p11470_p11, %p11464_p9 }
  0xae   : > { %11474 = shalt.err (!%p11471_p12)
}
  0xaf   : > { %10443 = dma.hbm_to_vmem [thread:$0]  (!%p11978_p6), %s14035_s13, 16, %s532_s17, [#allocation22]  }
  0xb0   : > { %s8526_s29 = sadd.s32 4294967294, %s11829_s21   ;;  %s12106_s14 = sadd.s32 1, %s11829_s21  }
  0xb1   : > { %14036 = sst [smem:[#allocation40_spill]] %s12106_s14  ;;  %s258_s25 = sadd.s32 1, %s11825_s20 }
  0xb2   : > { %s255_s27 = ssub.s32 %s11829_s21, %s12106_s14  ;;  %p265_p1 = scmp.ne.s32.totalorder %s11825_s20, %s11821_s19 }
  0xb3   : > { %p256_p4 = scmp.eq.s32.totalorder %s255_s27, 0  ;;  %p266_p13 = scmp.eq.s32.totalorder %s11829_s21, 0 }
  0xb4   : > { %p271_p0 = scmp.ne.s32.totalorder %s11821_s19, %s11817_s18  ;;  %p13981_p2 = scmp.eq.s32.totalorder %s11962_s22, 3 }
  0xb5   : > { %s12118_s12 = scalar_select %p256_p4, %s11825_s20, %s258_s25  }
  0xb6   : > { %p267_p5 = por %p266_p13, %p265_p1  ;;  %p14038_p7 = scmp.eq.s32.totalorder %s11962_s22, 0 }
  0xb7   : > { %14037 = sst [smem:[#allocation41_spill]] %s12118_s12  ;;  %p12128_p3 = por %p13981_p2, %p265_p1 }
  0xb8   : > { %p12122_p9 = por %p14038_p7, %p271_p0  ;;  %p395_p10 = scmp.eq.s32.totalorder %s8526_s29, 3 }
  0xb9   : > { %s14040_s30 = scalar_select %p12128_p3, 1, 0 }
  0xba   : > { %s14039_s17 = scalar_select %p12122_p9, 1, 0 }
  0xbb   : > { %p10468_p11 = scmp.lt.s32.totalorder %s11829_s21, 4  ;;  %p12134_p12 = por %p395_p10, %p271_p0 }
  0xbc   : > { %s12139_s16 = sand.u32 1, %s11825_s20   ;;  %s9187_s24 = smul.u32 192, %s11829_s21 }
  0xbd   : > { %s14041_s23 = scalar_select %p12134_p12, 1, 0 }
  0xbe   : > { %s10354_s25 = smul.u32 4608, %s12139_s16  ;;  %p12143_p4 = pnand %p10468_p11, %p267_p5 }
  0xbf   : > { %14042 = sst [smem:[#allocation42_spill]] %s14041_s23  ;;  %s14044_s10 = sld [smem:[#allocation58_spill]] }
  0xc0   : > { %s14043_s27 = scalar_select %p12143_p4, 1, 0 }
  0xc1   : > { %s546_s1 = scalar_lea.vmem [#allocation18], %s10354_s25  ;;  %s14045_s2 = sand.u32 1, %s11829_s21  }
  0xc2   : > { %s553_s15 = sshll.u32 %s546_s1, 4  ;;  %s12156_s4 = scalar_lea.sflag [#allocation19], %s14045_s2  ;;  %s12152_s15 = int_to_ptr.vmem [resolvable:$true] %s553_s15 }
  0xc3   : > { %p12162_p13 = pneg %p12143_p4 }
  0xc5   : > { %s12150_s29 = scalar_lea.hbm %s14044_s10, %s9187_s24  ;;  %s11480_s1 = scalar_lea.hbm %s14044_s10, 294912 }
  0xc6   : > { %s11475_s6 = scalar_lea.hbm %s12150_s29, 73728  ;;  %p11481_p7 = scmp.lt.u32.totalorder %s12150_s29, %s14044_s10 }
  0xc7   : > { %p11476_p1 = scmp.ne.s32.totalorder %s12150_s29, %s11475_s6  ;;  %p11482_p10 = scmp.lt.u32.totalorder %s11480_s1, %s11475_s6 }
  0xc8   : > { %s14046_s8 = scalar_select %p12162_p13, 1, 0 }
  0xc9   : > { %p11478_p0 = pnand %p12162_p13, %p11476_p1  ;;  %p11483_p11 = por %p11482_p10, %p11481_p7 }
  0xca   : > { %p11484_p2 = scmp.lt.u32.totalorder %s11475_s6, %s12150_s29 }
  0xcb   : > { %p11479_p5 = pneg %p11478_p0 }
  0xcc   : > { %p11485_p12 = por %p11484_p2, %p11483_p11 }
  0xce   : > { %p11486_p3 = pnand %p11485_p12, %p11479_p5 }
  0xd0   : > { %11489 = shalt.err (!%p11486_p3)
}
  0xd1   : > { %s11490_s2 = scalar_lea.vmem %s12152_s15, 73728  ;;  %s11840_s9 = smov [#allocation18]  }
  0xd2   : > { %p11491_p1 = scmp.ne.s32.totalorder %s12152_s15, %s11490_s2  ;;  %s11495_s11 = sshll.u32 %s11840_s9, 4  ;;  %s11496_s11 = int_to_ptr.vmem [resolvable:$false] %s11495_s11 }
  0xd3   : > { %s11497_s24 = scalar_lea.vmem %s11496_s11, 147456  ;;  %p11498_p6 = scmp.lt.s32.totalorder %s12152_s15, %s11496_s11 }
  0xd4   : > { %p11493_p0 = pnand %p11491_p1, %p12162_p13  ;;  %p11499_p8 = scmp.lt.s32.totalorder %s11497_s24, %s11490_s2 }
  0xd6   : > { %p11494_p9 = pneg %p11493_p0  ;;  %p11500_p7 = por %p11499_p8, %p11498_p6 }
  0xd8   : > { %p11501_p10 = pnand %p11500_p7, %p11494_p9 }
  0xda   : > { %11504 = shalt.err (!%p11501_p10)
}
  0xdb   : > { %s11841_s6 = smov 768   ;;  %s11842_s1 = smov 192  }
  0xdc   : > { %s11843_s25 = smov 12   ;;  %s11844_s10 = smov [#allocation3]  }
  0xdd   : > { %10447 = dma.hbm_to_vmem [thread:$0]  (!%p12143_p4), %s12150_s29, 73728, %s12152_s15, %s12156_s4, %s11841_s6, %s11842_s1, %s11843_s25  }
  0xde   : > { %s414_s13 = sshll.u32 %s11844_s10, 4  ;;  %s11845_s9 = smov [#allocation8]   ;;  %s415_s13 = int_to_ptr.vmem [resolvable:$true] %s414_s13 }
  0xdf   : > { %s443_s12 = sshll.u32 %s11845_s9, 4  ;;  %s14047_s0 = sld [smem:[#allocation50_spill]]  ;;  %s12186_s12 = int_to_ptr.vmem [resolvable:$true] %s443_s12 }
  0xe0   : > { %p14048_p8 = scmp.ne.s32.totalorder %s14031_s26, 0 }
  0xe5   : > { %s11505_s24 = scalar_lea.hbm %s14047_s0, 6656 }
  0xe6   : > { %p11506_p6 = scmp.ne.s32.totalorder %s14047_s0, %s11505_s24  ;;  %p11512_p3 = scmp.lt.u32.totalorder %s11505_s24, %s14047_s0 }
  0xe8   : > { %p11508_p2 = pnand %p11506_p6, %p14048_p8 }
  0xea   : > { %p11509_p9 = pneg %p11508_p2 }
  0xec   : > { %p11514_p12 = pnand %p11512_p3, %p11509_p9 }
  0xee   : > { %11517 = shalt.err (!%p11514_p12)
}
  0xef   : > { %s11518_s10 = scalar_lea.vmem %s415_s13, 6656  ;;  %p11526_p0 = scmp.lt.s32.totalorder %s415_s13, %s415_s13 }
  0xf0   : > { %p11519_p5 = scmp.ne.s32.totalorder %s415_s13, %s11518_s10  ;;  %p11527_p7 = scmp.lt.s32.totalorder %s11518_s10, %s11518_s10 }
  0xf2   : > { %p11521_p11 = pnand %p11519_p5, %p14048_p8  ;;  %p11528_p10 = por %p11527_p7, %p11526_p0 }
  0xf4   : > { %p11522_p1 = pneg %p11521_p11 }
  0xf6   : > { %p11529_p4 = pnand %p11528_p10, %p11522_p1 }
  0xf8   : > { %11532 = shalt.err (!%p11529_p4)
}
  0xf9   : > { %p14049_p6 = scmp.ne.s32.totalorder %s14029_s28, 0  ;;  %s14050_s20 = smov 32  }
  0xfa   : > { %s14051_s14 = smov 512   ;;  %s14052_s3 = sld [smem:[#allocation53_spill]] }
  0xfb   : > { %10416 = dma.hbm_to_vmem [thread:$0]  (!%p14049_p6), %s14047_s0, 6656, %s415_s13, [#allocation4], %s14051_s14, %s14051_s14, %s14050_s20  }
 0x100   : > { %s11533_s25 = scalar_lea.hbm %s14052_s3, 1024 }
 0x101   : > { %p11534_p2 = scmp.ne.s32.totalorder %s14052_s3, %s11533_s25  ;;  %p11540_p3 = scmp.lt.u32.totalorder %s11533_s25, %s14052_s3 }
 0x103   : > { %p11536_p4 = pnand %p11534_p2, %p14048_p8 }
 0x105   : > { %p11537_p9 = pneg %p11536_p4 }
 0x107   : > { %p11542_p12 = pnand %p11540_p3, %p11537_p9 }
 0x109   : > { %11545 = shalt.err (!%p11542_p12)
}
 0x10a   : > { %s11546_s13 = scalar_lea.vmem %s12186_s12, 1024  ;;  %p11554_p0 = scmp.lt.s32.totalorder %s12186_s12, %s12186_s12 }
 0x10b   : > { %p11547_p5 = scmp.ne.s32.totalorder %s12186_s12, %s11546_s13  ;;  %p11555_p7 = scmp.lt.s32.totalorder %s11546_s13, %s11546_s13 }
 0x10d   : > { %p11549_p11 = pnand %p11547_p5, %p14048_p8  ;;  %p11556_p10 = por %p11555_p7, %p11554_p0 }
 0x10f   : > { %p11550_p1 = pneg %p11549_p11 }
 0x111   : > { %p11557_p2 = pnand %p11556_p10, %p11550_p1 }
 0x113   : > { %11560 = shalt.err (!%p11557_p2)
}
 0x114   : > { %s14053_s15 = smov 8   ;;  %s14054_s10 = smov 128  }
 0x115   : > { %10422 = dma.hbm_to_vmem [thread:$0]  (!%p14049_p6), %s14052_s3, 1024, %s12186_s12, [#allocation7], %s14054_s10, %s14054_s10, %s14053_s15  }
 0x116   : > { %s11846_s23 = smov [#allocation11]   ;;  %s11561_s25 = scalar_lea.hbm %s13955_s5, 12288 }
 0x117   : > { %s467_s29 = sshll.u32 %s11846_s23, 4  ;;  %p11562_p4 = scmp.ne.s32.totalorder %s13955_s5, %s11561_s25  ;;  %s468_s29 = int_to_ptr.vmem [resolvable:$true] %s467_s29 }
 0x118   : > { %p11568_p12 = scmp.lt.u32.totalorder %s11561_s25, %s13955_s5 }
 0x119   : > { %p11564_p9 = pnand %p11562_p4, %p14048_p8 }
 0x11b   : > { %p11565_p3 = pneg %p11564_p9 }
 0x11d   : > { %p11570_p5 = pnand %p11568_p12, %p11565_p3 }
 0x11f   : > { %11573 = shalt.err (!%p11570_p5)
}
 0x120   : > { %s11574_s12 = scalar_lea.vmem %s468_s29, 12288  ;;  %p11582_p7 = scmp.lt.s32.totalorder %s468_s29, %s468_s29 }
 0x121   : > { %p11575_p11 = scmp.ne.s32.totalorder %s468_s29, %s11574_s12  ;;  %p11583_p10 = scmp.lt.s32.totalorder %s11574_s12, %s11574_s12 }
 0x123   : > { %p11577_p1 = pnand %p11575_p11, %p14048_p8  ;;  %p11584_p2 = por %p11583_p10, %p11582_p7 }
 0x125   : > { %p11578_p0 = pneg %p11577_p1 }
 0x127   : > { %p11585_p13 = pnand %p11584_p2, %p11578_p0 }
 0x129   : > { %11588 = shalt.err (!%p11585_p13)
}
 0x12a   : > { %s11847_s13 = smov 256   ;;  %s11848_s20 = smov 16  }
 0x12b   : > { %10428 = dma.hbm_to_vmem [thread:$0]  (!%p14049_p6), %s13955_s5, 12288, %s468_s29, [#allocation10], %s11847_s13, %s11847_s13, %s11848_s20  }
 0x12c   : > { %s11849_s6 = smov [#allocation14]   ;;  %s11850_s25 = smov [#allocation17]  }
 0x12d   : > { %s491_s1 = sshll.u32 %s11849_s6, 4  ;;  %s517_s9 = sshll.u32 %s11850_s25, 4  ;;  %s492_s1 = int_to_ptr.vmem [resolvable:$true] %s491_s1  ;;  %s518_s9 = int_to_ptr.vmem [resolvable:$true] %s517_s9 }
 0x12e   : > { %s11589_s24 = scalar_lea.hbm %s13957_s7, 1664 }
 0x12f   : > { %p11590_p13 = scmp.ne.s32.totalorder %s13957_s7, %s11589_s24  ;;  %p11596_p3 = scmp.lt.u32.totalorder %s11589_s24, %s13957_s7 }
 0x131   : > { %p11592_p4 = pnand %p11590_p13, %p14048_p8 }
 0x133   : > { %p11593_p9 = pneg %p11592_p4 }
 0x135   : > { %p11598_p12 = pnand %p11596_p3, %p11593_p9 }
 0x137   : > { %11601 = shalt.err (!%p11598_p12)
}
 0x138   : > { %s11602_s29 = scalar_lea.vmem %s492_s1, 1664  ;;  %p11610_p0 = scmp.lt.s32.totalorder %s492_s1, %s492_s1 }
 0x139   : > { %p11603_p5 = scmp.ne.s32.totalorder %s492_s1, %s11602_s29  ;;  %p11611_p7 = scmp.lt.s32.totalorder %s11602_s29, %s11602_s29 }
 0x13b   : > { %p11605_p11 = pnand %p11603_p5, %p14048_p8  ;;  %p11612_p10 = por %p11611_p7, %p11610_p0 }
 0x13d   : > { %p11606_p1 = pneg %p11605_p11 }
 0x13f   : > { %p11613_p2 = pnand %p11612_p10, %p11606_p1 }
 0x141   : > { %11616 = shalt.err (!%p11613_p2)
}
 0x142   : > { %10434 = dma.hbm_to_vmem [thread:$0]  (!%p14049_p6), %s13957_s7, 1664, %s492_s1, [#allocation13], %s14054_s10, %s14054_s10, %s14053_s15  }
 0x143   : > { %s10355_s18 = smul.u32 3, %s12139_s16  ;;  %s14055_s6 = sld [smem:[#allocation57_spill]] }
 0x149   : > { %s11617_s25 = scalar_lea.hbm %s14055_s6, 3072 }
 0x14a   : > { %p11618_p13 = scmp.ne.s32.totalorder %s14055_s6, %s11617_s25  ;;  %p11624_p3 = scmp.lt.u32.totalorder %s11617_s25, %s14055_s6 }
 0x14c   : > { %p11620_p4 = pnand %p11618_p13, %p14048_p8 }
 0x14e   : > { %p11621_p9 = pneg %p11620_p4 }
 0x150   : > { %p11626_p12 = pnand %p11624_p3, %p11621_p9 }
 0x152   : > { %11629 = shalt.err (!%p11626_p12)
}
 0x153   : > { %s11630_s1 = scalar_lea.vmem %s518_s9, 3072  ;;  %p11638_p0 = scmp.lt.s32.totalorder %s518_s9, %s518_s9 }
 0x154   : > { %p11631_p5 = scmp.ne.s32.totalorder %s518_s9, %s11630_s1  ;;  %p11639_p7 = scmp.lt.s32.totalorder %s11630_s1, %s11630_s1 }
 0x156   : > { %p11633_p11 = pnand %p11631_p5, %p14048_p8  ;;  %p11640_p10 = por %p11639_p7, %p11638_p0 }
 0x158   : > { %p11634_p1 = pneg %p11633_p11 }
 0x15a   : > { %p11641_p2 = pnand %p11640_p10, %p11634_p1 }
 0x15c   : > { %11644 = shalt.err (!%p11641_p2)
}
 0x15d   : > { %10440 = dma.hbm_to_vmem [thread:$0]  (!%p14049_p6), %s14055_s6, 3072, %s518_s9, [#allocation16], %s11847_s13, %s11847_s13, %s11848_s20  }
 0x15e   : > { %s9188_s3 = smul.u32 48, %s11829_s21  ;;  %s567_s26 = scalar_lea.vmem [#allocation20], %s10355_s18 }
 0x15f   : > { %s575_s14 = sshll.u32 %s567_s26, 4  ;;  %s14056_s2 = sld [smem:[#allocation59_spill]]  ;;  %s576_s14 = int_to_ptr.vmem [resolvable:$true] %s575_s14 }
 0x160   : > { %p14057_p13 = scmp.ne.s32.totalorder %s14046_s8, 0 }
 0x165   : > { %s573_s11 = scalar_lea.hbm %s14056_s2, %s9188_s3  ;;  %s11650_s1 = scalar_lea.hbm %s14056_s2, 192 }
 0x166   : > { %s11645_s24 = scalar_lea.hbm %s573_s11, 48  ;;  %p11651_p6 = scmp.lt.u32.totalorder %s573_s11, %s14056_s2 }
 0x167   : > { %p11646_p8 = scmp.ne.s32.totalorder %s573_s11, %s11645_s24  ;;  %p11652_p3 = scmp.lt.u32.totalorder %s11650_s1, %s11645_s24 }
 0x168   : > { %p11654_p5 = scmp.lt.u32.totalorder %s11645_s24, %s573_s11 }
 0x169   : > { %p11648_p4 = pnand %p11646_p8, %p14057_p13  ;;  %p11653_p12 = por %p11652_p3, %p11651_p6 }
 0x16b   : > { %p11649_p9 = pneg %p11648_p4  ;;  %p11655_p11 = por %p11654_p5, %p11653_p12 }
 0x16d   : > { %p11656_p1 = pnand %p11655_p11, %p11649_p9 }
 0x16f   : > { %11659 = shalt.err (!%p11656_p1)
}
 0x170   : > { %s11660_s13 = scalar_lea.vmem %s576_s14, 48  ;;  %s11851_s20 = smov [#allocation20]  }
 0x171   : > { %p11661_p0 = scmp.ne.s32.totalorder %s576_s14, %s11660_s13  ;;  %s11665_s9 = sshll.u32 %s11851_s20, 4  ;;  %s11666_s9 = int_to_ptr.vmem [resolvable:$false] %s11665_s9 }
 0x172   : > { %s11667_s18 = scalar_lea.vmem %s11666_s9, 96  ;;  %p11668_p2 = scmp.lt.s32.totalorder %s576_s14, %s11666_s9 }
 0x173   : > { %p11663_p7 = pnand %p11661_p0, %p14057_p13  ;;  %p11669_p8 = scmp.lt.s32.totalorder %s11667_s18, %s11660_s13 }
 0x175   : > { %p11664_p10 = pneg %p11663_p7  ;;  %p11670_p4 = por %p11669_p8, %p11668_p2 }
 0x177   : > { %p11671_p3 = pnand %p11670_p4, %p11664_p10 }
 0x179   : > { %11674 = shalt.err (!%p11671_p3)
}
 0x17a   : > { %p14058_p6 = scmp.ne.s32.totalorder %s14043_s27, 0  ;;  %s10356_s3 = smul.u32 384, %s12139_s16 }
 0x17b   : > { %s9189_s26 = smul.u32 6144, %s11829_s21  ;;  %s14059_s24 = sld [smem:[#allocation60_spill]] }
 0x17c   : > { %10450 = dma.hbm_to_vmem [thread:$0]  (!%p14058_p6), %s573_s11, 48, %s576_s14, %s12156_s4  }
 0x17d   : > { %s586_s12 = scalar_lea.vmem [#allocation21], %s10356_s3  ;;  %s14060_s29 = sand.u32 1, %s11829_s21  }
 0x17e   : > { %s593_s1 = sshll.u32 %s586_s12, 4  ;;  %s12327_s0 = scalar_lea.sflag [#allocation22], %s14060_s29  ;;  %s12323_s1 = int_to_ptr.vmem [resolvable:$true] %s593_s1 }
 0x181   : > { %s12321_s28 = scalar_lea.hbm %s14059_s24, %s9189_s26  ;;  %s11680_s14 = scalar_lea.hbm %s14059_s24, 24576 }
 0x182   : > { %s11675_s13 = scalar_lea.hbm %s12321_s28, 6144  ;;  %p11681_p11 = scmp.lt.u32.totalorder %s12321_s28, %s14059_s24 }
 0x183   : > { %p11676_p9 = scmp.ne.s32.totalorder %s12321_s28, %s11675_s13  ;;  %p11682_p1 = scmp.lt.u32.totalorder %s11680_s14, %s11675_s13 }
 0x184   : > { %p11684_p7 = scmp.lt.u32.totalorder %s11675_s13, %s12321_s28 }
 0x185   : > { %p11678_p12 = pnand %p11676_p9, %p14057_p13  ;;  %p11683_p0 = por %p11682_p1, %p11681_p11 }
 0x187   : > { %p11679_p5 = pneg %p11678_p12  ;;  %p11685_p10 = por %p11684_p7, %p11683_p0 }
 0x189   : > { %p11686_p2 = pnand %p11685_p10, %p11679_p5 }
 0x18b   : > { %11689 = shalt.err (!%p11686_p2)
}
 0x18c   : > { %s11690_s9 = scalar_lea.vmem %s12323_s1, 6144  ;;  %s11852_s18 = smov [#allocation21]  }
 0x18d   : > { %p11691_p8 = scmp.ne.s32.totalorder %s12323_s1, %s11690_s9  ;;  %s11695_s3 = sshll.u32 %s11852_s18, 4  ;;  %s11696_s3 = int_to_ptr.vmem [resolvable:$false] %s11695_s3 }
 0x18e   : > { %s11697_s26 = scalar_lea.vmem %s11696_s3, 12288  ;;  %p11698_p9 = scmp.lt.s32.totalorder %s12323_s1, %s11696_s3 }
 0x18f   : > { %p11693_p4 = pnand %p11691_p8, %p14057_p13  ;;  %p11699_p12 = scmp.lt.s32.totalorder %s11697_s26, %s11690_s9 }
 0x191   : > { %p11694_p3 = pneg %p11693_p4  ;;  %p11700_p11 = por %p11699_p12, %p11698_p9 }
 0x193   : > { %p11701_p1 = pnand %p11700_p11, %p11694_p3 }
 0x195   : > { %11704 = shalt.err (!%p11701_p1)
}
 0x196   : > { %10453 = dma.hbm_to_vmem [thread:$0]  (!%p14058_p6), %s12321_s28, 6144, %s12323_s1, %s12327_s0, %s14054_s10, %s14054_s10, %s14053_s15  }
 0x197   : > { %s14061_s8 = sld [smem:[#allocation39_spill]] }
 0x19d   : > { %p14062_p13 = scmp.ne.s32.totalorder %s14061_s8, 0 }
 0x19e   : > { %p14063_p5 = scmp.eq.s32.totalorder (!%p14062_p13), %s11962_s22, 0 }
 0x19f   : > { %605 = sbr.rel (%p14062_p13) target bundleno = 2340 (0x924), region = 76 }
 0x1a6   : > { %11776 = dma.done.wait (%p14063_p5), [#allocation4], 6656   ;;  %p14064_p0 = pmov %p14063_p5 }
 0x1a8   : > { %11778 = vsyncadd (%p14064_p0), [#allocation4], 4294960640  ;;  %p14065_p7 = pmov %p14064_p0 }
 0x1a9   : > { %p14066_p10 = pmov %p14064_p0 }
 0x1aa   : > { %11780 = dma.done.wait (%p14065_p7), [#allocation7], 33792  }
 0x1ab   : > { %11782 = vsyncadd (%p14066_p10), [#allocation7], 4294933504  ;;  %p14067_p2 = pmov %p14064_p0 }
 0x1ac   : > { %p14068_p6 = pmov %p14064_p0 }
 0x1ad   : > { %11784 = dma.done.wait (%p14067_p2), [#allocation10], 12304  }
 0x1ae   : > { %11786 = vsyncadd (%p14068_p6), [#allocation10], 4294954992  ;;  %p14069_p8 = pmov %p14064_p0 }
 0x1af   : > { %p14070_p4 = pmov %p14064_p0 }
 0x1b0   : > { %11788 = dma.done.wait (%p14069_p8), [#allocation13], 1696  }
 0x1b1   : > { %11790 = vsyncadd (%p14070_p4), [#allocation13], 4294965600  ;;  %p14071_p3 = pmov %p14064_p0 }
 0x1b2   : > { %p14072_p9 = pmov %p14064_p0 }
 0x1b3   : > { %11792 = dma.done.wait (%p14071_p3), [#allocation16], 4736  }
 0x1b4   : > { %11794 = vsyncadd (%p14072_p9), [#allocation16], 4294962560  ;;  %s643_s27 = sand.u32 1, %s11962_s22   ;;  %s12378_s15 = sand.u32 1, %s11821_s19  }
 0x1b5   : > { %s10357_s10 = smul.u32 4608, %s12378_s15  ;;  %s644_s23 = scalar_lea.sflag [#allocation19], %s643_s27 }
 0x1b6   : > { %p14073_p12 = scmp.ne.s32.totalorder %s14039_s17, 0 }
 0x1b7   : > { %s12381_s25 = scalar_lea.vmem [#allocation18], %s10357_s10 }
 0x1b8   : > { %11796 = dma.done.wait (%p14073_p12), %s644_s23, 73776  }
 0x1b9   : > { %11798 = vsyncadd (%p14073_p12), %s644_s23, 4294893520  ;;  %s10358_s28 = smul.u32 3, %s12378_s15  ;;  %s662_s29 = scalar_lea.sflag [#allocation22], %s643_s27 }
 0x1ba   : > { %s10359_s12 = smul.u32 384, %s12378_s15 }
 0x1bb   : > { %s12389_s1 = scalar_lea.vmem [#allocation20], %s10358_s28 }
 0x1bc   : > { %s12391_s0 = scalar_lea.vmem [#allocation21], %s10359_s12 }
 0x1bd   : > { %11800 = dma.done.wait (%p14073_p12), %s662_s29, 6144  }
 0x1be   : > { %11802 = vsyncadd (%p14073_p12), %s662_s29, 4294961152  ;;  %p14074_p11 = pmov %p14064_p0 }
 0x1bf   : > { %p14075_p1 = pmov %p14064_p0 }
 0x1c0   : > { %11804 = dma.done.wait (%p14074_p11), [#allocation22], 16  }
 0x1c1   : > { %11806 = vsyncadd (%p14075_p1), [#allocation22], 4294967280  ;;  %s10360_s13 = smul.u32 24, %s12378_s15  ;;  %p14076_p13 = scmp.ne.s32.totalorder %s11962_s22, 0 }
 0x1c3   : > { %s12402_s4 = scalar_lea.vmem [#allocation25], %s10360_s13  ;;  %734 = sbr.rel (%p14076_p13) target bundleno = 1254 (0x4e6), region = 132 }
 0x1ca   : > { %v788_v0 = vld [vmem:[#allocation6 + $0x8] sm:$0xff]  ;;  %v790_v2 = vld [vmem:[#allocation6 + $0x18] sm:$0xff]  ;;  %v787_v5 = vld [vmem:[#allocation6] sm:$0xff]  ;;  %vm11855_vm0 = vmmov 0   ;;  %s14077_s14 = sld [smem:[#allocation51_spill]]  ;;  %vm1636_vm1 = vcmask 523264  }
 0x1cb   : > { %v792_v1 = vld [vmem:[#allocation6 + $0x28] sm:$0xff]  ;;  %v794_v4 = vld [vmem:[#allocation6 + $0x38] sm:$0xff]  ;;  %v791_v6 = vld [vmem:[#allocation6 + $0x20] sm:$0xff] }
 0x1cc   : > { %v9630_v3 = vpack.c.bf16 %v792_v1, %v788_v0  ;;  %v9758_v7 = vpack.c.bf16 %v794_v4, %v790_v2  ;;  %v9632_v8 = vpack.c.bf16 %v791_v6, %v787_v5  ;;  %v789_v9 = vld [vmem:[#allocation6 + $0x10] sm:$0xff]  ;;  %v796_v11 = vld [vmem:[#allocation6 + $0x48] sm:$0xff]  ;;  %v798_v14 = vld [vmem:[#allocation6 + $0x58] sm:$0xff] }
 0x1cd   : > { %v793_v10 = vld [vmem:[#allocation6 + $0x30] sm:$0xff]  ;;  %v800_v13 = vld [vmem:[#allocation6 + $0x68] sm:$0xff]  ;;  %v802_v15 = vld [vmem:[#allocation6 + $0x78] sm:$0xff] }
 0x1ce   : > { %9631 = vmatprep.subr.bf16.mxu0 %v9630_v3  ;;  %v9760_v12 = vpack.c.bf16 %v793_v10, %v789_v9  ;;  %9759 = vmatprep.subr.bf16.mxu1 %v9758_v7  ;;  %v9634_v16 = vpack.c.bf16 %v800_v13, %v796_v11  ;;  %v9762_v17 = vpack.c.bf16 %v802_v15, %v798_v14  ;;  %v795_v18 = vld [vmem:[#allocation6 + $0x40] sm:$0xff]  ;;  %v797_v20 = vld [vmem:[#allocation6 + $0x50] sm:$0xff]  ;;  %v804_v23 = vld [vmem:[#allocation6 + $0x88] sm:$0xff] }
 0x1cf   : > { %9633 = vmatpush1.bf16.msra.mxu0 %v9632_v8  ;;  %v799_v19 = vld [vmem:[#allocation6 + $0x60] sm:$0xff]  ;;  %v801_v22 = vld [vmem:[#allocation6 + $0x70] sm:$0xff]  ;;  %v808_v24 = vld [vmem:[#allocation6 + $0xa8] sm:$0xff] }
 0x1d0   : > { %9761 = vmatpush1.bf16.msra.mxu1 %v9760_v12  ;;  %v9636_v21 = vpack.c.bf16 %v799_v19, %v795_v18  ;;  %9635 = vmatprep.subr.bf16.mxu0 %v9634_v16  ;;  %v9764_v25 = vpack.c.bf16 %v801_v22, %v797_v20  ;;  %v9638_v26 = vpack.c.bf16 %v808_v24, %v804_v23  ;;  %v806_v27 = vld [vmem:[#allocation6 + $0x98] sm:$0xff]  ;;  %v803_v29 = vld [vmem:[#allocation6 + $0x80] sm:$0xff]  ;;  %v805_v32 = vld [vmem:[#allocation6 + $0x90] sm:$0xff] }
 0x1d1   : > { %9763 = vmatprep.subr.bf16.mxu1 %v9762_v17  ;;  %v810_v28 = vld [vmem:[#allocation6 + $0xb8] sm:$0xff]  ;;  %v807_v31 = vld [vmem:[#allocation6 + $0xa0] sm:$0xff]  ;;  %v809_v33 = vld [vmem:[#allocation6 + $0xb0] sm:$0xff] }
 0x1d2   : > { %v9766_v30 = vpack.c.bf16 %v810_v28, %v806_v27  ;;  %v9640_v34 = vpack.c.bf16 %v807_v31, %v803_v29  ;;  %v812_v35 = vld [vmem:[#allocation6 + $0xc8] sm:$0xff]  ;;  %v814_v37 = vld [vmem:[#allocation6 + $0xd8] sm:$0xff]  ;;  %v9768_v38 = vpack.c.bf16 %v809_v33, %v805_v32  ;;  %v811_v41 = vld [vmem:[#allocation6 + $0xc0] sm:$0xff] }
 0x1d3   : > { %9637 = vmatpush1.bf16.msra.mxu0 %v9636_v21  ;;  %v816_v36 = vld [vmem:[#allocation6 + $0xe8] sm:$0xff]  ;;  %v818_v40 = vld [vmem:[#allocation6 + $0xf8] sm:$0xff]  ;;  %v815_v42 = vld [vmem:[#allocation6 + $0xe0] sm:$0xff] }
 0x1d4   : > { %9765 = vmatpush1.bf16.msra.mxu1 %v9764_v25  ;;  %9639 = vmatprep.subr.bf16.mxu0 %v9638_v26  ;;  %v9642_v39 = vpack.c.bf16 %v816_v36, %v812_v35  ;;  %v9770_v43 = vpack.c.bf16 %v818_v40, %v814_v37  ;;  %v813_v44 = vld [vmem:[#allocation6 + $0xd0] sm:$0xff]  ;;  %v820_v46 = vld [vmem:[#allocation6 + $0x108] sm:$0xff]  ;;  %v822_v48 = vld [vmem:[#allocation6 + $0x118] sm:$0xff]  ;;  %v9644_v50 = vpack.c.bf16 %v815_v42, %v811_v41 }
 0x1d5   : > { %9767 = vmatprep.subr.bf16.mxu1 %v9766_v30  ;;  %v817_v45 = vld [vmem:[#allocation6 + $0xf0] sm:$0xff]  ;;  %v824_v47 = vld [vmem:[#allocation6 + $0x128] sm:$0xff]  ;;  %v826_v49 = vld [vmem:[#allocation6 + $0x138] sm:$0xff] }
 0x1d6   : > { %v9772_v51 = vpack.c.bf16 %v817_v45, %v813_v44  ;;  %v9646_v52 = vpack.c.bf16 %v824_v47, %v820_v46  ;;  %v819_v53 = vld [vmem:[#allocation6 + $0x100] sm:$0xff]  ;;  %v821_v55 = vld [vmem:[#allocation6 + $0x110] sm:$0xff]  ;;  %v9774_v56 = vpack.c.bf16 %v826_v49, %v822_v48  ;;  %v828_v58 = vld [vmem:[#allocation6 + $0x148] sm:$0xff] }
 0x1d7   : > { %9641 = vmatpush1.bf16.msra.mxu0 %v9640_v34  ;;  %v823_v54 = vld [vmem:[#allocation6 + $0x120] sm:$0xff]  ;;  %v825_v57 = vld [vmem:[#allocation6 + $0x130] sm:$0xff]  ;;  %v832_v59 = vld [vmem:[#allocation6 + $0x168] sm:$0xff] }
 0x1d8   : > { %9769 = vmatpush1.bf16.msra.mxu1 %v9768_v38  ;;  %9643 = vmatprep.subr.bf16.mxu0 %v9642_v39  ;;  %v830_v60 = vld [vmem:[#allocation6 + $0x158] sm:$0xff]  ;;  %v9648_v62 = vpack.c.bf16 %v823_v54, %v819_v53  ;;  %v9776_v63 = vpack.c.bf16 %v825_v57, %v821_v55  ;;  %v9650_v0 = vpack.c.bf16 %v832_v59, %v828_v58  ;;  %v827_v1 = vld [vmem:[#allocation6 + $0x140] sm:$0xff]  ;;  %v829_v3 = vld [vmem:[#allocation6 + $0x150] sm:$0xff] }
 0x1d9   : > { %9771 = vmatprep.subr.bf16.mxu1 %v9770_v43  ;;  %v834_v61 = vld [vmem:[#allocation6 + $0x178] sm:$0xff]  ;;  %v831_v2 = vld [vmem:[#allocation6 + $0x160] sm:$0xff]  ;;  %v833_v5 = vld [vmem:[#allocation6 + $0x170] sm:$0xff] }
 0x1da   : > { %v9778_v4 = vpack.c.bf16 %v834_v61, %v830_v60  ;;  %v836_v6 = vld [vmem:[#allocation6 + $0x188] sm:$0xff]  ;;  %v838_v8 = vld [vmem:[#allocation6 + $0x198] sm:$0xff]  ;;  %v9652_v10 = vpack.c.bf16 %v831_v2, %v827_v1  ;;  %v9780_v11 = vpack.c.bf16 %v833_v5, %v829_v3  ;;  %v835_v13 = vld [vmem:[#allocation6 + $0x180] sm:$0xff] }
 0x1db   : > { %9645 = vmatpush1.bf16.msra.mxu0 %v9644_v50  ;;  %v840_v7 = vld [vmem:[#allocation6 + $0x1a8] sm:$0xff]  ;;  %v842_v9 = vld [vmem:[#allocation6 + $0x1b8] sm:$0xff]  ;;  %v839_v14 = vld [vmem:[#allocation6 + $0x1a0] sm:$0xff] }
 0x1dc   : > { %9773 = vmatpush1.bf16.msra.mxu1 %v9772_v51  ;;  %9647 = vmatprep.subr.bf16.mxu0 %v9646_v52  ;;  %v9654_v12 = vpack.c.bf16 %v840_v7, %v836_v6  ;;  %v837_v15 = vld [vmem:[#allocation6 + $0x190] sm:$0xff]  ;;  %v9782_v16 = vpack.c.bf16 %v842_v9, %v838_v8  ;;  %v844_v18 = vld [vmem:[#allocation6 + $0x1c8] sm:$0xff]  ;;  %v846_v20 = vld [vmem:[#allocation6 + $0x1d8] sm:$0xff]  ;;  %v9656_v22 = vpack.c.bf16 %v839_v14, %v835_v13 }
 0x1dd   : > { %9775 = vmatprep.subr.bf16.mxu1 %v9774_v56  ;;  %v841_v17 = vld [vmem:[#allocation6 + $0x1b0] sm:$0xff]  ;;  %v848_v19 = vld [vmem:[#allocation6 + $0x1e8] sm:$0xff]  ;;  %v850_v21 = vld [vmem:[#allocation6 + $0x1f8] sm:$0xff] }
 0x1de   : > { %v9784_v23 = vpack.c.bf16 %v841_v17, %v837_v15  ;;  %v9658_v24 = vpack.c.bf16 %v848_v19, %v844_v18  ;;  %v843_v25 = vld [vmem:[#allocation6 + $0x1c0] sm:$0xff]  ;;  %v845_v27 = vld [vmem:[#allocation6 + $0x1d0] sm:$0xff]  ;;  %v9786_v28 = vpack.c.bf16 %v850_v21, %v846_v20  ;;  %v852_v30 = vld [vmem:[#allocation6 + $0x208] sm:$0xff] }
 0x1df   : > { %9649 = vmatpush1.bf16.msra.mxu0 %v9648_v62  ;;  %v847_v26 = vld [vmem:[#allocation6 + $0x1e0] sm:$0xff]  ;;  %v849_v29 = vld [vmem:[#allocation6 + $0x1f0] sm:$0xff]  ;;  %v856_v31 = vld [vmem:[#allocation6 + $0x228] sm:$0xff] }
 0x1e0   : > { %9777 = vmatpush1.bf16.msra.mxu1 %v9776_v63  ;;  %9651 = vmatprep.subr.bf16.mxu0 %v9650_v0  ;;  %v854_v32 = vld [vmem:[#allocation6 + $0x218] sm:$0xff]  ;;  %v9660_v34 = vpack.c.bf16 %v847_v26, %v843_v25  ;;  %v9788_v35 = vpack.c.bf16 %v849_v29, %v845_v27  ;;  %v9662_v36 = vpack.c.bf16 %v856_v31, %v852_v30  ;;  %v851_v37 = vld [vmem:[#allocation6 + $0x200] sm:$0xff]  ;;  %v853_v39 = vld [vmem:[#allocation6 + $0x210] sm:$0xff] }
 0x1e1   : > { %9779 = vmatprep.subr.bf16.mxu1 %v9778_v4  ;;  %v858_v33 = vld [vmem:[#allocation6 + $0x238] sm:$0xff]  ;;  %v855_v38 = vld [vmem:[#allocation6 + $0x220] sm:$0xff]  ;;  %v857_v41 = vld [vmem:[#allocation6 + $0x230] sm:$0xff] }
 0x1e2   : > { %v9790_v40 = vpack.c.bf16 %v858_v33, %v854_v32  ;;  %v860_v42 = vld [vmem:[#allocation6 + $0x248] sm:$0xff]  ;;  %v862_v44 = vld [vmem:[#allocation6 + $0x258] sm:$0xff]  ;;  %v9664_v46 = vpack.c.bf16 %v855_v38, %v851_v37  ;;  %v9792_v47 = vpack.c.bf16 %v857_v41, %v853_v39  ;;  %v859_v49 = vld [vmem:[#allocation6 + $0x240] sm:$0xff] }
 0x1e3   : > { %9653 = vmatpush1.bf16.msra.mxu0 %v9652_v10  ;;  %v864_v43 = vld [vmem:[#allocation6 + $0x268] sm:$0xff]  ;;  %v866_v45 = vld [vmem:[#allocation6 + $0x278] sm:$0xff]  ;;  %v863_v50 = vld [vmem:[#allocation6 + $0x260] sm:$0xff] }
 0x1e4   : > { %9781 = vmatpush1.bf16.msra.mxu1 %v9780_v11  ;;  %9655 = vmatprep.subr.bf16.mxu0 %v9654_v12  ;;  %v9666_v48 = vpack.c.bf16 %v864_v43, %v860_v42  ;;  %v861_v51 = vld [vmem:[#allocation6 + $0x250] sm:$0xff]  ;;  %v9794_v52 = vpack.c.bf16 %v866_v45, %v862_v44  ;;  %v868_v54 = vld [vmem:[#allocation6 + $0x288] sm:$0xff]  ;;  %v870_v56 = vld [vmem:[#allocation6 + $0x298] sm:$0xff]  ;;  %v9668_v58 = vpack.c.bf16 %v863_v50, %v859_v49  ;;  %v11853_v49 = vmov 0.0  }
 0x1e5   : > { %9783 = vmatprep.subr.bf16.mxu1 %v9782_v16  ;;  %v865_v53 = vld [vmem:[#allocation6 + $0x270] sm:$0xff]  ;;  %v872_v55 = vld [vmem:[#allocation6 + $0x2a8] sm:$0xff]  ;;  %v874_v57 = vld [vmem:[#allocation6 + $0x2b8] sm:$0xff]  ;;  %3140 = vst [vmem:[#allocation24] sm:$0xff] %v11853_v49 }
 0x1e6   : > { %v9796_v59 = vpack.c.bf16 %v865_v53, %v861_v51  ;;  %v9670_v60 = vpack.c.bf16 %v872_v55, %v868_v54  ;;  %v867_v61 = vld [vmem:[#allocation6 + $0x280] sm:$0xff]  ;;  %v869_v63 = vld [vmem:[#allocation6 + $0x290] sm:$0xff]  ;;  %v9798_v0 = vpack.c.bf16 %v874_v57, %v870_v56  ;;  %v876_v2 = vld [vmem:[#allocation6 + $0x2c8] sm:$0xff] }
 0x1e7   : > { %9657 = vmatpush1.bf16.msra.mxu0 %v9656_v22  ;;  %v871_v62 = vld [vmem:[#allocation6 + $0x2a0] sm:$0xff]  ;;  %v873_v1 = vld [vmem:[#allocation6 + $0x2b0] sm:$0xff]  ;;  %v880_v3 = vld [vmem:[#allocation6 + $0x2e8] sm:$0xff] }
 0x1e8   : > { %9785 = vmatpush1.bf16.msra.mxu1 %v9784_v23  ;;  %9659 = vmatprep.subr.bf16.mxu0 %v9658_v24  ;;  %v878_v4 = vld [vmem:[#allocation6 + $0x2d8] sm:$0xff]  ;;  %v9672_v6 = vpack.c.bf16 %v871_v62, %v867_v61  ;;  %v875_v7 = vld [vmem:[#allocation6 + $0x2c0] sm:$0xff]  ;;  %v9800_v8 = vpack.c.bf16 %v873_v1, %v869_v63  ;;  %v9674_v9 = vpack.c.bf16 %v880_v3, %v876_v2  ;;  %v877_v11 = vld [vmem:[#allocation6 + $0x2d0] sm:$0xff] }
 0x1e9   : > { %9787 = vmatprep.subr.bf16.mxu1 %v9786_v28  ;;  %v882_v5 = vld [vmem:[#allocation6 + $0x2f8] sm:$0xff]  ;;  %v879_v10 = vld [vmem:[#allocation6 + $0x2e0] sm:$0xff]  ;;  %v881_v12 = vld [vmem:[#allocation6 + $0x2f0] sm:$0xff] }
 0x1ea   : > { %v9802_v13 = vpack.c.bf16 %v882_v5, %v878_v4  ;;  %v884_v14 = vld [vmem:[#allocation6 + $0x308] sm:$0xff]  ;;  %v886_v17 = vld [vmem:[#allocation6 + $0x318] sm:$0xff]  ;;  %v9676_v19 = vpack.c.bf16 %v879_v10, %v875_v7  ;;  %v9804_v20 = vpack.c.bf16 %v881_v12, %v877_v11  ;;  %v883_v22 = vld [vmem:[#allocation6 + $0x300] sm:$0xff] }
 0x1eb   : > { %9661 = vmatpush1.bf16.msra.mxu0 %v9660_v34  ;;  %v888_v15 = vld [vmem:[#allocation6 + $0x328] sm:$0xff]  ;;  %v890_v18 = vld [vmem:[#allocation6 + $0x338] sm:$0xff]  ;;  %v887_v23 = vld [vmem:[#allocation6 + $0x320] sm:$0xff] }
 0x1ec   : > { %9789 = vmatpush1.bf16.msra.mxu1 %v9788_v35  ;;  %9663 = vmatprep.subr.bf16.mxu0 %v9662_v36  ;;  %v736_v16 = vld [vmem:[#allocation3 + $0x8] sm:$0xff]  ;;  %v9678_v21 = vpack.c.bf16 %v888_v15, %v884_v14  ;;  %v885_v24 = vld [vmem:[#allocation6 + $0x310] sm:$0xff]  ;;  %v9806_v25 = vpack.c.bf16 %v890_v18, %v886_v17  ;;  %v894_v29 = vld [vmem:[#allocation6 + $0x358] sm:$0xff]  ;;  %v9680_v31 = vpack.c.bf16 %v887_v23, %v883_v22 }
 0x1ed   : > { %9791 = vmatprep.subr.bf16.mxu1 %v9790_v40  ;;  %1107 = vmatprep.mubr.f32.mxu0 %v736_v16  ;;  %v889_v26 = vld [vmem:[#allocation6 + $0x330] sm:$0xff]  ;;  %v892_v27 = vld [vmem:[#allocation6 + $0x348] sm:$0xff]  ;;  %v898_v30 = vld [vmem:[#allocation6 + $0x378] sm:$0xff] }
 0x1ee   : > { %1393 = vmatprep.mubr.f32.mxu1 %v736_v16  ;;  %v896_v28 = vld [vmem:[#allocation6 + $0x368] sm:$0xff]  ;;  %v9808_v32 = vpack.c.bf16 %v889_v26, %v885_v24  ;;  %v891_v34 = vld [vmem:[#allocation6 + $0x340] sm:$0xff]  ;;  %v893_v36 = vld [vmem:[#allocation6 + $0x350] sm:$0xff]  ;;  %v9810_v37 = vpack.c.bf16 %v898_v30, %v894_v29 }
 0x1ef   : > { %9665 = vmatpush1.bf16.msra.mxu0 %v9664_v46  ;;  %v9682_v33 = vpack.c.bf16 %v896_v28, %v892_v27  ;;  %v895_v35 = vld [vmem:[#allocation6 + $0x360] sm:$0xff]  ;;  %v897_v38 = vld [vmem:[#allocation6 + $0x370] sm:$0xff]  ;;  %v900_v39 = vld [vmem:[#allocation6 + $0x388] sm:$0xff] }
 0x1f0   : > { %9793 = vmatpush1.bf16.msra.mxu1 %v9792_v47  ;;  %9667 = vmatprep.subr.bf16.mxu0 %v9666_v48  ;;  %v904_v40 = vld [vmem:[#allocation6 + $0x3a8] sm:$0xff]  ;;  %v902_v41 = vld [vmem:[#allocation6 + $0x398] sm:$0xff]  ;;  %v9684_v43 = vpack.c.bf16 %v895_v35, %v891_v34  ;;  %v9812_v44 = vpack.c.bf16 %v897_v38, %v893_v36  ;;  %v899_v46 = vld [vmem:[#allocation6 + $0x380] sm:$0xff] }
 0x1f1   : > { %9795 = vmatprep.subr.bf16.mxu1 %v9794_v52  ;;  %v906_v42 = vld [vmem:[#allocation6 + $0x3b8] sm:$0xff]  ;;  %v9686_v45 = vpack.c.bf16 %v904_v40, %v900_v39  ;;  %v903_v47 = vld [vmem:[#allocation6 + $0x3a0] sm:$0xff]  ;;  %v901_v48 = vld [vmem:[#allocation6 + $0x390] sm:$0xff] }
 0x1f2   : > { %v9814_v50 = vpack.c.bf16 %v906_v42, %v902_v41  ;;  %v905_v51 = vld [vmem:[#allocation6 + $0x3b0] sm:$0xff]  ;;  %v908_v52 = vld [vmem:[#allocation6 + $0x3c8] sm:$0xff]  ;;  %v910_v54 = vld [vmem:[#allocation6 + $0x3d8] sm:$0xff]  ;;  %v9688_v56 = vpack.c.bf16 %v903_v47, %v899_v46 }
 0x1f3   : > { %9669 = vmatpush1.bf16.msra.mxu0 %v9668_v58  ;;  %v912_v53 = vld [vmem:[#allocation6 + $0x3e8] sm:$0xff]  ;;  %v914_v55 = vld [vmem:[#allocation6 + $0x3f8] sm:$0xff]  ;;  %v9816_v57 = vpack.c.bf16 %v905_v51, %v901_v48  ;;  %v909_v61 = vld [vmem:[#allocation6 + $0x3d0] sm:$0xff] }
 0x1f4   : > { %9797 = vmatpush1.bf16.msra.mxu1 %v9796_v59  ;;  %9671 = vmatprep.subr.bf16.mxu0 %v9670_v60  ;;  %v9690_v58 = vpack.c.bf16 %v912_v53, %v908_v52  ;;  %v907_v59 = vld [vmem:[#allocation6 + $0x3c0] sm:$0xff]  ;;  %v9818_v62 = vpack.c.bf16 %v914_v55, %v910_v54  ;;  %v913_v63 = vld [vmem:[#allocation6 + $0x3f0] sm:$0xff]  ;;  %v920_v1 = vld [vmem:[#allocation6 + $0x428] sm:$0xff] }
 0x1f5   : > { %9799 = vmatprep.subr.bf16.mxu1 %v9798_v0  ;;  %v911_v60 = vld [vmem:[#allocation6 + $0x3e0] sm:$0xff]  ;;  %v916_v0 = vld [vmem:[#allocation6 + $0x408] sm:$0xff]  ;;  %v918_v2 = vld [vmem:[#allocation6 + $0x418] sm:$0xff]  ;;  %v9820_v5 = vpack.c.bf16 %v913_v63, %v909_v61 }
 0x1f6   : > { %v922_v3 = vld [vmem:[#allocation6 + $0x438] sm:$0xff]  ;;  %v9692_v4 = vpack.c.bf16 %v911_v60, %v907_v59  ;;  %v915_v7 = vld [vmem:[#allocation6 + $0x400] sm:$0xff]  ;;  %v921_v11 = vld [vmem:[#allocation6 + $0x430] sm:$0xff] }
 0x1f7   : > { %9673 = vmatpush1.bf16.msra.mxu0 %v9672_v6  ;;  %v9694_v6 = vpack.c.bf16 %v920_v1, %v916_v0  ;;  %v9822_v10 = vpack.c.bf16 %v922_v3, %v918_v2  ;;  %v924_v12 = vld [vmem:[#allocation6 + $0x448] sm:$0xff]  ;;  %v926_v14 = vld [vmem:[#allocation6 + $0x458] sm:$0xff]  ;;  %v735_v16 = vld [vmem:[#allocation3] sm:$0xff] }
 0x1f8   : > { %9801 = vmatpush1.bf16.msra.mxu1 %v9800_v8  ;;  %9675 = vmatprep.subr.bf16.mxu0 %v9674_v9  ;;  %v919_v8 = vld [vmem:[#allocation6 + $0x420] sm:$0xff]  ;;  %v917_v9 = vld [vmem:[#allocation6 + $0x410] sm:$0xff]  ;;  %v930_v15 = vld [vmem:[#allocation6 + $0x478] sm:$0xff] }
 0x1f9   : > { %9803 = vmatprep.subr.bf16.mxu1 %v9802_v13  ;;  %v928_v13 = vld [vmem:[#allocation6 + $0x468] sm:$0xff]  ;;  %v9696_v17 = vpack.c.bf16 %v919_v8, %v915_v7  ;;  %v9824_v18 = vpack.c.bf16 %v921_v11, %v917_v9  ;;  %v925_v22 = vld [vmem:[#allocation6 + $0x450] sm:$0xff]  ;;  %v9826_v23 = vpack.c.bf16 %v930_v15, %v926_v14  ;;  %v934_v27 = vld [vmem:[#allocation6 + $0x498] sm:$0xff] }
 0x1fa   : > { %v929_v24 = vld [vmem:[#allocation6 + $0x470] sm:$0xff]  ;;  %v936_v26 = vld [vmem:[#allocation6 + $0x4a8] sm:$0xff]  ;;  %v938_v28 = vld [vmem:[#allocation6 + $0x4b8] sm:$0xff] }
 0x1fb   : > { %9677 = vmatpush1.bf16.msra.mxu0 %v9676_v19  ;;  %v9698_v19 = vpack.c.bf16 %v928_v13, %v924_v12  ;;  %v740_v29 = vld [vmem:[#allocation3 + $0x28] sm:$0xff]  ;;  %v931_v34 = vld [vmem:[#allocation6 + $0x480] sm:$0xff]  ;;  %v933_v36 = vld [vmem:[#allocation6 + $0x490] sm:$0xff] }
 0x1fc   : > { %9805 = vmatpush1.bf16.msra.mxu1 %v9804_v20  ;;  %9679 = vmatprep.subr.bf16.mxu0 %v9678_v21  ;;  %v923_v20 = vld [vmem:[#allocation6 + $0x440] sm:$0xff]  ;;  %v937_v38 = vld [vmem:[#allocation6 + $0x4b0] sm:$0xff]  ;;  %v940_v39 = vld [vmem:[#allocation6 + $0x4c8] sm:$0xff] }
 0x1fd   : > { %9807 = vmatprep.subr.bf16.mxu1 %v9806_v25  ;;  %v927_v21 = vld [vmem:[#allocation6 + $0x460] sm:$0xff]  ;;  %v932_v25 = vld [vmem:[#allocation6 + $0x488] sm:$0xff]  ;;  %v942_v41 = vld [vmem:[#allocation6 + $0x4d8] sm:$0xff]  ;;  %v9832_v46 = vpack.c.bf16 %v937_v38, %v933_v36 }
 0x1fe   : > { %v9700_v30 = vpack.c.bf16 %v927_v21, %v923_v20  ;;  %v935_v35 = vld [vmem:[#allocation6 + $0x4a0] sm:$0xff]  ;;  %v944_v40 = vld [vmem:[#allocation6 + $0x4e8] sm:$0xff]  ;;  %v946_v42 = vld [vmem:[#allocation6 + $0x4f8] sm:$0xff] }
 0x1ff   : > { %9681 = vmatpush1.bf16.msra.mxu0 %v9680_v31  ;;  %v739_v31 = vld [vmem:[#allocation3 + $0x20] sm:$0xff]  ;;  %v9706_v47 = vpack.c.bf16 %v944_v40, %v940_v39  ;;  %v941_v51 = vld [vmem:[#allocation6 + $0x4d0] sm:$0xff]  ;;  %v9834_v52 = vpack.c.bf16 %v946_v42, %v942_v41  ;;  %v948_v54 = vld [vmem:[#allocation6 + $0x508] sm:$0xff] }
 0x200   : > { %9809 = vmatpush1.bf16.msra.mxu1 %v9808_v32  ;;  %9683 = vmatprep.subr.bf16.mxu0 %v9682_v33  ;;  %v9828_v32 = vpack.c.bf16 %v929_v24, %v925_v22  ;;  %v9702_v33 = vpack.c.bf16 %v936_v26, %v932_v25  ;;  %v939_v48 = vld [vmem:[#allocation6 + $0x4c0] sm:$0xff]  ;;  %v945_v53 = vld [vmem:[#allocation6 + $0x4f0] sm:$0xff]  ;;  %v952_v55 = vld [vmem:[#allocation6 + $0x528] sm:$0xff] }
 0x201   : > { %9811 = vmatprep.subr.bf16.mxu1 %v9810_v37  ;;  %v9830_v37 = vpack.c.bf16 %v938_v28, %v934_v27  ;;  %v747_v60 = vld [vmem:[#allocation3 + $0x60] sm:$0xff]  ;;  %v9836_v61 = vpack.c.bf16 %v945_v53, %v941_v51  ;;  %v949_v1 = vld [vmem:[#allocation6 + $0x510] sm:$0xff]  ;;  %v962_v7 = vld [vmem:[#allocation6 + $0x578] sm:$0xff] }
 0x202   : > { %v947_v63 = vld [vmem:[#allocation6 + $0x500] sm:$0xff]  ;;  %v953_v3 = vld [vmem:[#allocation6 + $0x530] sm:$0xff]  ;;  %v752_v8 = vld [vmem:[#allocation3 + $0x88] sm:$0xff] }
 0x203   : > { %9685 = vmatpush1.bf16.msra.mxu0 %v9684_v43  ;;  %v744_v43 = vld [vmem:[#allocation3 + $0x48] sm:$0xff]  ;;  %v951_v0 = vld [vmem:[#allocation6 + $0x520] sm:$0xff]  ;;  %v9840_v11 = vpack.c.bf16 %v953_v3, %v949_v1  ;;  %v957_v15 = vld [vmem:[#allocation6 + $0x550] sm:$0xff] }
 0x204   : > { %9813 = vmatpush1.bf16.msra.mxu1 %v9812_v44  ;;  %9687 = vmatprep.subr.bf16.mxu0 %v9686_v45  ;;  %v9704_v44 = vpack.c.bf16 %v935_v35, %v931_v34  ;;  %v743_v45 = vld [vmem:[#allocation3 + $0x40] sm:$0xff]  ;;  %v9712_v9 = vpack.c.bf16 %v951_v0, %v947_v63  ;;  %v966_v20 = vld [vmem:[#allocation6 + $0x598] sm:$0xff]  ;;  %v756_v22 = vld [vmem:[#allocation3 + $0xa8] sm:$0xff] }
 0x205   : > { %9815 = vmatprep.subr.bf16.mxu1 %v9814_v50  ;;  %v943_v50 = vld [vmem:[#allocation6 + $0x4e0] sm:$0xff]  ;;  %v970_v21 = vld [vmem:[#allocation6 + $0x5b8] sm:$0xff]  ;;  %v760_v36 = vld [vmem:[#allocation3 + $0xc8] sm:$0xff] }
 0x206   : > { %v9708_v59 = vpack.c.bf16 %v943_v50, %v939_v48  ;;  %v955_v13 = vld [vmem:[#allocation6 + $0x540] sm:$0xff]  ;;  %v974_v34 = vld [vmem:[#allocation6 + $0x5d8] sm:$0xff]  ;;  %v764_v51 = vld [vmem:[#allocation3 + $0xe8] sm:$0xff] }
 0x207   : > { %9689 = vmatpush1.bf16.msra.mxu0 %v9688_v56  ;;  %v950_v56 = vld [vmem:[#allocation6 + $0x518] sm:$0xff]  ;;  %v959_v14 = vld [vmem:[#allocation6 + $0x560] sm:$0xff]  ;;  %v768_v1 = vld [vmem:[#allocation3 + $0x108] sm:$0xff] }
 0x208   : > { %9817 = vmatpush1.bf16.msra.mxu1 %v9816_v57  ;;  %9691 = vmatprep.subr.bf16.mxu0 %v9690_v58  ;;  %v954_v57 = vld [vmem:[#allocation6 + $0x538] sm:$0xff]  ;;  %v748_v58 = vld [vmem:[#allocation3 + $0x68] sm:$0xff]  ;;  %v755_v24 = vld [vmem:[#allocation3 + $0xa0] sm:$0xff] }
 0x209   : > { %9819 = vmatprep.subr.bf16.mxu1 %v9818_v62  ;;  %v9710_v62 = vpack.c.bf16 %v952_v55, %v948_v54  ;;  %v9838_v2 = vpack.c.bf16 %v954_v57, %v950_v56  ;;  %v963_v27 = vld [vmem:[#allocation6 + $0x580] sm:$0xff]  ;;  %v978_v35 = vld [vmem:[#allocation6 + $0x5f8] sm:$0xff] }
 0x20a   : > { %v967_v28 = vld [vmem:[#allocation6 + $0x5a0] sm:$0xff]  ;;  %v982_v48 = vld [vmem:[#allocation6 + $0x618] sm:$0xff] }
 0x20b   : > { %9693 = vmatpush1.bf16.msra.mxu0 %v9692_v4  ;;  %v956_v4 = vld [vmem:[#allocation6 + $0x548] sm:$0xff]  ;;  %v759_v38 = vld [vmem:[#allocation3 + $0xc0] sm:$0xff]  ;;  %v986_v50 = vld [vmem:[#allocation6 + $0x638] sm:$0xff] }
 0x20c   : > { %9821 = vmatpush1.bf16.msra.mxu1 %v9820_v5  ;;  %9695 = vmatprep.subr.bf16.mxu0 %v9694_v6  ;;  %v960_v5 = vld [vmem:[#allocation6 + $0x568] sm:$0xff]  ;;  %v958_v6 = vld [vmem:[#allocation6 + $0x558] sm:$0xff]  ;;  %v971_v41 = vld [vmem:[#allocation6 + $0x5c0] sm:$0xff] }
 0x20d   : > { %9823 = vmatprep.subr.bf16.mxu1 %v9822_v10  ;;  %v751_v10 = vld [vmem:[#allocation3 + $0x80] sm:$0xff]  ;;  %v9714_v12 = vpack.c.bf16 %v960_v5, %v956_v4  ;;  %v990_v63 = vld [vmem:[#allocation6 + $0x658] sm:$0xff] }
 0x20e   : > { %1108 = vmatmul.mubr.f32.vlgmr.msra.gmra.mrb[0].mxu0 %v735_v16  ;;  %v975_v42 = vld [vmem:[#allocation6 + $0x5e0] sm:$0xff]  ;;  %v994_v0 = vld [vmem:[#allocation6 + $0x678] sm:$0xff] }
 0x20f   : > { %9697 = vmatpush1.bf16.msra.mxu0 %v9696_v17  ;;  %1394 = vmatmul.mubr.f32.vlgmr.msra.gmra.mrb[0].mxu1 %v735_v16  ;;  %v9842_v16 = vpack.c.bf16 %v962_v7, %v958_v6  ;;  %v961_v17 = vld [vmem:[#allocation6 + $0x570] sm:$0xff]  ;;  %v763_v53 = vld [vmem:[#allocation3 + $0xe0] sm:$0xff] }
 0x210   : > { %9825 = vmatpush1.bf16.msra.mxu1 %v9824_v18  ;;  %9699 = vmatprep.subr.bf16.mxu0 %v9698_v19  ;;  %v964_v18 = vld [vmem:[#allocation6 + $0x588] sm:$0xff]  ;;  %v9844_v25 = vpack.c.bf16 %v961_v17, %v957_v15  ;;  %v979_v56 = vld [vmem:[#allocation6 + $0x600] sm:$0xff] }
 0x211   : > { %9827 = vmatprep.subr.bf16.mxu1 %v9826_v23  ;;  %1113 = vmatprep.mubr.f32.mxu0 %v740_v29  ;;  %v968_v19 = vld [vmem:[#allocation6 + $0x5a8] sm:$0xff]  ;;  %v9716_v23 = vpack.c.bf16 %v959_v14, %v955_v13  ;;  %v983_v57 = vld [vmem:[#allocation6 + $0x620] sm:$0xff]  ;;  %v998_v13 = vld [vmem:[#allocation6 + $0x698] sm:$0xff] }
 0x212   : > { %1399 = vmatprep.mubr.f32.mxu1 %v740_v29  ;;  %1114 = vmatmul.mubr.f32.gmra.mrb[2].mxu0 %v739_v31  ;;  %v9718_v26 = vpack.c.bf16 %v968_v19, %v964_v18  ;;  %v965_v29 = vld [vmem:[#allocation6 + $0x590] sm:$0xff]  ;;  %v767_v3 = vld [vmem:[#allocation3 + $0x100] sm:$0xff]  ;;  %v1002_v14 = vld [vmem:[#allocation6 + $0x6b8] sm:$0xff] }
 0x213   : > { %9701 = vmatpush1.bf16.msra.mxu0 %v9700_v30  ;;  %1400 = vmatmul.mubr.f32.gmra.mrb[2].mxu1 %v739_v31  ;;  %v9846_v30 = vpack.c.bf16 %v970_v21, %v966_v20  ;;  %v969_v31 = vld [vmem:[#allocation6 + $0x5b0] sm:$0xff]  ;;  %v987_v6 = vld [vmem:[#allocation6 + $0x640] sm:$0xff]  ;;  %v772_v15 = vld [vmem:[#allocation3 + $0x128] sm:$0xff] }
 0x214   : > { %9829 = vmatpush1.bf16.msra.mxu1 %v9828_v32  ;;  %9703 = vmatprep.subr.bf16.mxu0 %v9702_v33  ;;  %v972_v32 = vld [vmem:[#allocation6 + $0x5c8] sm:$0xff]  ;;  %v9848_v39 = vpack.c.bf16 %v969_v31, %v965_v29  ;;  %v991_v7 = vld [vmem:[#allocation6 + $0x660] sm:$0xff] }
 0x215   : > { %9831 = vmatprep.subr.bf16.mxu1 %v9830_v37  ;;  %1119 = vmatprep.mubr.f32.mxu0 %v744_v43  ;;  %v976_v33 = vld [vmem:[#allocation6 + $0x5e8] sm:$0xff]  ;;  %v9720_v37 = vpack.c.bf16 %v967_v28, %v963_v27  ;;  %v771_v17 = vld [vmem:[#allocation3 + $0x120] sm:$0xff]  ;;  %v1006_v27 = vld [vmem:[#allocation6 + $0x6d8] sm:$0xff] }
 0x216   : > { %1405 = vmatprep.mubr.f32.mxu1 %v744_v43  ;;  %1120 = vmatmul.mubr.f32.gmra.mrb[4].mxu0 %v743_v45  ;;  %v9722_v40 = vpack.c.bf16 %v976_v33, %v972_v32  ;;  %v973_v43 = vld [vmem:[#allocation6 + $0x5d0] sm:$0xff]  ;;  %v995_v20 = vld [vmem:[#allocation6 + $0x680] sm:$0xff]  ;;  %v1010_v28 = vld [vmem:[#allocation6 + $0x6f8] sm:$0xff] }
 0x217   : > { %9705 = vmatpush1.bf16.msra.mxu0 %v9704_v44  ;;  %1406 = vmatmul.mubr.f32.gmra.mrb[4].mxu1 %v743_v45  ;;  %v9850_v44 = vpack.c.bf16 %v978_v35, %v974_v34  ;;  %v977_v45 = vld [vmem:[#allocation6 + $0x5f0] sm:$0xff]  ;;  %v999_v21 = vld [vmem:[#allocation6 + $0x6a0] sm:$0xff]  ;;  %v776_v29 = vld [vmem:[#allocation3 + $0x148] sm:$0xff] }
 0x218   : > { %9833 = vmatpush1.bf16.msra.mxu1 %v9832_v46  ;;  %9707 = vmatprep.subr.bf16.mxu0 %v9706_v47  ;;  %v980_v46 = vld [vmem:[#allocation6 + $0x608] sm:$0xff]  ;;  %v9852_v54 = vpack.c.bf16 %v977_v45, %v973_v43  ;;  %v775_v31 = vld [vmem:[#allocation3 + $0x140] sm:$0xff] }
 0x219   : > { %9835 = vmatprep.subr.bf16.mxu1 %v9834_v52  ;;  %1125 = vmatprep.mubr.f32.mxu0 %v748_v58  ;;  %v984_v47 = vld [vmem:[#allocation6 + $0x628] sm:$0xff]  ;;  %v9724_v52 = vpack.c.bf16 %v975_v42, %v971_v41  ;;  %v1003_v34 = vld [vmem:[#allocation6 + $0x6c0] sm:$0xff]  ;;  %v1014_v41 = vld [vmem:[#allocation6 + $0x718] sm:$0xff] }
 0x21a   : > { %1411 = vmatprep.mubr.f32.mxu1 %v748_v58  ;;  %1126 = vmatmul.mubr.f32.gmra.mrb[6].mxu0 %v747_v60  ;;  %v9726_v55 = vpack.c.bf16 %v984_v47, %v980_v46  ;;  %v981_v58 = vld [vmem:[#allocation6 + $0x610] sm:$0xff]  ;;  %v1007_v35 = vld [vmem:[#allocation6 + $0x6e0] sm:$0xff]  ;;  %v1018_v42 = vld [vmem:[#allocation6 + $0x738] sm:$0xff] }
 0x21b   : > { %9709 = vmatpush1.bf16.msra.mxu0 %v9708_v59  ;;  %1412 = vmatmul.mubr.f32.gmra.mrb[6].mxu1 %v747_v60  ;;  %v9854_v59 = vpack.c.bf16 %v986_v50, %v982_v48  ;;  %v985_v60 = vld [vmem:[#allocation6 + $0x630] sm:$0xff]  ;;  %v780_v43 = vld [vmem:[#allocation3 + $0x168] sm:$0xff]  ;;  %v779_v45 = vld [vmem:[#allocation3 + $0x160] sm:$0xff] }
 0x21c   : > { %9837 = vmatpush1.bf16.msra.mxu1 %v9836_v61  ;;  %9711 = vmatprep.subr.bf16.mxu0 %v9710_v62  ;;  %v988_v61 = vld [vmem:[#allocation6 + $0x648] sm:$0xff]  ;;  %v9856_v4 = vpack.c.bf16 %v985_v60, %v981_v58  ;;  %v1011_v48 = vld [vmem:[#allocation6 + $0x700] sm:$0xff] }
 0x21d   : > { %9839 = vmatprep.subr.bf16.mxu1 %v9838_v2  ;;  %1131 = vmatprep.mubr.f32.mxu0 %v752_v8  ;;  %v992_v62 = vld [vmem:[#allocation6 + $0x668] sm:$0xff]  ;;  %v9728_v2 = vpack.c.bf16 %v983_v57, %v979_v56  ;;  %v1015_v50 = vld [vmem:[#allocation6 + $0x720] sm:$0xff]  ;;  %v1022_v56 = vld [vmem:[#allocation6 + $0x758] sm:$0xff] }
 0x21e   : > { %1417 = vmatprep.mubr.f32.mxu1 %v752_v8  ;;  %1132 = vmatmul.mubr.f32.gmra.mrb[8].mxu0 %v751_v10  ;;  %v9730_v5 = vpack.c.bf16 %v992_v62, %v988_v61  ;;  %v989_v8 = vld [vmem:[#allocation6 + $0x650] sm:$0xff]  ;;  %v1026_v57 = vld [vmem:[#allocation6 + $0x778] sm:$0xff]  ;;  %v784_v58 = vld [vmem:[#allocation3 + $0x188] sm:$0xff] }
 0x21f   : > { %9713 = vmatpush1.bf16.msra.mxu0 %v9712_v9  ;;  %1418 = vmatmul.mubr.f32.gmra.mrb[8].mxu1 %v751_v10  ;;  %v9858_v9 = vpack.c.bf16 %v994_v0, %v990_v63  ;;  %v993_v10 = vld [vmem:[#allocation6 + $0x670] sm:$0xff]  ;;  %v783_v60 = vld [vmem:[#allocation3 + $0x180] sm:$0xff] }
 0x220   : > { %9841 = vmatpush1.bf16.msra.mxu1 %v9840_v11  ;;  %9715 = vmatprep.subr.bf16.mxu0 %v9714_v12  ;;  %v996_v11 = vld [vmem:[#allocation6 + $0x688] sm:$0xff]  ;;  %v9860_v18 = vpack.c.bf16 %v993_v10, %v989_v8  ;;  %v1019_v63 = vld [vmem:[#allocation6 + $0x740] sm:$0xff]  ;;  %v738_v8 = vld [vmem:[#allocation3 + $0x18] sm:$0xff] }
 0x221   : > { %9843 = vmatprep.subr.bf16.mxu1 %v9842_v16  ;;  %1137 = vmatprep.mubr.f32.mxu0 %v756_v22  ;;  %v1000_v12 = vld [vmem:[#allocation6 + $0x6a8] sm:$0xff]  ;;  %v9732_v16 = vpack.c.bf16 %v991_v7, %v987_v6  ;;  %v1023_v0 = vld [vmem:[#allocation6 + $0x760] sm:$0xff]  ;;  %v1030_v6 = vld [vmem:[#allocation6 + $0x798] sm:$0xff] }
 0x222   : > { %1423 = vmatprep.mubr.f32.mxu1 %v756_v22  ;;  %1138 = vmatmul.mubr.f32.gmra.mrb[10].mxu0 %v755_v24  ;;  %v9734_v19 = vpack.c.bf16 %v1000_v12, %v996_v11  ;;  %v997_v22 = vld [vmem:[#allocation6 + $0x690] sm:$0xff]  ;;  %v1034_v7 = vld [vmem:[#allocation6 + $0x7b8] sm:$0xff]  ;;  %v1027_v12 = vld [vmem:[#allocation6 + $0x780] sm:$0xff] }
 0x223   : > { %9717 = vmatpush1.bf16.msra.mxu0 %v9716_v23  ;;  %1424 = vmatmul.mubr.f32.gmra.mrb[10].mxu1 %v755_v24  ;;  %v9862_v23 = vpack.c.bf16 %v1002_v14, %v998_v13  ;;  %v1001_v24 = vld [vmem:[#allocation6 + $0x6b0] sm:$0xff]  ;;  %v1031_v13 = vld [vmem:[#allocation6 + $0x7a0] sm:$0xff] }
 0x224   : > { %9845 = vmatpush1.bf16.msra.mxu1 %v9844_v25  ;;  %9719 = vmatprep.subr.bf16.mxu0 %v9718_v26  ;;  %v1004_v25 = vld [vmem:[#allocation6 + $0x6c8] sm:$0xff]  ;;  %v9864_v32 = vpack.c.bf16 %v1001_v24, %v997_v22  ;;  %v1029_v14 = vld [vmem:[#allocation6 + $0x790] sm:$0xff]  ;;  %v1035_v24 = vld [vmem:[#allocation6 + $0x7c0] sm:$0xff] }
 0x225   : > { %9847 = vmatprep.subr.bf16.mxu1 %v9846_v30  ;;  %1143 = vmatprep.mubr.f32.mxu0 %v760_v36  ;;  %v1008_v26 = vld [vmem:[#allocation6 + $0x6e8] sm:$0xff]  ;;  %v9736_v30 = vpack.c.bf16 %v999_v21, %v995_v20  ;;  %v1042_v20 = vld [vmem:[#allocation6 + $0x7f8] sm:$0xff]  ;;  %v9752_v21 = vpack.c.bf16 %v1031_v13, %v1027_v12 }
 0x226   : > { %1429 = vmatprep.mubr.f32.mxu1 %v760_v36  ;;  %1144 = vmatmul.mubr.f32.gmra.mrb[12].mxu0 %v759_v38  ;;  %v9738_v33 = vpack.c.bf16 %v1008_v26, %v1004_v25  ;;  %v1005_v36 = vld [vmem:[#allocation6 + $0x6d0] sm:$0xff]  ;;  %v1039_v25 = vld [vmem:[#allocation6 + $0x7e0] sm:$0xff] }
 0x227   : > { %9721 = vmatpush1.bf16.msra.mxu0 %v9720_v37  ;;  %1430 = vmatmul.mubr.f32.gmra.mrb[12].mxu1 %v759_v38  ;;  %v9866_v37 = vpack.c.bf16 %v1010_v28, %v1006_v27  ;;  %v1009_v38 = vld [vmem:[#allocation6 + $0x6f0] sm:$0xff]  ;;  %v2008_v13 = vld [vmem:[#allocation11 + $0x198] sm:$0xff] }
 0x228   : > { %9849 = vmatpush1.bf16.msra.mxu1 %v9848_v39  ;;  %9723 = vmatprep.subr.bf16.mxu0 %v9722_v40  ;;  %v1012_v39 = vld [vmem:[#allocation6 + $0x708] sm:$0xff]  ;;  %v9868_v46 = vpack.c.bf16 %v1009_v38, %v1005_v36  ;;  %v1037_v27 = vld [vmem:[#allocation6 + $0x7d0] sm:$0xff] }
 0x229   : > { %9851 = vmatprep.subr.bf16.mxu1 %v9850_v44  ;;  %1149 = vmatprep.mubr.f32.mxu0 %v764_v51  ;;  %v1016_v40 = vld [vmem:[#allocation6 + $0x728] sm:$0xff]  ;;  %v9740_v44 = vpack.c.bf16 %v1007_v35, %v1003_v34  ;;  %v1041_v28 = vld [vmem:[#allocation6 + $0x7f0] sm:$0xff]  ;;  %v1992_v34 = vld [vmem:[#allocation11 + $0x118] sm:$0xff] }
 0x22a   : > { %1435 = vmatprep.mubr.f32.mxu1 %v764_v51  ;;  %1150 = vmatmul.mubr.f32.gmra.mrb[14].mxu0 %v763_v53  ;;  %v9742_v47 = vpack.c.bf16 %v1016_v40, %v1012_v39  ;;  %v1013_v51 = vld [vmem:[#allocation6 + $0x710] sm:$0xff]  ;;  %v11854_v39 = vmov 0.0|0.0  }
 0x22b   : > { %9725 = vmatpush1.bf16.msra.mxu0 %v9724_v52  ;;  %1436 = vmatmul.mubr.f32.gmra.mrb[14].mxu1 %v763_v53  ;;  %v9870_v52 = vpack.c.bf16 %v1018_v42, %v1014_v41  ;;  %v1017_v53 = vld [vmem:[#allocation6 + $0x730] sm:$0xff]  ;;  %v1989_v41 = vld [vmem:[#allocation11 + $0x100] sm:$0xff] }
 0x22c   : > { %9853 = vmatpush1.bf16.msra.mxu1 %v9852_v54  ;;  %9727 = vmatprep.subr.bf16.mxu0 %v9726_v55  ;;  %v1020_v54 = vld [vmem:[#allocation6 + $0x748] sm:$0xff]  ;;  %v9872_v61 = vpack.c.bf16 %v1017_v53, %v1013_v51  ;;  %v737_v35 = vld [vmem:[#allocation3 + $0x10] sm:$0xff]  ;;  %v1632_v51 = vld [vmem:[#allocation8 + $0x20] sm:$0xff] }
 0x22d   : > { %9855 = vmatprep.subr.bf16.mxu1 %v9854_v59  ;;  %1155 = vmatprep.mubr.f32.mxu0 %v768_v1  ;;  %v1024_v55 = vld [vmem:[#allocation6 + $0x768] sm:$0xff]  ;;  %v9744_v59 = vpack.c.bf16 %v1015_v50, %v1011_v48  ;;  %v1630_v40 = vld [vmem:[#allocation8 + $0x10] sm:$0xff] }
 0x22e   : > { %1441 = vmatprep.mubr.f32.mxu1 %v768_v1  ;;  %1156 = vmatmul.mubr.f32.gmra.mrb[16].mxu0 %v767_v3  ;;  %v9746_v62 = vpack.c.bf16 %v1024_v55, %v1020_v54  ;;  %v1021_v1 = vld [vmem:[#allocation6 + $0x750] sm:$0xff]  ;;  %v1993_v53 = vld [vmem:[#allocation11 + $0x120] sm:$0xff] }
 0x22f   : > { %9729 = vmatpush1.bf16.msra.mxu0 %v9728_v2  ;;  %1442 = vmatmul.mubr.f32.gmra.mrb[16].mxu1 %v767_v3  ;;  %v9874_v2 = vpack.c.bf16 %v1026_v57, %v1022_v56  ;;  %v1025_v3 = vld [vmem:[#allocation6 + $0x770] sm:$0xff]  ;;  %v1633_v55 = vld [vmem:[#allocation8 + $0x28] sm:$0xff]  ;;  %v2000_v57 = vld [vmem:[#allocation11 + $0x158] sm:$0xff] }
 0x230   : > { %9857 = vmatpush1.bf16.msra.mxu1 %v9856_v4  ;;  %9731 = vmatprep.subr.bf16.mxu0 %v9730_v5  ;;  %v1028_v4 = vld [vmem:[#allocation6 + $0x788] sm:$0xff]  ;;  %v9876_v10 = vpack.c.bf16 %v1025_v3, %v1021_v1  ;;  %v1991_v42 = vld [vmem:[#allocation11 + $0x110] sm:$0xff] }
 0x231   : > { %9859 = vmatprep.subr.bf16.mxu1 %v9858_v9  ;;  %1161 = vmatprep.mubr.f32.mxu0 %v772_v15  ;;  %v1032_v5 = vld [vmem:[#allocation6 + $0x7a8] sm:$0xff]  ;;  %v9748_v9 = vpack.c.bf16 %v1023_v0, %v1019_v63  ;;  %v12410_v48 = vpack.c.bf16 %v1991_v42, %v1989_v41  ;;  %v1995_v54 = vld [vmem:[#allocation11 + $0x130] sm:$0xff] }
 0x232   : > { %1447 = vmatprep.mubr.f32.mxu1 %v772_v15  ;;  %1162 = vmatmul.mubr.f32.gmra.mrb[18].mxu0 %v771_v17  ;;  %v9750_v11 = vpack.c.bf16 %v1032_v5, %v1028_v4  ;;  %v9878_v15 = vpack.c.bf16 %v1034_v7, %v1030_v6  ;;  %v1998_v56 = vld [vmem:[#allocation11 + $0x148] sm:$0xff]  ;;  %v1997_v0 = vld [vmem:[#allocation11 + $0x140] sm:$0xff]  ;;  %v1999_v1 = vld [vmem:[#allocation11 + $0x150] sm:$0xff] }
 0x233   : > { %9733 = vmatpush1.bf16.msra.mxu0 %v9732_v16  ;;  %1448 = vmatmul.mubr.f32.gmra.mrb[18].mxu1 %v771_v17  ;;  %v1033_v16 = vld [vmem:[#allocation6 + $0x7b0] sm:$0xff]  ;;  %v1036_v17 = vld [vmem:[#allocation6 + $0x7c8] sm:$0xff]  ;;  %v12418_v63 = vpack.c.bf16 %v2000_v57, %v1998_v56  ;;  %v2004_v4 = vld [vmem:[#allocation11 + $0x178] sm:$0xff]  ;;  %v12422_v6 = vpack.c.bf16 %v1999_v1, %v1997_v0 }
 0x234   : > { %9861 = vmatpush1.bf16.msra.mxu1 %v9860_v18  ;;  %9735 = vmatprep.subr.bf16.mxu0 %v9734_v19  ;;  %v1040_v18 = vld [vmem:[#allocation6 + $0x7e8] sm:$0xff]  ;;  %v1038_v19 = vld [vmem:[#allocation6 + $0x7d8] sm:$0xff]  ;;  %v9880_v22 = vpack.c.bf16 %v1033_v16, %v1029_v14  ;;  %v749_v5 = vld [vmem:[#allocation3 + $0x70] sm:$0xff] }
 0x235   : > { %9863 = vmatprep.subr.bf16.mxu1 %v9862_v23  ;;  %1167 = vmatprep.mubr.f32.mxu0 %v776_v29  ;;  %v9754_v23 = vpack.c.bf16 %v1040_v18, %v1036_v17  ;;  %v9882_v26 = vpack.c.bf16 %v1042_v20, %v1038_v19  ;;  %v2002_v3 = vld [vmem:[#allocation11 + $0x168] sm:$0xff]  ;;  %v754_v7 = vld [vmem:[#allocation3 + $0x98] sm:$0xff]  ;;  %v2005_v18 = vld [vmem:[#allocation11 + $0x180] sm:$0xff] }
 0x236   : > { %1453 = vmatprep.mubr.f32.mxu1 %v776_v29  ;;  %1168 = vmatmul.mubr.f32.gmra.mrb[20].mxu0 %v775_v31  ;;  %v9756_v29 = vpack.c.bf16 %v1039_v25, %v1035_v24  ;;  %v2006_v12 = vld [vmem:[#allocation11 + $0x188] sm:$0xff]  ;;  %v758_v16 = vld [vmem:[#allocation3 + $0xb8] sm:$0xff]  ;;  %v2013_v56 = vld [vmem:[#allocation11 + $0x1c0] sm:$0xff] }
 0x237   : > { %9737 = vmatpush1.bf16.msra.mxu0 %v9736_v30  ;;  %1454 = vmatmul.mubr.f32.gmra.mrb[20].mxu1 %v775_v31  ;;  %v1628_v30 = vld [vmem:[#allocation8] sm:$0xff]  ;;  %v9884_v31 = vpack.c.bf16 %v1041_v28, %v1037_v27  ;;  %v753_v14 = vld [vmem:[#allocation3 + $0x90] sm:$0xff]  ;;  %v12430_v17 = vpack.c.bf16 %v2008_v13, %v2006_v12  ;;  %v766_v24 = vld [vmem:[#allocation3 + $0xf8] sm:$0xff] }
 0x238   : > { %9865 = vmatpush1.bf16.msra.mxu1 %v9864_v32  ;;  %9739 = vmatprep.subr.bf16.mxu0 %v9738_v33  ;;  %v1629_v32 = vld [vmem:[#allocation8 + $0x8] sm:$0xff]  ;;  %v2007_v19 = vld [vmem:[#allocation11 + $0x190] sm:$0xff] }
 0x239   : > { %9867 = vmatprep.subr.bf16.mxu1 %v9866_v37  ;;  %1173 = vmatprep.mubr.f32.mxu0 %v780_v43  ;;  %v1990_v33 = vld [vmem:[#allocation11 + $0x108] sm:$0xff]  ;;  %v9887_v36 = vpack.c.bf16 %v1629_v32, %v1628_v30  ;;  %v742_v37 = vld [vmem:[#allocation3 + $0x38] sm:$0xff] }
 0x23a   : > { %1459 = vmatprep.mubr.f32.mxu1 %v780_v43  ;;  %1174 = vmatmul.mubr.f32.gmra.mrb[22].mxu0 %v779_v45  ;;  %v12407_v38 = vpack.c.bf16 %v1992_v34, %v1990_v33  ;;  %v1631_v43 = vld [vmem:[#allocation8 + $0x18] sm:$0xff]  ;;  %v757_v20 = vld [vmem:[#allocation3 + $0xb0] sm:$0xff]  ;;  %v1620_v41 = vld [vmem:[%s14077_s14 + $0x28] sm:$0xff] }
 0x23b   : > { %9741 = vmatpush1.bf16.msra.mxu0 %v9740_v44  ;;  %1460 = vmatmul.mubr.f32.gmra.mrb[22].mxu1 %v779_v45  ;;  %v1994_v44 = vld [vmem:[#allocation11 + $0x128] sm:$0xff]  ;;  %v1996_v45 = vld [vmem:[#allocation11 + $0x138] sm:$0xff]  ;;  %v9890_v50 = vpack.c.bf16 %v1631_v43, %v1630_v40  ;;  %v2015_v57 = vld [vmem:[#allocation11 + $0x1d0] sm:$0xff] }
 0x23c   : > { %9869 = vmatpush1.bf16.msra.mxu1 %v9868_v46  ;;  %9743 = vmatprep.subr.bf16.mxu0 %v9742_v47  ;;  %v741_v46 = vld [vmem:[#allocation3 + $0x30] sm:$0xff]  ;;  %v746_v47 = vld [vmem:[#allocation3 + $0x58] sm:$0xff] }
 0x23d   : > { %9871 = vmatprep.subr.bf16.mxu1 %v9870_v52  ;;  %1179 = vmatprep.mubr.f32.mxu0 %v784_v58  ;;  %v12412_v52 = vpack.c.bf16 %v1996_v45, %v1994_v44  ;;  %v765_v25 = vld [vmem:[#allocation3 + $0xf0] sm:$0xff]  ;;  %v774_v28 = vld [vmem:[#allocation3 + $0x138] sm:$0xff]  ;;  %v1623_v44 = vld [vmem:[%s14077_s14 + $0x40] sm:$0xff] }
 0x23e   : > { %1465 = vmatprep.mubr.f32.mxu1 %v784_v58  ;;  %1180 = vmatmul.mubr.f32.gmra.mrb[24].mxu0 %v783_v60  ;;  %v745_v58 = vld [vmem:[#allocation3 + $0x50] sm:$0xff]  ;;  %v778_v30 = vld [vmem:[#allocation3 + $0x158] sm:$0xff] }
 0x23f   : > { %9745 = vmatpush1.bf16.msra.mxu0 %v9744_v59  ;;  %1466 = vmatmul.mubr.f32.gmra.mrb[24].mxu1 %v783_v60  ;;  %v750_v59 = vld [vmem:[#allocation3 + $0x78] sm:$0xff]  ;;  %v12416_v60 = vpack.c.bf16 %v1995_v54, %v1993_v53  ;;  %v769_v27 = vld [vmem:[#allocation3 + $0x110] sm:$0xff] }
 0x240   : > { %9873 = vmatpush1.bf16.msra.mxu1 %v9872_v61  ;;  %9747 = vmatprep.subr.bf16.mxu0 %v9746_v62  ;;  %v9893_v61 = vpack.c.bf16 %v1633_v55, %v1632_v51  ;;  %v1634_v62 = vld [vmem:[#allocation8 + $0x30] sm:$0xff]  ;;  %v782_v32 = vld [vmem:[#allocation3 + $0x178] sm:$0xff]  ;;  %v1624_v51 = vld [vmem:[%s14077_s14 + $0x48] sm:$0xff] }
 0x241   : > { %9875 = vmatprep.subr.bf16.mxu1 %v9874_v2  ;;  %1250 = vmatprep.mubr.f32.mxu0 %v738_v8  ;;  %v1635_v2 = vld [vmem:[#allocation8 + $0x38] sm:$0xff]  ;;  %v781_v33 = vld [vmem:[#allocation3 + $0x170] sm:$0xff] }
 0x242   : > { %1536 = vmatprep.mubr.f32.mxu1 %v738_v8  ;;  %v9896_v8 = vpack.c.bf16 %v1635_v2, %v1634_v62  ;;  %v786_v34 = vld [vmem:[#allocation3 + $0x198] sm:$0xff]  ;;  %v1621_v42 = vld [vmem:[%s14077_s14 + $0x30] sm:$0xff] }
 0x243   : > { %9749 = vmatpush1.bf16.msra.mxu0 %v9748_v9  ;;  %v12424_v9 = vpack.c.bf16 %v2004_v4, %v2002_v3  ;;  %v1618_v40 = vld [vmem:[%s14077_s14 + $0x18] sm:$0xff]  ;;  %v2010_v45 = vld [vmem:[#allocation11 + $0x1a8] sm:$0xff]  ;;  %v1627_v3 = vld [vmem:[%s14077_s14 + $0x60] sm:$0xff] }
 0x244   : > { %9877 = vmatpush1.bf16.msra.mxu1 %v9876_v10  ;;  %9751 = vmatprep.subr.bf16.mxu0 %v9750_v11  ;;  %v2001_v10 = vld [vmem:[#allocation11 + $0x160] sm:$0xff]  ;;  %v2003_v11 = vld [vmem:[#allocation11 + $0x170] sm:$0xff]  ;;  %v2014_v53 = vld [vmem:[#allocation11 + $0x1c8] sm:$0xff] }
 0x245   : > { %9879 = vmatprep.subr.bf16.mxu1 %v9878_v15  ;;  %v12428_v15 = vpack.c.bf16 %v2003_v11, %v2001_v10  ;;  %v1622_v43 = vld [vmem:[%s14077_s14 + $0x38] sm:$0xff]  ;;  %v1957_v4 = vld [vmem:[#allocation11 + $0x8] sm:$0xff] }
 0x246   : > { %v2016_v54 = vld [vmem:[#allocation11 + $0x1d8] sm:$0xff]  ;;  %v2019_v0 = vld [vmem:[#allocation11 + $0x1f0] sm:$0xff] }
 0x247   : > { %9753 = vmatpush1.bf16.msra.mxu0 %v9752_v21  ;;  %v12435_v21 = vpack.c.bf16 %v2007_v19, %v2005_v18  ;;  %v9922_v55 = vpack.c.bf16 %v2016_v54, %v2014_v53  ;;  %v1626_v1 = vld [vmem:[%s14077_s14 + $0x58] sm:$0xff] }
 0x248   : > { %9881 = vmatpush1.bf16.msra.mxu1 %v9880_v22  ;;  %9755 = vmatprep.subr.bf16.mxu0 %v9754_v23  ;;  %v762_v22 = vld [vmem:[#allocation3 + $0xd8] sm:$0xff]  ;;  %v761_v23 = vld [vmem:[#allocation3 + $0xd0] sm:$0xff] }
 0x249   : > { %9883 = vmatprep.subr.bf16.mxu1 %v9882_v26  ;;  %v770_v26 = vld [vmem:[#allocation3 + $0x118] sm:$0xff] }
 0x24b   : > { %9757 = vmatpush1.bf16.msra.mxu0 %v9756_v29  ;;  %v773_v29 = vld [vmem:[#allocation3 + $0x130] sm:$0xff] }
 0x24c   : > { %9885 = vmatpush1.bf16.msra.mxu1 %v9884_v31  ;;  %9886 = vmatprep.subr.bf16.mxu0 %v11854_v39  ;;  %v777_v31 = vld [vmem:[#allocation3 + $0x150] sm:$0xff] }
 0x24d   : > { %9899 = vmatprep.subr.bf16.mxu1 %v12407_v38 }
 0x24e   : > { %1251 = vmatmul.mubr.f32.vlgmr.msra.gmra.mrb[0].mxu0 %v737_v35 }
 0x24f   : > { %1537 = vmatmul.mubr.f32.vlgmr.msra.gmra.mrb[0].mxu1 %v737_v35  ;;  %9888 = vmatpush3.bf16.msra.mxu0 %v9887_v36  ;;  %v785_v35 = vld [vmem:[#allocation3 + $0x190] sm:$0xff]  ;;  %v1615_v36 = vld [vmem:[%s14077_s14] sm:$0xff] }
 0x250   : > { %1256 = vmatprep.mubr.f32.mxu0 %v742_v37  ;;  %1542 = vmatprep.mubr.f32.mxu1 %v742_v37  ;;  %v1616_v37 = vld [vmem:[%s14077_s14 + $0x8] sm:$0xff] }
 0x251   : > { %9889 = vmatprep.subr.bf16.mxu0 %v11854_v39  ;;  %9901 = vmatpush1.bf16.msra.mxu1 %v12410_v48 }
 0x252   : > { %1257 = vmatmul.mubr.f32.gmra.mrb[2].mxu0 %v741_v46  ;;  %9903 = vmatprep.subr.bf16.mxu1 %v12412_v52 }
 0x253   : > { %1543 = vmatmul.mubr.f32.gmra.mrb[2].mxu1 %v741_v46  ;;  %1262 = vmatprep.mubr.f32.mxu0 %v746_v47  ;;  %v2012_v46 = vld [vmem:[#allocation11 + $0x1b8] sm:$0xff] }
 0x254   : > { %1548 = vmatprep.mubr.f32.mxu1 %v746_v47  ;;  %9891 = vmatpush3.bf16.msra.mxu0 %v9890_v50  ;;  %v9918_v47 = vpack.c.bf16 %v2012_v46, %v2010_v45  ;;  %v2011_v50 = vld [vmem:[#allocation11 + $0x1b0] sm:$0xff] }
 0x255   : > { %9892 = vmatprep.subr.bf16.mxu0 %v11854_v39  ;;  %9905 = vmatpush1.bf16.msra.mxu1 %v12416_v60 }
 0x256   : > { %1263 = vmatmul.mubr.f32.gmra.mrb[4].mxu0 %v745_v58  ;;  %9907 = vmatprep.subr.bf16.mxu1 %v12418_v63 }
 0x257   : > { %1549 = vmatmul.mubr.f32.gmra.mrb[4].mxu1 %v745_v58  ;;  %1268 = vmatprep.mubr.f32.mxu0 %v750_v59  ;;  %v1625_v58 = vld [vmem:[%s14077_s14 + $0x50] sm:$0xff] }
 0x258   : > { %1554 = vmatprep.mubr.f32.mxu1 %v750_v59  ;;  %9894 = vmatpush3.bf16.msra.mxu0 %v9893_v61  ;;  %v9924_v59 = vpack.c.bf16 %v2015_v57, %v2013_v56  ;;  %v2020_v61 = vld [vmem:[#allocation11 + $0x1f8] sm:$0xff]  ;;  %v1969_v56 = vld [vmem:[#allocation11 + $0x68] sm:$0xff] }
 0x259   : > { %9895 = vmatprep.subr.bf16.mxu0 %v11854_v39  ;;  %9909 = vmatpush1.bf16.msra.mxu1 %v12422_v6  ;;  %v12461_v39 = vld [vmem:[#allocation24] sm:$0xff] }
 0x25a   : > { %1269 = vmatmul.mubr.f32.gmra.mrb[6].mxu0 %v749_v5  ;;  %9911 = vmatprep.subr.bf16.mxu1 %v12424_v9  ;;  %v1971_v57 = vld [vmem:[#allocation11 + $0x78] sm:$0xff] }
 0x25b   : > { %1555 = vmatmul.mubr.f32.gmra.mrb[6].mxu1 %v749_v5  ;;  %1274 = vmatprep.mubr.f32.mxu0 %v754_v7  ;;  %v1959_v5 = vld [vmem:[#allocation11 + $0x18] sm:$0xff] }
 0x25c   : > { %1560 = vmatprep.mubr.f32.mxu1 %v754_v7  ;;  %9897 = vmatpush3.bf16.msra.mxu0 %v9896_v8 }
 0x25d   : > { %9995 = vmatprep.subr.bf16.mxu0 %v12407_v38  ;;  %9913 = vmatpush1.bf16.msra.mxu1 %v12428_v15  ;;  %v1617_v38 = vld [vmem:[%s14077_s14 + $0x10] sm:$0xff] }
 0x25e   : > { %1275 = vmatmul.mubr.f32.gmra.mrb[8].mxu0 %v753_v14  ;;  %9915 = vmatprep.subr.bf16.mxu1 %v12430_v17 }
 0x25f   : > { %1561 = vmatmul.mubr.f32.gmra.mrb[8].mxu1 %v753_v14  ;;  %1280 = vmatprep.mubr.f32.mxu0 %v758_v16 }
 0x260   : > { %1566 = vmatprep.mubr.f32.mxu1 %v758_v16 }
 0x261   : > { %9917 = vmatpush1.bf16.msra.mxu1 %v12435_v21 }
 0x262   : > { %1281 = vmatmul.mubr.f32.gmra.mrb[10].mxu0 %v757_v20  ;;  %9919 = vmatprep.subr.bf16.mxu1 %v9918_v47 }
 0x263   : > { %1567 = vmatmul.mubr.f32.gmra.mrb[10].mxu1 %v757_v20  ;;  %1286 = vmatprep.mubr.f32.mxu0 %v762_v22  ;;  %v1956_v20 = vld [vmem:[#allocation11] sm:$0xff] }
 0x264   : > { %1572 = vmatprep.mubr.f32.mxu1 %v762_v22  ;;  %v1879_v22 = vld [vmem:[#allocation14 + $0x8] sm:$0xff] }
 0x266   : > { %1287 = vmatmul.mubr.f32.gmra.mrb[12].mxu0 %v761_v23 }
 0x267   : > { %1573 = vmatmul.mubr.f32.gmra.mrb[12].mxu1 %v761_v23  ;;  %1292 = vmatprep.mubr.f32.mxu0 %v766_v24 }
 0x268   : > { %1578 = vmatprep.mubr.f32.mxu1 %v766_v24 }
 0x26a   : > { %1293 = vmatmul.mubr.f32.gmra.mrb[14].mxu0 %v765_v25 }
 0x26b   : > { %1579 = vmatmul.mubr.f32.gmra.mrb[14].mxu1 %v765_v25  ;;  %1298 = vmatprep.mubr.f32.mxu0 %v770_v26  ;;  %v1961_v25 = vld [vmem:[#allocation11 + $0x28] sm:$0xff] }
 0x26c   : > { %1584 = vmatprep.mubr.f32.mxu1 %v770_v26  ;;  %v1963_v26 = vld [vmem:[#allocation11 + $0x38] sm:$0xff] }
 0x26e   : > { %1299 = vmatmul.mubr.f32.gmra.mrb[16].mxu0 %v769_v27 }
 0x26f   : > { %1585 = vmatmul.mubr.f32.gmra.mrb[16].mxu1 %v769_v27  ;;  %1304 = vmatprep.mubr.f32.mxu0 %v774_v28 }
 0x270   : > { %1590 = vmatprep.mubr.f32.mxu1 %v774_v28 }
 0x272   : > { %1305 = vmatmul.mubr.f32.gmra.mrb[18].mxu0 %v773_v29 }
 0x273   : > { %1591 = vmatmul.mubr.f32.gmra.mrb[18].mxu1 %v773_v29  ;;  %1310 = vmatprep.mubr.f32.mxu0 %v778_v30 }
 0x274   : > { %1596 = vmatprep.mubr.f32.mxu1 %v778_v30 }
 0x276   : > { %1311 = vmatmul.mubr.f32.gmra.mrb[20].mxu0 %v777_v31 }
 0x277   : > { %1597 = vmatmul.mubr.f32.gmra.mrb[20].mxu1 %v777_v31  ;;  %1316 = vmatprep.mubr.f32.mxu0 %v782_v32 }
 0x278   : > { %1602 = vmatprep.mubr.f32.mxu1 %v782_v32 }
 0x27a   : > { %1317 = vmatmul.mubr.f32.gmra.mrb[22].mxu0 %v781_v33 }
 0x27b   : > { %1603 = vmatmul.mubr.f32.gmra.mrb[22].mxu1 %v781_v33  ;;  %1322 = vmatprep.mubr.f32.mxu0 %v786_v34 }
 0x27c   : > { %1608 = vmatprep.mubr.f32.mxu1 %v786_v34  ;;  %v12555_v34 = vpack.c.bf16 %v1963_v26, %v1961_v25  ;;  %v1972_v26 = vld [vmem:[#allocation11 + $0x80] sm:$0xff] }
 0x27e   : > { %1323 = vmatmul.mubr.f32.gmra.mrb[24].mxu0 %v785_v35 }
 0x27f   : > { %1609 = vmatmul.mubr.f32.gmra.mrb[24].mxu1 %v785_v35  ;;  %9556 = vmatprep.mubr.msk.f32.mxu0 %vm11855_vm0, %v11853_v49  ;;  %v1960_v35 = vld [vmem:[#allocation11 + $0x20] sm:$0xff] }
 0x280   : > { %2118 = vmatprep.mubr.f32.mxu1 %v11853_v49 }
 0x282   : > { %9557 = vmatmul.mubr.msk.f32.vlgmr.msra.gmra.mrb[26].mxu0 %vm1636_vm1, %v1615_v36  ;;  %v1962_v36 = vld [vmem:[#allocation11 + $0x30] sm:$0xff] }
 0x283   : > { %9559 = vmatprep.mubr.msk.f32.mxu0 %vm11855_vm0, %v11853_v49  ;;  %9997 = vmatpush1.bf16.msra.mxu0 %v12410_v48  ;;  %v2009_v48 = vld [vmem:[#allocation11 + $0x1a0] sm:$0xff]  ;;  %v12564_v45 = vpack.c.bf16 %v1962_v36, %v1960_v35  ;;  %v1977_v35 = vld [vmem:[#allocation11 + $0xa8] sm:$0xff]  ;;  %v1979_v36 = vld [vmem:[#allocation11 + $0xb8] sm:$0xff] }
 0x284   : > { %9999 = vmatprep.subr.bf16.mxu0 %v12412_v52  ;;  %v9920_v52 = vpack.c.bf16 %v2011_v50, %v2009_v48 }
 0x286   : > { %9560 = vmatmul.mubr.msk.f32.gmra.mrb[28].mxu0 %vm1636_vm1, %v1616_v37  ;;  %9921 = vmatpush1.bf16.msra.mxu1 %v9920_v52 }
 0x287   : > { %9562 = vmatprep.mubr.msk.f32.mxu0 %vm11855_vm0, %v11853_v49  ;;  %10001 = vmatpush1.bf16.msra.mxu0 %v12416_v60  ;;  %v1619_v49 = vld [vmem:[%s14077_s14 + $0x20] sm:$0xff]  ;;  %v2018_v60 = vld [vmem:[#allocation11 + $0x1e8] sm:$0xff] }
 0x288   : > { %10003 = vmatprep.subr.bf16.mxu0 %v12418_v63  ;;  %9923 = vmatprep.subr.bf16.mxu1 %v9922_v55  ;;  %v9926_v62 = vpack.c.bf16 %v2020_v61, %v2018_v60  ;;  %v2017_v63 = vld [vmem:[#allocation11 + $0x1e0] sm:$0xff] }
 0x289   : > { %v9928_v2 = vpack.c.bf16 %v2019_v0, %v2017_v63 }
 0x28a   : > { %9563 = vmatmul.mubr.msk.f32.gmra.mrb[30].mxu0 %vm1636_vm1, %v1617_v38  ;;  %9925 = vmatpush1.bf16.msra.mxu1 %v9924_v59 }
 0x28b   : > { %9565 = vmatprep.mubr.msk.f32.mxu0 %vm11855_vm0, %v12461_v39  ;;  %10005 = vmatpush1.bf16.msra.mxu0 %v12422_v6  ;;  %v9930_v6 = vpack.c.bf16 %v1959_v5, %v1957_v4 }
 0x28c   : > { %10007 = vmatprep.subr.bf16.mxu0 %v12424_v9  ;;  %9927 = vmatprep.subr.bf16.mxu1 %v9926_v62 }
 0x28e   : > { %9566 = vmatmul.mubr.msk.f32.gmra.mrb[32].mxu0 %vm1636_vm1, %v1618_v40  ;;  %9929 = vmatpush1.bf16.msra.mxu1 %v9928_v2  ;;  %v1880_v40 = vld [vmem:[#allocation14 + $0x10] sm:$0xff] }
 0x28f   : > { %9568 = vmatprep.mubr.msk.f32.mxu0 %vm11855_vm0, %v12461_v39  ;;  %10009 = vmatpush1.bf16.msra.mxu0 %v12428_v15 }
 0x290   : > { %10011 = vmatprep.subr.bf16.mxu0 %v12430_v17  ;;  %9931 = vmatprep.subr.bf16.mxu1 %v9930_v6  ;;  %v12543_v17 = vld [vmem:[#allocation9] ss:$0 sm:$0xff] }
 0x292   : > { %9569 = vmatmul.mubr.msk.f32.gmra.mrb[34].mxu0 %vm1636_vm1, %v1619_v49  ;;  %v1965_v49 = vld [vmem:[#allocation11 + $0x48] sm:$0xff] }
 0x293   : > { %9571 = vmatprep.mubr.msk.f32.mxu0 %vm11855_vm0, %v12461_v39  ;;  %10013 = vmatpush1.bf16.msra.mxu0 %v12435_v21  ;;  %v1958_v21 = vld [vmem:[#allocation11 + $0x10] sm:$0xff] }
 0x294   : > { %10015 = vmatprep.subr.bf16.mxu0 %v9918_v47  ;;  %v12550_v30 = vpack.c.bf16 %v1958_v21, %v1956_v20 }
 0x296   : > { %9572 = vmatmul.mubr.msk.f32.gmra.mrb[36].mxu0 %vm1636_vm1, %v1620_v41  ;;  %v1967_v41 = vld [vmem:[#allocation11 + $0x58] sm:$0xff] }
 0x297   : > { %9574 = vmatprep.mubr.msk.f32.mxu0 %vm11855_vm0, %v12461_v39  ;;  %10017 = vmatpush1.bf16.msra.mxu0 %v9920_v52  ;;  %v12570_v50 = vpack.c.bf16 %v1967_v41, %v1965_v49  ;;  %v1966_v52 = vld [vmem:[#allocation11 + $0x50] sm:$0xff] }
 0x298   : > { %10019 = vmatprep.subr.bf16.mxu0 %v9922_v55  ;;  %v1881_v55 = vld [vmem:[#allocation14 + $0x18] sm:$0xff] }
 0x29a   : > { %9575 = vmatmul.mubr.msk.f32.gmra.mrb[38].mxu0 %vm1636_vm1, %v1621_v42 }
 0x29b   : > { %9577 = vmatprep.mubr.msk.f32.mxu0 %vm11855_vm0, %v12461_v39  ;;  %10021 = vmatpush1.bf16.msra.mxu0 %v9924_v59 }
 0x29c   : > { %10023 = vmatprep.subr.bf16.mxu0 %v9926_v62 }
 0x29e   : > { %9578 = vmatmul.mubr.msk.f32.gmra.mrb[40].mxu0 %vm1636_vm1, %v1622_v43 }
 0x29f   : > { %9580 = vmatprep.mubr.msk.f32.mxu0 %vm11855_vm0, %v12461_v39  ;;  %10025 = vmatpush1.bf16.msra.mxu0 %v9928_v2  ;;  %v1968_v2 = vld [vmem:[#allocation11 + $0x60] sm:$0xff] }
 0x2a0   : > { %10027 = vmatprep.subr.bf16.mxu0 %v9930_v6  ;;  %v1882_v6 = vld [vmem:[#allocation14 + $0x20] sm:$0xff] }
 0x2a2   : > { %9581 = vmatmul.mubr.msk.f32.gmra.mrb[42].mxu0 %vm1636_vm1, %v1623_v44 }
 0x2a3   : > { %9583 = vmatprep.mubr.msk.f32.mxu0 %vm11855_vm0, %v12461_v39 }
 0x2a6   : > { %9584 = vmatmul.mubr.msk.f32.gmra.mrb[44].mxu0 %vm1636_vm1, %v1624_v51  ;;  %v1964_v51 = vld [vmem:[#allocation11 + $0x40] sm:$0xff] }
 0x2a7   : > { %9586 = vmatprep.mubr.msk.f32.mxu0 %vm11855_vm0, %v12461_v39  ;;  %v12579_v61 = vpack.c.bf16 %v1966_v52, %v1964_v51  ;;  %v1976_v51 = vld [vmem:[#allocation11 + $0xa0] sm:$0xff]  ;;  %v1978_v52 = vld [vmem:[#allocation11 + $0xb0] sm:$0xff] }
 0x2aa   : > { %9587 = vmatmul.mubr.msk.f32.gmra.mrb[46].mxu0 %vm1636_vm1, %v1625_v58 }
 0x2ab   : > { %9589 = vmatprep.mubr.msk.f32.mxu0 %vm11855_vm0, %v12461_v39 }
 0x2ae   : > { %9590 = vmatmul.mubr.msk.f32.gmra.mrb[48].mxu0 %vm1636_vm1, %v1626_v1  ;;  %v12585_v1 = vpack.c.bf16 %v1971_v57, %v1969_v56  ;;  %v1884_v56 = vld [vmem:[#allocation14 + $0x30] sm:$0xff]  ;;  %v1981_v57 = vld [vmem:[#allocation11 + $0xc8] sm:$0xff] }
 0x2af   : > { %9592 = vmatprep.mubr.msk.f32.mxu0 %vm11855_vm0, %v12461_v39 }
 0x2b2   : > { %9593 = vmatmul.mubr.msk.f32.gmra.mrb[50].mxu0 %vm1636_vm1, %v1627_v3  ;;  %v1970_v3 = vld [vmem:[#allocation11 + $0x70] sm:$0xff] }
 0x2b3   : > { %2553 = vmatprep.mubr.f32.mxu0 %v12461_v39  ;;  %v12594_v20 = vpack.c.bf16 %v1970_v3, %v1968_v2  ;;  %v12624_v2 = vpack.c.bf16 %v1978_v52, %v1976_v51  ;;  %v1984_v51 = vld [vmem:[#allocation11 + $0xe0] sm:$0xff]  ;;  %v1986_v52 = vld [vmem:[#allocation11 + $0xf0] sm:$0xff] }
 0x321   : > { %v12529_v7 = vpop.f32.mrb[0].mxu0 }
 0x322   : > { %v12531_v8 = vpop.f32.mrb[0].mxu1  ;;  %v12533_v9 = vpop.f32.mrb[1].mxu0 }
 0x323   : > { %v12537_v11 = vpop.f32.mrb[1].mxu1 }
 0x325   : > { %v1258_v12 = vpop.f32.mrb[2].mxu0 }
 0x326   : > { %v12539_v13 = vpop.f32.mrb[2].mxu1  ;;  %v1260_v14 = vpop.f32.mrb[3].mxu0 }
 0x327   : > { %v1808_v15 = vmax.f32 %v1258_v12, %v1260_v14  ;;  %v12541_v16 = vpop.f32.mrb[3].mxu1  ;;  %v1973_v12 = vld [vmem:[#allocation11 + $0x88] sm:$0xff]  ;;  %v1975_v14 = vld [vmem:[#allocation11 + $0x98] sm:$0xff] }
 0x328   : > { %v12600_v25 = vpack.c.bf16 %v1975_v14, %v1973_v12  ;;  %v1980_v14 = vld [vmem:[#allocation11 + $0xc0] sm:$0xff] }
 0x329   : > { %v1827_v18 = vadd.f32 %v12543_v17, %v1808_v15  ;;  %v1264_v19 = vpop.f32.mrb[4].mxu0 }
 0x32a   : > { %v12546_v23 = vpop.f32.mrb[4].mxu1  ;;  %v1266_v24 = vpop.f32.mrb[5].mxu0 }
 0x32b   : > { %v1892_v27 = vmax.f32 %v1827_v18, 0.0  ;;  %v1809_v28 = vmax.f32 %v1264_v19, %v1266_v24  ;;  %v12548_v29 = vpop.f32.mrb[5].mxu1 }
 0x32d   : > { %v12552_v31 = vmul.f32 %v1892_v27, %v1879_v22  ;;  %v1828_v32 = vadd.f32 %v12543_v17, %v1809_v28  ;;  %v1270_v33 = vpop.f32.mrb[6].mxu0  ;;  %v1974_v27 = vld [vmem:[#allocation11 + $0x90] sm:$0xff] }
 0x32e   : > { %v12557_v37 = vpop.f32.mrb[6].mxu1  ;;  %v1272_v38 = vpop.f32.mrb[7].mxu0  ;;  %v12609_v41 = vpack.c.bf16 %v1974_v27, %v1972_v26  ;;  %v1985_v26 = vld [vmem:[#allocation11 + $0xe8] sm:$0xff]  ;;  %v1987_v27 = vld [vmem:[#allocation11 + $0xf8] sm:$0xff] }
 0x32f   : > { %v1893_v42 = vmax.f32 %v1828_v32, 0.0  ;;  %v1810_v43 = vmax.f32 %v1270_v33, %v1272_v38  ;;  %v12559_v44 = vpop.f32.mrb[7].mxu1  ;;  %2554 = vmatmul.mubr.f32.vlgmr.msra.gmra.mrb[52].mxu0 %v12552_v31  ;;  %v1883_v33 = vld [vmem:[#allocation14 + $0x28] sm:$0xff] }
 0x330   : > { %2559 = vmatprep.mubr.f32.mxu0 %v12461_v39  ;;  %10029 = vmatpush1.bf16.msra.mxu0 %v12550_v30 }
 0x331   : > { %v1829_v46 = vadd.f32 %v12543_v17, %v1810_v43  ;;  %v1276_v47 = vpop.f32.mrb[8].mxu0  ;;  %v12567_v48 = vmul.f32 %v1893_v42, %v1880_v40  ;;  %10031 = vmatprep.subr.bf16.mxu0 %v12555_v34 }
 0x332   : > { %v12572_v53 = vpop.f32.mrb[8].mxu1  ;;  %v1278_v54 = vpop.f32.mrb[9].mxu0 }
 0x333   : > { %v1894_v58 = vmax.f32 %v1829_v46, 0.0  ;;  %v1811_v59 = vmax.f32 %v1276_v47, %v1278_v54  ;;  %v12574_v60 = vpop.f32.mrb[9].mxu1  ;;  %2560 = vmatmul.mubr.f32.gmra.mrb[54].mxu0 %v12567_v48  ;;  %v12615_v47 = vpack.c.bf16 %v1979_v36, %v1977_v35 }
 0x334   : > { %2565 = vmatprep.mubr.f32.mxu0 %v12461_v39  ;;  %10033 = vmatpush1.bf16.msra.mxu0 %v12564_v45 }
 0x335   : > { %v1830_v62 = vadd.f32 %v12543_v17, %v1811_v59  ;;  %v1282_v63 = vpop.f32.mrb[10].mxu0  ;;  %v12582_v0 = vmul.f32 %v1894_v58, %v1881_v55  ;;  %10035 = vmatprep.subr.bf16.mxu0 %v12570_v50  ;;  %v1983_v58 = vld [vmem:[#allocation11 + $0xd8] sm:$0xff] }
 0x336   : > { %v12587_v4 = vpop.f32.mrb[10].mxu1  ;;  %v1284_v5 = vpop.f32.mrb[11].mxu0  ;;  %v12630_v12 = vpack.c.bf16 %v1983_v58, %v1981_v57  ;;  %v1886_v57 = vld [vmem:[#allocation14 + $0x40] sm:$0xff] }
 0x337   : > { %v1895_v15 = vmax.f32 %v1830_v62, 0.0  ;;  %v1812_v18 = vmax.f32 %v1282_v63, %v1284_v5  ;;  %v12589_v19 = vpop.f32.mrb[11].mxu1  ;;  %2566 = vmatmul.mubr.f32.gmra.mrb[56].mxu0 %v12582_v0  ;;  %v2023_v58 = vld [vmem:[#allocation11 + $0x208] sm:$0xff] }
 0x338   : > { %2571 = vmatprep.mubr.f32.mxu0 %v12461_v39  ;;  %10037 = vmatpush1.bf16.msra.mxu0 %v12579_v61 }
 0x339   : > { %v1831_v21 = vadd.f32 %v12543_v17, %v1812_v18  ;;  %v1288_v22 = vpop.f32.mrb[12].mxu0  ;;  %v12597_v24 = vmul.f32 %v1895_v15, %v1882_v6  ;;  %10039 = vmatprep.subr.bf16.mxu0 %v12585_v1  ;;  %v1982_v15 = vld [vmem:[#allocation11 + $0xd0] sm:$0xff] }
 0x33a   : > { %v12602_v28 = vpop.f32.mrb[12].mxu1  ;;  %v1290_v32 = vpop.f32.mrb[13].mxu0  ;;  %v12639_v36 = vpack.c.bf16 %v1982_v15, %v1980_v14  ;;  %v12654_v14 = vpack.c.bf16 %v1986_v52, %v1984_v51 }
 0x33b   : > { %v1896_v38 = vmax.f32 %v1831_v21, 0.0  ;;  %v1813_v40 = vmax.f32 %v1288_v22, %v1290_v32  ;;  %v12604_v49 = vpop.f32.mrb[13].mxu1  ;;  %2572 = vmatmul.mubr.f32.gmra.mrb[58].mxu0 %v12597_v24  ;;  %v1885_v22 = vld [vmem:[#allocation14 + $0x38] sm:$0xff] }
 0x33c   : > { %2577 = vmatprep.mubr.f32.mxu0 %v12461_v39  ;;  %10041 = vmatpush1.bf16.msra.mxu0 %v12594_v20 }
 0x33d   : > { %v1832_v42 = vadd.f32 %v12543_v17, %v1813_v40  ;;  %v1294_v43 = vpop.f32.mrb[14].mxu0  ;;  %v12612_v46 = vmul.f32 %v1896_v38, %v1883_v33  ;;  %10043 = vmatprep.subr.bf16.mxu0 %v12600_v25 }
 0x33e   : > { %v12617_v54 = vpop.f32.mrb[14].mxu1  ;;  %v1296_v55 = vpop.f32.mrb[15].mxu0 }
 0x33f   : > { %14078 = vst [vmem:[#allocation43_spill] sm:$0xff] %v12612_v46  ;;  %v1897_v59 = vmax.f32 %v1832_v42, 0.0  ;;  %v1814_v62 = vmax.f32 %v1294_v43, %v1296_v55  ;;  %v12619_v63 = vpop.f32.mrb[15].mxu1  ;;  %2578 = vmatmul.mubr.f32.gmra.mrb[60].mxu0 %v12612_v46  ;;  %v12645_v43 = vpack.c.bf16 %v1987_v27, %v1985_v26 }
 0x340   : > { %2583 = vmatprep.mubr.f32.mxu0 %v12461_v39  ;;  %10045 = vmatpush1.bf16.msra.mxu0 %v12609_v41 }
 0x341   : > { %v1833_v3 = vadd.f32 %v12543_v17, %v1814_v62  ;;  %v1300_v5 = vpop.f32.mrb[16].mxu0  ;;  %v12627_v6 = vmul.f32 %v1897_v59, %v1884_v56  ;;  %10047 = vmatprep.subr.bf16.mxu0 %v12615_v47  ;;  %v2025_v59 = vld [vmem:[#allocation11 + $0x218] sm:$0xff] }
 0x342   : > { %v12632_v18 = vpop.f32.mrb[16].mxu1  ;;  %v1302_v21 = vpop.f32.mrb[17].mxu0  ;;  %v12660_v26 = vpack.c.bf16 %v2025_v59, %v2023_v58 }
 0x343   : > { %14079 = vst [vmem:[#allocation44_spill] sm:$0xff] %v12627_v6  ;;  %v1898_v32 = vmax.f32 %v1833_v3, 0.0  ;;  %v1815_v33 = vmax.f32 %v1300_v5, %v1302_v21  ;;  %v12634_v35 = vpop.f32.mrb[17].mxu1  ;;  %2584 = vmatmul.mubr.f32.gmra.mrb[62].mxu0 %v12627_v6 }
 0x344   : > { %2589 = vmatprep.mubr.f32.mxu0 %v12461_v39  ;;  %10049 = vmatpush1.bf16.msra.mxu0 %v12624_v2 }
 0x345   : > { %v1834_v38 = vadd.f32 %v12543_v17, %v1815_v33  ;;  %v1306_v40 = vpop.f32.mrb[18].mxu0  ;;  %v12642_v42 = vmul.f32 %v1898_v32, %v1885_v22  ;;  %10051 = vmatprep.subr.bf16.mxu0 %v12630_v12  ;;  %v1887_v33 = vld [vmem:[#allocation14 + $0x48] sm:$0xff] }
 0x346   : > { %v12647_v55 = vpop.f32.mrb[18].mxu1  ;;  %v1308_v56 = vpop.f32.mrb[19].mxu0 }
 0x347   : > { %14080 = vst [vmem:[#allocation45_spill] sm:$0xff] %v12642_v42  ;;  %v1899_v62 = vmax.f32 %v1834_v38, 0.0  ;;  %v1816_v3 = vmax.f32 %v1306_v40, %v1308_v56  ;;  %v12649_v5 = vpop.f32.mrb[19].mxu1  ;;  %2590 = vmatmul.mubr.f32.gmra.mrb[64].mxu0 %v12642_v42 }
 0x348   : > { %2595 = vmatprep.mubr.f32.mxu0 %v12461_v39  ;;  %10053 = vmatpush1.bf16.msra.mxu0 %v12639_v36 }
 0x349   : > { %v1835_v15 = vadd.f32 %v12543_v17, %v1816_v3  ;;  %v1312_v21 = vpop.f32.mrb[20].mxu0  ;;  %v12657_v22 = vmul.f32 %v1899_v62, %v1886_v57  ;;  %10055 = vmatprep.subr.bf16.mxu0 %v12645_v43  ;;  %v1888_v62 = vld [vmem:[#allocation14 + $0x50] sm:$0xff] }
 0x34a   : > { %v12662_v27 = vpop.f32.mrb[20].mxu1  ;;  %v1314_v32 = vpop.f32.mrb[21].mxu0 }
 0x34b   : > { %14081 = vst [vmem:[#allocation46_spill] sm:$0xff] %v12657_v22  ;;  %v1900_v38 = vmax.f32 %v1835_v15, 0.0  ;;  %v1817_v40 = vmax.f32 %v1312_v21, %v1314_v32  ;;  %v12664_v56 = vpop.f32.mrb[21].mxu1  ;;  %2596 = vmatmul.mubr.f32.gmra.mrb[66].mxu0 %v12657_v22  ;;  %v1889_v22 = vld [vmem:[#allocation14 + $0x58] sm:$0xff] }
 0x34c   : > { %2601 = vmatprep.mubr.f32.mxu0 %v12461_v39  ;;  %10057 = vmatpush1.bf16.msra.mxu0 %v12654_v14 }
 0x34d   : > { %v1836_v51 = vadd.f32 %v12543_v17, %v1817_v40  ;;  %v1318_v52 = vpop.f32.mrb[22].mxu0  ;;  %v12670_v57 = vmul.f32 %v1900_v38, %v1887_v33  ;;  %10059 = vmatprep.subr.bf16.mxu0 %v12660_v26 }
 0x34e   : > { %v12673_v58 = vpop.f32.mrb[22].mxu1  ;;  %v1320_v59 = vpop.f32.mrb[23].mxu0 }
 0x34f   : > { %14082 = vst [vmem:[#allocation47_spill] sm:$0xff] %v12670_v57  ;;  %v1901_v3 = vmax.f32 %v1836_v51, 0.0  ;;  %v1818_v15 = vmax.f32 %v1318_v52, %v1320_v59  ;;  %v12675_v21 = vpop.f32.mrb[23].mxu1  ;;  %2602 = vmatmul.mubr.f32.gmra.mrb[68].mxu0 %v12670_v57 }
 0x350   : > { %2607 = vmatprep.mubr.f32.mxu0 %v12461_v39 }
 0x351   : > { %v1837_v32 = vadd.f32 %v12543_v17, %v1818_v15  ;;  %v1324_v40 = vpop.f32.mrb[24].mxu0  ;;  %v12680_v10 = vmul.f32 %v1901_v3, %v1888_v62  ;;  %v1890_v15 = vld [vmem:[#allocation14 + $0x60] sm:$0xff] }
 0x352   : > { %v12682_v33 = vpop.f32.mrb[24].mxu1  ;;  %v1326_v38 = vpop.f32.mrb[25].mxu0 }
 0x353   : > { %14083 = vst [vmem:[#allocation48_spill] sm:$0xff] %v12680_v10  ;;  %v1902_v42 = vmax.f32 %v1837_v32, 0.0  ;;  %v1819_v6 = vmax.f32 %v1324_v40, %v1326_v38  ;;  %v12684_v46 = vpop.f32.mrb[25].mxu1  ;;  %2608 = vmatmul.mubr.f32.gmra.mrb[70].mxu0 %v12680_v10 }
 0x354   : > { %2613 = vmatprep.mubr.f32.mxu0 %v12461_v39 }
 0x355   : > { %v1838_v51 = vadd.f32 %v12543_v17, %v1819_v6  ;;  %v1742_v52 = vpop.f32.mrb[26].mxu0  ;;  %v12689_v59 = vmul.f32 %v1902_v42, %v1889_v22  ;;  %v1917_v22 = vld [vmem:[#allocation15] sm:$0xff] }
 0x356   : > { %v1839_v62 = vadd.f32 %v1742_v52, %v12537_v11  ;;  %v9558_v3 = vpop.f32.mrb[27].mxu0  ;;  %v2022_v52 = vld [vmem:[#allocation11 + $0x200] sm:$0xff] }
 0x357   : > { %14084 = vst [vmem:[#allocation49_spill] sm:$0xff] %v12689_v59  ;;  %v1903_v57 = vmax.f32 %v1838_v51, 0.0  ;;  %2614 = vmatmul.mubr.f32.gmra.mrb[72].mxu0 %v12689_v59  ;;  %v1918_v59 = vld [vmem:[#allocation15 + $0x8] sm:$0xff] }
 0x358   : > { %v1852_v32 = vmax.f32 %v12531_v8, %v1839_v62  ;;  %2619 = vmatprep.mubr.f32.mxu0 %v12461_v39  ;;  %v2024_v8 = vld [vmem:[#allocation11 + $0x210] sm:$0xff] }
 0x359   : > { %v1747_v40 = vpop.f32.mrb[28].mxu0  ;;  %v12695_v38 = vmul.f32 %v1903_v57, %v1890_v15 }
 0x35a   : > { %v1865_v10 = vadd.f32 %v12543_v17, %v1852_v32  ;;  %v1840_v6 = vadd.f32 %v1747_v40, %v12541_v16  ;;  %v9561_v42 = vpop.f32.mrb[29].mxu0  ;;  %v12704_v16 = vpack.c.bf16 %v2024_v8, %v2022_v52  ;;  %v2028_v52 = vld [vmem:[#allocation11 + $0x230] sm:$0xff]  ;;  %v1919_v8 = vld [vmem:[#allocation15 + $0x10] sm:$0xff] }
 0x35b   : > { %2620 = vmatmul.mubr.f32.gmra.mrb[74].mxu0 %v12695_v38 }
 0x35c   : > { %v1930_v11 = vmax.f32 %v1865_v10, 0.0  ;;  %v1853_v51 = vmax.f32 %v12539_v13, %v1840_v6  ;;  %2690 = vmatprep.mubr.f32.mxu0 %v12461_v39  ;;  %v2027_v10 = vld [vmem:[#allocation11 + $0x228] sm:$0xff]  ;;  %v2029_v13 = vld [vmem:[#allocation11 + $0x238] sm:$0xff] }
 0x35d   : > { %v1752_v62 = vpop.f32.mrb[30].mxu0 }
 0x35e   : > { %v1943_v3 = vmul.f32 %v1930_v11, %v1917_v22  ;;  %v1866_v57 = vadd.f32 %v12543_v17, %v1853_v51  ;;  %v1841_v15 = vadd.f32 %v1752_v62, %v12548_v29  ;;  %v9564_v32 = vpop.f32.mrb[31].mxu0  ;;  %v12716_v62 = vpack.c.bf16 %v2029_v13, %v2027_v10  ;;  %v2032_v10 = vld [vmem:[#allocation11 + $0x250] sm:$0xff]  ;;  %v1920_v13 = vld [vmem:[#allocation15 + $0x18] sm:$0xff] }
 0x360   : > { %v1931_v40 = vmax.f32 %v1866_v57, 0.0  ;;  %v1854_v42 = vmax.f32 %v12546_v23, %v1841_v15  ;;  %2119 = vmatmul.mubr.f32.vlgmr.msra.gmra.mrb[26].mxu1 %v1943_v3  ;;  %2691 = vmatmul.mubr.f32.vlgmr.msra.gmra.mrb[52].mxu0 %v1943_v3  ;;  %v2026_v23 = vld [vmem:[#allocation11 + $0x220] sm:$0xff]  ;;  %v2033_v57 = vld [vmem:[#allocation11 + $0x258] sm:$0xff] }
 0x361   : > { %v1757_v6 = vpop.f32.mrb[32].mxu0  ;;  %9933 = vmatpush1.bf16.msra.mxu1 %v12550_v30  ;;  %2124 = vmatprep.mubr.f32.mxu1 %v12461_v39 }
 0x362   : > { %v1867_v22 = vadd.f32 %v12543_v17, %v1854_v42  ;;  %v1842_v29 = vadd.f32 %v1757_v6, %v12559_v44  ;;  %v9567_v11 = vpop.f32.mrb[33].mxu0  ;;  %2696 = vmatprep.mubr.f32.mxu0 %v12461_v39  ;;  %v12712_v51 = vmul.f32 %v1931_v40, %v1918_v59  ;;  %9935 = vmatprep.subr.bf16.mxu1 %v12555_v34  ;;  %v2031_v44 = vld [vmem:[#allocation11 + $0x248] sm:$0xff]  ;;  %v2030_v42 = vld [vmem:[#allocation11 + $0x240] sm:$0xff] }
 0x363   : > { %10061 = vmatpush1.bf16.msra.mxu0 %v12704_v16  ;;  %v12723_v34 = vpack.c.bf16 %v2028_v52, %v2026_v23  ;;  %v12732_v6 = vpack.c.bf16 %v2033_v57, %v2031_v44  ;;  %v1921_v44 = vld [vmem:[#allocation15 + $0x20] sm:$0xff] }
 0x364   : > { %v1932_v30 = vmax.f32 %v1867_v22, 0.0  ;;  %v1855_v3 = vmax.f32 %v12557_v37, %v1842_v29  ;;  %2125 = vmatmul.mubr.f32.gmra.mrb[28].mxu1 %v12712_v51  ;;  %2697 = vmatmul.mubr.f32.gmra.mrb[54].mxu0 %v12712_v51  ;;  %v2037_v29 = vld [vmem:[#allocation11 + $0x278] sm:$0xff] }
 0x365   : > { %v1762_v59 = vpop.f32.mrb[34].mxu0  ;;  %2130 = vmatprep.mubr.f32.mxu1 %v12461_v39  ;;  %9937 = vmatpush1.bf16.msra.mxu1 %v12564_v45 }
 0x366   : > { %v1868_v15 = vadd.f32 %v12543_v17, %v1855_v3  ;;  %v1843_v32 = vadd.f32 %v1762_v59, %v12574_v60  ;;  %v9570_v40 = vpop.f32.mrb[35].mxu0  ;;  %2702 = vmatprep.mubr.f32.mxu0 %v12461_v39  ;;  %v12728_v37 = vmul.f32 %v1932_v30, %v1919_v8  ;;  %9939 = vmatprep.subr.bf16.mxu1 %v12570_v50  ;;  %v2035_v60 = vld [vmem:[#allocation11 + $0x268] sm:$0xff]  ;;  %v2036_v3 = vld [vmem:[#allocation11 + $0x270] sm:$0xff] }
 0x367   : > { %10063 = vmatprep.subr.bf16.mxu0 %v12716_v62  ;;  %v12739_v50 = vpack.c.bf16 %v2032_v10, %v2030_v42  ;;  %v12749_v57 = vpack.c.bf16 %v2037_v29, %v2035_v60 }
 0x368   : > { %v1933_v45 = vmax.f32 %v1868_v15, 0.0  ;;  %v1856_v22 = vmax.f32 %v12572_v53, %v1843_v32  ;;  %2131 = vmatmul.mubr.f32.gmra.mrb[30].mxu1 %v12728_v37  ;;  %2703 = vmatmul.mubr.f32.gmra.mrb[56].mxu0 %v12728_v37  ;;  %v2034_v53 = vld [vmem:[#allocation11 + $0x260] sm:$0xff] }
 0x369   : > { %v1767_v11 = vpop.f32.mrb[36].mxu0  ;;  %2136 = vmatprep.mubr.f32.mxu1 %v12461_v39  ;;  %2708 = vmatprep.mubr.f32.mxu0 %v12461_v39  ;;  %v12756_v40 = vpack.c.bf16 %v2036_v3, %v2034_v53 }
 0x36a   : > { %v1869_v23 = vadd.f32 %v12543_v17, %v1856_v22  ;;  %v1844_v52 = vadd.f32 %v1767_v11, %v12589_v19  ;;  %v9573_v8 = vpop.f32.mrb[37].mxu0  ;;  %v12743_v30 = vmul.f32 %v1933_v45, %v1920_v13  ;;  %9941 = vmatpush1.bf16.msra.mxu1 %v12579_v61  ;;  %10065 = vmatpush1.bf16.msra.mxu0 %v12723_v34  ;;  %v2039_v19 = vld [vmem:[#allocation11 + $0x288] sm:$0xff]  ;;  %v2041_v61 = vld [vmem:[#allocation11 + $0x298] sm:$0xff]  ;;  %v2040_v45 = vld [vmem:[#allocation11 + $0x290] sm:$0xff] }
 0x36b   : > { %9943 = vmatprep.subr.bf16.mxu1 %v12585_v1  ;;  %10067 = vmatprep.subr.bf16.mxu0 %v12732_v6  ;;  %v1922_v22 = vld [vmem:[#allocation15 + $0x28] sm:$0xff]  ;;  %v12766_v60 = vpack.c.bf16 %v2041_v61, %v2039_v19 }
 0x36c   : > { %v1934_v59 = vmax.f32 %v1869_v23, 0.0  ;;  %v1857_v15 = vmax.f32 %v12587_v4, %v1844_v52  ;;  %2137 = vmatmul.mubr.f32.gmra.mrb[32].mxu1 %v12743_v30  ;;  %2709 = vmatmul.mubr.f32.gmra.mrb[58].mxu0 %v12743_v30  ;;  %v2038_v4 = vld [vmem:[#allocation11 + $0x280] sm:$0xff] }
 0x36d   : > { %v1772_v32 = vpop.f32.mrb[38].mxu0  ;;  %2142 = vmatprep.mubr.f32.mxu1 %v12461_v39  ;;  %2714 = vmatprep.mubr.f32.mxu0 %v12461_v39  ;;  %v12773_v52 = vpack.c.bf16 %v2040_v45, %v2038_v4  ;;  %v2048_v45 = vld [vmem:[#allocation11 + $0x2d0] sm:$0xff] }
 0x36e   : > { %v1870_v1 = vadd.f32 %v12543_v17, %v1857_v15  ;;  %v1845_v42 = vadd.f32 %v1772_v32, %v12604_v49  ;;  %v9576_v10 = vpop.f32.mrb[39].mxu0  ;;  %v12760_v13 = vmul.f32 %v1934_v59, %v1921_v44  ;;  %9945 = vmatpush1.bf16.msra.mxu1 %v12594_v20  ;;  %10069 = vmatpush1.bf16.msra.mxu0 %v12739_v50  ;;  %v2043_v49 = vld [vmem:[#allocation11 + $0x2a8] sm:$0xff]  ;;  %v2045_v20 = vld [vmem:[#allocation11 + $0x2b8] sm:$0xff]  ;;  %v2044_v44 = vld [vmem:[#allocation11 + $0x2b0] sm:$0xff] }
 0x36f   : > { %9947 = vmatprep.subr.bf16.mxu1 %v12600_v25  ;;  %10071 = vmatprep.subr.bf16.mxu0 %v12749_v57  ;;  %v1923_v59 = vld [vmem:[#allocation15 + $0x30] sm:$0xff]  ;;  %v12783_v15 = vpack.c.bf16 %v2045_v20, %v2043_v49 }
 0x370   : > { %v1935_v29 = vmax.f32 %v1870_v1, 0.0  ;;  %v1858_v11 = vmax.f32 %v12602_v28, %v1845_v42  ;;  %2143 = vmatmul.mubr.f32.gmra.mrb[34].mxu1 %v12760_v13  ;;  %2715 = vmatmul.mubr.f32.gmra.mrb[60].mxu0 %v12760_v13  ;;  %v2042_v28 = vld [vmem:[#allocation11 + $0x2a0] sm:$0xff] }
 0x371   : > { %v1777_v23 = vpop.f32.mrb[40].mxu0  ;;  %2148 = vmatprep.mubr.f32.mxu1 %v12461_v39  ;;  %2720 = vmatprep.mubr.f32.mxu0 %v12461_v39  ;;  %v12790_v1 = vpack.c.bf16 %v2044_v44, %v2042_v28  ;;  %v2052_v28 = vld [vmem:[#allocation11 + $0x2f0] sm:$0xff] }
 0x372   : > { %v1871_v25 = vadd.f32 %v12543_v17, %v1858_v11  ;;  %v1846_v8 = vadd.f32 %v1777_v23, %v12619_v63  ;;  %v9579_v53 = vpop.f32.mrb[41].mxu0  ;;  %v12777_v3 = vmul.f32 %v1935_v29, %v1922_v22  ;;  %9949 = vmatpush1.bf16.msra.mxu1 %v12609_v41  ;;  %10073 = vmatpush1.bf16.msra.mxu0 %v12756_v40  ;;  %v2047_v63 = vld [vmem:[#allocation11 + $0x2c8] sm:$0xff]  ;;  %v2049_v41 = vld [vmem:[#allocation11 + $0x2d8] sm:$0xff] }
 0x373   : > { %9951 = vmatprep.subr.bf16.mxu1 %v12615_v47  ;;  %10075 = vmatprep.subr.bf16.mxu0 %v12766_v60  ;;  %v1924_v22 = vld [vmem:[#allocation15 + $0x38] sm:$0xff]  ;;  %v12800_v29 = vpack.c.bf16 %v2049_v41, %v2047_v63  ;;  %v1925_v44 = vld [vmem:[#allocation15 + $0x40] sm:$0xff] }
 0x374   : > { %v1936_v19 = vmax.f32 %v1871_v25, 0.0  ;;  %v1859_v61 = vmax.f32 %v12617_v54, %v1846_v8  ;;  %2149 = vmatmul.mubr.f32.gmra.mrb[36].mxu1 %v12777_v3  ;;  %2721 = vmatmul.mubr.f32.gmra.mrb[62].mxu0 %v12777_v3  ;;  %v2046_v54 = vld [vmem:[#allocation11 + $0x2c0] sm:$0xff] }
 0x375   : > { %v1782_v32 = vpop.f32.mrb[42].mxu0  ;;  %2154 = vmatprep.mubr.f32.mxu1 %v12461_v39  ;;  %2726 = vmatprep.mubr.f32.mxu0 %v12461_v39  ;;  %v12807_v23 = vpack.c.bf16 %v2048_v45, %v2046_v54 }
 0x376   : > { %v1872_v47 = vadd.f32 %v12543_v17, %v1859_v61  ;;  %v1847_v42 = vadd.f32 %v1782_v32, %v12634_v35  ;;  %v9582_v10 = vpop.f32.mrb[43].mxu0  ;;  %v12794_v4 = vmul.f32 %v1936_v19, %v1923_v59  ;;  %9953 = vmatpush1.bf16.msra.mxu1 %v12624_v2  ;;  %10077 = vmatpush1.bf16.msra.mxu0 %v12773_v52  ;;  %v2051_v35 = vld [vmem:[#allocation11 + $0x2e8] sm:$0xff]  ;;  %v2053_v2 = vld [vmem:[#allocation11 + $0x2f8] sm:$0xff] }
 0x377   : > { %9955 = vmatprep.subr.bf16.mxu1 %v12630_v12  ;;  %10079 = vmatprep.subr.bf16.mxu0 %v12783_v15  ;;  %v12817_v59 = vpack.c.bf16 %v2053_v2, %v2051_v35 }
 0x378   : > { %v1937_v11 = vmax.f32 %v1872_v47, 0.0  ;;  %v1860_v49 = vmax.f32 %v12632_v18, %v1847_v42  ;;  %2155 = vmatmul.mubr.f32.gmra.mrb[38].mxu1 %v12794_v4  ;;  %2727 = vmatmul.mubr.f32.gmra.mrb[64].mxu0 %v12794_v4  ;;  %v2050_v18 = vld [vmem:[#allocation11 + $0x2e0] sm:$0xff] }
 0x379   : > { %v1787_v20 = vpop.f32.mrb[44].mxu0  ;;  %2160 = vmatprep.mubr.f32.mxu1 %v12461_v39  ;;  %2732 = vmatprep.mubr.f32.mxu0 %v12461_v39 }
 0x37a   : > { %v1873_v12 = vadd.f32 %v12543_v17, %v1860_v49  ;;  %v1848_v25 = vadd.f32 %v1787_v20, %v12649_v5  ;;  %v9585_v8 = vpop.f32.mrb[45].mxu0  ;;  %v12811_v53 = vmul.f32 %v1937_v11, %v1924_v22  ;;  %9957 = vmatpush1.bf16.msra.mxu1 %v12639_v36  ;;  %10081 = vmatpush1.bf16.msra.mxu0 %v12790_v1  ;;  %v1927_v22 = vld [vmem:[#allocation15 + $0x50] sm:$0xff] }
 0x37b   : > { %10083 = vmatprep.subr.bf16.mxu0 %v12800_v29  ;;  %9959 = vmatprep.subr.bf16.mxu1 %v12645_v43  ;;  %v12824_v36 = vpack.c.bf16 %v2052_v28, %v2050_v18  ;;  %v14092_v28 = vld [vmem:[#allocation49_spill] sm:$0xff] }
 0x37c   : > { %v1938_v19 = vmax.f32 %v1873_v12, 0.0  ;;  %v1861_v61 = vmax.f32 %v12647_v55, %v1848_v25  ;;  %2161 = vmatmul.mubr.f32.gmra.mrb[40].mxu1 %v12811_v53  ;;  %2733 = vmatmul.mubr.f32.gmra.mrb[66].mxu0 %v12811_v53  ;;  %v1926_v55 = vld [vmem:[#allocation15 + $0x48] sm:$0xff]  ;;  %v1928_v25 = vld [vmem:[#allocation15 + $0x58] sm:$0xff] }
 0x37d   : > { %v1792_v5 = vpop.f32.mrb[46].mxu0  ;;  %2166 = vmatprep.mubr.f32.mxu1 %v12461_v39  ;;  %2738 = vmatprep.mubr.f32.mxu0 %v12461_v39 }
 0x37e   : > { %v1874_v63 = vadd.f32 %v12543_v17, %v1861_v61  ;;  %v1849_v43 = vadd.f32 %v1792_v5, %v12664_v56  ;;  %v9588_v41 = vpop.f32.mrb[47].mxu0  ;;  %v12828_v32 = vmul.f32 %v1938_v19, %v1925_v44  ;;  %10085 = vmatpush1.bf16.msra.mxu0 %v12807_v23  ;;  %9961 = vmatpush1.bf16.msra.mxu1 %v12654_v14 }
 0x37f   : > { %10087 = vmatprep.subr.bf16.mxu0 %v12817_v59  ;;  %9963 = vmatprep.subr.bf16.mxu1 %v12660_v26  ;;  %v2974_v41 = vlaneseq }
 0x380   : > { %v1939_v47 = vmax.f32 %v1874_v63, 0.0  ;;  %v1862_v42 = vmax.f32 %v12662_v27, %v1849_v43  ;;  %2167 = vmatmul.mubr.f32.gmra.mrb[42].mxu1 %v12828_v32  ;;  %2739 = vmatmul.mubr.f32.gmra.mrb[68].mxu0 %v12828_v32 }
 0x381   : > { %v1797_v56 = vpop.f32.mrb[48].mxu0  ;;  %2172 = vmatprep.mubr.f32.mxu1 %v12461_v39  ;;  %2744 = vmatprep.mubr.f32.mxu0 %v12461_v39 }
 0x382   : > { %v1875_v10 = vadd.f32 %v12543_v17, %v1862_v42  ;;  %v1850_v14 = vadd.f32 %v1797_v56, %v12675_v21  ;;  %v9591_v54 = vpop.f32.mrb[49].mxu0  ;;  %v12841_v45 = vmul.f32 %v1939_v47, %v1926_v55  ;;  %10089 = vmatpush1.bf16.msra.mxu0 %v12824_v36  ;;  %v14085_v21 = vmax.f32 %v12529_v7, %v12533_v9  ;;  %v2972_v47 = vld [vmem:[#allocation12] sm:$0x3] }
 0x384   : > { %v1940_v27 = vmax.f32 %v1875_v10, 0.0  ;;  %v1863_v11 = vmax.f32 %v12673_v58, %v1850_v14  ;;  %2173 = vmatmul.mubr.f32.gmra.mrb[44].mxu1 %v12841_v45  ;;  %2745 = vmatmul.mubr.f32.gmra.mrb[70].mxu0 %v12841_v45  ;;  %v1826_v35 = vadd.f32 %v12543_v17, %v14085_v21 }
 0x385   : > { %v1802_v49 = vpop.f32.mrb[50].mxu0  ;;  %2178 = vmatprep.mubr.f32.mxu1 %v12461_v39  ;;  %2750 = vmatprep.mubr.f32.mxu0 %v12461_v39 }
 0x386   : > { %v1876_v2 = vadd.f32 %v12543_v17, %v1863_v11  ;;  %v12855_v20 = vadd.f32 %v1802_v49, %v12684_v46  ;;  %v12857_v58 = vmul.f32 %v1940_v27, %v1927_v22  ;;  %v9594_v12 = vpop.f32.mrb[51].mxu0  ;;  %v1891_v7 = vmax.f32 %v1826_v35, 0.0  ;;  %v1878_v17 = vld [vmem:[#allocation14] sm:$0xff]  ;;  %v2924_v11 = vld [vmem:[#allocation17] sm:$0xff] }
 0x388   : > { %v1941_v8 = vmax.f32 %v1876_v2, 0.0  ;;  %v1864_v18 = vmax.f32 %v12682_v33, %v12855_v20  ;;  %2179 = vmatmul.mubr.f32.gmra.mrb[46].mxu1 %v12857_v58  ;;  %2751 = vmatmul.mubr.f32.gmra.mrb[72].mxu0 %v12857_v58  ;;  %v1904_v46 = vmul.f32 %v1891_v7, %v1878_v17  ;;  %v2925_v2 = vld [vmem:[#allocation17 + $0x8] sm:$0xff] }
 0x389   : > { %2184 = vmatprep.mubr.f32.mxu1 %v12461_v39  ;;  %2756 = vmatprep.mubr.f32.mxu0 %v12461_v39 }
 0x38a   : > { %v12865_v9 = vmul.f32 %v1941_v8, %v1928_v25 }
 0x38c   : > { %2185 = vmatmul.mubr.f32.gmra.mrb[48].mxu1 %v12865_v9  ;;  %2757 = vmatmul.mubr.f32.gmra.mrb[74].mxu0 %v12865_v9 }
 0x38d   : > { %2255 = vmatprep.mubr.f32.mxu1 %v12461_v39  ;;  %2827 = vmatprep.mubr.f32.mxu0 %v12461_v39 }
 0x390   : > { %2256 = vmatmul.mubr.f32.vlgmr.msra.gmra.mrb[26].mxu1 %v1904_v46  ;;  %2828 = vmatmul.mubr.f32.vlgmr.msra.gmra.mrb[52].mxu0 %v12712_v51  ;;  %v12884_v51 = vld [vmem:[#allocation24] sm:$0xff] }
 0x391   : > { %9965 = vmatpush1.bf16.msra.mxu1 %v12704_v16  ;;  %2261 = vmatprep.mubr.f32.mxu1 %v12461_v39 }
 0x392   : > { %2833 = vmatprep.mubr.f32.mxu0 %v12461_v39  ;;  %9967 = vmatprep.subr.bf16.mxu1 %v12716_v62 }
 0x394   : > { %2262 = vmatmul.mubr.f32.gmra.mrb[28].mxu1 %v12552_v31  ;;  %2834 = vmatmul.mubr.f32.gmra.mrb[54].mxu0 %v12728_v37  ;;  %v14087_v37 = vld [vmem:[#allocation44_spill] sm:$0xff] }
 0x395   : > { %2267 = vmatprep.mubr.f32.mxu1 %v12461_v39  ;;  %9969 = vmatpush1.bf16.msra.mxu1 %v12723_v34 }
 0x396   : > { %2839 = vmatprep.mubr.f32.mxu0 %v12461_v39  ;;  %9971 = vmatprep.subr.bf16.mxu1 %v12732_v6  ;;  %v14086_v39 = vld [vmem:[#allocation43_spill] sm:$0xff] }
 0x398   : > { %2268 = vmatmul.mubr.f32.gmra.mrb[30].mxu1 %v12567_v48  ;;  %2840 = vmatmul.mubr.f32.gmra.mrb[56].mxu0 %v12743_v30  ;;  %v14088_v30 = vld [vmem:[#allocation45_spill] sm:$0xff] }
 0x399   : > { %2273 = vmatprep.mubr.f32.mxu1 %v12884_v51  ;;  %2845 = vmatprep.mubr.f32.mxu0 %v12884_v51 }
 0x39a   : > { %9973 = vmatpush1.bf16.msra.mxu1 %v12739_v50 }
 0x39b   : > { %9975 = vmatprep.subr.bf16.mxu1 %v12749_v57 }
 0x39c   : > { %2274 = vmatmul.mubr.f32.gmra.mrb[32].mxu1 %v12582_v0  ;;  %2846 = vmatmul.mubr.f32.gmra.mrb[58].mxu0 %v12760_v13  ;;  %v14089_v13 = vld [vmem:[#allocation46_spill] sm:$0xff] }
 0x39d   : > { %2279 = vmatprep.mubr.f32.mxu1 %v12884_v51  ;;  %2851 = vmatprep.mubr.f32.mxu0 %v12884_v51 }
 0x39e   : > { %9977 = vmatpush1.bf16.msra.mxu1 %v12756_v40 }
 0x39f   : > { %9979 = vmatprep.subr.bf16.mxu1 %v12766_v60 }
 0x3a0   : > { %2280 = vmatmul.mubr.f32.gmra.mrb[34].mxu1 %v12597_v24  ;;  %2852 = vmatmul.mubr.f32.gmra.mrb[60].mxu0 %v12777_v3  ;;  %v14090_v3 = vld [vmem:[#allocation47_spill] sm:$0xff] }
 0x3a1   : > { %2285 = vmatprep.mubr.f32.mxu1 %v12884_v51  ;;  %2857 = vmatprep.mubr.f32.mxu0 %v12884_v51 }
 0x3a2   : > { %9981 = vmatpush1.bf16.msra.mxu1 %v12773_v52 }
 0x3a3   : > { %9983 = vmatprep.subr.bf16.mxu1 %v12783_v15 }
 0x3a4   : > { %2286 = vmatmul.mubr.f32.gmra.mrb[36].mxu1 %v14086_v39  ;;  %2858 = vmatmul.mubr.f32.gmra.mrb[62].mxu0 %v12794_v4  ;;  %v14091_v4 = vld [vmem:[#allocation48_spill] sm:$0xff] }
 0x3a5   : > { %2291 = vmatprep.mubr.f32.mxu1 %v12884_v51 }
 0x3a6   : > { %9985 = vmatpush1.bf16.msra.mxu1 %v12790_v1 }
 0x3a7   : > { %9987 = vmatprep.subr.bf16.mxu1 %v12800_v29 }
 0x3a8   : > { %2292 = vmatmul.mubr.f32.gmra.mrb[38].mxu1 %v14087_v37 }
 0x3a9   : > { %2297 = vmatprep.mubr.f32.mxu1 %v12884_v51 }
 0x3aa   : > { %9989 = vmatpush1.bf16.msra.mxu1 %v12807_v23 }
 0x3ab   : > { %9991 = vmatprep.subr.bf16.mxu1 %v12817_v59 }
 0x3ac   : > { %2298 = vmatmul.mubr.f32.gmra.mrb[40].mxu1 %v14088_v30 }
 0x3ad   : > { %2303 = vmatprep.mubr.f32.mxu1 %v12884_v51 }
 0x3ae   : > { %9993 = vmatpush1.bf16.msra.mxu1 %v12824_v36 }
 0x3af   : > { %10146 = vmatprep.subr.bf16.mxu1 %v12660_v26 }
 0x3b0   : > { %2304 = vmatmul.mubr.f32.gmra.mrb[42].mxu1 %v14089_v13 }
 0x3b1   : > { %2309 = vmatprep.mubr.f32.mxu1 %v12884_v51 }
 0x3b4   : > { %2310 = vmatmul.mubr.f32.gmra.mrb[44].mxu1 %v14090_v3 }
 0x3b5   : > { %2315 = vmatprep.mubr.f32.mxu1 %v12884_v51 }
 0x3b8   : > { %2316 = vmatmul.mubr.f32.gmra.mrb[46].mxu1 %v14091_v4 }
 0x3b9   : > { %2321 = vmatprep.mubr.f32.mxu1 %v12884_v51 }
 0x3bc   : > { %2322 = vmatmul.mubr.f32.gmra.mrb[48].mxu1 %v14092_v28 }
 0x3bd   : > { %2392 = vmatprep.mubr.f32.mxu1 %v12884_v51 }
 0x3c0   : > { %2393 = vmatmul.mubr.f32.vlgmr.msra.gmra.mrb[26].mxu1 %v12552_v31  ;;  %v10542_v31 = vld [vmem:[#allocation9] ss:$0 sm:$0xff] }
 0x3c1   : > { %10154 = vmatpush1.bf16.msra.mxu1 %v12704_v16  ;;  %2398 = vmatprep.mubr.f32.mxu1 %v12884_v51 }
 0x3c2   : > { %10147 = vmatprep.subr.bf16.mxu1 %v12716_v62 }
 0x3c4   : > { %2399 = vmatmul.mubr.f32.gmra.mrb[28].mxu1 %v12567_v48  ;;  %v1877_v48 = vadd.f32 %v10542_v31, %v1864_v18 }
 0x3c5   : > { %2404 = vmatprep.mubr.f32.mxu1 %v12884_v51  ;;  %10155 = vmatpush1.bf16.msra.mxu1 %v12723_v34 }
 0x3c6   : > { %10148 = vmatprep.subr.bf16.mxu1 %v12732_v6 }
 0x3c8   : > { %2405 = vmatmul.mubr.f32.gmra.mrb[30].mxu1 %v12582_v0  ;;  %v1942_v0 = vmax.f32 %v1877_v48, 0.0 }
 0x3c9   : > { %2410 = vmatprep.mubr.f32.mxu1 %v12884_v51  ;;  %10156 = vmatpush1.bf16.msra.mxu1 %v12739_v50 }
 0x3ca   : > { %10149 = vmatprep.subr.bf16.mxu1 %v12749_v57 }
 0x3cc   : > { %2411 = vmatmul.mubr.f32.gmra.mrb[32].mxu1 %v12597_v24  ;;  %v1929_v24 = vld [vmem:[#allocation15 + $0x60] sm:$0xff] }
 0x3cd   : > { %2416 = vmatprep.mubr.f32.mxu1 %v12884_v51  ;;  %10157 = vmatpush1.bf16.msra.mxu1 %v12756_v40  ;;  %v1955_v26 = vmul.f32 %v1942_v0, %v1929_v24  ;;  %v2928_v0 = vld [vmem:[#allocation17 + $0x20] sm:$0xff] }
 0x3ce   : > { %10150 = vmatprep.subr.bf16.mxu1 %v12766_v60 }
 0x3d0   : > { %2417 = vmatmul.mubr.f32.gmra.mrb[34].mxu1 %v14086_v39  ;;  %v2927_v39 = vld [vmem:[#allocation17 + $0x18] sm:$0xff] }
 0x3d1   : > { %2422 = vmatprep.mubr.f32.mxu1 %v12884_v51  ;;  %10158 = vmatpush1.bf16.msra.mxu1 %v12773_v52 }
 0x3d2   : > { %10151 = vmatprep.subr.bf16.mxu1 %v12783_v15 }
 0x3d4   : > { %2423 = vmatmul.mubr.f32.gmra.mrb[36].mxu1 %v14087_v37 }
 0x3d5   : > { %2428 = vmatprep.mubr.f32.mxu1 %v12884_v51  ;;  %10159 = vmatpush1.bf16.msra.mxu1 %v12790_v1 }
 0x3d6   : > { %10152 = vmatprep.subr.bf16.mxu1 %v12800_v29 }
 0x3d8   : > { %2429 = vmatmul.mubr.f32.gmra.mrb[38].mxu1 %v14088_v30 }
 0x3d9   : > { %2434 = vmatprep.mubr.f32.mxu1 %v12884_v51  ;;  %10160 = vmatpush1.bf16.msra.mxu1 %v12807_v23 }
 0x3da   : > { %10153 = vmatprep.subr.bf16.mxu1 %v12817_v59 }
 0x3dc   : > { %2435 = vmatmul.mubr.f32.gmra.mrb[40].mxu1 %v14089_v13 }
 0x3dd   : > { %2440 = vmatprep.mubr.f32.mxu1 %v12884_v51  ;;  %10161 = vmatpush1.bf16.msra.mxu1 %v12824_v36 }
 0x3e0   : > { %2441 = vmatmul.mubr.f32.gmra.mrb[42].mxu1 %v14090_v3 }
 0x3e1   : > { %2446 = vmatprep.mubr.f32.mxu1 %v12884_v51 }
 0x3e4   : > { %2447 = vmatmul.mubr.f32.gmra.mrb[44].mxu1 %v14091_v4 }
 0x3e5   : > { %2452 = vmatprep.mubr.f32.mxu1 %v12884_v51 }
 0x3e8   : > { %2453 = vmatmul.mubr.f32.gmra.mrb[46].mxu1 %v14092_v28 }
 0x3e9   : > { %2458 = vmatprep.mubr.f32.mxu1 %v12884_v51 }
 0x3ec   : > { %2459 = vmatmul.mubr.f32.gmra.mrb[48].mxu1 %v12695_v38 }
 0x3ed   : > { %2863 = vmatprep.mubr.f32.mxu1 %v12884_v51 }
 0x3f0   : > { %2864 = vmatmul.mubr.f32.vlgmr.msra.gmra.mrb[50].mxu1 %v12811_v53 }
 0x3f1   : > { %2869 = vmatprep.mubr.f32.mxu1 %v12884_v51 }
 0x3f4   : > { %2870 = vmatmul.mubr.f32.gmra.mrb[52].mxu1 %v12828_v32  ;;  %v2975_v32 = vshrl.u32 %v2974_v41, 7 }
 0x3f5   : > { %2875 = vmatprep.mubr.f32.mxu1 %v12884_v51 }
 0x3f6   : > { %v2976_v55 = vsub.s32 0, %v2975_v32  ;;  %v2980_v42 = vsub.s32 1, %v2975_v32 }
 0x3f8   : > { %2876 = vmatmul.mubr.f32.gmra.mrb[54].mxu1 %v12841_v45  ;;  %v13007_v56 = vrot.slane %v2972_v47, %v2976_v55  ;;  %v13009_v14 = vrot.slane %v2972_v47, %v2980_v42  ;;  %v2930_v42 = vld [vmem:[#allocation17 + $0x30] sm:$0xff] }
 0x3f9   : > { %2881 = vmatprep.mubr.f32.mxu1 %v12884_v51 }
 0x3fc   : > { %2882 = vmatmul.mubr.f32.gmra.mrb[56].mxu1 %v12857_v58 }
 0x3fd   : > { %2887 = vmatprep.mubr.f32.mxu1 %v12884_v51 }
 0x400   : > { %2888 = vmatmul.mubr.f32.gmra.mrb[58].mxu1 %v12865_v9  ;;  %v2926_v9 = vld [vmem:[#allocation17 + $0x10] sm:$0xff] }
 0x401   : > { %2893 = vmatprep.mubr.f32.mxu1 %v12884_v51 }
 0x404   : > { %2894 = vmatmul.mubr.f32.gmra.mrb[60].mxu1 %v1955_v26 }
 0x44b   : > { %v12975_v38 = vpop.f32.mrb[64].mxu0 }
 0x44c   : > { %v12977_v16 = vpop.f32.mrb[65].mxu0 }
 0x44f   : > { %v12979_v62 = vpop.f32.mrb[66].mxu0 }
 0x450   : > { %v12981_v33 = vpop.f32.mrb[67].mxu0 }
 0x453   : > { %v12983_v34 = vpop.f32.mrb[68].mxu0 }
 0x454   : > { %v12985_v6 = vpop.f32.mrb[69].mxu0 }
 0x457   : > { %v12987_v50 = vpop.f32.mrb[70].mxu0 }
 0x458   : > { %v12989_v57 = vpop.f32.mrb[71].mxu0 }
 0x45b   : > { %v12991_v40 = vpop.f32.mrb[72].mxu0 }
 0x45c   : > { %v12993_v60 = vpop.f32.mrb[73].mxu0 }
 0x45f   : > { %v12995_v52 = vpop.f32.mrb[74].mxu0 }
 0x460   : > { %v12997_v15 = vpop.f32.mrb[75].mxu0 }
 0x463   : > { %v2829_v1 = vpop.f32.mrb[52].mxu0 }
 0x464   : > { %v2831_v29 = vpop.f32.mrb[53].mxu0 }
 0x467   : > { %v2835_v23 = vpop.f32.mrb[54].mxu0 }
 0x468   : > { %v2837_v53 = vpop.f32.mrb[55].mxu0 }
 0x46b   : > { %v2841_v44 = vpop.f32.mrb[56].mxu0 }
 0x46c   : > { %v2843_v59 = vpop.f32.mrb[57].mxu0 }
 0x46f   : > { %v2847_v19 = vpop.f32.mrb[58].mxu0 }
 0x470   : > { %v2849_v61 = vpop.f32.mrb[59].mxu0 }
 0x473   : > { %v12999_v5 = vpop.f32.mrb[60].mxu0 }
 0x474   : > { %v13001_v36 = vpop.f32.mrb[61].mxu0 }
 0x477   : > { %v13003_v63 = vpop.f32.mrb[62].mxu0 }
 0x478   : > { %v13005_v43 = vpop.f32.mrb[63].mxu0 }
 0x493   : > { %v2394_v10 = vpop.f32.mrb[26].mxu1 }
 0x494   : > { %v2948_v54 = vmax.f32 %v2394_v10, %v2829_v1  ;;  %v2396_v45 = vpop.f32.mrb[27].mxu1 }
 0x495   : > { %v2949_v22 = vmax.f32 %v2396_v45, %v2831_v29  ;;  %v2929_v29 = vld [vmem:[#allocation17 + $0x28] sm:$0xff] }
 0x496   : > { %v2984_v27 = vadd.f32 %v13007_v56, %v2948_v54 }
 0x497   : > { %v2985_v49 = vadd.f32 %v13009_v14, %v2949_v22  ;;  %v2400_v21 = vpop.f32.mrb[28].mxu1  ;;  %v2931_v22 = vld [vmem:[#allocation17 + $0x38] sm:$0xff] }
 0x498   : > { %v3008_v35 = vmax.f32 %v2984_v27, 0.0  ;;  %v2950_v20 = vmax.f32 %v2400_v21, %v2835_v23  ;;  %v2402_v58 = vpop.f32.mrb[29].mxu1 }
 0x499   : > { %v3009_v12 = vmax.f32 %v2985_v49, 0.0  ;;  %v2951_v25 = vmax.f32 %v2402_v58, %v2837_v53 }
 0x49a   : > { %v3032_v8 = vmul.f32 %v3008_v35, %v2924_v11  ;;  %v2986_v18 = vadd.f32 %v13007_v56, %v2950_v20  ;;  %v2932_v20 = vld [vmem:[#allocation17 + $0x40] sm:$0xff] }
 0x49b   : > { %v3033_v7 = vmul.f32 %v3009_v12, %v2925_v2  ;;  %v2987_v17 = vadd.f32 %v13009_v14, %v2951_v25  ;;  %v2406_v46 = vpop.f32.mrb[30].mxu1 }
 0x49c   : > { %v3010_v51 = vmax.f32 %v2986_v18, 0.0  ;;  %v2952_v37 = vmax.f32 %v2406_v46, %v2841_v44  ;;  %v2408_v30 = vpop.f32.mrb[31].mxu1 }
 0x49d   : > { %v9190_v13 = vpack.c.bf16 %v3033_v7, %v3032_v8  ;;  %v3011_v3 = vmax.f32 %v2987_v17, 0.0  ;;  %v2953_v4 = vmax.f32 %v2408_v30, %v2843_v59  ;;  %v2933_v8 = vld [vmem:[#allocation17 + $0x48] sm:$0xff] }
 0x49e   : > { %v3034_v28 = vmul.f32 %v3010_v51, %v2926_v9  ;;  %v2988_v31 = vadd.f32 %v13007_v56, %v2952_v37 }
 0x49f   : > { %3074 = vst [vmem:[#allocation2] sm:$0xff] %v9190_v13  ;;  %v3035_v48 = vmul.f32 %v3011_v3, %v2927_v39  ;;  %v2989_v24 = vadd.f32 %v13009_v14, %v2953_v4  ;;  %v2412_v26 = vpop.f32.mrb[32].mxu1  ;;  %v2934_v39 = vld [vmem:[#allocation17 + $0x50] sm:$0xff]  ;;  %v2935_v3 = vld [vmem:[#allocation17 + $0x58] sm:$0xff] }
 0x4a0   : > { %v3012_v1 = vmax.f32 %v2988_v31, 0.0  ;;  %v2954_v23 = vmax.f32 %v2412_v26, %v2847_v19  ;;  %v2414_v53 = vpop.f32.mrb[33].mxu1 }
 0x4a1   : > { %v9191_v41 = vpack.c.bf16 %v3035_v48, %v3034_v28  ;;  %v3013_v32 = vmax.f32 %v2989_v24, 0.0  ;;  %v2955_v44 = vmax.f32 %v2414_v53, %v2849_v61 }
 0x4a2   : > { %v3036_v55 = vmul.f32 %v3012_v1, %v2928_v0  ;;  %v2990_v47 = vadd.f32 %v13007_v56, %v2954_v23 }
 0x4a3   : > { %3079 = vst [vmem:[#allocation2 + $0x8] sm:$0xff] %v9191_v41  ;;  %v3037_v59 = vmul.f32 %v3013_v32, %v2929_v29  ;;  %v2991_v10 = vadd.f32 %v13009_v14, %v2955_v44  ;;  %v2418_v54 = vpop.f32.mrb[34].mxu1 }
 0x4a4   : > { %v3014_v45 = vmax.f32 %v2990_v47, 0.0  ;;  %v2956_v27 = vmax.f32 %v2418_v54, %v12999_v5  ;;  %v2420_v11 = vpop.f32.mrb[35].mxu1 }
 0x4a5   : > { %v9192_v49 = vpack.c.bf16 %v3037_v59, %v3036_v55  ;;  %v3015_v19 = vmax.f32 %v2991_v10, 0.0  ;;  %v2957_v21 = vmax.f32 %v2420_v11, %v13001_v36 }
 0x4a6   : > { %v3038_v35 = vmul.f32 %v3014_v45, %v2930_v42  ;;  %v2992_v61 = vadd.f32 %v13007_v56, %v2956_v27 }
 0x4a7   : > { %3086 = vst [vmem:[#allocation2 + $0x10] sm:$0xff] %v9192_v49  ;;  %v3039_v2 = vmul.f32 %v3015_v19, %v2931_v22  ;;  %v2993_v58 = vadd.f32 %v13009_v14, %v2957_v21  ;;  %v2424_v12 = vpop.f32.mrb[36].mxu1  ;;  %v2936_v49 = vld [vmem:[#allocation17 + $0x60] sm:$0xff] }
 0x4a8   : > { %v3016_v25 = vmax.f32 %v2992_v61, 0.0  ;;  %v2958_v18 = vmax.f32 %v2424_v12, %v13003_v63  ;;  %v2426_v7 = vpop.f32.mrb[37].mxu1  ;;  %v2937_v61 = vld [vmem:[#allocation17 + $0x68] sm:$0xff] }
 0x4a9   : > { %v9193_v5 = vpack.c.bf16 %v3039_v2, %v3038_v35  ;;  %v3017_v9 = vmax.f32 %v2993_v58, 0.0  ;;  %v2959_v17 = vmax.f32 %v2426_v7, %v13005_v43 }
 0x4aa   : > { %v3040_v46 = vmul.f32 %v3016_v25, %v2932_v20  ;;  %v2994_v36 = vadd.f32 %v13007_v56, %v2958_v18 }
 0x4ab   : > { %3091 = vst [vmem:[#allocation2 + $0x18] sm:$0xff] %v9193_v5  ;;  %v3041_v51 = vmul.f32 %v3017_v9, %v2933_v8  ;;  %v2995_v37 = vadd.f32 %v13009_v14, %v2959_v17  ;;  %v2430_v30 = vpop.f32.mrb[38].mxu1 }
 0x4ac   : > { %v3018_v13 = vmax.f32 %v2994_v36, 0.0  ;;  %v2432_v4 = vpop.f32.mrb[39].mxu1 }
 0x4ad   : > { %v9194_v28 = vpack.c.bf16 %v3041_v51, %v3040_v46  ;;  %v3019_v31 = vmax.f32 %v2995_v37, 0.0 }
 0x4ae   : > { %v3042_v63 = vmul.f32 %v3018_v13, %v2934_v39 }
 0x4af   : > { %3098 = vst [vmem:[#allocation2 + $0x20] sm:$0xff] %v9194_v28  ;;  %v3043_v48 = vmul.f32 %v3019_v31, %v2935_v3  ;;  %v2436_v0 = vpop.f32.mrb[40].mxu1 }
 0x4b0   : > { %v2438_v24 = vpop.f32.mrb[41].mxu1 }
 0x4b1   : > { %v9195_v43 = vpack.c.bf16 %v3043_v48, %v3042_v63  ;;  %v2941_v63 = vld [vmem:[#allocation17 + $0x88] sm:$0xff] }
 0x4b3   : > { %3103 = vst [vmem:[#allocation2 + $0x28] sm:$0xff] %v9195_v43  ;;  %v2442_v26 = vpop.f32.mrb[42].mxu1 }
 0x4b4   : > { %v2444_v1 = vpop.f32.mrb[43].mxu1 }
 0x4b7   : > { %v2448_v29 = vpop.f32.mrb[44].mxu1 }
 0x4b8   : > { %v13027_v23 = vpop.f32.mrb[45].mxu1 }
 0x4bb   : > { %v13029_v53 = vpop.f32.mrb[46].mxu1 }
 0x4bc   : > { %v13031_v41 = vpop.f32.mrb[47].mxu1 }
 0x4bf   : > { %v13033_v32 = vpop.f32.mrb[48].mxu1 }
 0x4c0   : > { %v13035_v44 = vpop.f32.mrb[49].mxu1 }
 0x4c3   : > { %v2865_v55 = vpop.f32.mrb[50].mxu1 }
 0x4c4   : > { %v10162_v47 = vadd.f32 %v2865_v55, %v12975_v38  ;;  %v2867_v59 = vpop.f32.mrb[51].mxu1 }
 0x4c5   : > { %v10163_v42 = vadd.f32 %v2867_v59, %v12977_v16 }
 0x4c6   : > { %v2960_v10 = vmax.f32 %v2430_v30, %v10162_v47 }
 0x4c7   : > { %v2961_v54 = vmax.f32 %v2432_v4, %v10163_v42  ;;  %v2871_v45 = vpop.f32.mrb[52].mxu1  ;;  %v2940_v4 = vld [vmem:[#allocation17 + $0x80] sm:$0xff]  ;;  %v2942_v42 = vld [vmem:[#allocation17 + $0x90] sm:$0xff] }
 0x4c8   : > { %v2996_v22 = vadd.f32 %v13007_v56, %v2960_v10  ;;  %v10164_v27 = vadd.f32 %v2871_v45, %v12979_v62  ;;  %v2873_v11 = vpop.f32.mrb[53].mxu1  ;;  %v2938_v62 = vld [vmem:[#allocation17 + $0x70] sm:$0xff] }
 0x4c9   : > { %v2997_v19 = vadd.f32 %v13009_v14, %v2961_v54  ;;  %v10165_v21 = vadd.f32 %v2873_v11, %v12981_v33  ;;  %v2939_v33 = vld [vmem:[#allocation17 + $0x78] sm:$0xff] }
 0x4ca   : > { %v3020_v35 = vmax.f32 %v2996_v22, 0.0  ;;  %v2962_v2 = vmax.f32 %v2436_v0, %v10164_v27 }
 0x4cb   : > { %v3021_v38 = vmax.f32 %v2997_v19, 0.0  ;;  %v2963_v20 = vmax.f32 %v2438_v24, %v10165_v21  ;;  %v2877_v58 = vpop.f32.mrb[54].mxu1 }
 0x4cc   : > { %v3044_v16 = vmul.f32 %v3020_v35, %v2936_v49  ;;  %v2998_v12 = vadd.f32 %v13007_v56, %v2962_v2  ;;  %v10166_v25 = vadd.f32 %v2877_v58, %v12983_v34  ;;  %v2879_v8 = vpop.f32.mrb[55].mxu1 }
 0x4cd   : > { %v3045_v18 = vmul.f32 %v3021_v38, %v2937_v61  ;;  %v2999_v7 = vadd.f32 %v13009_v14, %v2963_v20  ;;  %v10167_v5 = vadd.f32 %v2879_v8, %v12985_v6  ;;  %v2944_v61 = vld [vmem:[#allocation17 + $0xa0] sm:$0xff]  ;;  %v2946_v8 = vld [vmem:[#allocation17 + $0xb0] sm:$0xff] }
 0x4ce   : > { %v3022_v9 = vmax.f32 %v2998_v12, 0.0  ;;  %v2964_v17 = vmax.f32 %v2442_v26, %v10166_v25 }
 0x4cf   : > { %v9196_v46 = vpack.c.bf16 %v3045_v18, %v3044_v16  ;;  %v3023_v36 = vmax.f32 %v2999_v7, 0.0  ;;  %v2965_v51 = vmax.f32 %v2444_v1, %v10167_v5  ;;  %v2883_v39 = vpop.f32.mrb[56].mxu1  ;;  %v2947_v7 = vld [vmem:[#allocation17 + $0xb8] sm:$0xff] }
 0x4d0   : > { %v3046_v37 = vmul.f32 %v3022_v9, %v2938_v62  ;;  %v3000_v30 = vadd.f32 %v13007_v56, %v2964_v17  ;;  %v10168_v13 = vadd.f32 %v2883_v39, %v12987_v50  ;;  %v2885_v34 = vpop.f32.mrb[57].mxu1 }
 0x4d1   : > { %3110 = vst [vmem:[#allocation2 + $0x30] sm:$0xff] %v9196_v46  ;;  %v3047_v3 = vmul.f32 %v3023_v36, %v2939_v33  ;;  %v3001_v28 = vadd.f32 %v13009_v14, %v2965_v51  ;;  %v10169_v6 = vadd.f32 %v2885_v34, %v12989_v57 }
 0x4d2   : > { %v3024_v31 = vmax.f32 %v3000_v30, 0.0  ;;  %v2966_v48 = vmax.f32 %v2448_v29, %v10168_v13  ;;  %v2943_v29 = vld [vmem:[#allocation17 + $0x98] sm:$0xff] }
 0x4d3   : > { %v9197_v0 = vpack.c.bf16 %v3047_v3, %v3046_v37  ;;  %v3025_v24 = vmax.f32 %v3001_v28, 0.0  ;;  %v2967_v43 = vmax.f32 %v13027_v23, %v10169_v6  ;;  %v2889_v26 = vpop.f32.mrb[58].mxu1 }
 0x4d4   : > { %v3048_v1 = vmul.f32 %v3024_v31, %v2940_v4  ;;  %v3002_v55 = vadd.f32 %v13007_v56, %v2966_v48  ;;  %v10170_v50 = vadd.f32 %v2889_v26, %v12991_v40  ;;  %v2891_v47 = vpop.f32.mrb[59].mxu1 }
 0x4d5   : > { %3115 = vst [vmem:[#allocation2 + $0x38] sm:$0xff] %v9197_v0  ;;  %v3049_v59 = vmul.f32 %v3025_v24, %v2941_v63  ;;  %v3003_v10 = vadd.f32 %v13009_v14, %v2967_v43  ;;  %v10171_v57 = vadd.f32 %v2891_v47, %v12993_v60 }
 0x4d6   : > { %v3026_v54 = vmax.f32 %v3002_v55, 0.0  ;;  %v2968_v45 = vmax.f32 %v13029_v53, %v10170_v50  ;;  %v2945_v53 = vld [vmem:[#allocation17 + $0xa8] sm:$0xff] }
 0x4d7   : > { %v9198_v22 = vpack.c.bf16 %v3049_v59, %v3048_v1  ;;  %v3027_v23 = vmax.f32 %v3003_v10, 0.0  ;;  %v2969_v27 = vmax.f32 %v13031_v41, %v10171_v57  ;;  %v2895_v11 = vpop.f32.mrb[60].mxu1 }
 0x4d8   : > { %v3050_v49 = vmul.f32 %v3026_v54, %v2942_v42  ;;  %v3004_v40 = vadd.f32 %v13007_v56, %v2968_v45  ;;  %v10172_v19 = vadd.f32 %v2895_v11, %v12995_v52  ;;  %v2897_v21 = vpop.f32.mrb[61].mxu1 }
 0x4d9   : > { %3122 = vst [vmem:[#allocation2 + $0x40] sm:$0xff] %v9198_v22  ;;  %v3051_v35 = vmul.f32 %v3027_v23, %v2943_v29  ;;  %v3005_v60 = vadd.f32 %v13009_v14, %v2969_v27  ;;  %v10173_v2 = vadd.f32 %v2897_v21, %v12997_v15 }
 0x4da   : > { %v3028_v38 = vmax.f32 %v3004_v40, 0.0  ;;  %v2970_v20 = vmax.f32 %v13033_v32, %v10172_v19 }
 0x4db   : > { %v9199_v58 = vpack.c.bf16 %v3051_v35, %v3050_v49  ;;  %v3029_v41 = vmax.f32 %v3005_v60, 0.0  ;;  %v2971_v16 = vmax.f32 %v13035_v44, %v10173_v2 }
 0x4dc   : > { %v3052_v12 = vmul.f32 %v3028_v38, %v2944_v61  ;;  %v3006_v25 = vadd.f32 %v13007_v56, %v2970_v20 }
 0x4dd   : > { %3127 = vst [vmem:[#allocation2 + $0x48] sm:$0xff] %v9199_v58  ;;  %v3053_v52 = vmul.f32 %v3029_v41, %v2945_v53  ;;  %v3007_v18 = vadd.f32 %v13009_v14, %v2971_v16 }
 0x4de   : > { %v3030_v62 = vmax.f32 %v3006_v25, 0.0 }
 0x4df   : > { %v9200_v5 = vpack.c.bf16 %v3053_v52, %v3052_v12  ;;  %v3031_v15 = vmax.f32 %v3007_v18, 0.0 }
 0x4e0   : > { %v3054_v9 = vmul.f32 %v3030_v62, %v2946_v8 }
 0x4e1   : > { %3134 = vst [vmem:[#allocation2 + $0x50] sm:$0xff] %v9200_v5  ;;  %v3055_v33 = vmul.f32 %v3031_v15, %v2947_v7 }
 0x4e3   : > { %v9201_v32 = vpack.c.bf16 %v3055_v33, %v3054_v9 }
 0x4e5   : > { %3139 = vst [vmem:[#allocation2 + $0x58] sm:$0xff] %v9201_v32 }
 0x4e6 PF: > { %v10543_v56 = vld [vmem:[%s12381_s25 + $0x4] ss:$12 sps:$4 sm:$0xff]   ;;  %v10547_v44 = vld [vmem:[%s12381_s25] ss:$12 sps:$4 sm:$0xff]   ;;  %v10549_v46 = vld [vmem:[%s12381_s25 + $0x1c] ss:$12 sps:$4 sm:$0xff]  }
 0x4e7   : > { %v10545_v14 = vld [vmem:[%s12381_s25 + $0x484] ss:$12 sps:$4 sm:$0xff]   ;;  %7094 = vmatprep.subr.bf16.mxu1 %v10543_v56  ;;  %v10548_v17 = vld [vmem:[%s12381_s25 + $0x480] ss:$12 sps:$4 sm:$0xff]   ;;  %v10551_v36 = vld [vmem:[%s12381_s25 + $0x49c] ss:$12 sps:$4 sm:$0xff]  }
 0x4e8   : > { %7217 = vmatprep.subr.bf16.mxu0 %v10545_v14  ;;  %7095 = vmatpush1.bf16.msra.mxu1 %v10547_v44  ;;  %v10553_v51 = vld [vmem:[%s12381_s25 + $0x18] ss:$12 sps:$4 sm:$0xff]   ;;  %v10555_v37 = vld [vmem:[%s12381_s25 + $0x34] ss:$12 sps:$4 sm:$0xff]   ;;  %v10559_v13 = vld [vmem:[%s12381_s25 + $0x30] ss:$12 sps:$4 sm:$0xff]  }
 0x4e9   : > { %7218 = vmatpush1.bf16.msra.mxu0 %v10548_v17  ;;  %7096 = vmatprep.subr.bf16.mxu1 %v10549_v46  ;;  %v10554_v39 = vld [vmem:[%s12381_s25 + $0x498] ss:$12 sps:$4 sm:$0xff]   ;;  %v10557_v30 = vld [vmem:[%s12381_s25 + $0x4b4] ss:$12 sps:$4 sm:$0xff]   ;;  %v10560_v34 = vld [vmem:[%s12381_s25 + $0x4b0] ss:$12 sps:$4 sm:$0xff]  }
 0x4ea   : > { %7219 = vmatprep.subr.bf16.mxu0 %v10551_v36  ;;  %v10561_v3 = vld [vmem:[%s12381_s25 + $0x4c] ss:$12 sps:$4 sm:$0xff]   ;;  %v10565_v28 = vld [vmem:[%s12381_s25 + $0x48] ss:$12 sps:$4 sm:$0xff]   ;;  %v10567_v31 = vld [vmem:[%s12381_s25 + $0x64] ss:$12 sps:$4 sm:$0xff]  }
 0x4eb   : > { %v10563_v4 = vld [vmem:[%s12381_s25 + $0x4cc] ss:$12 sps:$4 sm:$0xff]   ;;  %v10566_v6 = vld [vmem:[%s12381_s25 + $0x4c8] ss:$12 sps:$4 sm:$0xff]   ;;  %v10569_v63 = vld [vmem:[%s12381_s25 + $0x4e4] ss:$12 sps:$4 sm:$0xff]  }
 0x4ec   : > { %7097 = vmatpush1.bf16.msra.mxu1 %v10553_v51  ;;  %v10571_v48 = vld [vmem:[%s12381_s25 + $0x60] ss:$12 sps:$4 sm:$0xff]   ;;  %v10573_v24 = vld [vmem:[%s12381_s25 + $0x7c] ss:$12 sps:$4 sm:$0xff]   ;;  %v10577_v26 = vld [vmem:[%s12381_s25 + $0x78] ss:$12 sps:$4 sm:$0xff]  }
 0x4ed   : > { %7220 = vmatpush1.bf16.msra.mxu0 %v10554_v39  ;;  %7098 = vmatprep.subr.bf16.mxu1 %v10555_v37  ;;  %v10572_v0 = vld [vmem:[%s12381_s25 + $0x4e0] ss:$12 sps:$4 sm:$0xff]   ;;  %v10575_v43 = vld [vmem:[%s12381_s25 + $0x4fc] ss:$12 sps:$4 sm:$0xff]   ;;  %v10578_v1 = vld [vmem:[%s12381_s25 + $0x4f8] ss:$12 sps:$4 sm:$0xff]  }
 0x4ee   : > { %7221 = vmatprep.subr.bf16.mxu0 %v10557_v30  ;;  %v10579_v55 = vld [vmem:[%s12381_s25 + $0x94] ss:$12 sps:$4 sm:$0xff]   ;;  %v10583_v47 = vld [vmem:[%s12381_s25 + $0x90] ss:$12 sps:$4 sm:$0xff]   ;;  %v10585_v42 = vld [vmem:[%s12381_s25 + $0xac] ss:$12 sps:$4 sm:$0xff]  }
 0x4ef   : > { %v10581_v50 = vld [vmem:[%s12381_s25 + $0x514] ss:$12 sps:$4 sm:$0xff]   ;;  %v10584_v59 = vld [vmem:[%s12381_s25 + $0x510] ss:$12 sps:$4 sm:$0xff]   ;;  %v10587_v10 = vld [vmem:[%s12381_s25 + $0x52c] ss:$12 sps:$4 sm:$0xff]  }
 0x4f0   : > { %7099 = vmatpush1.bf16.msra.mxu1 %v10559_v13  ;;  %v10589_v57 = vld [vmem:[%s12381_s25 + $0xa8] ss:$12 sps:$4 sm:$0xff]   ;;  %v10591_v29 = vld [vmem:[%s12381_s25 + $0xc4] ss:$12 sps:$4 sm:$0xff]   ;;  %v10595_v22 = vld [vmem:[%s12381_s25 + $0xc0] ss:$12 sps:$4 sm:$0xff]  }
 0x4f1   : > { %7222 = vmatpush1.bf16.msra.mxu0 %v10560_v34  ;;  %7100 = vmatprep.subr.bf16.mxu1 %v10561_v3  ;;  %v10590_v54 = vld [vmem:[%s12381_s25 + $0x528] ss:$12 sps:$4 sm:$0xff]   ;;  %v10593_v45 = vld [vmem:[%s12381_s25 + $0x544] ss:$12 sps:$4 sm:$0xff]   ;;  %v10596_v23 = vld [vmem:[%s12381_s25 + $0x540] ss:$12 sps:$4 sm:$0xff]  }
 0x4f2   : > { %7223 = vmatprep.subr.bf16.mxu0 %v10563_v4  ;;  %v10597_v27 = vld [vmem:[%s12381_s25 + $0xdc] ss:$12 sps:$4 sm:$0xff]   ;;  %v10601_v49 = vld [vmem:[%s12381_s25 + $0xd8] ss:$12 sps:$4 sm:$0xff]   ;;  %v10603_v19 = vld [vmem:[%s12381_s25 + $0xf4] ss:$12 sps:$4 sm:$0xff]  }
 0x4f3   : > { %v10599_v11 = vld [vmem:[%s12381_s25 + $0x55c] ss:$12 sps:$4 sm:$0xff]   ;;  %v10602_v40 = vld [vmem:[%s12381_s25 + $0x558] ss:$12 sps:$4 sm:$0xff]   ;;  %v10605_v21 = vld [vmem:[%s12381_s25 + $0x574] ss:$12 sps:$4 sm:$0xff]  }
 0x4f4   : > { %7101 = vmatpush1.bf16.msra.mxu1 %v10565_v28  ;;  %v10607_v35 = vld [vmem:[%s12381_s25 + $0xf0] ss:$12 sps:$4 sm:$0xff]   ;;  %v10609_v60 = vld [vmem:[%s12381_s25 + $0x10c] ss:$12 sps:$4 sm:$0xff]   ;;  %v10613_v53 = vld [vmem:[%s12381_s25 + $0x108] ss:$12 sps:$4 sm:$0xff]  }
 0x4f5   : > { %7224 = vmatpush1.bf16.msra.mxu0 %v10566_v6  ;;  %7102 = vmatprep.subr.bf16.mxu1 %v10567_v31  ;;  %v10608_v61 = vld [vmem:[%s12381_s25 + $0x570] ss:$12 sps:$4 sm:$0xff]   ;;  %v10611_v2 = vld [vmem:[%s12381_s25 + $0x58c] ss:$12 sps:$4 sm:$0xff]   ;;  %v10614_v58 = vld [vmem:[%s12381_s25 + $0x588] ss:$12 sps:$4 sm:$0xff]  }
 0x4f6   : > { %7225 = vmatprep.subr.bf16.mxu0 %v10569_v63  ;;  %v3141_v38 = vld [vmem:[#allocation2] sm:$0xff]  ;;  %v3144_v41 = vld [vmem:[#allocation2 + $0x18] sm:$0xff]  ;;  %v10627_v15 = vld [vmem:[%s12381_s25 + $0x154] ss:$12 sps:$4 sm:$0xff]   ;;  %vm11857_vm2 = vmmov 0   ;;  %p9180_p5 = scmp.ne.s32.totalorder %s11962_s22, 3 }
 0x4f7   : > { %v13113_v20 = vcombine.high %v3141_v38, %v3141_v38  ;;  %v10615_v16 = vld [vmem:[%s12381_s25 + $0x124] ss:$12 sps:$4 sm:$0xff]   ;;  %v13118_v25 = vcombine.high %v3144_v41, %v3144_v41  ;;  %v10619_v52 = vld [vmem:[%s12381_s25 + $0x120] ss:$12 sps:$4 sm:$0xff]   ;;  %v10621_v18 = vld [vmem:[%s12381_s25 + $0x13c] ss:$12 sps:$4 sm:$0xff]   ;;  %v13138_v51 = vcombine.low %v3141_v38, %v3141_v38  ;;  %v13140_v39 = vcombine.low %v3144_v41, %v3144_v41 }
 0x4f8   : > { %7103 = vmatpush1.bf16.msra.mxu1 %v10571_v48  ;;  %v10617_v12 = vld [vmem:[%s12381_s25 + $0x5a4] ss:$12 sps:$4 sm:$0xff]   ;;  %v10620_v8 = vld [vmem:[%s12381_s25 + $0x5a0] ss:$12 sps:$4 sm:$0xff]   ;;  %v10623_v62 = vld [vmem:[%s12381_s25 + $0x5bc] ss:$12 sps:$4 sm:$0xff]  }
 0x4f9   : > { %7226 = vmatpush1.bf16.msra.mxu0 %v10572_v0  ;;  %7104 = vmatprep.subr.bf16.mxu1 %v10573_v24  ;;  %v10625_v7 = vld [vmem:[%s12381_s25 + $0x138] ss:$12 sps:$4 sm:$0xff]   ;;  %v10629_v9 = vld [vmem:[%s12381_s25 + $0x5d4] ss:$12 sps:$4 sm:$0xff]   ;;  %v10631_v33 = vld [vmem:[%s12381_s25 + $0x150] ss:$12 sps:$4 sm:$0xff]  }
 0x4fa   : > { %7227 = vmatprep.subr.bf16.mxu0 %v10575_v43  ;;  %7126 = vmatprep.mubr.bf16.mxu1 %v13113_v20  ;;  %v10626_v5 = vld [vmem:[%s12381_s25 + $0x5b8] ss:$12 sps:$4 sm:$0xff]   ;;  %v10632_v32 = vld [vmem:[%s12381_s25 + $0x5d0] ss:$12 sps:$4 sm:$0xff]   ;;  %v10637_v44 = vld [vmem:[%s12381_s25 + $0x168] ss:$12 sps:$4 sm:$0xff]  }
 0x4fb   : > { %7249 = vmatprep.mubr.bf16.mxu0 %v13118_v25  ;;  %v10633_v56 = vld [vmem:[%s12381_s25 + $0x16c] ss:$12 sps:$4 sm:$0xff]   ;;  %v10638_v17 = vld [vmem:[%s12381_s25 + $0x5e8] ss:$12 sps:$4 sm:$0xff]   ;;  %v10643_v46 = vld [vmem:[%s12381_s25 + $0x184] ss:$12 sps:$4 sm:$0xff]  }
 0x4fc   : > { %7105 = vmatpush1.bf16.msra.mxu1 %v10577_v26  ;;  %v10635_v14 = vld [vmem:[%s12381_s25 + $0x5ec] ss:$12 sps:$4 sm:$0xff]   ;;  %v10648_v36 = vld [vmem:[%s12381_s25 + $0x604] ss:$12 sps:$4 sm:$0xff]   ;;  %v10651_v13 = vld [vmem:[%s12381_s25 + $0x19c] ss:$12 sps:$4 sm:$0xff]  }
 0x4fd   : > { %7228 = vmatpush1.bf16.msra.mxu0 %v10578_v1  ;;  %7106 = vmatprep.subr.bf16.mxu1 %v10579_v55  ;;  %v10641_v37 = vld [vmem:[%s12381_s25 + $0x180] ss:$12 sps:$4 sm:$0xff]   ;;  %v10654_v34 = vld [vmem:[%s12381_s25 + $0x61c] ss:$12 sps:$4 sm:$0xff]   ;;  %v10649_v3 = vld [vmem:[%s12381_s25 + $0x198] ss:$12 sps:$4 sm:$0xff]  }
 0x4fe   : > { %7229 = vmatprep.subr.bf16.mxu0 %v10581_v50  ;;  %v10646_v30 = vld [vmem:[%s12381_s25 + $0x600] ss:$12 sps:$4 sm:$0xff]   ;;  %v10652_v4 = vld [vmem:[%s12381_s25 + $0x618] ss:$12 sps:$4 sm:$0xff]   ;;  %v10655_v31 = vld [vmem:[%s12381_s25 + $0x1b0] ss:$12 sps:$4 sm:$0xff]  }
 0x4ff   : > { %v10657_v28 = vld [vmem:[%s12381_s25 + $0x1b4] ss:$12 sps:$4 sm:$0xff]   ;;  %v10658_v63 = vld [vmem:[%s12381_s25 + $0x630] ss:$12 sps:$4 sm:$0xff]   ;;  %v10663_v48 = vld [vmem:[%s12381_s25 + $0x1cc] ss:$12 sps:$4 sm:$0xff]  }
 0x500   : > { %7107 = vmatpush1.bf16.msra.mxu1 %v10583_v47  ;;  %v10660_v6 = vld [vmem:[%s12381_s25 + $0x634] ss:$12 sps:$4 sm:$0xff]   ;;  %v10666_v0 = vld [vmem:[%s12381_s25 + $0x64c] ss:$12 sps:$4 sm:$0xff]   ;;  %v10669_v26 = vld [vmem:[%s12381_s25 + $0x1e4] ss:$12 sps:$4 sm:$0xff]  }
 0x501   : > { %7230 = vmatpush1.bf16.msra.mxu0 %v10584_v59  ;;  %7108 = vmatprep.subr.bf16.mxu1 %v10585_v42  ;;  %v10661_v24 = vld [vmem:[%s12381_s25 + $0x1c8] ss:$12 sps:$4 sm:$0xff]   ;;  %v10672_v1 = vld [vmem:[%s12381_s25 + $0x664] ss:$12 sps:$4 sm:$0xff]   ;;  %v10667_v55 = vld [vmem:[%s12381_s25 + $0x1e0] ss:$12 sps:$4 sm:$0xff]  }
 0x502   : > { %7231 = vmatprep.subr.bf16.mxu0 %v10587_v10  ;;  %v10664_v43 = vld [vmem:[%s12381_s25 + $0x648] ss:$12 sps:$4 sm:$0xff]   ;;  %v10670_v50 = vld [vmem:[%s12381_s25 + $0x660] ss:$12 sps:$4 sm:$0xff]   ;;  %v10673_v42 = vld [vmem:[%s12381_s25 + $0x1f8] ss:$12 sps:$4 sm:$0xff]  }
 0x503   : > { %v10675_v47 = vld [vmem:[%s12381_s25 + $0x1fc] ss:$12 sps:$4 sm:$0xff]   ;;  %v10676_v10 = vld [vmem:[%s12381_s25 + $0x678] ss:$12 sps:$4 sm:$0xff]  }
 0x504   : > { %7109 = vmatpush1.bf16.msra.mxu1 %v10589_v57  ;;  %v10678_v59 = vld [vmem:[%s12381_s25 + $0x67c] ss:$12 sps:$4 sm:$0xff]   ;;  %v10681_v57 = vld [vmem:[%s12381_s25 + $0x214] ss:$12 sps:$4 sm:$0xff]   ;;  %v10700_v41 = vld [vmem:[%s12381_s25 + $0x6d8] ss:$12 sps:$4 sm:$0xff]  }
 0x505   : > { %7232 = vmatpush1.bf16.msra.mxu0 %v10590_v54  ;;  %7110 = vmatprep.subr.bf16.mxu1 %v10591_v29  ;;  %v10684_v54 = vld [vmem:[%s12381_s25 + $0x694] ss:$12 sps:$4 sm:$0xff]   ;;  %v10699_v38 = vld [vmem:[%s12381_s25 + $0x25c] ss:$12 sps:$4 sm:$0xff]  }
 0x506   : > { %7233 = vmatprep.subr.bf16.mxu0 %v10593_v45  ;;  %v13168_v29 = vld [vmem:[#allocation2 + $0x8] sm:$0xff]  ;;  %v10679_v45 = vld [vmem:[%s12381_s25 + $0x210] ss:$12 sps:$4 sm:$0xff]  }
 0x508   : > { %7111 = vmatpush1.bf16.msra.mxu1 %v10595_v22  ;;  %v10682_v22 = vld [vmem:[%s12381_s25 + $0x690] ss:$12 sps:$4 sm:$0xff]  }
 0x509   : > { %7234 = vmatpush1.bf16.msra.mxu0 %v10596_v23  ;;  %7112 = vmatprep.subr.bf16.mxu1 %v10597_v27  ;;  %v13174_v23 = vcombine.high %v13168_v29, %v13168_v29  ;;  %v13176_v27 = vld [vmem:[#allocation2 + $0x20] sm:$0xff] }
 0x50a   : > { %7235 = vmatprep.subr.bf16.mxu0 %v10599_v11  ;;  %v10687_v11 = vld [vmem:[%s12381_s25 + $0x22c] ss:$12 sps:$4 sm:$0xff]  }
 0x50c   : > { %7113 = vmatpush1.bf16.msra.mxu1 %v10601_v49  ;;  %v13181_v49 = vcombine.high %v13176_v27, %v13176_v27 }
 0x50d   : > { %7236 = vmatpush1.bf16.msra.mxu0 %v10602_v40  ;;  %7114 = vmatprep.subr.bf16.mxu1 %v10603_v19  ;;  %v10690_v40 = vld [vmem:[%s12381_s25 + $0x6ac] ss:$12 sps:$4 sm:$0xff]   ;;  %v10685_v19 = vld [vmem:[%s12381_s25 + $0x228] ss:$12 sps:$4 sm:$0xff]  }
 0x50e   : > { %7237 = vmatprep.subr.bf16.mxu0 %v10605_v21  ;;  %v10688_v21 = vld [vmem:[%s12381_s25 + $0x6a8] ss:$12 sps:$4 sm:$0xff]  }
 0x510   : > { %7115 = vmatpush1.bf16.msra.mxu1 %v10607_v35  ;;  %v10693_v35 = vld [vmem:[%s12381_s25 + $0x244] ss:$12 sps:$4 sm:$0xff]  }
 0x511   : > { %7238 = vmatpush1.bf16.msra.mxu0 %v10608_v61  ;;  %7116 = vmatprep.subr.bf16.mxu1 %v10609_v60  ;;  %v10696_v61 = vld [vmem:[%s12381_s25 + $0x6c4] ss:$12 sps:$4 sm:$0xff]   ;;  %v10691_v60 = vld [vmem:[%s12381_s25 + $0x240] ss:$12 sps:$4 sm:$0xff]  }
 0x512   : > { %7239 = vmatprep.subr.bf16.mxu0 %v10611_v2  ;;  %v10694_v2 = vld [vmem:[%s12381_s25 + $0x6c0] ss:$12 sps:$4 sm:$0xff]  }
 0x514   : > { %7117 = vmatpush1.bf16.msra.mxu1 %v10613_v53  ;;  %v10702_v53 = vld [vmem:[%s12381_s25 + $0x6dc] ss:$12 sps:$4 sm:$0xff]  }
 0x515   : > { %7240 = vmatpush1.bf16.msra.mxu0 %v10614_v58  ;;  %7118 = vmatprep.subr.bf16.mxu1 %v10615_v16  ;;  %v10697_v58 = vld [vmem:[%s12381_s25 + $0x258] ss:$12 sps:$4 sm:$0xff]   ;;  %v10705_v16 = vld [vmem:[%s12381_s25 + $0x274] ss:$12 sps:$4 sm:$0xff]  }
 0x516   : > { %7241 = vmatprep.subr.bf16.mxu0 %v10617_v12  ;;  %v10708_v12 = vld [vmem:[%s12381_s25 + $0x6f4] ss:$12 sps:$4 sm:$0xff]  }
 0x518   : > { %7119 = vmatpush1.bf16.msra.mxu1 %v10619_v52  ;;  %v10703_v52 = vld [vmem:[%s12381_s25 + $0x270] ss:$12 sps:$4 sm:$0xff]  }
 0x519   : > { %7242 = vmatpush1.bf16.msra.mxu0 %v10620_v8  ;;  %7120 = vmatprep.subr.bf16.mxu1 %v10621_v18  ;;  %v10706_v8 = vld [vmem:[%s12381_s25 + $0x6f0] ss:$12 sps:$4 sm:$0xff]   ;;  %v10711_v18 = vld [vmem:[%s12381_s25 + $0x28c] ss:$12 sps:$4 sm:$0xff]  }
 0x51a   : > { %7243 = vmatprep.subr.bf16.mxu0 %v10623_v62  ;;  %v10714_v62 = vld [vmem:[%s12381_s25 + $0x70c] ss:$12 sps:$4 sm:$0xff]  }
 0x51c   : > { %7121 = vmatpush1.bf16.msra.mxu1 %v10625_v7  ;;  %v10709_v7 = vld [vmem:[%s12381_s25 + $0x288] ss:$12 sps:$4 sm:$0xff]  }
 0x51d   : > { %7244 = vmatpush1.bf16.msra.mxu0 %v10626_v5  ;;  %7122 = vmatprep.subr.bf16.mxu1 %v10627_v15  ;;  %v10712_v5 = vld [vmem:[%s12381_s25 + $0x708] ss:$12 sps:$4 sm:$0xff]   ;;  %v10717_v15 = vld [vmem:[%s12381_s25 + $0x2a4] ss:$12 sps:$4 sm:$0xff]  }
 0x51e   : > { %7245 = vmatprep.subr.bf16.mxu0 %v10629_v9  ;;  %v10720_v9 = vld [vmem:[%s12381_s25 + $0x724] ss:$12 sps:$4 sm:$0xff]  }
 0x520   : > { %7123 = vmatpush1.bf16.msra.mxu1 %v10631_v33  ;;  %v10715_v33 = vld [vmem:[%s12381_s25 + $0x2a0] ss:$12 sps:$4 sm:$0xff]  }
 0x521   : > { %7246 = vmatpush1.bf16.msra.mxu0 %v10632_v32  ;;  %7124 = vmatprep.subr.bf16.mxu1 %v10633_v56  ;;  %v10718_v32 = vld [vmem:[%s12381_s25 + $0x720] ss:$12 sps:$4 sm:$0xff]   ;;  %v10723_v56 = vld [vmem:[%s12381_s25 + $0x2bc] ss:$12 sps:$4 sm:$0xff]  }
 0x522   : > { %7247 = vmatprep.subr.bf16.mxu0 %v10635_v14  ;;  %v10726_v14 = vld [vmem:[%s12381_s25 + $0x73c] ss:$12 sps:$4 sm:$0xff]  }
 0x524   : > { %7125 = vmatpush1.bf16.msra.mxu1 %v10637_v44  ;;  %v10721_v44 = vld [vmem:[%s12381_s25 + $0x2b8] ss:$12 sps:$4 sm:$0xff]  }
 0x525   : > { %7248 = vmatpush1.bf16.msra.mxu0 %v10638_v17  ;;  %7135 = vmatprep.subr.bf16.mxu1 %v10643_v46  ;;  %v10724_v17 = vld [vmem:[%s12381_s25 + $0x738] ss:$12 sps:$4 sm:$0xff]   ;;  %v10729_v46 = vld [vmem:[%s12381_s25 + $0x2d4] ss:$12 sps:$4 sm:$0xff]  }
 0x526   : > { %7258 = vmatprep.subr.bf16.mxu0 %v10648_v36  ;;  %v10732_v36 = vld [vmem:[%s12381_s25 + $0x754] ss:$12 sps:$4 sm:$0xff]  }
 0x527   : > { %7127 = vmatmul.mubr.bf16.vlgmr.msra.gmra.mrb[0].mxu1 %v13138_v51 }
 0x528   : > { %7250 = vmatmul.mubr.bf16.vlgmr.msra.gmra.mrb[0].mxu0 %v13140_v39  ;;  %7136 = vmatpush1.bf16.msra.mxu1 %v10641_v37  ;;  %v10727_v37 = vld [vmem:[%s12381_s25 + $0x2d0] ss:$12 sps:$4 sm:$0xff]  }
 0x529   : > { %7259 = vmatpush1.bf16.msra.mxu0 %v10646_v30  ;;  %7137 = vmatprep.subr.bf16.mxu1 %v10651_v13  ;;  %v10730_v30 = vld [vmem:[%s12381_s25 + $0x750] ss:$12 sps:$4 sm:$0xff]   ;;  %v10735_v13 = vld [vmem:[%s12381_s25 + $0x2ec] ss:$12 sps:$4 sm:$0xff]  }
 0x52a   : > { %7260 = vmatprep.subr.bf16.mxu0 %v10654_v34  ;;  %7167 = vmatprep.mubr.bf16.mxu1 %v13174_v23  ;;  %v10738_v34 = vld [vmem:[%s12381_s25 + $0x76c] ss:$12 sps:$4 sm:$0xff]  }
 0x52b   : > { %7290 = vmatprep.mubr.bf16.mxu0 %v13181_v49 }
 0x52c   : > { %7138 = vmatpush1.bf16.msra.mxu1 %v10649_v3  ;;  %v10733_v3 = vld [vmem:[%s12381_s25 + $0x2e8] ss:$12 sps:$4 sm:$0xff]  }
 0x52d   : > { %7261 = vmatpush1.bf16.msra.mxu0 %v10652_v4  ;;  %7139 = vmatprep.subr.bf16.mxu1 %v10657_v28  ;;  %v10736_v4 = vld [vmem:[%s12381_s25 + $0x768] ss:$12 sps:$4 sm:$0xff]   ;;  %v10743_v28 = vld [vmem:[%s12381_s25 + $0x304] ss:$12 sps:$4 sm:$0xff]  }
 0x52e   : > { %7262 = vmatprep.subr.bf16.mxu0 %v10660_v6  ;;  %v10748_v6 = vld [vmem:[%s12381_s25 + $0x784] ss:$12 sps:$4 sm:$0xff]  }
 0x530   : > { %7140 = vmatpush1.bf16.msra.mxu1 %v10655_v31  ;;  %v13224_v31 = vcombine.low %v13168_v29, %v13168_v29  ;;  %v10763_v29 = vld [vmem:[%s12381_s25 + $0x34c] ss:$12 sps:$4 sm:$0xff]  }
 0x531   : > { %7263 = vmatpush1.bf16.msra.mxu0 %v10658_v63  ;;  %7141 = vmatprep.subr.bf16.mxu1 %v10663_v48  ;;  %v10741_v63 = vld [vmem:[%s12381_s25 + $0x300] ss:$12 sps:$4 sm:$0xff]   ;;  %v13229_v48 = vcombine.low %v13176_v27, %v13176_v27  ;;  %v10764_v27 = vld [vmem:[%s12381_s25 + $0x7c8] ss:$12 sps:$4 sm:$0xff]  }
 0x532   : > { %7264 = vmatprep.subr.bf16.mxu0 %v10666_v0  ;;  %v10746_v0 = vld [vmem:[%s12381_s25 + $0x780] ss:$12 sps:$4 sm:$0xff]  }
 0x534   : > { %7142 = vmatpush1.bf16.msra.mxu1 %v10661_v24  ;;  %v10751_v24 = vld [vmem:[%s12381_s25 + $0x31c] ss:$12 sps:$4 sm:$0xff]  }
 0x535   : > { %7265 = vmatpush1.bf16.msra.mxu0 %v10664_v43  ;;  %7143 = vmatprep.subr.bf16.mxu1 %v10669_v26  ;;  %v10754_v43 = vld [vmem:[%s12381_s25 + $0x79c] ss:$12 sps:$4 sm:$0xff]  }
 0x536   : > { %7266 = vmatprep.subr.bf16.mxu0 %v10672_v1  ;;  %v13234_v26 = vld [vmem:[#allocation2 + $0x10] sm:$0xff]  ;;  %v13236_v1 = vld [vmem:[#allocation2 + $0x28] sm:$0xff] }
 0x538   : > { %7144 = vmatpush1.bf16.msra.mxu1 %v10667_v55  ;;  %v10749_v55 = vld [vmem:[%s12381_s25 + $0x318] ss:$12 sps:$4 sm:$0xff]  }
 0x539   : > { %7267 = vmatpush1.bf16.msra.mxu0 %v10670_v50  ;;  %7145 = vmatprep.subr.bf16.mxu1 %v10675_v47  ;;  %v13241_v50 = vcombine.high %v13234_v26, %v13234_v26  ;;  %v13245_v47 = vcombine.high %v13236_v1, %v13236_v1 }
 0x53a   : > { %7268 = vmatprep.subr.bf16.mxu0 %v10678_v59  ;;  %v10752_v59 = vld [vmem:[%s12381_s25 + $0x798] ss:$12 sps:$4 sm:$0xff]  }
 0x53c   : > { %7146 = vmatpush1.bf16.msra.mxu1 %v10673_v42  ;;  %v10757_v42 = vld [vmem:[%s12381_s25 + $0x334] ss:$12 sps:$4 sm:$0xff]  }
 0x53d   : > { %7269 = vmatpush1.bf16.msra.mxu0 %v10676_v10  ;;  %7147 = vmatprep.subr.bf16.mxu1 %v10681_v57  ;;  %v10760_v10 = vld [vmem:[%s12381_s25 + $0x7b4] ss:$12 sps:$4 sm:$0xff]   ;;  %v10755_v57 = vld [vmem:[%s12381_s25 + $0x330] ss:$12 sps:$4 sm:$0xff]  }
 0x53e   : > { %7270 = vmatprep.subr.bf16.mxu0 %v10684_v54  ;;  %v10758_v54 = vld [vmem:[%s12381_s25 + $0x7b0] ss:$12 sps:$4 sm:$0xff]  }
 0x540   : > { %7148 = vmatpush1.bf16.msra.mxu1 %v10679_v45  ;;  %v10766_v45 = vld [vmem:[%s12381_s25 + $0x7cc] ss:$12 sps:$4 sm:$0xff]  }
 0x541   : > { %7271 = vmatpush1.bf16.msra.mxu0 %v10682_v22  ;;  %7149 = vmatprep.subr.bf16.mxu1 %v10687_v11  ;;  %v10761_v22 = vld [vmem:[%s12381_s25 + $0x348] ss:$12 sps:$4 sm:$0xff]   ;;  %v10769_v11 = vld [vmem:[%s12381_s25 + $0x364] ss:$12 sps:$4 sm:$0xff]  }
 0x542   : > { %7272 = vmatprep.subr.bf16.mxu0 %v10690_v40  ;;  %v10772_v40 = vld [vmem:[%s12381_s25 + $0x7e4] ss:$12 sps:$4 sm:$0xff]  }
 0x544   : > { %7150 = vmatpush1.bf16.msra.mxu1 %v10685_v19  ;;  %v10767_v19 = vld [vmem:[%s12381_s25 + $0x360] ss:$12 sps:$4 sm:$0xff]  }
 0x545   : > { %7273 = vmatpush1.bf16.msra.mxu0 %v10688_v21  ;;  %7151 = vmatprep.subr.bf16.mxu1 %v10693_v35  ;;  %v10770_v21 = vld [vmem:[%s12381_s25 + $0x7e0] ss:$12 sps:$4 sm:$0xff]   ;;  %v10775_v35 = vld [vmem:[%s12381_s25 + $0x37c] ss:$12 sps:$4 sm:$0xff]  }
 0x546   : > { %7274 = vmatprep.subr.bf16.mxu0 %v10696_v61  ;;  %v10778_v61 = vld [vmem:[%s12381_s25 + $0x7fc] ss:$12 sps:$4 sm:$0xff]  }
 0x548   : > { %7152 = vmatpush1.bf16.msra.mxu1 %v10691_v60  ;;  %v10773_v60 = vld [vmem:[%s12381_s25 + $0x378] ss:$12 sps:$4 sm:$0xff]  }
 0x549   : > { %7275 = vmatpush1.bf16.msra.mxu0 %v10694_v2  ;;  %7153 = vmatprep.subr.bf16.mxu1 %v10699_v38  ;;  %v10776_v2 = vld [vmem:[%s12381_s25 + $0x7f8] ss:$12 sps:$4 sm:$0xff]   ;;  %v10781_v38 = vld [vmem:[%s12381_s25 + $0x394] ss:$12 sps:$4 sm:$0xff]  }
 0x54a   : > { %7276 = vmatprep.subr.bf16.mxu0 %v10702_v53  ;;  %v10784_v53 = vld [vmem:[%s12381_s25 + $0x814] ss:$12 sps:$4 sm:$0xff]  }
 0x54c   : > { %7154 = vmatpush1.bf16.msra.mxu1 %v10697_v58  ;;  %v10779_v58 = vld [vmem:[%s12381_s25 + $0x390] ss:$12 sps:$4 sm:$0xff]  }
 0x54d   : > { %7277 = vmatpush1.bf16.msra.mxu0 %v10700_v41  ;;  %7155 = vmatprep.subr.bf16.mxu1 %v10705_v16  ;;  %v10782_v41 = vld [vmem:[%s12381_s25 + $0x810] ss:$12 sps:$4 sm:$0xff]   ;;  %v10787_v16 = vld [vmem:[%s12381_s25 + $0x3ac] ss:$12 sps:$4 sm:$0xff]  }
 0x54e   : > { %7278 = vmatprep.subr.bf16.mxu0 %v10708_v12  ;;  %v10790_v12 = vld [vmem:[%s12381_s25 + $0x82c] ss:$12 sps:$4 sm:$0xff]  }
 0x550   : > { %7156 = vmatpush1.bf16.msra.mxu1 %v10703_v52  ;;  %v10785_v52 = vld [vmem:[%s12381_s25 + $0x3a8] ss:$12 sps:$4 sm:$0xff]  }
 0x551   : > { %7279 = vmatpush1.bf16.msra.mxu0 %v10706_v8  ;;  %7157 = vmatprep.subr.bf16.mxu1 %v10711_v18  ;;  %v10788_v8 = vld [vmem:[%s12381_s25 + $0x828] ss:$12 sps:$4 sm:$0xff]   ;;  %v10793_v18 = vld [vmem:[%s12381_s25 + $0x3c4] ss:$12 sps:$4 sm:$0xff]  }
 0x552   : > { %7280 = vmatprep.subr.bf16.mxu0 %v10714_v62  ;;  %v10796_v62 = vld [vmem:[%s12381_s25 + $0x844] ss:$12 sps:$4 sm:$0xff]  }
 0x554   : > { %7158 = vmatpush1.bf16.msra.mxu1 %v10709_v7  ;;  %v10791_v7 = vld [vmem:[%s12381_s25 + $0x3c0] ss:$12 sps:$4 sm:$0xff]  }
 0x555   : > { %7281 = vmatpush1.bf16.msra.mxu0 %v10712_v5  ;;  %7159 = vmatprep.subr.bf16.mxu1 %v10717_v15  ;;  %v10794_v5 = vld [vmem:[%s12381_s25 + $0x840] ss:$12 sps:$4 sm:$0xff]   ;;  %v10799_v15 = vld [vmem:[%s12381_s25 + $0x3dc] ss:$12 sps:$4 sm:$0xff]  }
 0x556   : > { %7282 = vmatprep.subr.bf16.mxu0 %v10720_v9  ;;  %v10802_v9 = vld [vmem:[%s12381_s25 + $0x85c] ss:$12 sps:$4 sm:$0xff]  }
 0x558   : > { %7160 = vmatpush1.bf16.msra.mxu1 %v10715_v33  ;;  %v10797_v33 = vld [vmem:[%s12381_s25 + $0x3d8] ss:$12 sps:$4 sm:$0xff]  }
 0x559   : > { %7283 = vmatpush1.bf16.msra.mxu0 %v10718_v32  ;;  %7161 = vmatprep.subr.bf16.mxu1 %v10723_v56  ;;  %v10800_v32 = vld [vmem:[%s12381_s25 + $0x858] ss:$12 sps:$4 sm:$0xff]   ;;  %v10805_v56 = vld [vmem:[%s12381_s25 + $0x3f4] ss:$12 sps:$4 sm:$0xff]  }
 0x55a   : > { %7284 = vmatprep.subr.bf16.mxu0 %v10726_v14  ;;  %v10808_v14 = vld [vmem:[%s12381_s25 + $0x874] ss:$12 sps:$4 sm:$0xff]  }
 0x55c   : > { %7162 = vmatpush1.bf16.msra.mxu1 %v10721_v44  ;;  %v10803_v44 = vld [vmem:[%s12381_s25 + $0x3f0] ss:$12 sps:$4 sm:$0xff]  }
 0x55d   : > { %7285 = vmatpush1.bf16.msra.mxu0 %v10724_v17  ;;  %7163 = vmatprep.subr.bf16.mxu1 %v10729_v46  ;;  %v10806_v17 = vld [vmem:[%s12381_s25 + $0x870] ss:$12 sps:$4 sm:$0xff]   ;;  %v10811_v46 = vld [vmem:[%s12381_s25 + $0x40c] ss:$12 sps:$4 sm:$0xff]  }
 0x55e   : > { %7286 = vmatprep.subr.bf16.mxu0 %v10732_v36  ;;  %v10814_v36 = vld [vmem:[%s12381_s25 + $0x88c] ss:$12 sps:$4 sm:$0xff]  }
 0x560   : > { %7164 = vmatpush1.bf16.msra.mxu1 %v10727_v37  ;;  %v10809_v37 = vld [vmem:[%s12381_s25 + $0x408] ss:$12 sps:$4 sm:$0xff]  }
 0x561   : > { %7287 = vmatpush1.bf16.msra.mxu0 %v10730_v30  ;;  %7165 = vmatprep.subr.bf16.mxu1 %v10735_v13  ;;  %v10812_v30 = vld [vmem:[%s12381_s25 + $0x888] ss:$12 sps:$4 sm:$0xff]   ;;  %v10817_v13 = vld [vmem:[%s12381_s25 + $0x424] ss:$12 sps:$4 sm:$0xff]  }
 0x562   : > { %7288 = vmatprep.subr.bf16.mxu0 %v10738_v34  ;;  %v10820_v34 = vld [vmem:[%s12381_s25 + $0x8a4] ss:$12 sps:$4 sm:$0xff]  }
 0x564   : > { %7166 = vmatpush1.bf16.msra.mxu1 %v10733_v3  ;;  %v10815_v3 = vld [vmem:[%s12381_s25 + $0x420] ss:$12 sps:$4 sm:$0xff]  }
 0x565   : > { %7289 = vmatpush1.bf16.msra.mxu0 %v10736_v4  ;;  %7176 = vmatprep.subr.bf16.mxu1 %v10743_v28  ;;  %v10818_v4 = vld [vmem:[%s12381_s25 + $0x8a0] ss:$12 sps:$4 sm:$0xff]   ;;  %v10823_v28 = vld [vmem:[%s12381_s25 + $0x43c] ss:$12 sps:$4 sm:$0xff]  }
 0x566   : > { %7299 = vmatprep.subr.bf16.mxu0 %v10748_v6  ;;  %v10826_v6 = vld [vmem:[%s12381_s25 + $0x8bc] ss:$12 sps:$4 sm:$0xff]  }
 0x567   : > { %7168 = vmatmul.mubr.bf16.vlgmr.msra.gmra.mrb[0].mxu1 %v13224_v31 }
 0x568   : > { %7291 = vmatmul.mubr.bf16.vlgmr.msra.gmra.mrb[0].mxu0 %v13229_v48  ;;  %7177 = vmatpush1.bf16.msra.mxu1 %v10741_v63  ;;  %v10821_v63 = vld [vmem:[%s12381_s25 + $0x438] ss:$12 sps:$4 sm:$0xff]  }
 0x569   : > { %7300 = vmatpush1.bf16.msra.mxu0 %v10746_v0  ;;  %7178 = vmatprep.subr.bf16.mxu1 %v10751_v24  ;;  %v10824_v0 = vld [vmem:[%s12381_s25 + $0x8b8] ss:$12 sps:$4 sm:$0xff]   ;;  %v10829_v24 = vld [vmem:[%s12381_s25 + $0x454] ss:$12 sps:$4 sm:$0xff]  }
 0x56a   : > { %7301 = vmatprep.subr.bf16.mxu0 %v10754_v43  ;;  %7208 = vmatprep.mubr.bf16.mxu1 %v13241_v50  ;;  %v10832_v43 = vld [vmem:[%s12381_s25 + $0x8d4] ss:$12 sps:$4 sm:$0xff]  }
 0x56b   : > { %7331 = vmatprep.mubr.bf16.mxu0 %v13245_v47 }
 0x56c   : > { %7179 = vmatpush1.bf16.msra.mxu1 %v10749_v55  ;;  %v10827_v55 = vld [vmem:[%s12381_s25 + $0x450] ss:$12 sps:$4 sm:$0xff]  }
 0x56d   : > { %7302 = vmatpush1.bf16.msra.mxu0 %v10752_v59  ;;  %7180 = vmatprep.subr.bf16.mxu1 %v10757_v42  ;;  %v10830_v59 = vld [vmem:[%s12381_s25 + $0x8d0] ss:$12 sps:$4 sm:$0xff]   ;;  %v10835_v42 = vld [vmem:[%s12381_s25 + $0x46c] ss:$12 sps:$4 sm:$0xff]  }
 0x56e   : > { %7303 = vmatprep.subr.bf16.mxu0 %v10760_v10  ;;  %v10838_v10 = vld [vmem:[%s12381_s25 + $0x8ec] ss:$12 sps:$4 sm:$0xff]  }
 0x570   : > { %7181 = vmatpush1.bf16.msra.mxu1 %v10755_v57  ;;  %v10833_v57 = vld [vmem:[%s12381_s25 + $0x468] ss:$12 sps:$4 sm:$0xff]  }
 0x571   : > { %7304 = vmatpush1.bf16.msra.mxu0 %v10758_v54  ;;  %7182 = vmatprep.subr.bf16.mxu1 %v10763_v29  ;;  %v10836_v54 = vld [vmem:[%s12381_s25 + $0x8e8] ss:$12 sps:$4 sm:$0xff]   ;;  %v10845_v29 = vld [vmem:[%s12381_s25 + $0x904] ss:$12 sps:$4 sm:$0xff]  }
 0x572   : > { %7305 = vmatprep.subr.bf16.mxu0 %v10766_v45  ;;  %v10846_v45 = vld [vmem:[%s12381_s25 + $0xc8] ss:$12 sps:$4 sm:$0xff]  }
 0x574   : > { %7183 = vmatpush1.bf16.msra.mxu1 %v10761_v22  ;;  %v10843_v22 = vld [vmem:[%s12381_s25 + $0x900] ss:$12 sps:$4 sm:$0xff]  }
 0x575   : > { %7306 = vmatpush1.bf16.msra.mxu0 %v10764_v27  ;;  %7184 = vmatprep.subr.bf16.mxu1 %v10769_v11  ;;  %v13313_v27 = vcombine.low %v13234_v26, %v13234_v26  ;;  %v13317_v11 = vcombine.low %v13236_v1, %v13236_v1  ;;  %v10852_v1 = vld [vmem:[%s12381_s25 + $0x20] ss:$12 sps:$4 sm:$0xff]  }
 0x576   : > { %7307 = vmatprep.subr.bf16.mxu0 %v10772_v40  ;;  %v10847_v40 = vld [vmem:[%s12381_s25 + $0x8] ss:$12 sps:$4 sm:$0xff]  }
 0x578   : > { %7185 = vmatpush1.bf16.msra.mxu1 %v10767_v19  ;;  %v13320_v19 = vld [vmem:[#allocation2 + $0x30] sm:$0xff] }
 0x579   : > { %7308 = vmatpush1.bf16.msra.mxu0 %v10770_v21  ;;  %7186 = vmatprep.subr.bf16.mxu1 %v10775_v35  ;;  %v10850_v21 = vld [vmem:[%s12381_s25 + $0x91c] ss:$12 sps:$4 sm:$0xff]   ;;  %v10851_v35 = vld [vmem:[%s12381_s25 + $0xe0] ss:$12 sps:$4 sm:$0xff]   ;;  %v13327_v26 = vcombine.high %v13320_v19, %v13320_v19 }
 0x57a   : > { %7309 = vmatprep.subr.bf16.mxu0 %v10778_v61  ;;  %v10848_v61 = vld [vmem:[%s12381_s25 + $0x918] ss:$12 sps:$4 sm:$0xff]  }
 0x57c   : > { %7187 = vmatpush1.bf16.msra.mxu1 %v10773_v60  ;;  %v10855_v60 = vld [vmem:[%s12381_s25 + $0x934] ss:$12 sps:$4 sm:$0xff]  }
 0x57d   : > { %7310 = vmatpush1.bf16.msra.mxu0 %v10776_v2  ;;  %7188 = vmatprep.subr.bf16.mxu1 %v10781_v38  ;;  %v10856_v2 = vld [vmem:[%s12381_s25 + $0xf8] ss:$12 sps:$4 sm:$0xff]   ;;  %v10853_v38 = vld [vmem:[%s12381_s25 + $0x930] ss:$12 sps:$4 sm:$0xff]  }
 0x57e   : > { %7311 = vmatprep.subr.bf16.mxu0 %v10784_v53  ;;  %v10857_v53 = vld [vmem:[%s12381_s25 + $0x38] ss:$12 sps:$4 sm:$0xff]  }
 0x580   : > { %7189 = vmatpush1.bf16.msra.mxu1 %v10779_v58  ;;  %v10860_v58 = vld [vmem:[%s12381_s25 + $0x94c] ss:$12 sps:$4 sm:$0xff]  }
 0x581   : > { %7312 = vmatpush1.bf16.msra.mxu0 %v10782_v41  ;;  %7190 = vmatprep.subr.bf16.mxu1 %v10787_v16  ;;  %v10861_v41 = vld [vmem:[%s12381_s25 + $0x110] ss:$12 sps:$4 sm:$0xff]   ;;  %v10858_v16 = vld [vmem:[%s12381_s25 + $0x948] ss:$12 sps:$4 sm:$0xff]  }
 0x582   : > { %7313 = vmatprep.subr.bf16.mxu0 %v10790_v12  ;;  %v10865_v12 = vld [vmem:[%s12381_s25 + $0x964] ss:$12 sps:$4 sm:$0xff]  }
 0x584   : > { %7191 = vmatpush1.bf16.msra.mxu1 %v10785_v52  ;;  %v10866_v52 = vld [vmem:[%s12381_s25 + $0x128] ss:$12 sps:$4 sm:$0xff]  }
 0x585   : > { %7314 = vmatpush1.bf16.msra.mxu0 %v10788_v8  ;;  %7192 = vmatprep.subr.bf16.mxu1 %v10793_v18  ;;  %v10863_v8 = vld [vmem:[%s12381_s25 + $0x960] ss:$12 sps:$4 sm:$0xff]   ;;  %v10867_v18 = vld [vmem:[%s12381_s25 + $0x68] ss:$12 sps:$4 sm:$0xff]  }
 0x586   : > { %7315 = vmatprep.subr.bf16.mxu0 %v10796_v62  ;;  %v10870_v62 = vld [vmem:[%s12381_s25 + $0x97c] ss:$12 sps:$4 sm:$0xff]  }
 0x588   : > { %7193 = vmatpush1.bf16.msra.mxu1 %v10791_v7  ;;  %v10871_v7 = vld [vmem:[%s12381_s25 + $0x140] ss:$12 sps:$4 sm:$0xff]  }
 0x589   : > { %7316 = vmatpush1.bf16.msra.mxu0 %v10794_v5  ;;  %7194 = vmatprep.subr.bf16.mxu1 %v10799_v15  ;;  %v10868_v5 = vld [vmem:[%s12381_s25 + $0x978] ss:$12 sps:$4 sm:$0xff]   ;;  %v10872_v15 = vld [vmem:[%s12381_s25 + $0x80] ss:$12 sps:$4 sm:$0xff]  }
 0x58a   : > { %7317 = vmatprep.subr.bf16.mxu0 %v10802_v9  ;;  %v10875_v9 = vld [vmem:[%s12381_s25 + $0x994] ss:$12 sps:$4 sm:$0xff]  }
 0x58c   : > { %7195 = vmatpush1.bf16.msra.mxu1 %v10797_v33  ;;  %v10876_v33 = vld [vmem:[%s12381_s25 + $0x158] ss:$12 sps:$4 sm:$0xff]  }
 0x58d   : > { %7318 = vmatpush1.bf16.msra.mxu0 %v10800_v32  ;;  %7196 = vmatprep.subr.bf16.mxu1 %v10805_v56  ;;  %v10873_v32 = vld [vmem:[%s12381_s25 + $0x990] ss:$12 sps:$4 sm:$0xff]   ;;  %v10877_v56 = vld [vmem:[%s12381_s25 + $0x98] ss:$12 sps:$4 sm:$0xff]  }
 0x58e   : > { %7319 = vmatprep.subr.bf16.mxu0 %v10808_v14  ;;  %v10880_v14 = vld [vmem:[%s12381_s25 + $0x9ac] ss:$12 sps:$4 sm:$0xff]  }
 0x590   : > { %7197 = vmatpush1.bf16.msra.mxu1 %v10803_v44  ;;  %v10881_v44 = vld [vmem:[%s12381_s25 + $0x170] ss:$12 sps:$4 sm:$0xff]  }
 0x591   : > { %7320 = vmatpush1.bf16.msra.mxu0 %v10806_v17  ;;  %7198 = vmatprep.subr.bf16.mxu1 %v10811_v46  ;;  %v10878_v17 = vld [vmem:[%s12381_s25 + $0x9a8] ss:$12 sps:$4 sm:$0xff]   ;;  %v10882_v46 = vld [vmem:[%s12381_s25 + $0xb0] ss:$12 sps:$4 sm:$0xff]  }
 0x592   : > { %7321 = vmatprep.subr.bf16.mxu0 %v10814_v36  ;;  %v10885_v36 = vld [vmem:[%s12381_s25 + $0x9c4] ss:$12 sps:$4 sm:$0xff]  }
 0x594   : > { %7199 = vmatpush1.bf16.msra.mxu1 %v10809_v37  ;;  %v10886_v37 = vld [vmem:[%s12381_s25 + $0x248] ss:$12 sps:$4 sm:$0xff]  }
 0x595   : > { %7322 = vmatpush1.bf16.msra.mxu0 %v10812_v30  ;;  %7200 = vmatprep.subr.bf16.mxu1 %v10817_v13  ;;  %v10883_v30 = vld [vmem:[%s12381_s25 + $0x9c0] ss:$12 sps:$4 sm:$0xff]   ;;  %v10887_v13 = vld [vmem:[%s12381_s25 + $0x188] ss:$12 sps:$4 sm:$0xff]  }
 0x596   : > { %7323 = vmatprep.subr.bf16.mxu0 %v10820_v34  ;;  %v10890_v34 = vld [vmem:[%s12381_s25 + $0x9dc] ss:$12 sps:$4 sm:$0xff]  }
 0x598   : > { %7201 = vmatpush1.bf16.msra.mxu1 %v10815_v3  ;;  %v10891_v3 = vld [vmem:[%s12381_s25 + $0x260] ss:$12 sps:$4 sm:$0xff]  }
 0x599   : > { %7324 = vmatpush1.bf16.msra.mxu0 %v10818_v4  ;;  %7202 = vmatprep.subr.bf16.mxu1 %v10823_v28  ;;  %v10888_v4 = vld [vmem:[%s12381_s25 + $0x9d8] ss:$12 sps:$4 sm:$0xff]   ;;  %v10892_v28 = vld [vmem:[%s12381_s25 + $0x1a0] ss:$12 sps:$4 sm:$0xff]  }
 0x59a   : > { %7325 = vmatprep.subr.bf16.mxu0 %v10826_v6  ;;  %v10895_v6 = vld [vmem:[%s12381_s25 + $0x9f4] ss:$12 sps:$4 sm:$0xff]  }
 0x59c   : > { %7203 = vmatpush1.bf16.msra.mxu1 %v10821_v63  ;;  %v10896_v63 = vld [vmem:[%s12381_s25 + $0x278] ss:$12 sps:$4 sm:$0xff]  }
 0x59d   : > { %7326 = vmatpush1.bf16.msra.mxu0 %v10824_v0  ;;  %7204 = vmatprep.subr.bf16.mxu1 %v10829_v24  ;;  %v10893_v0 = vld [vmem:[%s12381_s25 + $0x9f0] ss:$12 sps:$4 sm:$0xff]   ;;  %v10897_v24 = vld [vmem:[%s12381_s25 + $0x1b8] ss:$12 sps:$4 sm:$0xff]  }
 0x59e   : > { %7327 = vmatprep.subr.bf16.mxu0 %v10832_v43  ;;  %v10901_v43 = vld [vmem:[%s12381_s25 + $0x290] ss:$12 sps:$4 sm:$0xff]  }
 0x5a0   : > { %7205 = vmatpush1.bf16.msra.mxu1 %v10827_v55  ;;  %v10898_v55 = vld [vmem:[%s12381_s25 + $0xa08] ss:$12 sps:$4 sm:$0xff]  }
 0x5a1   : > { %7328 = vmatpush1.bf16.msra.mxu0 %v10830_v59  ;;  %7206 = vmatprep.subr.bf16.mxu1 %v10835_v42  ;;  %v10902_v59 = vld [vmem:[%s12381_s25 + $0x1d0] ss:$12 sps:$4 sm:$0xff]   ;;  %v10906_v42 = vld [vmem:[%s12381_s25 + $0x2a8] ss:$12 sps:$4 sm:$0xff]  }
 0x5a2   : > { %7329 = vmatprep.subr.bf16.mxu0 %v10838_v10  ;;  %v10903_v10 = vld [vmem:[%s12381_s25 + $0xa20] ss:$12 sps:$4 sm:$0xff]  }
 0x5a4   : > { %7207 = vmatpush1.bf16.msra.mxu1 %v10833_v57  ;;  %v10907_v57 = vld [vmem:[%s12381_s25 + $0x1e8] ss:$12 sps:$4 sm:$0xff]  }
 0x5a5   : > { %7330 = vmatpush1.bf16.msra.mxu0 %v10836_v54  ;;  %9224 = vmatprep.subr.bf16.mxu1 %v10846_v45  ;;  %v10910_v54 = vld [vmem:[%s12381_s25 + $0xa3c] ss:$12 sps:$4 sm:$0xff]   ;;  %v10908_v45 = vld [vmem:[%s12381_s25 + $0xa38] ss:$12 sps:$4 sm:$0xff]  }
 0x5a6   : > { %7340 = vmatprep.subr.bf16.mxu0 %v10845_v29  ;;  %v10911_v29 = vld [vmem:[%s12381_s25 + $0x2c0] ss:$12 sps:$4 sm:$0xff]  }
 0x5a7   : > { %7209 = vmatmul.mubr.bf16.vlgmr.msra.gmra.mrb[0].mxu1 %v13313_v27 }
 0x5a8   : > { %7332 = vmatmul.mubr.bf16.vlgmr.msra.gmra.mrb[0].mxu0 %v13317_v11  ;;  %9225 = vmatpush3.bf16.msra.mxu1 %v10847_v40  ;;  %v10915_v40 = vld [vmem:[%s12381_s25 + $0xa54] ss:$12 sps:$4 sm:$0xff]  }
 0x5a9   : > { %7341 = vmatpush1.bf16.msra.mxu0 %v10843_v22  ;;  %9226 = vmatprep.subr.bf16.mxu1 %v10851_v35  ;;  %v10912_v22 = vld [vmem:[%s12381_s25 + $0x200] ss:$12 sps:$4 sm:$0xff]   ;;  %v10913_v35 = vld [vmem:[%s12381_s25 + $0xa50] ss:$12 sps:$4 sm:$0xff]  }
 0x5aa   : > { %7342 = vmatprep.subr.bf16.mxu0 %v10850_v21  ;;  %7618 = vmatprep.mubr.bf16.mxu1 %v13113_v20  ;;  %v10862_v20 = vld [vmem:[%s12381_s25 + $0x50] ss:$12 sps:$4 sm:$0xff]   ;;  %v10916_v21 = vld [vmem:[%s12381_s25 + $0x2d8] ss:$12 sps:$4 sm:$0xff]  }
 0x5ab   : > { %7372 = vmatprep.mubr.bf16.mxu0 %v13327_v26 }
 0x5ac   : > { %9227 = vmatpush3.bf16.msra.mxu1 %v10852_v1  ;;  %v10920_v1 = vld [vmem:[%s12381_s25 + $0xa6c] ss:$12 sps:$4 sm:$0xff]  }
 0x5ad   : > { %7343 = vmatpush1.bf16.msra.mxu0 %v10848_v61  ;;  %9228 = vmatprep.subr.bf16.mxu1 %v10856_v2  ;;  %v10917_v61 = vld [vmem:[%s12381_s25 + $0x218] ss:$12 sps:$4 sm:$0xff]   ;;  %v10918_v2 = vld [vmem:[%s12381_s25 + $0xa68] ss:$12 sps:$4 sm:$0xff]  }
 0x5ae   : > { %7344 = vmatprep.subr.bf16.mxu0 %v10855_v60  ;;  %v10921_v60 = vld [vmem:[%s12381_s25 + $0x2f0] ss:$12 sps:$4 sm:$0xff]  }
 0x5b0   : > { %9229 = vmatpush3.bf16.msra.mxu1 %v10857_v53  ;;  %v10927_v53 = vld [vmem:[%s12381_s25 + $0xa84] ss:$12 sps:$4 sm:$0xff]  }
 0x5b1   : > { %7345 = vmatpush1.bf16.msra.mxu0 %v10853_v38  ;;  %9230 = vmatprep.subr.bf16.mxu1 %v10861_v41  ;;  %v10922_v38 = vld [vmem:[%s12381_s25 + $0x230] ss:$12 sps:$4 sm:$0xff]   ;;  %v10925_v41 = vld [vmem:[%s12381_s25 + $0xa80] ss:$12 sps:$4 sm:$0xff]  }
 0x5b2   : > { %7346 = vmatprep.subr.bf16.mxu0 %v10860_v58  ;;  %v10928_v58 = vld [vmem:[%s12381_s25 + $0x3c8] ss:$12 sps:$4 sm:$0xff]  }
 0x5b4   : > { %9231 = vmatpush3.bf16.msra.mxu1 %v10862_v20  ;;  %v13398_v20 = vcombine.low %v13320_v19, %v13320_v19  ;;  %v10930_v19 = vld [vmem:[%s12381_s25 + $0xa98] ss:$12 sps:$4 sm:$0xff]  }
 0x5b5   : > { %7347 = vmatpush1.bf16.msra.mxu0 %v10858_v16  ;;  %9232 = vmatprep.subr.bf16.mxu1 %v10866_v52  ;;  %v10929_v16 = vld [vmem:[%s12381_s25 + $0x308] ss:$12 sps:$4 sm:$0xff]  }
 0x5b6   : > { %7348 = vmatprep.subr.bf16.mxu0 %v10865_v12  ;;  %v13400_v12 = vld [vmem:[#allocation2 + $0x38] sm:$0xff] }
 0x5b7   : > { %v10932_v52 = vld [vmem:[%s12381_s25 + $0xa9c] ss:$12 sps:$4 sm:$0xff]  }
 0x5b8   : > { %9233 = vmatpush3.bf16.msra.mxu1 %v10867_v18  ;;  %v13406_v18 = vcombine.high %v13400_v12, %v13400_v12 }
 0x5b9   : > { %7349 = vmatpush1.bf16.msra.mxu0 %v10863_v8  ;;  %9234 = vmatprep.subr.bf16.mxu1 %v10871_v7  ;;  %v10933_v8 = vld [vmem:[%s12381_s25 + $0x3e0] ss:$12 sps:$4 sm:$0xff]  }
 0x5ba   : > { %7350 = vmatprep.subr.bf16.mxu0 %v10870_v62  ;;  %v10934_v62 = vld [vmem:[%s12381_s25 + $0x320] ss:$12 sps:$4 sm:$0xff]  }
 0x5bb   : > { %v10937_v7 = vld [vmem:[%s12381_s25 + $0xab4] ss:$12 sps:$4 sm:$0xff]  }
 0x5bc   : > { %9235 = vmatpush3.bf16.msra.mxu1 %v10872_v15  ;;  %v10935_v15 = vld [vmem:[%s12381_s25 + $0xab0] ss:$12 sps:$4 sm:$0xff]  }
 0x5bd   : > { %7351 = vmatpush1.bf16.msra.mxu0 %v10868_v5  ;;  %9236 = vmatprep.subr.bf16.mxu1 %v10876_v33  ;;  %v10938_v5 = vld [vmem:[%s12381_s25 + $0x3f8] ss:$12 sps:$4 sm:$0xff]   ;;  %v10943_v33 = vld [vmem:[%s12381_s25 + $0x410] ss:$12 sps:$4 sm:$0xff]  }
 0x5be   : > { %7352 = vmatprep.subr.bf16.mxu0 %v10875_v9  ;;  %v10942_v9 = vld [vmem:[%s12381_s25 + $0xacc] ss:$12 sps:$4 sm:$0xff]  }
 0x5c0   : > { %9237 = vmatpush3.bf16.msra.mxu1 %v10877_v56  ;;  %v10947_v56 = vld [vmem:[%s12381_s25 + $0xae4] ss:$12 sps:$4 sm:$0xff]  }
 0x5c1   : > { %7353 = vmatpush1.bf16.msra.mxu0 %v10873_v32  ;;  %9238 = vmatprep.subr.bf16.mxu1 %v10881_v44  ;;  %v10940_v32 = vld [vmem:[%s12381_s25 + $0xac8] ss:$12 sps:$4 sm:$0xff]   ;;  %v10945_v44 = vld [vmem:[%s12381_s25 + $0xae0] ss:$12 sps:$4 sm:$0xff]  }
 0x5c2   : > { %7354 = vmatprep.subr.bf16.mxu0 %v10880_v14  ;;  %v10948_v14 = vld [vmem:[%s12381_s25 + $0x428] ss:$12 sps:$4 sm:$0xff]  }
 0x5c4   : > { %9239 = vmatpush3.bf16.msra.mxu1 %v10882_v46  ;;  %v10952_v46 = vld [vmem:[%s12381_s25 + $0xafc] ss:$12 sps:$4 sm:$0xff]  }
 0x5c5   : > { %7355 = vmatpush1.bf16.msra.mxu0 %v10878_v17  ;;  %9246 = vmatprep.subr.bf16.mxu1 %v10886_v37  ;;  %v10949_v17 = vld [vmem:[%s12381_s25 + $0x368] ss:$12 sps:$4 sm:$0xff]   ;;  %v10950_v37 = vld [vmem:[%s12381_s25 + $0xaf8] ss:$12 sps:$4 sm:$0xff]  }
 0x5c6   : > { %7356 = vmatprep.subr.bf16.mxu0 %v10885_v36  ;;  %v10953_v36 = vld [vmem:[%s12381_s25 + $0x440] ss:$12 sps:$4 sm:$0xff]  }
 0x5c7   : > { %7619 = vmatmul.mubr.bf16.vlgmr.msra.gmra.mrb[4].mxu1 %v13138_v51  ;;  %v10900_v51 = vld [vmem:[%s12381_s25 + $0xa0c] ss:$12 sps:$4 sm:$0xff]  }
 0x5c8   : > { %9247 = vmatpush3.bf16.msra.mxu1 %v10887_v13  ;;  %7658 = vmatprep.mubr.bf16.mxu1 %v13174_v23  ;;  %v10905_v23 = vld [vmem:[%s12381_s25 + $0xa24] ss:$12 sps:$4 sm:$0xff]   ;;  %v10957_v13 = vld [vmem:[%s12381_s25 + $0xb14] ss:$12 sps:$4 sm:$0xff]  }
 0x5c9   : > { %7357 = vmatpush1.bf16.msra.mxu0 %v10883_v30  ;;  %9248 = vmatprep.subr.bf16.mxu1 %v10891_v3  ;;  %v10954_v30 = vld [vmem:[%s12381_s25 + $0x380] ss:$12 sps:$4 sm:$0xff]   ;;  %v10955_v3 = vld [vmem:[%s12381_s25 + $0xb10] ss:$12 sps:$4 sm:$0xff]  }
 0x5ca   : > { %7358 = vmatprep.subr.bf16.mxu0 %v10890_v34  ;;  %v10958_v34 = vld [vmem:[%s12381_s25 + $0x458] ss:$12 sps:$4 sm:$0xff]  }
 0x5cc   : > { %9249 = vmatpush3.bf16.msra.mxu1 %v10892_v28  ;;  %v10962_v28 = vld [vmem:[%s12381_s25 + $0xb2c] ss:$12 sps:$4 sm:$0xff]  }
 0x5cd   : > { %7359 = vmatpush1.bf16.msra.mxu0 %v10888_v4  ;;  %9250 = vmatprep.subr.bf16.mxu1 %v10896_v63  ;;  %v10959_v4 = vld [vmem:[%s12381_s25 + $0x398] ss:$12 sps:$4 sm:$0xff]   ;;  %v10960_v63 = vld [vmem:[%s12381_s25 + $0xb28] ss:$12 sps:$4 sm:$0xff]  }
 0x5ce   : > { %7360 = vmatprep.subr.bf16.mxu0 %v10895_v6  ;;  %v10963_v6 = vld [vmem:[%s12381_s25 + $0x470] ss:$12 sps:$4 sm:$0xff]  }
 0x5d0   : > { %9251 = vmatpush3.bf16.msra.mxu1 %v10897_v24  ;;  %v10967_v24 = vld [vmem:[%s12381_s25 + $0xb44] ss:$12 sps:$4 sm:$0xff]  }
 0x5d1   : > { %7361 = vmatpush1.bf16.msra.mxu0 %v10893_v0  ;;  %9252 = vmatprep.subr.bf16.mxu1 %v10901_v43  ;;  %v10964_v0 = vld [vmem:[%s12381_s25 + $0x3b0] ss:$12 sps:$4 sm:$0xff]   ;;  %v10965_v43 = vld [vmem:[%s12381_s25 + $0xb40] ss:$12 sps:$4 sm:$0xff]  }
 0x5d2   : > { %7362 = vmatprep.subr.bf16.mxu0 %v10900_v51  ;;  %v10968_v51 = vld [vmem:[%s12381_s25 + $0x548] ss:$12 sps:$4 sm:$0xff]  }
 0x5d4   : > { %9253 = vmatpush3.bf16.msra.mxu1 %v10902_v59  ;;  %v10972_v59 = vld [vmem:[%s12381_s25 + $0xb5c] ss:$12 sps:$4 sm:$0xff]  }
 0x5d5   : > { %7363 = vmatpush1.bf16.msra.mxu0 %v10898_v55  ;;  %9254 = vmatprep.subr.bf16.mxu1 %v10906_v42  ;;  %v10969_v55 = vld [vmem:[%s12381_s25 + $0x488] ss:$12 sps:$4 sm:$0xff]   ;;  %v10970_v42 = vld [vmem:[%s12381_s25 + $0xb58] ss:$12 sps:$4 sm:$0xff]  }
 0x5d6   : > { %7364 = vmatprep.subr.bf16.mxu0 %v10905_v23  ;;  %v10973_v23 = vld [vmem:[%s12381_s25 + $0x560] ss:$12 sps:$4 sm:$0xff]  }
 0x5d8   : > { %9255 = vmatpush3.bf16.msra.mxu1 %v10907_v57  ;;  %v10977_v57 = vld [vmem:[%s12381_s25 + $0xb74] ss:$12 sps:$4 sm:$0xff]  }
 0x5d9   : > { %7365 = vmatpush1.bf16.msra.mxu0 %v10903_v10  ;;  %9256 = vmatprep.subr.bf16.mxu1 %v10911_v29  ;;  %v10974_v10 = vld [vmem:[%s12381_s25 + $0x4a0] ss:$12 sps:$4 sm:$0xff]   ;;  %v10975_v29 = vld [vmem:[%s12381_s25 + $0xb70] ss:$12 sps:$4 sm:$0xff]  }
 0x5da   : > { %7366 = vmatprep.subr.bf16.mxu0 %v10910_v54  ;;  %v10978_v54 = vld [vmem:[%s12381_s25 + $0x578] ss:$12 sps:$4 sm:$0xff]  }
 0x5dc   : > { %9257 = vmatpush3.bf16.msra.mxu1 %v10912_v22  ;;  %v10983_v22 = vld [vmem:[%s12381_s25 + $0x590] ss:$12 sps:$4 sm:$0xff]  }
 0x5dd   : > { %7367 = vmatpush1.bf16.msra.mxu0 %v10908_v45  ;;  %9258 = vmatprep.subr.bf16.mxu1 %v10916_v21  ;;  %v10979_v45 = vld [vmem:[%s12381_s25 + $0x4b8] ss:$12 sps:$4 sm:$0xff]   ;;  %v10984_v21 = vld [vmem:[%s12381_s25 + $0x4d0] ss:$12 sps:$4 sm:$0xff]  }
 0x5de   : > { %7368 = vmatprep.subr.bf16.mxu0 %v10915_v40  ;;  %v10980_v40 = vld [vmem:[%s12381_s25 + $0xb88] ss:$12 sps:$4 sm:$0xff]  }
 0x5e0   : > { %9259 = vmatpush3.bf16.msra.mxu1 %v10917_v61  ;;  %v10985_v61 = vld [vmem:[%s12381_s25 + $0xba0] ss:$12 sps:$4 sm:$0xff]  }
 0x5e1   : > { %7369 = vmatpush1.bf16.msra.mxu0 %v10913_v35  ;;  %9260 = vmatprep.subr.bf16.mxu1 %v10921_v60  ;;  %v10988_v35 = vld [vmem:[%s12381_s25 + $0x5a8] ss:$12 sps:$4 sm:$0xff]  }
 0x5e2   : > { %7370 = vmatprep.subr.bf16.mxu0 %v10920_v1  ;;  %v10989_v1 = vld [vmem:[%s12381_s25 + $0x4e8] ss:$12 sps:$4 sm:$0xff]  }
 0x5e3   : > { %v10992_v60 = vld [vmem:[%s12381_s25 + $0xbbc] ss:$12 sps:$4 sm:$0xff]  }
 0x5e4   : > { %9261 = vmatpush3.bf16.msra.mxu1 %v10922_v38  ;;  %v10990_v38 = vld [vmem:[%s12381_s25 + $0xbb8] ss:$12 sps:$4 sm:$0xff]  }
 0x5e5   : > { %7371 = vmatpush1.bf16.msra.mxu0 %v10918_v2  ;;  %9268 = vmatprep.subr.bf16.mxu1 %v10928_v58  ;;  %v10993_v2 = vld [vmem:[%s12381_s25 + $0x5c0] ss:$12 sps:$4 sm:$0xff]  }
 0x5e6   : > { %7381 = vmatprep.subr.bf16.mxu0 %v10927_v53  ;;  %v10994_v53 = vld [vmem:[%s12381_s25 + $0x500] ss:$12 sps:$4 sm:$0xff]  }
 0x5e7   : > { %7659 = vmatmul.mubr.bf16.vlgmr.msra.gmra.mrb[8].mxu1 %v13224_v31  ;;  %v10939_v31 = vld [vmem:[%s12381_s25 + $0x338] ss:$12 sps:$4 sm:$0xff]   ;;  %v10997_v58 = vld [vmem:[%s12381_s25 + $0xbd4] ss:$12 sps:$4 sm:$0xff]  }
 0x5e8   : > { %7373 = vmatmul.mubr.bf16.vlgmr.msra.gmra.mrb[0].mxu0 %v13398_v20  ;;  %9269 = vmatpush3.bf16.msra.mxu1 %v10929_v16  ;;  %v10995_v16 = vld [vmem:[%s12381_s25 + $0xbd0] ss:$12 sps:$4 sm:$0xff]  }
 0x5e9   : > { %7382 = vmatpush1.bf16.msra.mxu0 %v10925_v41  ;;  %9270 = vmatprep.subr.bf16.mxu1 %v10933_v8  ;;  %v10998_v41 = vld [vmem:[%s12381_s25 + $0x5d8] ss:$12 sps:$4 sm:$0xff]  }
 0x5ea   : > { %7383 = vmatprep.subr.bf16.mxu0 %v10932_v52  ;;  %7698 = vmatprep.mubr.bf16.mxu1 %v13241_v50  ;;  %v10944_v50 = vld [vmem:[%s12381_s25 + $0x350] ss:$12 sps:$4 sm:$0xff]   ;;  %v10999_v52 = vld [vmem:[%s12381_s25 + $0x518] ss:$12 sps:$4 sm:$0xff]  }
 0x5eb   : > { %7413 = vmatprep.mubr.bf16.mxu0 %v13406_v18  ;;  %v11002_v8 = vld [vmem:[%s12381_s25 + $0xbec] ss:$12 sps:$4 sm:$0xff]  }
 0x5ec   : > { %9271 = vmatpush3.bf16.msra.mxu1 %v10934_v62  ;;  %v11000_v62 = vld [vmem:[%s12381_s25 + $0xbe8] ss:$12 sps:$4 sm:$0xff]  }
 0x5ed   : > { %7384 = vmatpush1.bf16.msra.mxu0 %v10930_v19  ;;  %9272 = vmatprep.subr.bf16.mxu1 %v10938_v5  ;;  %v11003_v19 = vld [vmem:[%s12381_s25 + $0x5f0] ss:$12 sps:$4 sm:$0xff]  }
 0x5ee   : > { %7385 = vmatprep.subr.bf16.mxu0 %v10937_v7  ;;  %v11004_v7 = vld [vmem:[%s12381_s25 + $0x530] ss:$12 sps:$4 sm:$0xff]  }
 0x5ef   : > { %v11009_v5 = vld [vmem:[%s12381_s25 + $0xc04] ss:$12 sps:$4 sm:$0xff]  }
 0x5f0   : > { %9273 = vmatpush3.bf16.msra.mxu1 %v10939_v31  ;;  %v11007_v31 = vld [vmem:[%s12381_s25 + $0xc00] ss:$12 sps:$4 sm:$0xff]  }
 0x5f1   : > { %7386 = vmatpush1.bf16.msra.mxu0 %v10935_v15  ;;  %9274 = vmatprep.subr.bf16.mxu1 %v10943_v33  ;;  %v11010_v15 = vld [vmem:[%s12381_s25 + $0x6c8] ss:$12 sps:$4 sm:$0xff]   ;;  %v13478_v33 = vcombine.low %v13400_v12, %v13400_v12  ;;  %v11012_v12 = vld [vmem:[%s12381_s25 + $0xc18] ss:$12 sps:$4 sm:$0xff]  }
 0x5f2   : > { %7387 = vmatprep.subr.bf16.mxu0 %v10942_v9  ;;  %v11011_v9 = vld [vmem:[%s12381_s25 + $0x608] ss:$12 sps:$4 sm:$0xff]  }
 0x5f4   : > { %9275 = vmatpush3.bf16.msra.mxu1 %v10944_v50  ;;  %v11014_v50 = vld [vmem:[%s12381_s25 + $0xc1c] ss:$12 sps:$4 sm:$0xff]  }
 0x5f5   : > { %7388 = vmatpush1.bf16.msra.mxu0 %v10940_v32  ;;  %9276 = vmatprep.subr.bf16.mxu1 %v10948_v14  ;;  %v13480_v32 = vld [vmem:[#allocation2 + $0x40] sm:$0xff] }
 0x5f6   : > { %7389 = vmatprep.subr.bf16.mxu0 %v10947_v56  ;;  %v11015_v56 = vld [vmem:[%s12381_s25 + $0x6e0] ss:$12 sps:$4 sm:$0xff]   ;;  %v13486_v14 = vcombine.high %v13480_v32, %v13480_v32 }
 0x5f8   : > { %9277 = vmatpush3.bf16.msra.mxu1 %v10949_v17  ;;  %v11019_v17 = vld [vmem:[%s12381_s25 + $0xc34] ss:$12 sps:$4 sm:$0xff]  }
 0x5f9   : > { %7390 = vmatpush1.bf16.msra.mxu0 %v10945_v44  ;;  %9278 = vmatprep.subr.bf16.mxu1 %v10953_v36  ;;  %v11016_v44 = vld [vmem:[%s12381_s25 + $0x620] ss:$12 sps:$4 sm:$0xff]   ;;  %v11017_v36 = vld [vmem:[%s12381_s25 + $0xc30] ss:$12 sps:$4 sm:$0xff]  }
 0x5fa   : > { %7391 = vmatprep.subr.bf16.mxu0 %v10952_v46  ;;  %v11020_v46 = vld [vmem:[%s12381_s25 + $0x6f8] ss:$12 sps:$4 sm:$0xff]  }
 0x5fc   : > { %9279 = vmatpush3.bf16.msra.mxu1 %v10954_v30  ;;  %v11025_v30 = vld [vmem:[%s12381_s25 + $0x710] ss:$12 sps:$4 sm:$0xff]  }
 0x5fd   : > { %7392 = vmatpush1.bf16.msra.mxu0 %v10950_v37  ;;  %9280 = vmatprep.subr.bf16.mxu1 %v10958_v34  ;;  %v11024_v37 = vld [vmem:[%s12381_s25 + $0xc4c] ss:$12 sps:$4 sm:$0xff]   ;;  %v11029_v34 = vld [vmem:[%s12381_s25 + $0xc64] ss:$12 sps:$4 sm:$0xff]  }
 0x5fe   : > { %7393 = vmatprep.subr.bf16.mxu0 %v10957_v13  ;;  %v11022_v13 = vld [vmem:[%s12381_s25 + $0xc48] ss:$12 sps:$4 sm:$0xff]  }
 0x600   : > { %9281 = vmatpush3.bf16.msra.mxu1 %v10959_v4  ;;  %v11027_v4 = vld [vmem:[%s12381_s25 + $0xc60] ss:$12 sps:$4 sm:$0xff]  }
 0x601   : > { %7394 = vmatpush1.bf16.msra.mxu0 %v10955_v3  ;;  %9282 = vmatprep.subr.bf16.mxu1 %v10963_v6  ;;  %v11030_v3 = vld [vmem:[%s12381_s25 + $0x728] ss:$12 sps:$4 sm:$0xff]  }
 0x602   : > { %7395 = vmatprep.subr.bf16.mxu0 %v10962_v28  ;;  %v11031_v28 = vld [vmem:[%s12381_s25 + $0x668] ss:$12 sps:$4 sm:$0xff]  }
 0x603   : > { %v11034_v6 = vld [vmem:[%s12381_s25 + $0xc7c] ss:$12 sps:$4 sm:$0xff]  }
 0x604   : > { %9283 = vmatpush3.bf16.msra.mxu1 %v10964_v0  ;;  %v11032_v0 = vld [vmem:[%s12381_s25 + $0xc78] ss:$12 sps:$4 sm:$0xff]  }
 0x605   : > { %7396 = vmatpush1.bf16.msra.mxu0 %v10960_v63  ;;  %9290 = vmatprep.subr.bf16.mxu1 %v10968_v51  ;;  %v11035_v63 = vld [vmem:[%s12381_s25 + $0x740] ss:$12 sps:$4 sm:$0xff]  }
 0x606   : > { %7397 = vmatprep.subr.bf16.mxu0 %v10967_v24  ;;  %v11036_v24 = vld [vmem:[%s12381_s25 + $0x680] ss:$12 sps:$4 sm:$0xff]  }
 0x607   : > { %7699 = vmatmul.mubr.bf16.vlgmr.msra.gmra.mrb[12].mxu1 %v13313_v27  ;;  %v10982_v27 = vld [vmem:[%s12381_s25 + $0xb8c] ss:$12 sps:$4 sm:$0xff]   ;;  %v11039_v51 = vld [vmem:[%s12381_s25 + $0xc94] ss:$12 sps:$4 sm:$0xff]  }
 0x608   : > { %9291 = vmatpush3.bf16.msra.mxu1 %v10969_v55  ;;  %7738 = vmatprep.mubr.bf16.mxu1 %v13118_v25  ;;  %v10987_v25 = vld [vmem:[%s12381_s25 + $0xba4] ss:$12 sps:$4 sm:$0xff]  }
 0x609   : > { %7398 = vmatpush1.bf16.msra.mxu0 %v10965_v43  ;;  %9292 = vmatprep.subr.bf16.mxu1 %v10973_v23  ;;  %v11040_v43 = vld [vmem:[%s12381_s25 + $0x758] ss:$12 sps:$4 sm:$0xff]   ;;  %v11037_v55 = vld [vmem:[%s12381_s25 + $0xc90] ss:$12 sps:$4 sm:$0xff]  }
 0x60a   : > { %7399 = vmatprep.subr.bf16.mxu0 %v10972_v59  ;;  %v11041_v59 = vld [vmem:[%s12381_s25 + $0x698] ss:$12 sps:$4 sm:$0xff]  }
 0x60b   : > { %v11044_v23 = vld [vmem:[%s12381_s25 + $0xcac] ss:$12 sps:$4 sm:$0xff]  }
 0x60c   : > { %9293 = vmatpush3.bf16.msra.mxu1 %v10974_v10  ;;  %v11042_v10 = vld [vmem:[%s12381_s25 + $0xca8] ss:$12 sps:$4 sm:$0xff]  }
 0x60d   : > { %7400 = vmatpush1.bf16.msra.mxu0 %v10970_v42  ;;  %9294 = vmatprep.subr.bf16.mxu1 %v10978_v54  ;;  %v11045_v42 = vld [vmem:[%s12381_s25 + $0x770] ss:$12 sps:$4 sm:$0xff]  }
 0x60e   : > { %7401 = vmatprep.subr.bf16.mxu0 %v10977_v57  ;;  %v11046_v57 = vld [vmem:[%s12381_s25 + $0x6b0] ss:$12 sps:$4 sm:$0xff]  }
 0x60f   : > { %v11049_v54 = vld [vmem:[%s12381_s25 + $0xcc4] ss:$12 sps:$4 sm:$0xff]  }
 0x610   : > { %9295 = vmatpush3.bf16.msra.mxu1 %v10979_v45  ;;  %v11047_v45 = vld [vmem:[%s12381_s25 + $0xcc0] ss:$12 sps:$4 sm:$0xff]  }
 0x611   : > { %7402 = vmatpush1.bf16.msra.mxu0 %v10975_v29  ;;  %9296 = vmatprep.subr.bf16.mxu1 %v10983_v22  ;;  %v11050_v29 = vld [vmem:[%s12381_s25 + $0x848] ss:$12 sps:$4 sm:$0xff]  }
 0x612   : > { %7403 = vmatprep.subr.bf16.mxu0 %v10982_v27  ;;  %v11051_v27 = vld [vmem:[%s12381_s25 + $0x788] ss:$12 sps:$4 sm:$0xff]  }
 0x613   : > { %v11054_v22 = vld [vmem:[%s12381_s25 + $0xcdc] ss:$12 sps:$4 sm:$0xff]  }
 0x614   : > { %9297 = vmatpush3.bf16.msra.mxu1 %v10984_v21  ;;  %v11052_v21 = vld [vmem:[%s12381_s25 + $0xcd8] ss:$12 sps:$4 sm:$0xff]  }
 0x615   : > { %7404 = vmatpush1.bf16.msra.mxu0 %v10980_v40  ;;  %9298 = vmatprep.subr.bf16.mxu1 %v10988_v35  ;;  %v11055_v40 = vld [vmem:[%s12381_s25 + $0x860] ss:$12 sps:$4 sm:$0xff]  }
 0x616   : > { %7405 = vmatprep.subr.bf16.mxu0 %v10987_v25  ;;  %v11056_v25 = vld [vmem:[%s12381_s25 + $0x7a0] ss:$12 sps:$4 sm:$0xff]  }
 0x617   : > { %v11059_v35 = vld [vmem:[%s12381_s25 + $0xcf4] ss:$12 sps:$4 sm:$0xff]  }
 0x618   : > { %9299 = vmatpush3.bf16.msra.mxu1 %v10989_v1  ;;  %v11057_v1 = vld [vmem:[%s12381_s25 + $0xcf0] ss:$12 sps:$4 sm:$0xff]  }
 0x619   : > { %7406 = vmatpush1.bf16.msra.mxu0 %v10985_v61  ;;  %9300 = vmatprep.subr.bf16.mxu1 %v10993_v2  ;;  %v11060_v61 = vld [vmem:[%s12381_s25 + $0x878] ss:$12 sps:$4 sm:$0xff]   ;;  %v11065_v2 = vld [vmem:[%s12381_s25 + $0x890] ss:$12 sps:$4 sm:$0xff]  }
 0x61a   : > { %7407 = vmatprep.subr.bf16.mxu0 %v10992_v60  ;;  %v11061_v60 = vld [vmem:[%s12381_s25 + $0x7b8] ss:$12 sps:$4 sm:$0xff]  }
 0x61c   : > { %9301 = vmatpush3.bf16.msra.mxu1 %v10994_v53  ;;  %v11066_v53 = vld [vmem:[%s12381_s25 + $0x7d0] ss:$12 sps:$4 sm:$0xff]  }
 0x61d   : > { %7408 = vmatpush1.bf16.msra.mxu0 %v10990_v38  ;;  %9302 = vmatprep.subr.bf16.mxu1 %v10998_v41  ;;  %v11062_v38 = vld [vmem:[%s12381_s25 + $0xd08] ss:$12 sps:$4 sm:$0xff]   ;;  %v11067_v41 = vld [vmem:[%s12381_s25 + $0xd20] ss:$12 sps:$4 sm:$0xff]  }
 0x61e   : > { %7409 = vmatprep.subr.bf16.mxu0 %v10997_v58  ;;  %v11070_v58 = vld [vmem:[%s12381_s25 + $0x8a8] ss:$12 sps:$4 sm:$0xff]  }
 0x620   : > { %9303 = vmatpush3.bf16.msra.mxu1 %v10999_v52  ;;  %v11074_v52 = vld [vmem:[%s12381_s25 + $0xd3c] ss:$12 sps:$4 sm:$0xff]  }
 0x621   : > { %7410 = vmatpush1.bf16.msra.mxu0 %v10995_v16  ;;  %9304 = vmatprep.subr.bf16.mxu1 %v11003_v19  ;;  %v11071_v16 = vld [vmem:[%s12381_s25 + $0x7e8] ss:$12 sps:$4 sm:$0xff]   ;;  %v11072_v19 = vld [vmem:[%s12381_s25 + $0xd38] ss:$12 sps:$4 sm:$0xff]  }
 0x622   : > { %7411 = vmatprep.subr.bf16.mxu0 %v11002_v8  ;;  %v11075_v8 = vld [vmem:[%s12381_s25 + $0x8c0] ss:$12 sps:$4 sm:$0xff]  }
 0x624   : > { %9305 = vmatpush3.bf16.msra.mxu1 %v11004_v7  ;;  %v11079_v7 = vld [vmem:[%s12381_s25 + $0xd54] ss:$12 sps:$4 sm:$0xff]  }
 0x625   : > { %7412 = vmatpush1.bf16.msra.mxu0 %v11000_v62  ;;  %9312 = vmatprep.subr.bf16.mxu1 %v11010_v15  ;;  %v11076_v62 = vld [vmem:[%s12381_s25 + $0x800] ss:$12 sps:$4 sm:$0xff]   ;;  %v11077_v15 = vld [vmem:[%s12381_s25 + $0xd50] ss:$12 sps:$4 sm:$0xff]  }
 0x626   : > { %7422 = vmatprep.subr.bf16.mxu0 %v11009_v5  ;;  %v11080_v5 = vld [vmem:[%s12381_s25 + $0x8d8] ss:$12 sps:$4 sm:$0xff]  }
 0x627   : > { %7739 = vmatmul.mubr.bf16.vlgmr.msra.gmra.mrb[16].mxu1 %v13140_v39  ;;  %v11021_v39 = vld [vmem:[%s12381_s25 + $0x638] ss:$12 sps:$4 sm:$0xff]  }
 0x628   : > { %7414 = vmatmul.mubr.bf16.vlgmr.msra.gmra.mrb[0].mxu0 %v13478_v33  ;;  %9313 = vmatpush3.bf16.msra.mxu1 %v11011_v9  ;;  %v11084_v9 = vld [vmem:[%s12381_s25 + $0xd6c] ss:$12 sps:$4 sm:$0xff]  }
 0x629   : > { %7423 = vmatpush1.bf16.msra.mxu0 %v11007_v31  ;;  %9314 = vmatprep.subr.bf16.mxu1 %v11015_v56  ;;  %v11081_v31 = vld [vmem:[%s12381_s25 + $0x818] ss:$12 sps:$4 sm:$0xff]   ;;  %v11082_v56 = vld [vmem:[%s12381_s25 + $0xd68] ss:$12 sps:$4 sm:$0xff]  }
 0x62a   : > { %7424 = vmatprep.subr.bf16.mxu0 %v11014_v50  ;;  %7778 = vmatprep.mubr.bf16.mxu1 %v13181_v49  ;;  %v11026_v49 = vld [vmem:[%s12381_s25 + $0x650] ss:$12 sps:$4 sm:$0xff]  }
 0x62b   : > { %7454 = vmatprep.mubr.bf16.mxu0 %v13486_v14  ;;  %v11085_v50 = vld [vmem:[%s12381_s25 + $0x8f0] ss:$12 sps:$4 sm:$0xff]  }
 0x62c   : > { %9315 = vmatpush3.bf16.msra.mxu1 %v11016_v44  ;;  %v11091_v44 = vld [vmem:[%s12381_s25 + $0xd84] ss:$12 sps:$4 sm:$0xff]  }
 0x62d   : > { %7425 = vmatpush1.bf16.msra.mxu0 %v11012_v12  ;;  %9316 = vmatprep.subr.bf16.mxu1 %v11020_v46  ;;  %v11086_v12 = vld [vmem:[%s12381_s25 + $0x830] ss:$12 sps:$4 sm:$0xff]   ;;  %v11089_v46 = vld [vmem:[%s12381_s25 + $0xd80] ss:$12 sps:$4 sm:$0xff]  }
 0x62e   : > { %7426 = vmatprep.subr.bf16.mxu0 %v11019_v17  ;;  %v11092_v17 = vld [vmem:[%s12381_s25 + $0x9c8] ss:$12 sps:$4 sm:$0xff]  }
 0x630   : > { %9317 = vmatpush3.bf16.msra.mxu1 %v11021_v39  ;;  %v13558_v39 = vcombine.low %v13480_v32, %v13480_v32  ;;  %v11094_v32 = vld [vmem:[%s12381_s25 + $0xd98] ss:$12 sps:$4 sm:$0xff]  }
 0x631   : > { %7427 = vmatpush1.bf16.msra.mxu0 %v11017_v36  ;;  %9318 = vmatprep.subr.bf16.mxu1 %v11025_v30  ;;  %v11093_v36 = vld [vmem:[%s12381_s25 + $0x908] ss:$12 sps:$4 sm:$0xff]  }
 0x632   : > { %7428 = vmatprep.subr.bf16.mxu0 %v11024_v37  ;;  %v13560_v37 = vld [vmem:[#allocation2 + $0x48] sm:$0xff]  ;;  %v11096_v30 = vld [vmem:[%s12381_s25 + $0xd9c] ss:$12 sps:$4 sm:$0xff]  }
 0x634   : > { %9319 = vmatpush3.bf16.msra.mxu1 %v11026_v49  ;;  %v13566_v49 = vcombine.high %v13560_v37, %v13560_v37 }
 0x635   : > { %7429 = vmatpush1.bf16.msra.mxu0 %v11022_v13  ;;  %9320 = vmatprep.subr.bf16.mxu1 %v11030_v3  ;;  %v11097_v13 = vld [vmem:[%s12381_s25 + $0x9e0] ss:$12 sps:$4 sm:$0xff]  }
 0x636   : > { %7430 = vmatprep.subr.bf16.mxu0 %v11029_v34  ;;  %v11098_v34 = vld [vmem:[%s12381_s25 + $0x920] ss:$12 sps:$4 sm:$0xff]  }
 0x637   : > { %v11101_v3 = vld [vmem:[%s12381_s25 + $0xdb4] ss:$12 sps:$4 sm:$0xff]  }
 0x638   : > { %9321 = vmatpush3.bf16.msra.mxu1 %v11031_v28  ;;  %v11103_v28 = vld [vmem:[%s12381_s25 + $0x938] ss:$12 sps:$4 sm:$0xff]  }
 0x639   : > { %7431 = vmatpush1.bf16.msra.mxu0 %v11027_v4  ;;  %9322 = vmatprep.subr.bf16.mxu1 %v11035_v63  ;;  %v11102_v4 = vld [vmem:[%s12381_s25 + $0x9f8] ss:$12 sps:$4 sm:$0xff]   ;;  %v11107_v63 = vld [vmem:[%s12381_s25 + $0xa10] ss:$12 sps:$4 sm:$0xff]  }
 0x63a   : > { %7432 = vmatprep.subr.bf16.mxu0 %v11034_v6  ;;  %v11106_v6 = vld [vmem:[%s12381_s25 + $0xdcc] ss:$12 sps:$4 sm:$0xff]  }
 0x63c   : > { %9323 = vmatpush3.bf16.msra.mxu1 %v11036_v24  ;;  %v11108_v24 = vld [vmem:[%s12381_s25 + $0x950] ss:$12 sps:$4 sm:$0xff]  }
 0x63d   : > { %7433 = vmatpush1.bf16.msra.mxu0 %v11032_v0  ;;  %9324 = vmatprep.subr.bf16.mxu1 %v11040_v43  ;;  %v11104_v0 = vld [vmem:[%s12381_s25 + $0xdc8] ss:$12 sps:$4 sm:$0xff]   ;;  %v11109_v43 = vld [vmem:[%s12381_s25 + $0xde0] ss:$12 sps:$4 sm:$0xff]  }
 0x63e   : > { %7434 = vmatprep.subr.bf16.mxu0 %v11039_v51  ;;  %v11112_v51 = vld [vmem:[%s12381_s25 + $0xa28] ss:$12 sps:$4 sm:$0xff]  }
 0x640   : > { %9325 = vmatpush3.bf16.msra.mxu1 %v11041_v59  ;;  %v11116_v59 = vld [vmem:[%s12381_s25 + $0xdfc] ss:$12 sps:$4 sm:$0xff]  }
 0x641   : > { %7435 = vmatpush1.bf16.msra.mxu0 %v11037_v55  ;;  %9326 = vmatprep.subr.bf16.mxu1 %v11045_v42  ;;  %v11113_v55 = vld [vmem:[%s12381_s25 + $0x968] ss:$12 sps:$4 sm:$0xff]   ;;  %v11114_v42 = vld [vmem:[%s12381_s25 + $0xdf8] ss:$12 sps:$4 sm:$0xff]  }
 0x642   : > { %7436 = vmatprep.subr.bf16.mxu0 %v11044_v23  ;;  %v11117_v23 = vld [vmem:[%s12381_s25 + $0xa40] ss:$12 sps:$4 sm:$0xff]  }
 0x644   : > { %9327 = vmatpush3.bf16.msra.mxu1 %v11046_v57  ;;  %v11121_v57 = vld [vmem:[%s12381_s25 + $0xe14] ss:$12 sps:$4 sm:$0xff]  }
 0x645   : > { %7437 = vmatpush1.bf16.msra.mxu0 %v11042_v10  ;;  %9334 = vmatprep.subr.bf16.mxu1 %v11050_v29  ;;  %v11118_v10 = vld [vmem:[%s12381_s25 + $0x980] ss:$12 sps:$4 sm:$0xff]  }
 0x646   : > { %7438 = vmatprep.subr.bf16.mxu0 %v11049_v54  ;;  %v11122_v54 = vld [vmem:[%s12381_s25 + $0xa58] ss:$12 sps:$4 sm:$0xff]  }
 0x647   : > { %7779 = vmatmul.mubr.bf16.vlgmr.msra.gmra.mrb[20].mxu1 %v13229_v48  ;;  %v11064_v48 = vld [vmem:[%s12381_s25 + $0xd0c] ss:$12 sps:$4 sm:$0xff]  }
 0x648   : > { %9335 = vmatpush3.bf16.msra.mxu1 %v11051_v27  ;;  %7818 = vmatprep.mubr.bf16.mxu1 %v13245_v47  ;;  %v11069_v47 = vld [vmem:[%s12381_s25 + $0xd24] ss:$12 sps:$4 sm:$0xff]  }
 0x649   : > { %7439 = vmatpush1.bf16.msra.mxu0 %v11047_v45  ;;  %9336 = vmatprep.subr.bf16.mxu1 %v11055_v40  ;;  %v11119_v45 = vld [vmem:[%s12381_s25 + $0xe10] ss:$12 sps:$4 sm:$0xff]   ;;  %v11123_v27 = vld [vmem:[%s12381_s25 + $0x998] ss:$12 sps:$4 sm:$0xff]  }
 0x64a   : > { %7440 = vmatprep.subr.bf16.mxu0 %v11054_v22 }
 0x64c   : > { %9337 = vmatpush3.bf16.msra.mxu1 %v11056_v25 }
 0x64d   : > { %7441 = vmatpush1.bf16.msra.mxu0 %v11052_v21  ;;  %9338 = vmatprep.subr.bf16.mxu1 %v11060_v61  ;;  %v11126_v21 = vld [vmem:[%s12381_s25 + $0xe2c] ss:$12 sps:$4 sm:$0xff]   ;;  %v11124_v61 = vld [vmem:[%s12381_s25 + $0xe28] ss:$12 sps:$4 sm:$0xff]  }
 0x64e   : > { %7442 = vmatprep.subr.bf16.mxu0 %v11059_v35  ;;  %v11127_v35 = vld [vmem:[%s12381_s25 + $0xa70] ss:$12 sps:$4 sm:$0xff]  }
 0x650   : > { %9339 = vmatpush3.bf16.msra.mxu1 %v11061_v60  ;;  %v11131_v60 = vld [vmem:[%s12381_s25 + $0xe44] ss:$12 sps:$4 sm:$0xff]  }
 0x651   : > { %7443 = vmatpush1.bf16.msra.mxu0 %v11057_v1  ;;  %9340 = vmatprep.subr.bf16.mxu1 %v11065_v2  ;;  %v11128_v1 = vld [vmem:[%s12381_s25 + $0x9b0] ss:$12 sps:$4 sm:$0xff]   ;;  %v11129_v2 = vld [vmem:[%s12381_s25 + $0xe40] ss:$12 sps:$4 sm:$0xff]  }
 0x652   : > { %7444 = vmatprep.subr.bf16.mxu0 %v11064_v48  ;;  %v11132_v48 = vld [vmem:[%s12381_s25 + $0xb48] ss:$12 sps:$4 sm:$0xff]  }
 0x654   : > { %9341 = vmatpush3.bf16.msra.mxu1 %v11066_v53  ;;  %v11136_v53 = vld [vmem:[%s12381_s25 + $0xe5c] ss:$12 sps:$4 sm:$0xff]  }
 0x655   : > { %7445 = vmatpush1.bf16.msra.mxu0 %v11062_v38  ;;  %9342 = vmatprep.subr.bf16.mxu1 %v11070_v58  ;;  %v11133_v38 = vld [vmem:[%s12381_s25 + $0xa88] ss:$12 sps:$4 sm:$0xff]   ;;  %v11134_v58 = vld [vmem:[%s12381_s25 + $0xe58] ss:$12 sps:$4 sm:$0xff]  }
 0x656   : > { %7446 = vmatprep.subr.bf16.mxu0 %v11069_v47  ;;  %v11137_v47 = vld [vmem:[%s12381_s25 + $0xb60] ss:$12 sps:$4 sm:$0xff]  }
 0x658   : > { %9343 = vmatpush3.bf16.msra.mxu1 %v11071_v16  ;;  %v11141_v16 = vld [vmem:[%s12381_s25 + $0xe74] ss:$12 sps:$4 sm:$0xff]  }
 0x659   : > { %7447 = vmatpush1.bf16.msra.mxu0 %v11067_v41  ;;  %9344 = vmatprep.subr.bf16.mxu1 %v11075_v8  ;;  %v11138_v41 = vld [vmem:[%s12381_s25 + $0xaa0] ss:$12 sps:$4 sm:$0xff]   ;;  %v11139_v8 = vld [vmem:[%s12381_s25 + $0xe70] ss:$12 sps:$4 sm:$0xff]  }
 0x65a   : > { %7448 = vmatprep.subr.bf16.mxu0 %v11074_v52  ;;  %v11142_v52 = vld [vmem:[%s12381_s25 + $0xb78] ss:$12 sps:$4 sm:$0xff]  }
 0x65c   : > { %9345 = vmatpush3.bf16.msra.mxu1 %v11076_v62  ;;  %v11147_v62 = vld [vmem:[%s12381_s25 + $0xb90] ss:$12 sps:$4 sm:$0xff]  }
 0x65d   : > { %7449 = vmatpush1.bf16.msra.mxu0 %v11072_v19  ;;  %9346 = vmatprep.subr.bf16.mxu1 %v11080_v5  ;;  %v11143_v19 = vld [vmem:[%s12381_s25 + $0xab8] ss:$12 sps:$4 sm:$0xff]   ;;  %v11148_v5 = vld [vmem:[%s12381_s25 + $0xad0] ss:$12 sps:$4 sm:$0xff]  }
 0x65e   : > { %7450 = vmatprep.subr.bf16.mxu0 %v11079_v7  ;;  %v11144_v7 = vld [vmem:[%s12381_s25 + $0xe88] ss:$12 sps:$4 sm:$0xff]  }
 0x660   : > { %9347 = vmatpush3.bf16.msra.mxu1 %v11081_v31  ;;  %v11149_v31 = vld [vmem:[%s12381_s25 + $0xea0] ss:$12 sps:$4 sm:$0xff]  }
 0x661   : > { %7451 = vmatpush1.bf16.msra.mxu0 %v11077_v15  ;;  %9348 = vmatprep.subr.bf16.mxu1 %v11085_v50  ;;  %v11152_v15 = vld [vmem:[%s12381_s25 + $0xba8] ss:$12 sps:$4 sm:$0xff]  }
 0x662   : > { %7452 = vmatprep.subr.bf16.mxu0 %v11084_v9  ;;  %v11153_v9 = vld [vmem:[%s12381_s25 + $0xae8] ss:$12 sps:$4 sm:$0xff]  }
 0x663   : > { %v11156_v50 = vld [vmem:[%s12381_s25 + $0xebc] ss:$12 sps:$4 sm:$0xff]  }
 0x664   : > { %9349 = vmatpush3.bf16.msra.mxu1 %v11086_v12  ;;  %v11154_v12 = vld [vmem:[%s12381_s25 + $0xeb8] ss:$12 sps:$4 sm:$0xff]  }
 0x665   : > { %7453 = vmatpush1.bf16.msra.mxu0 %v11082_v56  ;;  %9356 = vmatprep.subr.bf16.mxu1 %v11092_v17  ;;  %v11157_v56 = vld [vmem:[%s12381_s25 + $0xbc0] ss:$12 sps:$4 sm:$0xff]  }
 0x666   : > { %7463 = vmatprep.subr.bf16.mxu0 %v11091_v44  ;;  %v11158_v44 = vld [vmem:[%s12381_s25 + $0xb00] ss:$12 sps:$4 sm:$0xff]  }
 0x667   : > { %7819 = vmatmul.mubr.bf16.vlgmr.msra.gmra.mrb[24].mxu1 %v13317_v11  ;;  %v11099_v11 = vld [vmem:[%s12381_s25 + $0xdb0] ss:$12 sps:$4 sm:$0xff]   ;;  %v11161_v17 = vld [vmem:[%s12381_s25 + $0xed4] ss:$12 sps:$4 sm:$0xff]  }
 0x668   : > { %7455 = vmatmul.mubr.bf16.vlgmr.msra.gmra.mrb[0].mxu0 %v13558_v39  ;;  %9357 = vmatpush3.bf16.msra.mxu1 %v11093_v36 }
 0x669   : > { %7464 = vmatpush1.bf16.msra.mxu0 %v11089_v46  ;;  %9358 = vmatprep.subr.bf16.mxu1 %v11097_v13  ;;  %v11162_v46 = vld [vmem:[%s12381_s25 + $0xbd8] ss:$12 sps:$4 sm:$0xff]  }
 0x66a   : > { %7465 = vmatprep.subr.bf16.mxu0 %v11096_v30  ;;  %7858 = vmatprep.mubr.bf16.mxu1 %v13327_v26  ;;  %v11111_v26 = vld [vmem:[%s12381_s25 + $0xde4] ss:$12 sps:$4 sm:$0xff]  }
 0x66b   : > { %7495 = vmatprep.mubr.bf16.mxu0 %v13566_v49  ;;  %v11159_v30 = vld [vmem:[%s12381_s25 + $0xed0] ss:$12 sps:$4 sm:$0xff]  }
 0x66c   : > { %9359 = vmatpush3.bf16.msra.mxu1 %v11098_v34  ;;  %v11166_v34 = vld [vmem:[%s12381_s25 + $0xeec] ss:$12 sps:$4 sm:$0xff]  }
 0x66d   : > { %7466 = vmatpush1.bf16.msra.mxu0 %v11094_v32  ;;  %9360 = vmatprep.subr.bf16.mxu1 %v11102_v4  ;;  %v11163_v32 = vld [vmem:[%s12381_s25 + $0xb18] ss:$12 sps:$4 sm:$0xff]  }
 0x66e   : > { %7467 = vmatprep.subr.bf16.mxu0 %v11101_v3 }
 0x670   : > { %9361 = vmatpush3.bf16.msra.mxu1 %v11103_v28  ;;  %v11167_v28 = vld [vmem:[%s12381_s25 + $0xbf0] ss:$12 sps:$4 sm:$0xff]  }
 0x671   : > { %7468 = vmatpush1.bf16.msra.mxu0 %v11099_v11  ;;  %9362 = vmatprep.subr.bf16.mxu1 %v11107_v63  ;;  %v11168_v63 = vld [vmem:[%s12381_s25 + $0xb30] ss:$12 sps:$4 sm:$0xff]  }
 0x672   : > { %7469 = vmatprep.subr.bf16.mxu0 %v11106_v6  ;;  %v11164_v6 = vld [vmem:[%s12381_s25 + $0xee8] ss:$12 sps:$4 sm:$0xff]  }
 0x674   : > { %9363 = vmatpush3.bf16.msra.mxu1 %v11108_v24  ;;  %v11174_v24 = vld [vmem:[%s12381_s25 + $0xcc8] ss:$12 sps:$4 sm:$0xff]  }
 0x675   : > { %7470 = vmatpush1.bf16.msra.mxu0 %v11104_v0  ;;  %9364 = vmatprep.subr.bf16.mxu1 %v11112_v51  ;;  %v11173_v0 = vld [vmem:[%s12381_s25 + $0xf04] ss:$12 sps:$4 sm:$0xff]   ;;  %v13643_v51 = vcombine.low %v13560_v37, %v13560_v37 }
 0x676   : > { %7471 = vmatprep.subr.bf16.mxu0 %v11111_v26  ;;  %v11171_v26 = vld [vmem:[%s12381_s25 + $0xf00] ss:$12 sps:$4 sm:$0xff]   ;;  %v11176_v37 = vld [vmem:[%s12381_s25 + $0xf18] ss:$12 sps:$4 sm:$0xff]  }
 0x678   : > { %9365 = vmatpush3.bf16.msra.mxu1 %v11113_v55  ;;  %v11175_v55 = vld [vmem:[%s12381_s25 + $0xc08] ss:$12 sps:$4 sm:$0xff]  }
 0x679   : > { %7472 = vmatpush1.bf16.msra.mxu0 %v11109_v43  ;;  %9366 = vmatprep.subr.bf16.mxu1 %v11117_v23  ;;  %v13645_v43 = vld [vmem:[#allocation2 + $0x50] sm:$0xff] }
 0x67a   : > { %7473 = vmatprep.subr.bf16.mxu0 %v11116_v59  ;;  %v13592_v29 = vpop.f32.mrb[0].mxu1  ;;  %v11178_v59 = vld [vmem:[%s12381_s25 + $0xf1c] ss:$12 sps:$4 sm:$0xff]   ;;  %v11179_v23 = vld [vmem:[%s12381_s25 + $0xce0] ss:$12 sps:$4 sm:$0xff]  }
 0x67b   : > { %v13596_v22 = vpop.f32.mrb[1].mxu1 }
 0x67c   : > { %v7214_v40 = vpop.f32.mrb[2].mxu1  ;;  %9367 = vmatpush3.bf16.msra.mxu1 %v11118_v10  ;;  %v11180_v10 = vld [vmem:[%s12381_s25 + $0xc20] ss:$12 sps:$4 sm:$0xff]  }
 0x67d   : > { %7474 = vmatpush1.bf16.msra.mxu0 %v11114_v42  ;;  %v7215_v25 = vpop.f32.mrb[3].mxu1  ;;  %9368 = vmatprep.subr.bf16.mxu1 %v11122_v54  ;;  %v13652_v42 = vcombine.high %v13645_v43, %v13645_v43  ;;  %v11184_v54 = vld [vmem:[%s12381_s25 + $0xcf8] ss:$12 sps:$4 sm:$0xff]   ;;  %v11189_v40 = vld [vmem:[%s12381_s25 + $0xd10] ss:$12 sps:$4 sm:$0xff]  }
 0x67e   : > { %7475 = vmatprep.subr.bf16.mxu0 %v11121_v57  ;;  %v11183_v57 = vld [vmem:[%s12381_s25 + $0xf34] ss:$12 sps:$4 sm:$0xff]   ;;  %v11190_v25 = vld [vmem:[%s12381_s25 + $0xc50] ss:$12 sps:$4 sm:$0xff]  }
 0x680   : > { %9369 = vmatpush3.bf16.msra.mxu1 %v11123_v27  ;;  %v11188_v27 = vld [vmem:[%s12381_s25 + $0xf4c] ss:$12 sps:$4 sm:$0xff]  }
 0x681   : > { %7476 = vmatpush1.bf16.msra.mxu0 %v11119_v45  ;;  %9370 = vmatprep.subr.bf16.mxu1 %v11127_v35  ;;  %v11185_v45 = vld [vmem:[%s12381_s25 + $0xc38] ss:$12 sps:$4 sm:$0xff]  }
 0x682   : > { %7477 = vmatprep.subr.bf16.mxu0 %v11126_v21  ;;  %v3923_v21 = vlaneseq  ;;  %v11193_v35 = vld [vmem:[%s12381_s25 + $0xf64] ss:$12 sps:$4 sm:$0xff]  }
 0x684   : > { %9371 = vmatpush3.bf16.msra.mxu1 %v11128_v1  ;;  %v13670_v1 = vshrl.u32 %v3923_v21, 7 }
 0x685   : > { %7478 = vmatpush1.bf16.msra.mxu0 %v11124_v61  ;;  %9378 = vmatprep.subr.bf16.mxu1 %v11132_v48  ;;  %v11194_v61 = vld [vmem:[%s12381_s25 + $0xd28] ss:$12 sps:$4 sm:$0xff]   ;;  %v11191_v48 = vld [vmem:[%s12381_s25 + $0xf60] ss:$12 sps:$4 sm:$0xff]  }
 0x686   : > { %7479 = vmatprep.subr.bf16.mxu0 %v11131_v60  ;;  %v3933_v60 = vsub.s32 2, %v13670_v1 }
 0x687   : > { %7859 = vmatmul.mubr.bf16.vlgmr.msra.gmra.mrb[28].mxu1 %v13398_v20  ;;  %v11146_v20 = vld [vmem:[%s12381_s25 + $0xe8c] ss:$12 sps:$4 sm:$0xff]  }
 0x688   : > { %9379 = vmatpush3.bf16.msra.mxu1 %v11133_v38  ;;  %7898 = vmatprep.mubr.bf16.mxu1 %v13406_v18  ;;  %v11151_v18 = vld [vmem:[%s12381_s25 + $0xea4] ss:$12 sps:$4 sm:$0xff]   ;;  %v11198_v38 = vld [vmem:[%s12381_s25 + $0xf7c] ss:$12 sps:$4 sm:$0xff]  }
 0x689   : > { %7480 = vmatpush1.bf16.msra.mxu0 %v11129_v2  ;;  %9380 = vmatprep.subr.bf16.mxu1 %v11137_v47  ;;  %v11195_v2 = vld [vmem:[%s12381_s25 + $0xc68] ss:$12 sps:$4 sm:$0xff]   ;;  %v13678_v47 = vld [vmem:[%s12389_s1] sm:$0x7] }
 0x68a   : > { %7481 = vmatprep.subr.bf16.mxu0 %v11136_v53  ;;  %v11199_v53 = vld [vmem:[%s12381_s25 + $0xd40] ss:$12 sps:$4 sm:$0xff]  }
 0x68c   : > { %9381 = vmatpush3.bf16.msra.mxu1 %v11138_v41  ;;  %v11196_v41 = vld [vmem:[%s12381_s25 + $0xf78] ss:$12 sps:$4 sm:$0xff]  }
 0x68d   : > { %7482 = vmatpush1.bf16.msra.mxu0 %v11134_v58  ;;  %9382 = vmatprep.subr.bf16.mxu1 %v11142_v52  ;;  %v3934_v58 = vrot.slane %v13678_v47, %v3933_v60  ;;  %v11203_v52 = vld [vmem:[%s12381_s25 + $0xf94] ss:$12 sps:$4 sm:$0xff]   ;;  %v11249_v60 = vld [vmem:[%s12381_s25 + $0xef0] ss:$12 sps:$4 sm:$0xff]  }
 0x68e   : > { %7483 = vmatprep.subr.bf16.mxu0 %v11141_v16  ;;  %v11200_v16 = vld [vmem:[%s12381_s25 + $0xc80] ss:$12 sps:$4 sm:$0xff]  }
 0x690   : > { %9383 = vmatpush3.bf16.msra.mxu1 %v11143_v19 }
 0x691   : > { %7484 = vmatpush1.bf16.msra.mxu0 %v11139_v8  ;;  %9384 = vmatprep.subr.bf16.mxu1 %v11147_v62  ;;  %v11204_v8 = vld [vmem:[%s12381_s25 + $0xd58] ss:$12 sps:$4 sm:$0xff]  }
 0x692   : > { %7485 = vmatprep.subr.bf16.mxu0 %v11146_v20 }
 0x694   : > { %9385 = vmatpush3.bf16.msra.mxu1 %v11148_v5 }
 0x695   : > { %7486 = vmatpush1.bf16.msra.mxu0 %v11144_v7  ;;  %9386 = vmatprep.subr.bf16.mxu1 %v11152_v15  ;;  %v11205_v15 = vld [vmem:[%s12381_s25 + $0xc98] ss:$12 sps:$4 sm:$0xff]  }
 0x696   : > { %7487 = vmatprep.subr.bf16.mxu0 %v11151_v18  ;;  %v11201_v18 = vld [vmem:[%s12381_s25 + $0xf90] ss:$12 sps:$4 sm:$0xff]  }
 0x698   : > { %9387 = vmatpush3.bf16.msra.mxu1 %v11153_v9  ;;  %v11208_v9 = vld [vmem:[%s12381_s25 + $0xfac] ss:$12 sps:$4 sm:$0xff]  }
 0x699   : > { %7488 = vmatpush1.bf16.msra.mxu0 %v11149_v31  ;;  %9388 = vmatprep.subr.bf16.mxu1 %v11157_v56 }
 0x69a   : > { %7489 = vmatprep.subr.bf16.mxu0 %v11156_v50  ;;  %v9240_v36 = vpop.f32.mrb[4].mxu1  ;;  %v11209_v50 = vld [vmem:[%s12381_s25 + $0xd70] ss:$12 sps:$4 sm:$0xff]  }
 0x69b   : > { %v9241_v13 = vpop.f32.mrb[5].mxu1 }
 0x69c   : > { %v13633_v3 = vadd.f32 %v9241_v13, %v9240_v36  ;;  %v9243_v4 = vpop.f32.mrb[6].mxu1  ;;  %9389 = vmatpush3.bf16.msra.mxu1 %v11158_v44  ;;  %v11210_v44 = vld [vmem:[%s12381_s25 + $0xcb0] ss:$12 sps:$4 sm:$0xff]   ;;  %v11211_v36 = vld [vmem:[%s12381_s25 + $0xfc0] ss:$12 sps:$4 sm:$0xff]  }
 0x69d   : > { %7490 = vmatpush1.bf16.msra.mxu0 %v11154_v12  ;;  %v9244_v11 = vpop.f32.mrb[7].mxu1  ;;  %9390 = vmatprep.subr.bf16.mxu1 %v11162_v46  ;;  %v11206_v12 = vld [vmem:[%s12381_s25 + $0xfa8] ss:$12 sps:$4 sm:$0xff]  }
 0x69e   : > { %7491 = vmatprep.subr.bf16.mxu0 %v11161_v17  ;;  %v7621_v62 = vadd.f32 %v13633_v3, %v3934_v58  ;;  %v11213_v17 = vld [vmem:[%s12381_s25 + $0xfc4] ss:$12 sps:$4 sm:$0xff]   ;;  %v11214_v46 = vld [vmem:[%s12381_s25 + $0xe48] ss:$12 sps:$4 sm:$0xff]   ;;  %v11220_v3 = vld [vmem:[%s12381_s25 + $0xda0] ss:$12 sps:$4 sm:$0xff]  }
 0x69f   : > { %v11218_v13 = vld [vmem:[%s12381_s25 + $0xfdc] ss:$12 sps:$4 sm:$0xff]   ;;  %v11223_v4 = vld [vmem:[%s12381_s25 + $0xff4] ss:$12 sps:$4 sm:$0xff]   ;;  %v11224_v11 = vld [vmem:[%s12381_s25 + $0xe78] ss:$12 sps:$4 sm:$0xff]  }
 0x6a0   : > { %9391 = vmatpush3.bf16.msra.mxu1 %v11163_v32  ;;  %v11219_v32 = vld [vmem:[%s12381_s25 + $0xe60] ss:$12 sps:$4 sm:$0xff]   ;;  %v11256_v58 = vld [vmem:[%s12381_s25 + $0xfc8] ss:$12 sps:$4 sm:$0xff]  }
 0x6a1   : > { %7492 = vmatpush1.bf16.msra.mxu0 %v11159_v30  ;;  %9392 = vmatprep.subr.bf16.mxu1 %v11167_v28  ;;  %v11215_v30 = vld [vmem:[%s12381_s25 + $0xd88] ss:$12 sps:$4 sm:$0xff]   ;;  %v11221_v28 = vld [vmem:[%s12381_s25 + $0xff0] ss:$12 sps:$4 sm:$0xff]  }
 0x6a2   : > { %7493 = vmatprep.subr.bf16.mxu0 %v11166_v34  ;;  %v11216_v34 = vld [vmem:[%s12381_s25 + $0xfd8] ss:$12 sps:$4 sm:$0xff]  }
 0x6a4   : > { %9393 = vmatpush3.bf16.msra.mxu1 %v11168_v63  ;;  %v11229_v63 = vld [vmem:[%s12381_s25 + $0xe90] ss:$12 sps:$4 sm:$0xff]  }
 0x6a5   : > { %7494 = vmatpush1.bf16.msra.mxu0 %v11164_v6  ;;  %9400 = vmatprep.subr.bf16.mxu1 %v11174_v24  ;;  %v11228_v6 = vld [vmem:[%s12381_s25 + $0x100c] ss:$12 sps:$4 sm:$0xff]   ;;  %v11230_v24 = vld [vmem:[%s12381_s25 + $0xdd0] ss:$12 sps:$4 sm:$0xff]  }
 0x6a6   : > { %7504 = vmatprep.subr.bf16.mxu0 %v11173_v0  ;;  %v11226_v0 = vld [vmem:[%s12381_s25 + $0x1008] ss:$12 sps:$4 sm:$0xff]  }
 0x6a7   : > { %7899 = vmatmul.mubr.bf16.vlgmr.msra.gmra.mrb[32].mxu1 %v13478_v33  ;;  %v11181_v33 = vld [vmem:[%s12381_s25 + $0xf30] ss:$12 sps:$4 sm:$0xff]  }
 0x6a8   : > { %7496 = vmatmul.mubr.bf16.vlgmr.msra.gmra.mrb[0].mxu0 %v13643_v51  ;;  %9401 = vmatpush3.bf16.msra.mxu1 %v11175_v55  ;;  %v11231_v55 = vld [vmem:[%s12381_s25 + $0x1020] ss:$12 sps:$4 sm:$0xff]  }
 0x6a9   : > { %7505 = vmatpush1.bf16.msra.mxu0 %v11171_v26  ;;  %9402 = vmatprep.subr.bf16.mxu1 %v11179_v23  ;;  %v11234_v26 = vld [vmem:[%s12381_s25 + $0xea8] ss:$12 sps:$4 sm:$0xff]  }
 0x6aa   : > { %7506 = vmatprep.subr.bf16.mxu0 %v11178_v59  ;;  %7938 = vmatprep.mubr.bf16.mxu1 %v13486_v14  ;;  %v11186_v14 = vld [vmem:[%s12381_s25 + $0xf48] ss:$12 sps:$4 sm:$0xff]  }
 0x6ab   : > { %7536 = vmatprep.mubr.bf16.mxu0 %v13652_v42  ;;  %v11235_v59 = vld [vmem:[%s12381_s25 + $0xde8] ss:$12 sps:$4 sm:$0xff]  }
 0x6ac   : > { %9403 = vmatpush3.bf16.msra.mxu1 %v11180_v10  ;;  %v11238_v23 = vld [vmem:[%s12381_s25 + $0x103c] ss:$12 sps:$4 sm:$0xff]   ;;  %v11236_v10 = vld [vmem:[%s12381_s25 + $0x1038] ss:$12 sps:$4 sm:$0xff]  }
 0x6ad   : > { %7507 = vmatpush1.bf16.msra.mxu0 %v11176_v37  ;;  %9404 = vmatprep.subr.bf16.mxu1 %v11184_v54  ;;  %v11239_v37 = vld [vmem:[%s12381_s25 + $0xec0] ss:$12 sps:$4 sm:$0xff]  }
 0x6ae   : > { %7508 = vmatprep.subr.bf16.mxu0 %v11183_v57  ;;  %v11240_v57 = vld [vmem:[%s12381_s25 + $0xe00] ss:$12 sps:$4 sm:$0xff]  }
 0x6af   : > { %v11243_v54 = vld [vmem:[%s12381_s25 + $0x1054] ss:$12 sps:$4 sm:$0xff]  }
 0x6b0   : > { %9405 = vmatpush3.bf16.msra.mxu1 %v11185_v45 }
 0x6b1   : > { %7509 = vmatpush1.bf16.msra.mxu0 %v11181_v33  ;;  %9406 = vmatprep.subr.bf16.mxu1 %v11189_v40  ;;  %v11244_v33 = vld [vmem:[%s12381_s25 + $0xed8] ss:$12 sps:$4 sm:$0xff]  }
 0x6b2   : > { %7510 = vmatprep.subr.bf16.mxu0 %v11188_v27 }
 0x6b4   : > { %9407 = vmatpush3.bf16.msra.mxu1 %v11190_v25  ;;  %v11245_v25 = vld [vmem:[%s12381_s25 + $0xe18] ss:$12 sps:$4 sm:$0xff]  }
 0x6b5   : > { %7511 = vmatpush1.bf16.msra.mxu0 %v11186_v14  ;;  %9408 = vmatprep.subr.bf16.mxu1 %v11194_v61  ;;  %v11241_v14 = vld [vmem:[%s12381_s25 + $0x1050] ss:$12 sps:$4 sm:$0xff]   ;;  %v11248_v61 = vld [vmem:[%s12381_s25 + $0x106c] ss:$12 sps:$4 sm:$0xff]  }
 0x6b6   : > { %7512 = vmatprep.subr.bf16.mxu0 %v11193_v35 }
 0x6b8   : > { %9409 = vmatpush3.bf16.msra.mxu1 %v11195_v2  ;;  %v11246_v2 = vld [vmem:[%s12381_s25 + $0x1068] ss:$12 sps:$4 sm:$0xff]  }
 0x6b9   : > { %7513 = vmatpush1.bf16.msra.mxu0 %v11191_v48  ;;  %9410 = vmatprep.subr.bf16.mxu1 %v11199_v53  ;;  %v11255_v53 = vld [vmem:[%s12381_s25 + $0x1084] ss:$12 sps:$4 sm:$0xff]  }
 0x6ba   : > { %7514 = vmatprep.subr.bf16.mxu0 %v11198_v38  ;;  %v9262_v19 = vpop.f32.mrb[8].mxu1  ;;  %v11250_v38 = vld [vmem:[%s12381_s25 + $0xe30] ss:$12 sps:$4 sm:$0xff]  }
 0x6bb   : > { %v9263_v20 = vpop.f32.mrb[9].mxu1 }
 0x6bc   : > { %v9264_v7 = vadd.f32 %v9263_v20, %v9262_v19  ;;  %v9265_v5 = vpop.f32.mrb[10].mxu1  ;;  %9411 = vmatpush3.bf16.msra.mxu1 %v11200_v16  ;;  %v13737_v16 = vld [vmem:[#allocation2 + $0x58] sm:$0xff]  ;;  %v11261_v20 = vld [vmem:[%s12381_s25 + $0xfe0] ss:$12 sps:$4 sm:$0xff]  }
 0x6bd   : > { %7515 = vmatpush1.bf16.msra.mxu0 %v11196_v41  ;;  %v9266_v31 = vpop.f32.mrb[11].mxu1  ;;  %9412 = vmatprep.subr.bf16.mxu1 %v11204_v8  ;;  %v13735_v41 = vcombine.low %v13645_v43, %v13645_v43  ;;  %v11257_v8 = vld [vmem:[%s12381_s25 + $0xf08] ss:$12 sps:$4 sm:$0xff]   ;;  %v11258_v43 = vld [vmem:[%s12381_s25 + $0x1098] ss:$12 sps:$4 sm:$0xff]  }
 0x6be   : > { %7516 = vmatprep.subr.bf16.mxu0 %v11203_v52  ;;  %v13690_v56 = vadd.f32 %v9264_v7, %v7621_v62  ;;  %v11253_v52 = vld [vmem:[%s12381_s25 + $0x1080] ss:$12 sps:$4 sm:$0xff]   ;;  %v11260_v19 = vld [vmem:[%s12381_s25 + $0x109c] ss:$12 sps:$4 sm:$0xff]   ;;  %v13745_v62 = vcombine.high %v13737_v16, %v13737_v16 }
 0x6bf   : > { %v11262_v7 = vld [vmem:[%s12381_s25 + $0xf20] ss:$12 sps:$4 sm:$0xff]  }
 0x6c0   : > { %9413 = vmatpush3.bf16.msra.mxu1 %v11205_v15  ;;  %v11265_v5 = vld [vmem:[%s12381_s25 + $0x10b4] ss:$12 sps:$4 sm:$0xff]   ;;  %v11267_v15 = vld [vmem:[%s12381_s25 + $0xf38] ss:$12 sps:$4 sm:$0xff]  }
 0x6c1   : > { %7517 = vmatpush1.bf16.msra.mxu0 %v11201_v18  ;;  %9414 = vmatprep.subr.bf16.mxu1 %v11209_v50  ;;  %v11266_v18 = vld [vmem:[%s12381_s25 + $0xff8] ss:$12 sps:$4 sm:$0xff]   ;;  %v11268_v50 = vld [vmem:[%s12381_s25 + $0x10c8] ss:$12 sps:$4 sm:$0xff]  }
 0x6c2   : > { %7518 = vmatprep.subr.bf16.mxu0 %v11208_v9  ;;  %v11270_v31 = vld [vmem:[%s12381_s25 + $0x10cc] ss:$12 sps:$4 sm:$0xff]   ;;  %v11271_v9 = vld [vmem:[%s12381_s25 + $0x1010] ss:$12 sps:$4 sm:$0xff]  }
 0x6c4   : > { %9415 = vmatpush3.bf16.msra.mxu1 %v11210_v44  ;;  %v11273_v44 = vld [vmem:[%s12381_s25 + $0x10e0] ss:$12 sps:$4 sm:$0xff]  }
 0x6c5   : > { %7519 = vmatpush1.bf16.msra.mxu0 %v11206_v12  ;;  %9422 = vmatprep.subr.bf16.mxu1 %v11214_v46  ;;  %v11276_v12 = vld [vmem:[%s12381_s25 + $0x1028] ss:$12 sps:$4 sm:$0xff]  }
 0x6c6   : > { %7520 = vmatprep.subr.bf16.mxu0 %v11213_v17  ;;  %v11277_v17 = vld [vmem:[%s12381_s25 + $0xf68] ss:$12 sps:$4 sm:$0xff]  }
 0x6c7   : > { %7939 = vmatmul.mubr.bf16.vlgmr.msra.gmra.mrb[36].mxu1 %v13558_v39  ;;  %v11225_v39 = vld [vmem:[%s12381_s25 + $0xdb8] ss:$12 sps:$4 sm:$0xff]   ;;  %v11280_v46 = vld [vmem:[%s12381_s25 + $0x10fc] ss:$12 sps:$4 sm:$0xff]  }
 0x6c8   : > { %9423 = vmatpush3.bf16.msra.mxu1 %v11215_v30  ;;  %7978 = vmatprep.mubr.bf16.mxu1 %v13566_v49  ;;  %v11233_v49 = vld [vmem:[%s12381_s25 + $0x1024] ss:$12 sps:$4 sm:$0xff]  }
 0x6c9   : > { %7521 = vmatpush1.bf16.msra.mxu0 %v11211_v36  ;;  %9424 = vmatprep.subr.bf16.mxu1 %v11219_v32  ;;  %v11281_v36 = vld [vmem:[%s12381_s25 + $0x1040] ss:$12 sps:$4 sm:$0xff]   ;;  %v11278_v30 = vld [vmem:[%s12381_s25 + $0x10f8] ss:$12 sps:$4 sm:$0xff]  }
 0x6ca   : > { %7522 = vmatprep.subr.bf16.mxu0 %v11218_v13  ;;  %v11282_v13 = vld [vmem:[%s12381_s25 + $0xf80] ss:$12 sps:$4 sm:$0xff]  }
 0x6cb   : > { %v11285_v32 = vld [vmem:[%s12381_s25 + $0x1114] ss:$12 sps:$4 sm:$0xff]  }
 0x6cc   : > { %9425 = vmatpush3.bf16.msra.mxu1 %v11220_v3 }
 0x6cd   : > { %7523 = vmatpush1.bf16.msra.mxu0 %v11216_v34  ;;  %9426 = vmatprep.subr.bf16.mxu1 %v11224_v11  ;;  %v11286_v34 = vld [vmem:[%s12381_s25 + $0x1058] ss:$12 sps:$4 sm:$0xff]  }
 0x6ce   : > { %7524 = vmatprep.subr.bf16.mxu0 %v11223_v4 }
 0x6d0   : > { %9427 = vmatpush3.bf16.msra.mxu1 %v11225_v39  ;;  %v11283_v39 = vld [vmem:[%s12381_s25 + $0x1110] ss:$12 sps:$4 sm:$0xff]  }
 0x6d1   : > { %7525 = vmatpush1.bf16.msra.mxu0 %v11221_v28  ;;  %9428 = vmatprep.subr.bf16.mxu1 %v11229_v63 }
 0x6d2   : > { %7526 = vmatprep.subr.bf16.mxu0 %v11228_v6  ;;  %v11287_v6 = vld [vmem:[%s12381_s25 + $0xf98] ss:$12 sps:$4 sm:$0xff]  }
 0x6d4   : > { %9429 = vmatpush3.bf16.msra.mxu1 %v11230_v24  ;;  %v11291_v24 = vld [vmem:[%s12381_s25 + $0x1070] ss:$12 sps:$4 sm:$0xff]  }
 0x6d5   : > { %7527 = vmatpush1.bf16.msra.mxu0 %v11226_v0  ;;  %9430 = vmatprep.subr.bf16.mxu1 %v11234_v26  ;;  %v11290_v0 = vld [vmem:[%s12381_s25 + $0x112c] ss:$12 sps:$4 sm:$0xff]   ;;  %v11288_v26 = vld [vmem:[%s12381_s25 + $0x1128] ss:$12 sps:$4 sm:$0xff]  }
 0x6d6   : > { %7528 = vmatprep.subr.bf16.mxu0 %v11233_v49 }
 0x6d8   : > { %9431 = vmatpush3.bf16.msra.mxu1 %v11235_v59  ;;  %v11295_v59 = vld [vmem:[%s12381_s25 + $0x1144] ss:$12 sps:$4 sm:$0xff]  }
 0x6d9   : > { %7529 = vmatpush1.bf16.msra.mxu0 %v11231_v55  ;;  %9432 = vmatprep.subr.bf16.mxu1 %v11239_v37  ;;  %v11292_v55 = vld [vmem:[%s12381_s25 + $0xfb0] ss:$12 sps:$4 sm:$0xff]   ;;  %v11293_v37 = vld [vmem:[%s12381_s25 + $0x1140] ss:$12 sps:$4 sm:$0xff]  }
 0x6da   : > { %7530 = vmatprep.subr.bf16.mxu0 %v11238_v23  ;;  %v9284_v45 = vpop.f32.mrb[12].mxu1  ;;  %v11296_v23 = vld [vmem:[%s12381_s25 + $0x1148] ss:$12 sps:$4 sm:$0xff]  }
 0x6db   : > { %v9285_v27 = vpop.f32.mrb[13].mxu1 }
 0x6dc   : > { %v9286_v40 = vadd.f32 %v9285_v27, %v9284_v45  ;;  %v9287_v21 = vpop.f32.mrb[14].mxu1  ;;  %9433 = vmatpush3.bf16.msra.mxu1 %v11240_v57  ;;  %v11300_v57 = vld [vmem:[%s12381_s25 + $0x115c] ss:$12 sps:$4 sm:$0xff]   ;;  %v11302_v45 = vld [vmem:[%s12381_s25 + $0x10a0] ss:$12 sps:$4 sm:$0xff]  }
 0x6dd   : > { %7531 = vmatpush1.bf16.msra.mxu0 %v11236_v10  ;;  %v9288_v35 = vpop.f32.mrb[15].mxu1  ;;  %9434 = vmatprep.subr.bf16.mxu1 %v11244_v33  ;;  %v11297_v10 = vld [vmem:[%s12381_s25 + $0x1088] ss:$12 sps:$4 sm:$0xff]   ;;  %v11298_v33 = vld [vmem:[%s12381_s25 + $0x1158] ss:$12 sps:$4 sm:$0xff]  }
 0x6de   : > { %7532 = vmatprep.subr.bf16.mxu0 %v11243_v54  ;;  %v13727_v48 = vadd.f32 %v9286_v40, %v13690_v56  ;;  %v11275_v56 = vld [vmem:[%s12381_s25 + $0x10e4] ss:$12 sps:$4 sm:$0xff]   ;;  %v11301_v54 = vld [vmem:[%s12381_s25 + $0x1160] ss:$12 sps:$4 sm:$0xff]  }
 0x6df   : > { %v11305_v27 = vld [vmem:[%s12381_s25 + $0x1174] ss:$12 sps:$4 sm:$0xff]   ;;  %v11306_v40 = vld [vmem:[%s12381_s25 + $0x1178] ss:$12 sps:$4 sm:$0xff]   ;;  %v11303_v21 = vld [vmem:[%s12381_s25 + $0x1170] ss:$12 sps:$4 sm:$0xff]  }
 0x6e0   : > { %9435 = vmatpush3.bf16.msra.mxu1 %v11245_v25  ;;  %v11310_v25 = vld [vmem:[%s12381_s25 + $0x118c] ss:$12 sps:$4 sm:$0xff]   ;;  %v11311_v35 = vld [vmem:[%s12381_s25 + $0x1190] ss:$12 sps:$4 sm:$0xff]  }
 0x6e1   : > { %7533 = vmatpush1.bf16.msra.mxu0 %v11241_v14  ;;  %9436 = vmatprep.subr.bf16.mxu1 %v11249_v60  ;;  %v11307_v14 = vld [vmem:[%s12381_s25 + $0x10b8] ss:$12 sps:$4 sm:$0xff]   ;;  %v11312_v60 = vld [vmem:[%s12381_s25 + $0x10d0] ss:$12 sps:$4 sm:$0xff]  }
 0x6e2   : > { %7534 = vmatprep.subr.bf16.mxu0 %v11248_v61  ;;  %v11308_v61 = vld [vmem:[%s12381_s25 + $0x1188] ss:$12 sps:$4 sm:$0xff]  }
 0x6e4   : > { %9437 = vmatpush3.bf16.msra.mxu1 %v11250_v38  ;;  %v11313_v38 = vld [vmem:[%s12381_s25 + $0x11a0] ss:$12 sps:$4 sm:$0xff]  }
 0x6e5   : > { %7535 = vmatpush1.bf16.msra.mxu0 %v11246_v2  ;;  %9444 = vmatprep.subr.bf16.mxu1 %v11256_v58  ;;  %v11316_v2 = vld [vmem:[%s12381_s25 + $0x11a8] ss:$12 sps:$4 sm:$0xff]  }
 0x6e6   : > { %7545 = vmatprep.subr.bf16.mxu0 %v11255_v53  ;;  %v11317_v53 = vld [vmem:[%s12381_s25 + $0x10e8] ss:$12 sps:$4 sm:$0xff]  }
 0x6e7   : > { %7979 = vmatmul.mubr.bf16.vlgmr.msra.gmra.mrb[40].mxu1 %v13643_v51  ;;  %v11263_v51 = vld [vmem:[%s12381_s25 + $0x10b0] ss:$12 sps:$4 sm:$0xff]  }
 0x6e8   : > { %7537 = vmatmul.mubr.bf16.vlgmr.msra.gmra.mrb[0].mxu0 %v13735_v41  ;;  %9445 = vmatpush3.bf16.msra.mxu1 %v11257_v8  ;;  %v11320_v58 = vld [vmem:[%s12381_s25 + $0x11bc] ss:$12 sps:$4 sm:$0xff]   ;;  %v11322_v8 = vld [vmem:[%s12381_s25 + $0x1100] ss:$12 sps:$4 sm:$0xff]  }
 0x6e9   : > { %7546 = vmatpush1.bf16.msra.mxu0 %v11253_v52  ;;  %9446 = vmatprep.subr.bf16.mxu1 %v11261_v20  ;;  %v11318_v52 = vld [vmem:[%s12381_s25 + $0x11b8] ss:$12 sps:$4 sm:$0xff]  }
 0x6ea   : > { %7547 = vmatprep.subr.bf16.mxu0 %v11260_v19  ;;  %8018 = vmatprep.mubr.bf16.mxu1 %v13652_v42  ;;  %v11272_v42 = vld [vmem:[%s12381_s25 + $0xf50] ss:$12 sps:$4 sm:$0xff]   ;;  %v11325_v19 = vld [vmem:[%s12381_s25 + $0x11d4] ss:$12 sps:$4 sm:$0xff]   ;;  %v11326_v20 = vld [vmem:[%s12381_s25 + $0x11d8] ss:$12 sps:$4 sm:$0xff]  }
 0x6eb   : > { %7577 = vmatprep.mubr.bf16.mxu0 %v13745_v62 }
 0x6ec   : > { %9447 = vmatpush3.bf16.msra.mxu1 %v11262_v7 }
 0x6ed   : > { %7548 = vmatpush1.bf16.msra.mxu0 %v11258_v43  ;;  %9448 = vmatprep.subr.bf16.mxu1 %v11266_v18  ;;  %v11323_v18 = vld [vmem:[%s12381_s25 + $0x11d0] ss:$12 sps:$4 sm:$0xff]  }
 0x6ee   : > { %7549 = vmatprep.subr.bf16.mxu0 %v11265_v5 }
 0x6f0   : > { %9449 = vmatpush3.bf16.msra.mxu1 %v11267_v15 }
 0x6f1   : > { %7550 = vmatpush1.bf16.msra.mxu0 %v11263_v51  ;;  %9450 = vmatprep.subr.bf16.mxu1 %v11271_v9  ;;  %v11327_v51 = vld [vmem:[%s12381_s25 + $0x1118] ss:$12 sps:$4 sm:$0xff]   ;;  %v11331_v9 = vld [vmem:[%s12381_s25 + $0x11f0] ss:$12 sps:$4 sm:$0xff]  }
 0x6f2   : > { %7551 = vmatprep.subr.bf16.mxu0 %v11270_v31  ;;  %v11330_v31 = vld [vmem:[%s12381_s25 + $0x11ec] ss:$12 sps:$4 sm:$0xff]  }
 0x6f4   : > { %9451 = vmatpush3.bf16.msra.mxu1 %v11272_v42  ;;  %v11328_v42 = vld [vmem:[%s12381_s25 + $0x11e8] ss:$12 sps:$4 sm:$0xff]  }
 0x6f5   : > { %7552 = vmatpush1.bf16.msra.mxu0 %v11268_v50  ;;  %9452 = vmatprep.subr.bf16.mxu1 %v11276_v12  ;;  %v8602_v12 = vcombine.low %v13737_v16, %v13737_v16 }
 0x6f6   : > { %7553 = vmatprep.subr.bf16.mxu0 %v11275_v56  ;;  %v11332_v56 = vld [vmem:[%s12381_s25 + $0x1130] ss:$12 sps:$4 sm:$0xff]  }
 0x6f8   : > { %9453 = vmatpush3.bf16.msra.mxu1 %v11277_v17 }
 0x6f9   : > { %7554 = vmatpush1.bf16.msra.mxu0 %v11273_v44  ;;  %9454 = vmatprep.subr.bf16.mxu1 %v11281_v36 }
 0x6fa   : > { %7555 = vmatprep.subr.bf16.mxu0 %v11280_v46  ;;  %v9306_v3 = vpop.f32.mrb[16].mxu1 }
 0x6fb   : > { %v9307_v4 = vpop.f32.mrb[17].mxu1 }
 0x6fc   : > { %v9308_v11 = vadd.f32 %v9307_v4, %v9306_v3  ;;  %v9309_v28 = vpop.f32.mrb[18].mxu1  ;;  %9455 = vmatpush3.bf16.msra.mxu1 %v11282_v13 }
 0x6fd   : > { %7556 = vmatpush1.bf16.msra.mxu0 %v11278_v30  ;;  %v9310_v63 = vpop.f32.mrb[19].mxu1  ;;  %9456 = vmatprep.subr.bf16.mxu1 %v11286_v34  ;;  %v8089_v28 = vld [vmem:[%s12391_s0 + $0x80] sm:$0xff] }
 0x6fe   : > { %7557 = vmatprep.subr.bf16.mxu0 %v11285_v32  ;;  %v13776_v49 = vadd.f32 %v9308_v11, %v13727_v48  ;;  %v11315_v48 = vld [vmem:[%s12381_s25 + $0x11a4] ss:$12 sps:$4 sm:$0xff]  }
 0x700   : > { %9457 = vmatpush3.bf16.msra.mxu1 %v11287_v6  ;;  %v8073_v6 = vld [vmem:[%s12391_s0] sm:$0xff] }
 0x701   : > { %7558 = vmatpush1.bf16.msra.mxu0 %v11283_v39  ;;  %9458 = vmatprep.subr.bf16.mxu1 %v11291_v24  ;;  %v8090_v39 = vld [vmem:[%s12391_s0 + $0x88] sm:$0xff]  ;;  %v11856_v24 = vmov 0.0|0.0  }
 0x702   : > { %7559 = vmatprep.subr.bf16.mxu0 %v11290_v0  ;;  %v10090_v63 = vpack.c.bf16 %v8090_v39, %v8089_v28  ;;  %v8074_v0 = vld [vmem:[%s12391_s0 + $0x8] sm:$0xff] }
 0x703   : > { %v8086_v28 = vld [vmem:[%s12391_s0 + $0x68] sm:$0xff] }
 0x704   : > { %9459 = vmatpush3.bf16.msra.mxu1 %v11292_v55  ;;  %v10092_v55 = vpack.c.bf16 %v8074_v0, %v8073_v6  ;;  %v8117_v6 = vld [vmem:[%s12391_s0 + $0x160] sm:$0xff] }
 0x705   : > { %7560 = vmatpush1.bf16.msra.mxu0 %v11288_v26  ;;  %9466 = vmatprep.subr.bf16.mxu1 %v11296_v23  ;;  %v8106_v26 = vld [vmem:[%s12391_s0 + $0x108] sm:$0xff]  ;;  %v8091_v23 = vld [vmem:[%s12391_s0 + $0x90] sm:$0xff] }
 0x706   : > { %7561 = vmatprep.subr.bf16.mxu0 %v11295_v59 }
 0x707   : > { %8019 = vmatmul.mubr.bf16.vlgmr.msra.gmra.mrb[44].mxu1 %v13735_v41  ;;  %v11321_v41 = vld [vmem:[%s12381_s25 + $0x11c0] ss:$12 sps:$4 sm:$0xff]  }
 0x708   : > { %9467 = vmatpush3.bf16.msra.mxu1 %v11297_v10  ;;  %8058 = vmatprep.mubr.bf16.mxu1 %v13745_v62  ;;  %v8075_v10 = vld [vmem:[%s12391_s0 + $0x10] sm:$0xff] }
 0x709   : > { %7562 = vmatpush1.bf16.msra.mxu0 %v11293_v37  ;;  %9468 = vmatprep.subr.bf16.mxu1 %v11301_v54  ;;  %v8092_v37 = vld [vmem:[%s12391_s0 + $0x98] sm:$0xff] }
 0x70a   : > { %7563 = vmatprep.subr.bf16.mxu0 %v11300_v57  ;;  %v10094_v57 = vpack.c.bf16 %v8092_v37, %v8091_v23  ;;  %v8076_v54 = vld [vmem:[%s12391_s0 + $0x18] sm:$0xff]  ;;  %v8087_v37 = vld [vmem:[%s12391_s0 + $0x70] sm:$0xff] }
 0x70c   : > { %9469 = vmatpush3.bf16.msra.mxu1 %v11302_v45  ;;  %v8108_v45 = vld [vmem:[%s12391_s0 + $0x118] sm:$0xff] }
 0x70d   : > { %7564 = vmatpush1.bf16.msra.mxu0 %v11298_v33  ;;  %9470 = vmatprep.subr.bf16.mxu1 %v11306_v40  ;;  %v8107_v33 = vld [vmem:[%s12391_s0 + $0x110] sm:$0xff] }
 0x70e   : > { %7565 = vmatprep.subr.bf16.mxu0 %v11305_v27  ;;  %v10096_v27 = vpack.c.bf16 %v8076_v54, %v8075_v10  ;;  %v10126_v40 = vpack.c.bf16 %v8108_v45, %v8107_v33  ;;  %v8088_v10 = vld [vmem:[%s12391_s0 + $0x78] sm:$0xff]  ;;  %v8119_v45 = vld [vmem:[%s12391_s0 + $0x170] sm:$0xff] }
 0x70f   : > { %v10120_v33 = vpack.c.bf16 %v8088_v10, %v8087_v37 }
 0x710   : > { %9471 = vmatpush3.bf16.msra.mxu1 %v11307_v14  ;;  %v8094_v14 = vld [vmem:[%s12391_s0 + $0xa8] sm:$0xff] }
 0x711   : > { %7566 = vmatpush1.bf16.msra.mxu0 %v11303_v21  ;;  %9472 = vmatprep.subr.bf16.mxu1 %v11311_v35  ;;  %v8093_v21 = vld [vmem:[%s12391_s0 + $0xa0] sm:$0xff] }
 0x712   : > { %7567 = vmatprep.subr.bf16.mxu0 %v11310_v25  ;;  %v8077_v25 = vld [vmem:[%s12391_s0 + $0x20] sm:$0xff]  ;;  %v10098_v35 = vpack.c.bf16 %v8094_v14, %v8093_v21 }
 0x714   : > { %9473 = vmatpush3.bf16.msra.mxu1 %v11312_v60  ;;  %v8109_v60 = vld [vmem:[%s12391_s0 + $0x120] sm:$0xff] }
 0x715   : > { %7568 = vmatpush1.bf16.msra.mxu0 %v11308_v61  ;;  %9474 = vmatprep.subr.bf16.mxu1 %v11316_v2  ;;  %v8078_v61 = vld [vmem:[%s12391_s0 + $0x28] sm:$0xff]  ;;  %v8095_v2 = vld [vmem:[%s12391_s0 + $0xb0] sm:$0xff] }
 0x716   : > { %7569 = vmatprep.subr.bf16.mxu0 %v11315_v48  ;;  %v8110_v48 = vld [vmem:[%s12391_s0 + $0x128] sm:$0xff] }
 0x718   : > { %9475 = vmatpush3.bf16.msra.mxu1 %v11317_v53  ;;  %v10100_v53 = vpack.c.bf16 %v8078_v61, %v8077_v25  ;;  %v11858_v25 = vmov 0.0  }
 0x719   : > { %7570 = vmatpush1.bf16.msra.mxu0 %v11313_v38  ;;  %9476 = vmatprep.subr.bf16.mxu1 %v11321_v41  ;;  %v8096_v38 = vld [vmem:[%s12391_s0 + $0xb8] sm:$0xff]  ;;  %v8079_v41 = vld [vmem:[%s12391_s0 + $0x30] sm:$0xff] }
 0x71a   : > { %7571 = vmatprep.subr.bf16.mxu0 %v11320_v58  ;;  %v9328_v62 = vpop.f32.mrb[20].mxu1  ;;  %v10129_v58 = vpack.c.bf16 %v8110_v48, %v8109_v60 }
 0x71b   : > { %v9329_v43 = vpop.f32.mrb[21].mxu1 }
 0x71c   : > { %v9330_v7 = vadd.f32 %v9329_v43, %v9328_v62  ;;  %v9331_v5 = vpop.f32.mrb[22].mxu1  ;;  %9477 = vmatpush3.bf16.msra.mxu1 %v11322_v8  ;;  %v8080_v8 = vld [vmem:[%s12391_s0 + $0x38] sm:$0xff]  ;;  %v8097_v62 = vld [vmem:[%s12391_s0 + $0xc0] sm:$0xff]  ;;  %v8098_v43 = vld [vmem:[%s12391_s0 + $0xc8] sm:$0xff] }
 0x71d   : > { %7572 = vmatpush1.bf16.msra.mxu0 %v11318_v52  ;;  %v9332_v15 = vpop.f32.mrb[23].mxu1  ;;  %9478 = vmatprep.subr.bf16.mxu1 %v11326_v20  ;;  %v10102_v52 = vpack.c.bf16 %v8096_v38, %v8095_v2  ;;  %v8112_v20 = vld [vmem:[%s12391_s0 + $0x138] sm:$0xff] }
 0x71e   : > { %7573 = vmatprep.subr.bf16.mxu0 %v11325_v19  ;;  %v7781_v50 = vadd.f32 %v9330_v7, %v13776_v49  ;;  %v8105_v49 = vld [vmem:[%s12391_s0 + $0x100] sm:$0xff]  ;;  %v8111_v19 = vld [vmem:[%s12391_s0 + $0x130] sm:$0xff]  ;;  %v10104_v7 = vpack.c.bf16 %v8080_v8, %v8079_v41  ;;  %v8082_v15 = vld [vmem:[%s12391_s0 + $0x48] sm:$0xff] }
 0x71f   : > { %v10123_v59 = vpack.c.bf16 %v8106_v26, %v8105_v49  ;;  %v10132_v5 = vpack.c.bf16 %v8112_v20, %v8111_v19  ;;  %v8103_v26 = vld [vmem:[%s12391_s0 + $0xf0] sm:$0xff] }
 0x720   : > { %9479 = vmatpush3.bf16.msra.mxu1 %v11327_v51  ;;  %v10106_v51 = vpack.c.bf16 %v8098_v43, %v8097_v62 }
 0x721   : > { %7574 = vmatpush1.bf16.msra.mxu0 %v11323_v18  ;;  %9480 = vmatprep.subr.bf16.mxu1 %v11331_v9  ;;  %v8081_v18 = vld [vmem:[%s12391_s0 + $0x40] sm:$0xff]  ;;  %v8114_v9 = vld [vmem:[%s12391_s0 + $0x148] sm:$0xff] }
 0x722   : > { %7575 = vmatprep.subr.bf16.mxu0 %v11330_v31  ;;  %v8113_v31 = vld [vmem:[%s12391_s0 + $0x140] sm:$0xff] }
 0x724   : > { %9481 = vmatpush3.bf16.msra.mxu1 %v11332_v56  ;;  %v10108_v56 = vpack.c.bf16 %v8082_v15, %v8081_v18  ;;  %v3929_v18 = vsub.s32 1, %v13670_v1 }
 0x725   : > { %7576 = vmatpush1.bf16.msra.mxu0 %v11328_v42  ;;  %10122 = vmatprep.subr.bf16.mxu1 %v11856_v24  ;;  %v8100_v42 = vld [vmem:[%s12391_s0 + $0xd8] sm:$0xff] }
 0x726   : > { %10091 = vmatprep.subr.bf16.mxu0 %v10090_v63  ;;  %v8118_v63 = vld [vmem:[%s12391_s0 + $0x168] sm:$0xff]  ;;  %v3930_v15 = vrot.slane %v13678_v47, %v3929_v18 }
 0x727   : > { %8059 = vmatmul.mubr.bf16.vlgmr.msra.gmra.mrb[48].mxu1 %v8602_v12  ;;  %v10141_v0 = vpack.c.bf16 %v8118_v63, %v8117_v6 }
 0x728   : > { %7578 = vmatmul.mubr.bf16.vlgmr.msra.gmra.mrb[0].mxu0 %v8602_v12  ;;  %10124 = vmatpush3.bf16.msra.mxu1 %v10123_v59  ;;  %v10135_v12 = vpack.c.bf16 %v8114_v9, %v8113_v31  ;;  %v10312_v9 = vadd.f32 %v13596_v22, %v3930_v15 }
 0x729   : > { %10093 = vmatpush3.bf16.msra.mxu0 %v10092_v55  ;;  %10125 = vmatprep.subr.bf16.mxu1 %v11856_v24  ;;  %v8104_v55 = vld [vmem:[%s12391_s0 + $0xf8] sm:$0xff] }
 0x72a   : > { %10095 = vmatprep.subr.bf16.mxu0 %v10094_v57  ;;  %v10118_v23 = vpack.c.bf16 %v8104_v55, %v8103_v26  ;;  %9627 = vmatprep.mubr.msk.f32.mxu1 %vm11857_vm2, %v11858_v25 }
 0x72c   : > { %10127 = vmatpush3.bf16.msra.mxu1 %v10126_v40 }
 0x72d   : > { %10097 = vmatpush3.bf16.msra.mxu0 %v10096_v27  ;;  %10128 = vmatprep.subr.bf16.mxu1 %v11856_v24  ;;  %v8120_v27 = vld [vmem:[%s12391_s0 + $0x178] sm:$0xff] }
 0x72e   : > { %10099 = vmatprep.subr.bf16.mxu0 %v10098_v35  ;;  %v10144_v21 = vpack.c.bf16 %v8120_v27, %v8119_v45 }
 0x730   : > { %10130 = vmatpush3.bf16.msra.mxu1 %v10129_v58 }
 0x731   : > { %10101 = vmatpush3.bf16.msra.mxu0 %v10100_v53  ;;  %10131 = vmatprep.subr.bf16.mxu1 %v11856_v24 }
 0x732   : > { %10103 = vmatprep.subr.bf16.mxu0 %v10102_v52 }
 0x734   : > { %10133 = vmatpush3.bf16.msra.mxu1 %v10132_v5  ;;  %v3925_v5 = vsub.s32 0, %v13670_v1 }
 0x735   : > { %10105 = vmatpush3.bf16.msra.mxu0 %v10104_v7  ;;  %10134 = vmatprep.subr.bf16.mxu1 %v11856_v24 }
 0x736   : > { %10107 = vmatprep.subr.bf16.mxu0 %v10106_v51  ;;  %v3926_v51 = vrot.slane %v13678_v47, %v3925_v5 }
 0x738   : > { %10136 = vmatpush3.bf16.msra.mxu1 %v10135_v12  ;;  %v10310_v31 = vadd.f32 %v13592_v29, %v3926_v51 }
 0x739   : > { %10109 = vmatpush3.bf16.msra.mxu0 %v10108_v56  ;;  %10137 = vmatprep.subr.bf16.mxu1 %v11856_v24 }
 0x73a   : > { %v9350_v44 = vpop.f32.mrb[24].mxu1 }
 0x73b   : > { %v9351_v17 = vpop.f32.mrb[25].mxu1 }
 0x73c   : > { %v9352_v46 = vadd.f32 %v9351_v17, %v9350_v44  ;;  %v9353_v36 = vpop.f32.mrb[26].mxu1  ;;  %v8083_v44 = vld [vmem:[%s12391_s0 + $0x50] sm:$0xff] }
 0x73d   : > { %v9354_v30 = vpop.f32.mrb[27].mxu1  ;;  %v8115_v36 = vld [vmem:[%s12391_s0 + $0x150] sm:$0xff] }
 0x73e   : > { %v7821_v13 = vadd.f32 %v9352_v46, %v7781_v50  ;;  %v8099_v50 = vld [vmem:[%s12391_s0 + $0xd0] sm:$0xff]  ;;  %v8084_v46 = vld [vmem:[%s12391_s0 + $0x58] sm:$0xff] }
 0x73f   : > { %v10110_v17 = vpack.c.bf16 %v8100_v42, %v8099_v50  ;;  %v8116_v30 = vld [vmem:[%s12391_s0 + $0x158] sm:$0xff] }
 0x741   : > { %10111 = vmatprep.subr.bf16.mxu0 %v10110_v17 }
 0x75a   : > { %v9372_v32 = vpop.f32.mrb[28].mxu1 }
 0x75b   : > { %v9373_v34 = vpop.f32.mrb[29].mxu1 }
 0x75c   : > { %v9374_v16 = vadd.f32 %v9373_v34, %v9372_v32  ;;  %v9375_v3 = vpop.f32.mrb[30].mxu1  ;;  %v8102_v32 = vld [vmem:[%s12391_s0 + $0xe8] sm:$0xff]  ;;  %v10112_v34 = vpack.c.bf16 %v8084_v46, %v8083_v44 }
 0x75d   : > { %v9376_v4 = vpop.f32.mrb[31].mxu1 }
 0x75e   : > { %v13817_v11 = vadd.f32 %v9374_v16, %v7821_v13  ;;  %v8101_v13 = vld [vmem:[%s12391_s0 + $0xe0] sm:$0xff]  ;;  %v10138_v16 = vpack.c.bf16 %v8116_v30, %v8115_v36  ;;  %10113 = vmatpush3.bf16.msra.mxu0 %v10112_v34 }
 0x75f   : > { %v10114_v3 = vpack.c.bf16 %v8102_v32, %v8101_v13  ;;  %v8085_v4 = vld [vmem:[%s12391_s0 + $0x60] sm:$0xff] }
 0x760   : > { %10139 = vmatpush3.bf16.msra.mxu1 %v10138_v16  ;;  %v10116_v39 = vpack.c.bf16 %v8086_v28, %v8085_v4 }
 0x761   : > { %10115 = vmatprep.subr.bf16.mxu0 %v10114_v3  ;;  %10140 = vmatprep.subr.bf16.mxu1 %v11856_v24 }
 0x762   : > { %10117 = vmatpush3.bf16.msra.mxu0 %v10116_v39  ;;  %v8072_v39 = vld [vmem:[#allocation24] sm:$0xff] }
 0x763   : > { %10119 = vmatprep.subr.bf16.mxu0 %v10118_v23 }
 0x764   : > { %10142 = vmatpush3.bf16.msra.mxu1 %v10141_v0 }
 0x765   : > { %10143 = vmatprep.subr.bf16.mxu1 %v11856_v24 }
 0x766   : > { %10121 = vmatpush3.bf16.msra.mxu0 %v10120_v33 }
 0x768   : > { %10145 = vmatpush3.bf16.msra.mxu1 %v10144_v21 }
 0x77a   : > { %v9394_v49 = vpop.f32.mrb[32].mxu1 }
 0x77b   : > { %v9395_v59 = vpop.f32.mrb[33].mxu1 }
 0x77c   : > { %v9396_v57 = vadd.f32 %v9395_v59, %v9394_v49  ;;  %v9397_v54 = vpop.f32.mrb[34].mxu1  ;;  %v9181_v49 = vld [vmem:[#allocation23] ss:$0 sm:$0xff] (!%p9180_p5) }
 0x77d   : > { %v9398_v40 = vpop.f32.mrb[35].mxu1 }
 0x77e   : > { %v7901_v14 = vadd.f32 %v9396_v57, %v13817_v11 }
 0x79a   : > { %v9416_v35 = vpop.f32.mrb[36].mxu1 }
 0x79b   : > { %v9417_v61 = vpop.f32.mrb[37].mxu1 }
 0x79c   : > { %v9418_v60 = vadd.f32 %v9417_v61, %v9416_v35  ;;  %v9419_v48 = vpop.f32.mrb[38].mxu1 }
 0x79d   : > { %v9420_v2 = vpop.f32.mrb[39].mxu1 }
 0x79e   : > { %v7941_v38 = vadd.f32 %v9418_v60, %v7901_v14 }
 0x7ba   : > { %v9438_v53 = vpop.f32.mrb[40].mxu1 }
 0x7bb   : > { %v9439_v24 = vpop.f32.mrb[41].mxu1 }
 0x7bc   : > { %v9440_v58 = vadd.f32 %v9439_v24, %v9438_v53  ;;  %v9441_v41 = vpop.f32.mrb[42].mxu1 }
 0x7bd   : > { %v9442_v52 = vpop.f32.mrb[43].mxu1 }
 0x7be   : > { %v7981_v8 = vadd.f32 %v9440_v58, %v7941_v38 }
 0x7da   : > { %v9460_v19 = vpop.f32.mrb[44].mxu1 }
 0x7db   : > { %v9461_v20 = vpop.f32.mrb[45].mxu1 }
 0x7dc   : > { %v9462_v11 = vadd.f32 %v9461_v20, %v9460_v19  ;;  %v9463_v62 = vpop.f32.mrb[46].mxu1 }
 0x7dd   : > { %v9464_v43 = vpop.f32.mrb[47].mxu1 }
 0x7de   : > { %v8021_v7 = vadd.f32 %v9462_v11, %v7981_v8 }
 0x7fa   : > { %v9482_v42 = vpop.f32.mrb[48].mxu1 }
 0x7fb   : > { %v7579_v50 = vpop.f32.mrb[0].mxu0  ;;  %v9483_v44 = vpop.f32.mrb[49].mxu1 }
 0x7fc   : > { %v10311_v56 = vadd.f32 %v10310_v31, %v7579_v50  ;;  %v7581_v12 = vpop.f32.mrb[1].mxu0  ;;  %v9484_v46 = vadd.f32 %v9483_v44, %v9482_v42  ;;  %v9485_v1 = vpop.f32.mrb[50].mxu1 }
 0x7fd   : > { %v10313_v17 = vadd.f32 %v10312_v9, %v7581_v12  ;;  %v7583_v36 = vpop.f32.mrb[2].mxu0  ;;  %v9486_v32 = vpop.f32.mrb[51].mxu1 }
 0x7fe   : > { %v8066_v30 = vmax.f32 %v10311_v56, 0.0  ;;  %v7584_v13 = vpop.f32.mrb[3].mxu0  ;;  %v8061_v34 = vadd.f32 %v9484_v46, %v8021_v7 }
 0x7ff   : > { %v8067_v47 = vmax.f32 %v10313_v17, 0.0 }
 0x800   : > { %8069 = vst [vmem:[%s12402_s4] sm:$0xff] %v8066_v30  ;;  %v8068_v29 = vmax.f32 %v8061_v34, 0.0 }
 0x801   : > { %8070 = vst [vmem:[%s12402_s4 + $0x8] sm:$0xff] %v8067_v47  ;;  %8185 = vmatprep.mubr.f32.mxu0 %v8067_v47 }
 0x802   : > { %8186 = vmatmul.mubr.f32.vlgmr.msra.gmra.mrb[4].mxu0 %v8066_v30  ;;  %8071 = vst [vmem:[%s12402_s4 + $0x10] sm:$0xff] %v8068_v29  ;;  %9628 = vmatmul.mubr.f32.vlgmr.msra.gmra.mrb[52].mxu1 %v8068_v29 }
 0x8d5   : > { %v9520_v22 = vpop.f32.mrb[4].mxu0  ;;  %v8257_v3 = vpop.f32.mrb[52].mxu1 }
 0x8d6   : > { %v9521_v16 = vpop.f32.mrb[5].mxu0  ;;  %v9629_v28 = vpop.f32.mrb[53].mxu1 }
 0x8d7   : > { %v9522_v4 = vadd.f32 %v9521_v16, %v9520_v22  ;;  %8266 = sbr.rel (%p9180_p5) target bundleno = 2280 (0x8e8), region = 136 }
 0x8d9   : > { %v8258_v6 = vadd.f32 %v9522_v4, %v8257_v3 }
 0x8db   : > { %v8261_v63 = vadd.f32 %v8258_v6, %v8072_v39 }
 0x8dd   : > { %8262 = vst [vmem:[#allocation24] sm:$0xff] %v8261_v63 }
 0x8e4   : > { %v8267_v0 = vld [vmem:[#allocation24] sm:$0xff] }
 0x8e5   : > { %v8275_v26 = vadd.f32 %v9181_v49, %v8267_v0 }
 0x8e7   : > { %8276 = vst [vmem:[#allocation24] sm:$0xff] %v8275_v26 }
 0x8e8 PF: > { %s11859_s25 = smov [#allocation24]   ;;  %s9202_s0 = smul.u32 384, %s11962_s22 }
 0x8e9   : > { %s8289_s1 = sshll.u32 %s11859_s25, 4  ;;  %s8303_s10 = sshll.u32 %s12402_s4, 4  ;;  %s8290_s1 = int_to_ptr.vmem [resolvable:$true] %s8289_s1  ;;  %s8304_s10 = int_to_ptr.vmem [resolvable:$true] %s8303_s10 }
 0x8ea   : > { %s11705_s23 = scalar_lea.vmem %s8290_s1, 128  ;;  %p14093_p7 = scmp.eq.s32.totalorder %s11962_s22, 3 }
 0x8eb   : > { %p11706_p0 = scmp.ne.s32.totalorder %s8290_s1, %s11705_s23  ;;  %p11712_p6 = scmp.lt.s32.totalorder %s8290_s1, %s8290_s1 }
 0x8ec   : > { %p11713_p8 = scmp.lt.s32.totalorder %s11705_s23, %s11705_s23 }
 0x8ed   : > { %p11707_p10 = pnand %p11706_p0, %p14093_p7 }
 0x8ee   : > { %p11714_p4 = por %p11713_p8, %p11712_p6 }
 0x8ef   : > { %p11708_p2 = pneg %p11707_p10 }
 0x8f1   : > { %p11715_p3 = pnand %p11714_p4, %p11708_p2 }
 0x8f3   : > { %11718 = shalt.err (!%p11715_p3)
}
 0x8f4   : > { %s14094_s29 = sld [smem:[#allocation62_spill]]  ;;  %p14095_p12 = pmov %p14093_p7 }
 0x8fa   : > { %s11719_s13 = scalar_lea.hbm %s14094_s29, 128 }
 0x8fb   : > { %p11720_p9 = scmp.ne.s32.totalorder %s14094_s29, %s11719_s13  ;;  %p11725_p13 = scmp.lt.u32.totalorder %s11719_s13, %s14094_s29 }
 0x8fd   : > { %p11721_p11 = pnand %p11720_p9, %p14095_p12 }
 0x8ff   : > { %p11722_p1 = pneg %p11721_p11 }
 0x901   : > { %p11727_p5 = pnand %p11725_p13, %p11722_p1 }
 0x903   : > { %11730 = shalt.err (!%p11727_p5)
}
 0x904   : > { %p14096_p0 = pmov %p14093_p7  ;;  %s14097_s26 = sld [smem:[#allocation63_spill]] }
 0x905   : > { %s8278_s27 = scalar_lea.sflag [#allocation26], %s12378_s15  ;;  %s11731_s25 = scalar_lea.vmem %s8304_s10, 384 }
 0x906   : > { %10408 = dma.vmem_to_hbm [thread:$0]  (%p14096_p0), %s8290_s1, 128, %s14094_s29, [#allocation5]  }
 0x907   : > { %p11732_p7 = scmp.ne.s32.totalorder %s8304_s10, %s11731_s25  ;;  %p14098_p10 = scmp.ne.s32.totalorder %s14040_s30, 0 }
 0x908   : > { %s11860_s23 = smov [#allocation25]  }
 0x909   : > { %p11733_p2 = pnand %p11732_p7, %p14098_p10  ;;  %s11735_s28 = sshll.u32 %s11860_s23, 4  ;;  %s11736_s28 = int_to_ptr.vmem [resolvable:$false] %s11735_s28 }
 0x90a   : > { %s13909_s8 = scalar_lea.hbm %s14097_s26, %s9202_s0  ;;  %s11737_s12 = scalar_lea.vmem %s11736_s28, 768 }
 0x90b   : > { %p11734_p6 = pneg %p11733_p2  ;;  %p11738_p8 = scmp.lt.s32.totalorder %s8304_s10, %s11736_s28 }
 0x90c   : > { %p11739_p4 = scmp.lt.s32.totalorder %s11737_s12, %s11731_s25 }
 0x90e   : > { %p11740_p3 = por %p11739_p4, %p11738_p8 }
 0x910   : > { %p11741_p9 = pnand %p11740_p3, %p11734_p6 }
 0x912   : > { %11744 = shalt.err (!%p11741_p9)
}
 0x913   : > { %s11745_s15 = scalar_lea.hbm %s13909_s8, 384  ;;  %s11749_s13 = scalar_lea.hbm %s14097_s26, 1536 }
 0x914   : > { %p11746_p12 = scmp.ne.s32.totalorder %s13909_s8, %s11745_s15  ;;  %p11750_p13 = scmp.lt.u32.totalorder %s13909_s8, %s14097_s26 }
 0x915   : > { %p11751_p5 = scmp.lt.u32.totalorder %s11749_s13, %s11745_s15  ;;  %p11753_p7 = scmp.lt.u32.totalorder %s11745_s15, %s13909_s8 }
 0x916   : > { %p11747_p11 = pnand %p11746_p12, %p14098_p10 }
 0x917   : > { %p11752_p0 = por %p11751_p5, %p11750_p13 }
 0x918   : > { %p11748_p1 = pneg %p11747_p11 }
 0x919   : > { %p11754_p2 = por %p11753_p7, %p11752_p0 }
 0x91b   : > { %p11755_p6 = pnand %p11754_p2, %p11748_p1 }
 0x91d   : > { %11758 = shalt.err (!%p11755_p6)
}
 0x91e   : > { %10409 = dma.vmem_to_hbm [thread:$0]  (%p14098_p10), %s8304_s10, 384, %s13909_s8, %s8278_s27  }
 0x91f   : > { %p14099_p8 = scmp.eq.s32.totalorder %s11962_s22, 3 }
 0x921   : > { %11808 = dma.done.wait (%p14099_p8), [#allocation5], 128   ;;  %p14100_p4 = pmov %p14099_p8 }
 0x923   : > { %11810 = vsyncadd (%p14100_p4), [#allocation5], 4294967168 }
 0x924 PF: > { %s14101_s4 = sld [smem:[#allocation37_spill]]  ;;  %s14102_s11 = sld [smem:[#allocation42_spill]] }
 0x925   : > { %p10481_p3 = scmp.ge.s32.totalorder %s11829_s21, 2 }
 0x92a   : > { %s8319_s20 = sand.u32 1, %s14101_s4   ;;  %p14103_p9 = scmp.ne.s32.totalorder %s14102_s11, 0 }
 0x92b   : > { %s8320_s9 = scalar_lea.sflag [#allocation26], %s8319_s20 }
 0x92c   : > { %p10455_p12 = pnand %p10481_p3, %p14103_p9 }
 0x92e   : > { %11812 = dma.done.wait (!%p10455_p12), %s8320_s9, 384  }
 0x92f   : > { %11814 = vsyncadd (!%p10455_p12), %s8320_s9, 4294966912  ;;  %s14104_s21 = sld [smem:[#allocation40_spill]]  ;;  %s14105_s30 = sld [smem:[#allocation38_spill]] }
 0x930   : > { %s14106_s20 = sld [smem:[#allocation41_spill]]  ;;  %s14107_s18 = smov %s11821_s19 }
 0x935   : > { %p38_p10 = scmp.ge.s32.totalorder %s14104_s21, 6   ;;  %s14108_s19 = smov %s14105_s30 }
 0x937   :  { %40 = sbr.rel (!%p38_p10) target bundleno = 28 (0x1c), region = 205 }
 0x93e   :  { %8325 = vsyncpa [#allocation4], 1 }
 0x93f   :  { %8327 = vsyncpa [#allocation4 + $0x1], 1 }
 0x940   :  { %8328 = vsyncpa [#allocation7], 1 }
 0x941   :  { %8329 = vsyncpa [#allocation10], 1 }
 0x942   :  { %8330 = vsyncpa [#allocation13], 1 }
 0x943   :  { %8331 = vsyncpa [#allocation16], 1 }
 0x944   :  { %8332 = vsyncpa [#allocation19], 1 }
 0x945   :  { %8334 = vsyncpa [#allocation19 + $0x1], 1 }
 0x946   :  { %8335 = vsyncpa [#allocation22], 1 }
 0x947   :  { %8337 = vsyncpa [#allocation22 + $0x1], 1 }
 0x948   :  { %8338 = vsyncpa [#allocation5], 1 }
 0x949   :  { %8340 = vsyncpa [#allocation5 + $0x1], 1 }
 0x94a   :  { %8341 = vsyncpa [#allocation26], 1 }
 0x94b   :  { %8343 = vsyncpa [#allocation26 + $0x1], 1 }

</bundles_post_ra>
